<compile_context>
chip_gen: v7x
topology: tpu7x:2x2x1
jax: 0.10.0
libtpu: 0.0.40
codegen_flags: <defaults>
</compile_context>

<pallas_src>
import functools

import jax
import jax.numpy as jnp
from jax import lax
from jax.experimental import pallas as pl
from jax.experimental.pallas import tpu as pltpu


# ----------------------------------------------------------------------------
# Pallas kernels
# ----------------------------------------------------------------------------
def _matmul_bias_relu_kernel(x_ref, w_ref, b_ref, o_ref):
    """o = relu(x @ w + b).

    x_ref : (tm, K)     bf16  im2col activation tile
    w_ref : (K, cout)   bf16  folded (BN-scaled) weight, VMEM-resident
    b_ref : (1, cout)   f32   folded BN bias
    o_ref : (tm, cout)  bf16
    """
    y = jnp.dot(x_ref[...], w_ref[...], preferred_element_type=jnp.float32)
    y = y + b_ref[...]
    o_ref[...] = jnp.maximum(y, 0.0).astype(o_ref.dtype)


def conv_as_matmul(patches, w, b, *, tm_cap=512):
    """patches: (M, K) bf16, w: (K, cout) bf16, b: (1, cout) f32 -> (M, cout) bf16.

    Grid is M-tiles only; the weight block index is constant, so the full
    layer weight stays in VMEM for the whole call (fetched once)."""
    m, k = patches.shape
    _, cout = w.shape
    tm = m
    if m > tm_cap and m % tm_cap == 0:
        tm = tm_cap
    grid_m = m // tm
    flops = 2 * m * k * cout
    bytes_accessed = 2 * (m * k + k * cout + m * cout) + 4 * cout
    return pl.pallas_call(
        _matmul_bias_relu_kernel,
        out_shape=jax.ShapeDtypeStruct((m, cout), jnp.bfloat16),
        grid_spec=pltpu.PrefetchScalarGridSpec(
            num_scalar_prefetch=0,
            grid=(grid_m,),
            in_specs=[
                pl.BlockSpec((tm, k), lambda i: (i, 0)),
                pl.BlockSpec((k, cout), lambda i: (0, 0)),   # VMEM-resident
                pl.BlockSpec((1, cout), lambda i: (0, 0)),
            ],
            out_specs=pl.BlockSpec((tm, cout), lambda i: (i, 0)),
        ),
        compiler_params=pltpu.CompilerParams(
            dimension_semantics=("parallel",)),
        cost_estimate=pl.CostEstimate(flops=flops, transcendentals=0,
                                      bytes_accessed=bytes_accessed),
    )(patches, w, b)


def _reduce_quant_kernel(p_ref, w_ref, u_ref, o_ref, *, lo, step, inv_step,
                         nlevels, stochastic, quantize):
    """Fused: reduce-conv matmul + tanh + (optional +u) + hard quantization.

    Operates on a 128-lane-padded latent axis (padded columns sliced off by
    the wrapper); quantizer uses a precomputed 1/step (no vector divide)."""
    z = jnp.dot(p_ref[...], w_ref[...], preferred_element_type=jnp.float32)
    x = jnp.tanh(z)
    if stochastic:
        x = x + u_ref[...]
    if quantize:
        # centers form the uniform grid lo + step*i, i in [0, nlevels)
        idx = jnp.clip(jnp.round((x - lo) * inv_step), 0.0, float(nlevels - 1))
        x = lo + step * idx
    o_ref[...] = x.astype(o_ref.dtype)


def reduce_quant(patches, w_pad, u_pad, *, q_limits, nlevels, stochastic,
                 quantize):
    """patches: (N, 8192) bf16, w_pad: (8192, 128) bf16, u_pad: (N, 128) f32."""
    m, k = patches.shape
    _, cpad = w_pad.shape
    lo, hi = float(q_limits[0]), float(q_limits[1])
    step = (hi - lo) / (nlevels - 1)
    kern = functools.partial(_reduce_quant_kernel, lo=lo, step=step,
                             inv_step=1.0 / step, nlevels=nlevels,
                             stochastic=stochastic, quantize=quantize)
    return pl.pallas_call(
        kern,
        out_shape=jax.ShapeDtypeStruct((m, cpad), jnp.float32),
        grid_spec=pltpu.PrefetchScalarGridSpec(
            num_scalar_prefetch=0,
            grid=(1,),
            in_specs=[
                pl.BlockSpec((m, k), lambda i: (0, 0)),
                pl.BlockSpec((k, cpad), lambda i: (0, 0)),
                pl.BlockSpec((m, cpad), lambda i: (0, 0)),
            ],
            out_specs=pl.BlockSpec((m, cpad), lambda i: (0, 0)),
        ),
        cost_estimate=pl.CostEstimate(flops=2 * m * k * cpad,
                                      transcendentals=m * cpad,
                                      bytes_accessed=2 * (m * k + k * cpad)
                                      + 4 * 2 * m * cpad),
    )(patches, w_pad, u_pad)


# ----------------------------------------------------------------------------
# Glue: im2col prep (plain JAX), parameter setup, forward driver
# ----------------------------------------------------------------------------
def im2col_4x4_s2_p1(x_nhwc):
    """NHWC -> (N*Ho*Wo, 4*4*C) bf16 patches of a 4x4/stride-2/pad-1 conv,
    flattened in (kh, kw, cin) order (matches the HWIO weight flattening)."""
    n, h, w, c = x_nhwc.shape
    ho, wo = h // 2, w // 2
    xp = jnp.pad(x_nhwc, ((0, 0), (1, 1), (1, 1), (0, 0)))
    rows = []
    for di in range(4):
        cols = []
        for dj in range(4):
            sl = lax.slice(
                xp,
                (0, di, dj, 0),
                (n, di + 2 * (ho - 1) + 1, dj + 2 * (wo - 1) + 1, c),
                (1, 2, 2, 1))
            cols.append(sl)                       # (n, ho, wo, c)
        rows.append(jnp.stack(cols, axis=3))      # (n, ho, wo, kw=4, c)
    patches = jnp.stack(rows, axis=3)             # (n, ho, wo, kh=4, kw=4, c)
    return patches.reshape(n * ho * wo, 16 * c).astype(jnp.bfloat16), ho, wo


def init_params(key, n_channel, latent_dim, lane_pad=128):
    """Deterministic synthetic parameters (shapes follow EncoderLSUN.__init__).

    Returns (raw_f32_params_for_reference, folded_bf16_params_for_kernels)."""
    chans = [n_channel, 64, 128, 256, 512]
    eps = 1e-5
    raw, folded = {}, {}
    for li in range(4):
        cin, cout = chans[li], chans[li + 1]
        key, kw_, kg, kb, km, kv = jax.random.split(key, 6)
        w = 0.05 * jax.random.normal(kw_, (4, 4, cin, cout), dtype=jnp.float32)
        if li == 0:
            scale = jnp.ones((cout,), jnp.float32)     # first conv has no BN
            bias = jnp.zeros((cout,), jnp.float32)
        else:
            gamma = 1.0 + 0.1 * jax.random.normal(kg, (cout,), jnp.float32)
            beta = 0.1 * jax.random.normal(kb, (cout,), jnp.float32)
            rmean = 0.1 * jax.random.normal(km, (cout,), jnp.float32)
            rvar = 1.0 + 0.1 * jnp.abs(
                jax.random.normal(kv, (cout,), jnp.float32))
            s = gamma / jnp.sqrt(rvar + eps)
            scale, bias = s, beta - rmean * s
        raw[f"w{li}"] = w
        raw[f"scale{li}"] = scale
        raw[f"bias{li}"] = bias
        folded[f"w{li}"] = (w * scale.reshape(1, 1, 1, cout)).reshape(
            16 * cin, cout).astype(jnp.bfloat16)
        folded[f"b{li}"] = bias.reshape(1, cout)
    key, kr = jax.random.split(key)
    wr = 0.02 * jax.random.normal(kr, (4 * 4 * 512, latent_dim), jnp.float32)
    raw["wr"] = wr
    wr_pad = jnp.zeros((4 * 4 * 512, lane_pad), jnp.float32)
    wr_pad = wr_pad.at[:, :latent_dim].set(wr)          # lane-dense padded
    folded["wr"] = wr_pad.astype(jnp.bfloat16)
    return raw, folded


def encoder_lsun_forward(folded, x_nchw, u, *, L, q_limits, latent_dim,
                         stochastic=True, quantize=True):
    x = jnp.transpose(x_nchw, (0, 2, 3, 1)).astype(jnp.bfloat16)   # NCHW->NHWC
    chans = [64, 128, 256, 512]
    n = x.shape[0]
    for li in range(4):
        patches, ho, wo = im2col_4x4_s2_p1(x)
        y = conv_as_matmul(patches, folded[f"w{li}"], folded[f"b{li}"])
        x = y.reshape(n, ho, wo, chans[li])              # free row-major reshape
    assert x.shape[1] == 4 and x.shape[2] == 4, \
        "input_size must reduce to 4x4 before the 'reduce' conv"
    p = x.reshape(n, 4 * 4 * 512)          # 4x4 'valid' reduce conv == flatten
    cpad = folded["wr"].shape[1]
    u_pad = jnp.pad(u.astype(jnp.float32),
                    ((0, 0), (0, cpad - latent_dim)))
    z = reduce_quant(p, folded["wr"], u_pad, q_limits=q_limits, nlevels=L,
                     stochastic=stochastic, quantize=quantize)
    return z[:, :latent_dim]               # (N, latent_dim) == x.view(-1, latent)


def reference_forward(raw, x_nchw, u, *, L, q_limits, stochastic=True,
                      quantize=True):
    """Pure-JAX fp32 reference of the same forward (for tolerance checking)."""
    x = jnp.transpose(x_nchw, (0, 2, 3, 1))
    for li in range(4):
        x = lax.conv_general_dilated(
            x, raw[f"w{li}"], window_strides=(2, 2), padding=((1, 1), (1, 1)),
            dimension_numbers=("NHWC", "HWIO", "NHWC"))
        x = x * raw[f"scale{li}"] + raw[f"bias{li}"]
        x = jnp.maximum(x, 0.0)
    n = x.shape[0]
    z = jnp.tanh(x.reshape(n, -1) @ raw["wr"])
    if stochastic:
        z = z + u
    if quantize:
        lo, hi = q_limits
        step = (hi - lo) / (L - 1)
        idx = jnp.clip(jnp.round((z - lo) / step), 0.0, float(L - 1))
        z = lo + step * idx
    return z


def generate_centers(L, q_limits):
    lo, hi = q_limits
    return [lo + i * (hi - lo) / (L - 1) for i in range(L)]


if __name__ == "__main__":
    # input_size must be 64 so four stride-2 convs + the 4x4 reduce conv fit.
    n_channel = 3
    latent_dim = 8
    input_size = 64
    batch = 2
    L = 5
    q_limits = (-2.0, 2.0)

    key = jax.random.PRNGKey(0)
    kx, ku, kp = jax.random.split(key, 3)
    x = jax.random.normal(kx, (batch, n_channel, input_size, input_size),
                          dtype=jnp.float32)
    alpha = (q_limits[1] - q_limits[0]) / (L - 1)
    u = jax.random.uniform(ku, (batch, latent_dim), dtype=jnp.float32,
                           minval=-alpha / 2, maxval=alpha / 2)
    raw, folded = init_params(kp, n_channel, latent_dim)

    fwd = jax.jit(functools.partial(
        encoder_lsun_forward, L=L, q_limits=q_limits, latent_dim=latent_dim,
        stochastic=True, quantize=True))
    out = jax.block_until_ready(fwd(folded, x, u))
    assert out.shape == (batch, latent_dim), out.shape

    # 1) quantized output must lie exactly on the centers grid
    centers = jnp.asarray(generate_centers(L, q_limits), jnp.float32)
    assert bool(jnp.all(
        jnp.min(jnp.abs(out[..., None] - centers), axis=-1) == 0.0))

    # 2) pre-quantization path vs fp32 XLA reference (bf16-MXU tolerance)
    fwd_soft = jax.jit(functools.partial(
        encoder_lsun_forward, L=L, q_limits=q_limits, latent_dim=latent_dim,
        stochastic=True, quantize=False))
    got = jax.block_until_ready(fwd_soft(folded, x, u))
    ref = reference_forward(raw, x, u, L=L, q_limits=q_limits,
                            stochastic=True, quantize=False)
    err = float(jnp.max(jnp.abs(got - ref)))
    assert err < 0.1, f"max abs error vs fp32 reference: {err}"

    print("KERNEL_OK")
</pallas_src>

<mosaic_0001>
module attributes {stable_mosaic.version = 11 : i64} {
  func.func @_matmul_bias_relu_kernel(%arg0: i32, %arg1: memref<512x48xbf16, #tpu.memory_space<vmem>>, %arg2: memref<48x64xbf16, #tpu.memory_space<vmem>>, %arg3: memref<1x64xf32, #tpu.memory_space<vmem>>, %arg4: memref<512x64xbf16, #tpu.memory_space<vmem>>) attributes {dimension_semantics = [#tpu.dimension_semantics<parallel>], iteration_bounds = array<i64: 4>, scalar_prefetch = 0 : i64, scratch_operands = 0 : i64, tpu.core_type = #tpu.core_type<tc>, window_params = [{transform_indices = @transform_0, window_bounds = array<i64: 512, 48>}, {pipeline_mode = #tpu.pipeline_mode<synchronous>, transform_indices = @transform_1, window_bounds = array<i64: 48, 64>}, {pipeline_mode = #tpu.pipeline_mode<synchronous>, transform_indices = @transform_2, window_bounds = array<i64: 1, 64>}, {transform_indices = @transform_3, window_bounds = array<i64: 512, 64>}]} {
    %c0 = arith.constant 0 : index
    %c0_0 = arith.constant 0 : index
    %0 = vector.load %arg1[%c0, %c0_0] : memref<512x48xbf16, #tpu.memory_space<vmem>>, vector<512x48xbf16>
    %c0_1 = arith.constant 0 : index
    %c0_2 = arith.constant 0 : index
    %1 = vector.load %arg2[%c0_1, %c0_2] : memref<48x64xbf16, #tpu.memory_space<vmem>>, vector<48x64xbf16>
    %cst = arith.constant dense<0.000000e+00> : vector<512x64xf32>
    %2 = tpu.matmul %0, %1, %cst {dimension_numbers = #tpu.dot_dimension_numbers<[1], [0], [0], [1], [0, 0, 1, 1], [], []>} : vector<512x48xbf16>, vector<48x64xbf16>, vector<512x64xf32> -> vector<512x64xf32>
    %c0_3 = arith.constant 0 : index
    %c0_4 = arith.constant 0 : index
    %3 = vector.load %arg3[%c0_3, %c0_4] : memref<1x64xf32, #tpu.memory_space<vmem>>, vector<1x64xf32>
    %4 = vector.broadcast %3 : vector<1x64xf32> to vector<512x64xf32>
    %5 = arith.addf %2, %4 : vector<512x64xf32>
    %cst_5 = arith.constant 0.000000e+00 : f32
    %6 = vector.broadcast %cst_5 : f32 to vector<512x64xf32>
    %7 = arith.maximumf %5, %6 : vector<512x64xf32>
    %8 = arith.truncf %7 : vector<512x64xf32> to vector<512x64xbf16>
    %c0_6 = arith.constant 0 : index
    %c0_7 = arith.constant 0 : index
    %9 = vector.load %arg4[%c0_6, %c0_7] : memref<512x64xbf16, #tpu.memory_space<vmem>>, vector<512x64xbf16>
    tpu.vector_store %arg4[%c0_6, %c0_7], %8 {strides = array<i32>} : memref<512x64xbf16, #tpu.memory_space<vmem>>, vector<512x64xbf16>,
    return
  }
  func.func @transform_0(%arg0: i32) -> (i32, i32) {
    %c0_i32 = arith.constant 0 : i32
    %c0_i32_0 = arith.constant 0 : i32
    return %arg0, %c0_i32 : i32, i32
  }
  func.func @transform_1(%arg0: i32) -> (i32, i32) {
    %c0_i32 = arith.constant 0 : i32
    %c0_i32_0 = arith.constant 0 : i32
    %c0_i32_1 = arith.constant 0 : i32
    return %c0_i32, %c0_i32_0 : i32, i32
  }
  func.func @transform_2(%arg0: i32) -> (i32, i32) {
    %c0_i32 = arith.constant 0 : i32
    %c0_i32_0 = arith.constant 0 : i32
    %c0_i32_1 = arith.constant 0 : i32
    return %c0_i32, %c0_i32_0 : i32, i32
  }
  func.func @transform_3(%arg0: i32) -> (i32, i32) {
    %c0_i32 = arith.constant 0 : i32
    %c0_i32_0 = arith.constant 0 : i32
    return %arg0, %c0_i32 : i32, i32
  }
}

module attributes {stable_mosaic.version = 11 : i64} {
  func.func @_matmul_bias_relu_kernel(%arg0: i32, %arg1: memref<512x1024xbf16, #tpu.memory_space<vmem>>, %arg2: memref<1024x128xbf16, #tpu.memory_space<vmem>>, %arg3: memref<1x128xf32, #tpu.memory_space<vmem>>, %arg4: memref<512x128xbf16, #tpu.memory_space<vmem>>) attributes {dimension_semantics = [#tpu.dimension_semantics<parallel>], iteration_bounds = array<i64: 1>, scalar_prefetch = 0 : i64, scratch_operands = 0 : i64, tpu.core_type = #tpu.core_type<tc>, window_params = [{transform_indices = @transform_0, window_bounds = array<i64: 512, 1024>}, {pipeline_mode = #tpu.pipeline_mode<synchronous>, transform_indices = @transform_1, window_bounds = array<i64: 1024, 128>}, {pipeline_mode = #tpu.pipeline_mode<synchronous>, transform_indices = @transform_2, window_bounds = array<i64: 1, 128>}, {transform_indices = @transform_3, window_bounds = array<i64: 512, 128>}]} {
    %c0 = arith.constant 0 : index
    %c0_0 = arith.constant 0 : index
    %0 = vector.load %arg1[%c0, %c0_0] : memref<512x1024xbf16, #tpu.memory_space<vmem>>, vector<512x1024xbf16>
    %c0_1 = arith.constant 0 : index
    %c0_2 = arith.constant 0 : index
    %1 = vector.load %arg2[%c0_1, %c0_2] : memref<1024x128xbf16, #tpu.memory_space<vmem>>, vector<1024x128xbf16>
    %cst = arith.constant dense<0.000000e+00> : vector<512x128xf32>
    %2 = tpu.matmul %0, %1, %cst {dimension_numbers = #tpu.dot_dimension_numbers<[1], [0], [0], [1], [0, 0, 1, 1], [], []>} : vector<512x1024xbf16>, vector<1024x128xbf16>, vector<512x128xf32> -> vector<512x128xf32>
    %c0_3 = arith.constant 0 : index
    %c0_4 = arith.constant 0 : index
    %3 = vector.load %arg3[%c0_3, %c0_4] : memref<1x128xf32, #tpu.memory_space<vmem>>, vector<1x128xf32>
    %4 = vector.broadcast %3 : vector<1x128xf32> to vector<512x128xf32>
    %5 = arith.addf %2, %4 : vector<512x128xf32>
    %cst_5 = arith.constant 0.000000e+00 : f32
    %6 = vector.broadcast %cst_5 : f32 to vector<512x128xf32>
    %7 = arith.maximumf %5, %6 : vector<512x128xf32>
    %8 = arith.truncf %7 : vector<512x128xf32> to vector<512x128xbf16>
    %c0_6 = arith.constant 0 : index
    %c0_7 = arith.constant 0 : index
    %9 = vector.load %arg4[%c0_6, %c0_7] : memref<512x128xbf16, #tpu.memory_space<vmem>>, vector<512x128xbf16>
    tpu.vector_store %arg4[%c0_6, %c0_7], %8 {strides = array<i32>} : memref<512x128xbf16, #tpu.memory_space<vmem>>, vector<512x128xbf16>,
    return
  }
  func.func @transform_0(%arg0: i32) -> (i32, i32) {
    %c0_i32 = arith.constant 0 : i32
    %c0_i32_0 = arith.constant 0 : i32
    return %arg0, %c0_i32 : i32, i32
  }
  func.func @transform_1(%arg0: i32) -> (i32, i32) {
    %c0_i32 = arith.constant 0 : i32
    %c0_i32_0 = arith.constant 0 : i32
    %c0_i32_1 = arith.constant 0 : i32
    return %c0_i32, %c0_i32_0 : i32, i32
  }
  func.func @transform_2(%arg0: i32) -> (i32, i32) {
    %c0_i32 = arith.constant 0 : i32
    %c0_i32_0 = arith.constant 0 : i32
    %c0_i32_1 = arith.constant 0 : i32
    return %c0_i32, %c0_i32_0 : i32, i32
  }
  func.func @transform_3(%arg0: i32) -> (i32, i32) {
    %c0_i32 = arith.constant 0 : i32
    %c0_i32_0 = arith.constant 0 : i32
    return %arg0, %c0_i32 : i32, i32
  }
}

module attributes {stable_mosaic.version = 11 : i64} {
  func.func @_matmul_bias_relu_kernel(%arg0: i32, %arg1: memref<128x2048xbf16, #tpu.memory_space<vmem>>, %arg2: memref<2048x256xbf16, #tpu.memory_space<vmem>>, %arg3: memref<1x256xf32, #tpu.memory_space<vmem>>, %arg4: memref<128x256xbf16, #tpu.memory_space<vmem>>) attributes {dimension_semantics = [#tpu.dimension_semantics<parallel>], iteration_bounds = array<i64: 1>, scalar_prefetch = 0 : i64, scratch_operands = 0 : i64, tpu.core_type = #tpu.core_type<tc>, window_params = [{transform_indices = @transform_0, window_bounds = array<i64: 128, 2048>}, {pipeline_mode = #tpu.pipeline_mode<synchronous>, transform_indices = @transform_1, window_bounds = array<i64: 2048, 256>}, {pipeline_mode = #tpu.pipeline_mode<synchronous>, transform_indices = @transform_2, window_bounds = array<i64: 1, 256>}, {transform_indices = @transform_3, window_bounds = array<i64: 128, 256>}]} {
    %c0 = arith.constant 0 : index
    %c0_0 = arith.constant 0 : index
    %0 = vector.load %arg1[%c0, %c0_0] : memref<128x2048xbf16, #tpu.memory_space<vmem>>, vector<128x2048xbf16>
    %c0_1 = arith.constant 0 : index
    %c0_2 = arith.constant 0 : index
    %1 = vector.load %arg2[%c0_1, %c0_2] : memref<2048x256xbf16, #tpu.memory_space<vmem>>, vector<2048x256xbf16>
    %cst = arith.constant dense<0.000000e+00> : vector<128x256xf32>
    %2 = tpu.matmul %0, %1, %cst {dimension_numbers = #tpu.dot_dimension_numbers<[1], [0], [0], [1], [0, 0, 1, 1], [], []>} : vector<128x2048xbf16>, vector<2048x256xbf16>, vector<128x256xf32> -> vector<128x256xf32>
    %c0_3 = arith.constant 0 : index
    %c0_4 = arith.constant 0 : index
    %3 = vector.load %arg3[%c0_3, %c0_4] : memref<1x256xf32, #tpu.memory_space<vmem>>, vector<1x256xf32>
    %4 = vector.broadcast %3 : vector<1x256xf32> to vector<128x256xf32>
    %5 = arith.addf %2, %4 : vector<128x256xf32>
    %cst_5 = arith.constant 0.000000e+00 : f32
    %6 = vector.broadcast %cst_5 : f32 to vector<128x256xf32>
    %7 = arith.maximumf %5, %6 : vector<128x256xf32>
    %8 = arith.truncf %7 : vector<128x256xf32> to vector<128x256xbf16>
    %c0_6 = arith.constant 0 : index
    %c0_7 = arith.constant 0 : index
    %9 = vector.load %arg4[%c0_6, %c0_7] : memref<128x256xbf16, #tpu.memory_space<vmem>>, vector<128x256xbf16>
    tpu.vector_store %arg4[%c0_6, %c0_7], %8 {strides = array<i32>} : memref<128x256xbf16, #tpu.memory_space<vmem>>, vector<128x256xbf16>,
    return
  }
  func.func @transform_0(%arg0: i32) -> (i32, i32) {
    %c0_i32 = arith.constant 0 : i32
    %c0_i32_0 = arith.constant 0 : i32
    return %arg0, %c0_i32 : i32, i32
  }
  func.func @transform_1(%arg0: i32) -> (i32, i32) {
    %c0_i32 = arith.constant 0 : i32
    %c0_i32_0 = arith.constant 0 : i32
    %c0_i32_1 = arith.constant 0 : i32
    return %c0_i32, %c0_i32_0 : i32, i32
  }
  func.func @transform_2(%arg0: i32) -> (i32, i32) {
    %c0_i32 = arith.constant 0 : i32
    %c0_i32_0 = arith.constant 0 : i32
    %c0_i32_1 = arith.constant 0 : i32
    return %c0_i32, %c0_i32_0 : i32, i32
  }
  func.func @transform_3(%arg0: i32) -> (i32, i32) {
    %c0_i32 = arith.constant 0 : i32
    %c0_i32_0 = arith.constant 0 : i32
    return %arg0, %c0_i32 : i32, i32
  }
}

module attributes {stable_mosaic.version = 11 : i64} {
  func.func @_matmul_bias_relu_kernel(%arg0: i32, %arg1: memref<32x4096xbf16, #tpu.memory_space<vmem>>, %arg2: memref<4096x512xbf16, #tpu.memory_space<vmem>>, %arg3: memref<1x512xf32, #tpu.memory_space<vmem>>, %arg4: memref<32x512xbf16, #tpu.memory_space<vmem>>) attributes {dimension_semantics = [#tpu.dimension_semantics<parallel>], iteration_bounds = array<i64: 1>, scalar_prefetch = 0 : i64, scratch_operands = 0 : i64, tpu.core_type = #tpu.core_type<tc>, window_params = [{transform_indices = @transform_0, window_bounds = array<i64: 32, 4096>}, {pipeline_mode = #tpu.pipeline_mode<synchronous>, transform_indices = @transform_1, window_bounds = array<i64: 4096, 512>}, {pipeline_mode = #tpu.pipeline_mode<synchronous>, transform_indices = @transform_2, window_bounds = array<i64: 1, 512>}, {transform_indices = @transform_3, window_bounds = array<i64: 32, 512>}]} {
    %c0 = arith.constant 0 : index
    %c0_0 = arith.constant 0 : index
    %0 = vector.load %arg1[%c0, %c0_0] : memref<32x4096xbf16, #tpu.memory_space<vmem>>, vector<32x4096xbf16>
    %c0_1 = arith.constant 0 : index
    %c0_2 = arith.constant 0 : index
    %1 = vector.load %arg2[%c0_1, %c0_2] : memref<4096x512xbf16, #tpu.memory_space<vmem>>, vector<4096x512xbf16>
    %cst = arith.constant dense<0.000000e+00> : vector<32x512xf32>
    %2 = tpu.matmul %0, %1, %cst {dimension_numbers = #tpu.dot_dimension_numbers<[1], [0], [0], [1], [0, 0, 1, 1], [], []>} : vector<32x4096xbf16>, vector<4096x512xbf16>, vector<32x512xf32> -> vector<32x512xf32>
    %c0_3 = arith.constant 0 : index
    %c0_4 = arith.constant 0 : index
    %3 = vector.load %arg3[%c0_3, %c0_4] : memref<1x512xf32, #tpu.memory_space<vmem>>, vector<1x512xf32>
    %4 = vector.broadcast %3 : vector<1x512xf32> to vector<32x512xf32>
    %5 = arith.addf %2, %4 : vector<32x512xf32>
    %cst_5 = arith.constant 0.000000e+00 : f32
    %6 = vector.broadcast %cst_5 : f32 to vector<32x512xf32>
    %7 = arith.maximumf %5, %6 : vector<32x512xf32>
    %8 = arith.truncf %7 : vector<32x512xf32> to vector<32x512xbf16>
    %c0_6 = arith.constant 0 : index
    %c0_7 = arith.constant 0 : index
    %9 = vector.load %arg4[%c0_6, %c0_7] : memref<32x512xbf16, #tpu.memory_space<vmem>>, vector<32x512xbf16>
    tpu.vector_store %arg4[%c0_6, %c0_7], %8 {strides = array<i32>} : memref<32x512xbf16, #tpu.memory_space<vmem>>, vector<32x512xbf16>,
    return
  }
  func.func @transform_0(%arg0: i32) -> (i32, i32) {
    %c0_i32 = arith.constant 0 : i32
    %c0_i32_0 = arith.constant 0 : i32
    return %arg0, %c0_i32 : i32, i32
  }
  func.func @transform_1(%arg0: i32) -> (i32, i32) {
    %c0_i32 = arith.constant 0 : i32
    %c0_i32_0 = arith.constant 0 : i32
    %c0_i32_1 = arith.constant 0 : i32
    return %c0_i32, %c0_i32_0 : i32, i32
  }
  func.func @transform_2(%arg0: i32) -> (i32, i32) {
    %c0_i32 = arith.constant 0 : i32
    %c0_i32_0 = arith.constant 0 : i32
    %c0_i32_1 = arith.constant 0 : i32
    return %c0_i32, %c0_i32_0 : i32, i32
  }
  func.func @transform_3(%arg0: i32) -> (i32, i32) {
    %c0_i32 = arith.constant 0 : i32
    %c0_i32_0 = arith.constant 0 : i32
    return %arg0, %c0_i32 : i32, i32
  }
}

module attributes {stable_mosaic.version = 11 : i64} {
  func.func @_reduce_quant_kernel(%arg0: i32, %arg1: memref<2x8192xbf16, #tpu.memory_space<vmem>>, %arg2: memref<8192x128xbf16, #tpu.memory_space<vmem>>, %arg3: memref<2x128xf32, #tpu.memory_space<vmem>>, %arg4: memref<2x128xf32, #tpu.memory_space<vmem>>) attributes {dimension_semantics = [#tpu.dimension_semantics<arbitrary>], iteration_bounds = array<i64: 1>, scalar_prefetch = 0 : i64, scratch_operands = 0 : i64, tpu.core_type = #tpu.core_type<tc>, window_params = [{pipeline_mode = #tpu.pipeline_mode<synchronous>, transform_indices = @transform_0, window_bounds = array<i64: 2, 8192>}, {pipeline_mode = #tpu.pipeline_mode<synchronous>, transform_indices = @transform_1, window_bounds = array<i64: 8192, 128>}, {pipeline_mode = #tpu.pipeline_mode<synchronous>, transform_indices = @transform_2, window_bounds = array<i64: 2, 128>}, {pipeline_mode = #tpu.pipeline_mode<synchronous>, transform_indices = @transform_3, window_bounds = array<i64: 2, 128>}]} {
    %c0 = arith.constant 0 : index
    %c0_0 = arith.constant 0 : index
    %0 = vector.load %arg1[%c0, %c0_0] : memref<2x8192xbf16, #tpu.memory_space<vmem>>, vector<2x8192xbf16>
    %c0_1 = arith.constant 0 : index
    %c0_2 = arith.constant 0 : index
    %1 = vector.load %arg2[%c0_1, %c0_2] : memref<8192x128xbf16, #tpu.memory_space<vmem>>, vector<8192x128xbf16>
    %cst = arith.constant dense<0.000000e+00> : vector<2x128xf32>
    %2 = tpu.matmul %0, %1, %cst {dimension_numbers = #tpu.dot_dimension_numbers<[1], [0], [0], [1], [0, 0, 1, 1], [], []>} : vector<2x8192xbf16>, vector<8192x128xbf16>, vector<2x128xf32> -> vector<2x128xf32>
    %3 = math.tanh %2 : vector<2x128xf32>
    %c0_3 = arith.constant 0 : index
    %c0_4 = arith.constant 0 : index
    %4 = vector.load %arg3[%c0_3, %c0_4] : memref<2x128xf32, #tpu.memory_space<vmem>>, vector<2x128xf32>
    %5 = arith.addf %3, %4 : vector<2x128xf32>
    %cst_5 = arith.constant -2.000000e+00 : f32
    %6 = vector.broadcast %cst_5 : f32 to vector<2x128xf32>
    %7 = arith.subf %5, %6 : vector<2x128xf32>
    %cst_6 = arith.constant 1.000000e+00 : f32
    %8 = vector.broadcast %cst_6 : f32 to vector<2x128xf32>
    %9 = arith.mulf %7, %8 : vector<2x128xf32>
    %10 = math.roundeven %9 : vector<2x128xf32>
    %cst_7 = arith.constant 0.000000e+00 : f32
    %cst_8 = arith.constant 4.000000e+00 : f32
    %11 = vector.broadcast %cst_7 : f32 to vector<2x128xf32>
    %12 = arith.maximumf %11, %10 : vector<2x128xf32>
    %13 = vector.broadcast %cst_8 : f32 to vector<2x128xf32>
    %14 = arith.minimumf %13, %12 : vector<2x128xf32>
    %cst_9 = arith.constant 1.000000e+00 : f32
    %15 = vector.broadcast %cst_9 : f32 to vector<2x128xf32>
    %16 = arith.mulf %15, %14 : vector<2x128xf32>
    %cst_10 = arith.constant -2.000000e+00 : f32
    %17 = vector.broadcast %cst_10 : f32 to vector<2x128xf32>
    %18 = arith.addf %17, %16 : vector<2x128xf32>
    %c0_11 = arith.constant 0 : index
    %c0_12 = arith.constant 0 : index
    %19 = vector.load %arg4[%c0_11, %c0_12] : memref<2x128xf32, #tpu.memory_space<vmem>>, vector<2x128xf32>
    tpu.vector_store %arg4[%c0_11, %c0_12], %18 {strides = array<i32>} : memref<2x128xf32, #tpu.memory_space<vmem>>, vector<2x128xf32>,
    return
  }
  func.func @transform_0(%arg0: i32) -> (i32, i32) {
    %c0_i32 = arith.constant 0 : i32
    %c0_i32_0 = arith.constant 0 : i32
    %c0_i32_1 = arith.constant 0 : i32
    return %c0_i32, %c0_i32_0 : i32, i32
  }
  func.func @transform_1(%arg0: i32) -> (i32, i32) {
    %c0_i32 = arith.constant 0 : i32
    %c0_i32_0 = arith.constant 0 : i32
    %c0_i32_1 = arith.constant 0 : i32
    return %c0_i32, %c0_i32_0 : i32, i32
  }
  func.func @transform_2(%arg0: i32) -> (i32, i32) {
    %c0_i32 = arith.constant 0 : i32
    %c0_i32_0 = arith.constant 0 : i32
    %c0_i32_1 = arith.constant 0 : i32
    return %c0_i32, %c0_i32_0 : i32, i32
  }
  func.func @transform_3(%arg0: i32) -> (i32, i32) {
    %c0_i32 = arith.constant 0 : i32
    %c0_i32_0 = arith.constant 0 : i32
    %c0_i32_1 = arith.constant 0 : i32
    return %c0_i32, %c0_i32_0 : i32, i32
  }
}

</mosaic_0001>

<bundles_post_ra>
// kernel: encoder_lsun_forward.5
= control target key start
LH: loop header
LB: loop body
LE: loop exit
PB: predicated region body
PF: predicated region fallthrough
CT: control target
= control target key end

     0   :  { %s1646_s12 = smov 0   ;;  %s1944_s0 = inlined_call_operand.vmem [shape: bf16[2048,48], index: 0, kind: input, shape index: {}]   ;;  %s1945_s1 = inlined_call_operand.vmem [shape: bf16[48,64], index: 1, kind: input, shape index: {}]   ;;  %s1946_s2 = inlined_call_operand.vmem [shape: f32[1,64], index: 2, kind: input, shape index: {}]   ;;  %s1947_s3 = inlined_call_operand.vmem [shape: bf16[2048,64], index: 3, kind: output, shape index: {}]  }
   0x1 LB: > { %s1257_s13 = sadd.s32 4294967295, %s1624_s12   ;;  %p1261_p0 = scmp.ge.s32.totalorder %s1624_s12, 1  ;;  %s1624_s12 = sphi %s1646_s12, %s13_s12  }
   0x2   : > { %p138_p1 = scmp.lt.s32.totalorder %s1624_s12, 5 }
   0x4   : > { %p139_p2 = pnand %p1261_p0, %p138_p1 }
   0x5   : > { %v1583_v0 = vld [vmem:[%s1945_s1] sm:$0xff] (!%p139_p2)   ;;  %s1262_s16 = sshll.u32 (!%p139_p2), %s1257_s13, 6  ;;  %v1584_v1 = vld [vmem:[%s1945_s1 + $0x8] sm:$0xff] (!%p139_p2)   ;;  %v1585_v2 = vld [vmem:[%s1945_s1 + $0x10] sm:$0xff] (!%p139_p2)   ;;  %vm430_vm0 = vcmask (!%p139_p2), 392192   ;;  %vm1136_vm1 = vcmask (!%p139_p2), 519168  }
   0x6   : > { %142 = sbr.rel (%p139_p2) target bundleno = 297 (0x129), region = 32  ;;  %p163_p3 = scmp.lt.s32.totalorder (!%p139_p2), %s1262_s16, 255  ;;  %1499 = vmatprep.subr.bf16.mxu0 (!%p139_p2), %v1583_v0  ;;  %1569 = vmatprep.subr.bf16.mxu1 (!%p139_p2), %v1583_v0  ;;  %v1740_v35 = vld [vmem:[%s1946_s2] ss:$0 sm:$0xff] (!%p139_p2) }
   0x7   : > { %1500 = vmatpush3.bf16.msra.mxu0 (!%p139_p2), %v1583_v0  ;;  %1572 = vmatpush3.bf16.msra.mxu1 (!%p139_p2), %v1583_v0 }
   0x8   : > { %1501 = vmatprep.subr.bf16.mxu0 (!%p139_p2), %v1584_v1  ;;  %1570 = vmatprep.subr.bf16.mxu1 (!%p139_p2), %v1584_v1 }
   0xb   : > { %1502 = vmatpush3.bf16.msra.mxu0 (!%p139_p2), %v1584_v1  ;;  %1573 = vmatpush3.bf16.msra.mxu1 (!%p139_p2), %v1584_v1 }
   0xc   : > { %1503 = vmatprep.subr.bf16.mxu0 (!%p139_p2), %v1585_v2  ;;  %1571 = vmatprep.subr.bf16.mxu1 (!%p139_p2), %v1585_v2 }
   0xd   : > { %s1949_s16 = smov (!%p163_p3, %s1262_s16), 255 }
   0xe   : > { %s1263_s21 = sshll.u32 %s1949_s16, 2 }
   0xf   : > { %s1671_s24 = scalar_lea.vmem %s1944_s0, %s1263_s21  ;;  %1504 = vmatpush3.bf16.msra.mxu0 %v1585_v2  ;;  %1574 = vmatpush3.bf16.msra.mxu1 %v1585_v2  ;;  %s1753_s29 = scalar_lea.vmem %s1947_s3, %s1263_s21 }
  0x10   : > { %v1586_v3 = vld [vmem:[%s1671_s24] sm:$0xff]   ;;  %v1588_v5 = vld [vmem:[%s1671_s24 + $0x8] sm:$0xff]   ;;  %v1590_v7 = vld [vmem:[%s1671_s24 + $0x10] sm:$0xff]  }
  0x11   : > { %v1587_v4 = vld [vmem:[%s1671_s24 + $0x80] sm:$0xff]   ;;  %1505 = vmatprep.mubr.msk.bf16.mxu0 %vm430_vm0, %v1586_v3  ;;  %v1589_v6 = vld [vmem:[%s1671_s24 + $0x88] sm:$0xff]   ;;  %v1591_v8 = vld [vmem:[%s1671_s24 + $0x90] sm:$0xff]  }
  0x12   : > { %1537 = vmatprep.mubr.msk.bf16.mxu1 %vm430_vm0, %v1587_v4  ;;  %1506 = vmatmul.mubr.msk.bf16.vlgmr.msra.gmra.mrb[0].mxu0 %vm430_vm0, %v1588_v5  ;;  %v1592_v9 = vld [vmem:[%s1671_s24 + $0x18] sm:$0xff]   ;;  %v1594_v11 = vld [vmem:[%s1671_s24 + $0x20] sm:$0xff]   ;;  %v1596_v13 = vld [vmem:[%s1671_s24 + $0x28] sm:$0xff]  }
  0x13   : > { %1538 = vmatmul.mubr.msk.bf16.vlgmr.msra.gmra.mrb[0].mxu1 %vm430_vm0, %v1589_v6  ;;  %1509 = vmatprep.mubr.msk.bf16.mxu0 %vm430_vm0, %v1590_v7  ;;  %v1593_v10 = vld [vmem:[%s1671_s24 + $0x98] sm:$0xff]   ;;  %v1595_v12 = vld [vmem:[%s1671_s24 + $0xa0] sm:$0xff]   ;;  %v1597_v14 = vld [vmem:[%s1671_s24 + $0xa8] sm:$0xff]  }
  0x14   : > { %1541 = vmatprep.mubr.msk.bf16.mxu1 %vm430_vm0, %v1591_v8  ;;  %v1598_v15 = vld [vmem:[%s1671_s24 + $0x30] sm:$0xff]   ;;  %v1600_v17 = vld [vmem:[%s1671_s24 + $0x38] sm:$0xff]   ;;  %v1602_v19 = vld [vmem:[%s1671_s24 + $0x40] sm:$0xff]  }
  0x15   : > { %v1599_v16 = vld [vmem:[%s1671_s24 + $0xb0] sm:$0xff]   ;;  %v1601_v18 = vld [vmem:[%s1671_s24 + $0xb8] sm:$0xff]   ;;  %v1603_v20 = vld [vmem:[%s1671_s24 + $0xc0] sm:$0xff]  }
  0x16   : > { %v1604_v21 = vld [vmem:[%s1671_s24 + $0x48] sm:$0xff]   ;;  %v1606_v23 = vld [vmem:[%s1671_s24 + $0x50] sm:$0xff]   ;;  %v1608_v25 = vld [vmem:[%s1671_s24 + $0x58] sm:$0xff]  }
  0x17   : > { %v1605_v22 = vld [vmem:[%s1671_s24 + $0xc8] sm:$0xff]   ;;  %v1607_v24 = vld [vmem:[%s1671_s24 + $0xd0] sm:$0xff]   ;;  %v1609_v26 = vld [vmem:[%s1671_s24 + $0xd8] sm:$0xff]  }
  0x18   : > { %v1610_v27 = vld [vmem:[%s1671_s24 + $0x60] sm:$0xff]   ;;  %v1612_v29 = vld [vmem:[%s1671_s24 + $0x68] sm:$0xff]   ;;  %v1614_v31 = vld [vmem:[%s1671_s24 + $0x70] sm:$0xff]  }
  0x19   : > { %v1611_v28 = vld [vmem:[%s1671_s24 + $0xe0] sm:$0xff]   ;;  %v1613_v30 = vld [vmem:[%s1671_s24 + $0xe8] sm:$0xff]   ;;  %v1615_v32 = vld [vmem:[%s1671_s24 + $0xf0] sm:$0xff]  }
  0x1a   : > { %1510 = vmatmul.mubr.msk.bf16.gmra.mrb[4].mxu0 %vm430_vm0, %v1592_v9  ;;  %v1616_v33 = vld [vmem:[%s1671_s24 + $0x78] sm:$0xff]  }
  0x1b   : > { %1542 = vmatmul.mubr.msk.bf16.gmra.mrb[4].mxu1 %vm430_vm0, %v1593_v10  ;;  %1513 = vmatprep.mubr.msk.bf16.mxu0 %vm430_vm0, %v1594_v11  ;;  %v1617_v34 = vld [vmem:[%s1671_s24 + $0xf8] sm:$0xff]  }
  0x1c   : > { %1545 = vmatprep.mubr.msk.bf16.mxu1 %vm430_vm0, %v1595_v12 }
  0x22   : > { %1514 = vmatmul.mubr.msk.bf16.gmra.mrb[8].mxu0 %vm430_vm0, %v1596_v13 }
  0x23   : > { %1546 = vmatmul.mubr.msk.bf16.gmra.mrb[8].mxu1 %vm430_vm0, %v1597_v14  ;;  %1517 = vmatprep.mubr.msk.bf16.mxu0 %vm430_vm0, %v1598_v15 }
  0x24   : > { %1549 = vmatprep.mubr.msk.bf16.mxu1 %vm430_vm0, %v1599_v16 }
  0x2a   : > { %1518 = vmatmul.mubr.msk.bf16.gmra.mrb[12].mxu0 %vm430_vm0, %v1600_v17 }
  0x2b   : > { %1550 = vmatmul.mubr.msk.bf16.gmra.mrb[12].mxu1 %vm430_vm0, %v1601_v18  ;;  %1521 = vmatprep.mubr.msk.bf16.mxu0 %vm430_vm0, %v1602_v19 }
  0x2c   : > { %1553 = vmatprep.mubr.msk.bf16.mxu1 %vm430_vm0, %v1603_v20 }
  0x32   : > { %1522 = vmatmul.mubr.msk.bf16.gmra.mrb[16].mxu0 %vm430_vm0, %v1604_v21 }
  0x33   : > { %1554 = vmatmul.mubr.msk.bf16.gmra.mrb[16].mxu1 %vm430_vm0, %v1605_v22  ;;  %1525 = vmatprep.mubr.msk.bf16.mxu0 %vm430_vm0, %v1606_v23 }
  0x34   : > { %1557 = vmatprep.mubr.msk.bf16.mxu1 %vm430_vm0, %v1607_v24 }
  0x3a   : > { %1526 = vmatmul.mubr.msk.bf16.gmra.mrb[20].mxu0 %vm430_vm0, %v1608_v25 }
  0x3b   : > { %1558 = vmatmul.mubr.msk.bf16.gmra.mrb[20].mxu1 %vm430_vm0, %v1609_v26  ;;  %1529 = vmatprep.mubr.msk.bf16.mxu0 %vm430_vm0, %v1610_v27 }
  0x3c   : > { %1561 = vmatprep.mubr.msk.bf16.mxu1 %vm430_vm0, %v1611_v28 }
  0x42   : > { %1530 = vmatmul.mubr.msk.bf16.gmra.mrb[24].mxu0 %vm430_vm0, %v1612_v29 }
  0x43   : > { %1562 = vmatmul.mubr.msk.bf16.gmra.mrb[24].mxu1 %vm430_vm0, %v1613_v30  ;;  %1533 = vmatprep.mubr.msk.bf16.mxu0 %vm430_vm0, %v1614_v31 }
  0x44   : > { %1565 = vmatprep.mubr.msk.bf16.mxu1 %vm430_vm0, %v1615_v32 }
  0x4a   : > { %1534 = vmatmul.mubr.msk.bf16.gmra.mrb[28].mxu0 %vm430_vm0, %v1616_v33 }
  0x4b   : > { %1566 = vmatmul.mubr.msk.bf16.gmra.mrb[28].mxu1 %vm430_vm0, %v1617_v34 }
  0xe5   : > { %v1507_v36 = vpop.f32.mrb[0].mxu0 }
  0xe6   : > { %v1539_v37 = vpop.f32.mrb[0].mxu1  ;;  %v570_v38 = vadd.f32 %v1507_v36, %v1740_v35  ;;  %v561_v40 = vpop.f32.mrb[1].mxu0 }
  0xe7   : > { %v698_v39 = vadd.f32 %v1539_v37, %v1740_v35  ;;  %v689_v41 = vpop.f32.mrb[1].mxu1  ;;  %v562_v42 = vadd.f32 %v1740_v35, %v561_v40  ;;  %v1508_v44 = vpop.f32.mrb[2].mxu0 }
  0xe8   : > { %v690_v43 = vadd.f32 %v1740_v35, %v689_v41  ;;  %v1540_v45 = vpop.f32.mrb[2].mxu1  ;;  %v818_v46 = vmax.f32 %v570_v38, 0.0  ;;  %v573_v48 = vadd.f32 %v1508_v44, %v1740_v35  ;;  %v564_v50 = vpop.f32.mrb[3].mxu0 }
  0xe9   : > { %v850_v47 = vmax.f32 %v698_v39, 0.0  ;;  %v701_v49 = vadd.f32 %v1540_v45, %v1740_v35  ;;  %v692_v51 = vpop.f32.mrb[3].mxu1  ;;  %v816_v52 = vmax.f32 %v562_v42, 0.0  ;;  %v565_v54 = vadd.f32 %v1740_v35, %v564_v50 }
  0xea   : > { %v848_v53 = vmax.f32 %v690_v43, 0.0  ;;  %v693_v55 = vadd.f32 %v1740_v35, %v692_v51  ;;  %v1402_v56 = vpack.c.bf16 %v818_v46, %v818_v46  ;;  %v819_v58 = vmax.f32 %v573_v48, 0.0 }
  0xeb   : > { %v1434_v57 = vpack.c.bf16 %v850_v47, %v850_v47  ;;  %v851_v59 = vmax.f32 %v701_v49, 0.0  ;;  %v1400_v60 = vpack.c.bf16 %v816_v52, %v816_v52  ;;  %v817_v62 = vmax.f32 %v565_v54, 0.0 }
  0xec   : > { %v1432_v61 = vpack.c.bf16 %v848_v53, %v848_v53  ;;  %v849_v63 = vmax.f32 %v693_v55, 0.0  ;;  %1139 = vst.msk [vmem:[%s1753_s29 + $0x8] sm:$0xf] %vm1136_vm1, %v1402_v56  ;;  %v1403_v0 = vpack.c.bf16 %v819_v58, %v819_v58 }
  0xed   : > { %1171 = vst.msk [vmem:[%s1753_s29 + $0x88] sm:$0xf] %vm1136_vm1, %v1434_v57  ;;  %v1435_v1 = vpack.c.bf16 %v851_v59, %v851_v59  ;;  %1137 = vst.msk [vmem:[%s1753_s29] sm:$0xf] %vm1136_vm1, %v1400_v60  ;;  %v1401_v2 = vpack.c.bf16 %v817_v62, %v817_v62  ;;  %v1511_v4 = vpop.f32.mrb[4].mxu0 }
  0xee   : > { %1169 = vst.msk [vmem:[%s1753_s29 + $0x80] sm:$0xf] %vm1136_vm1, %v1432_v61  ;;  %v1433_v3 = vpack.c.bf16 %v849_v63, %v849_v63  ;;  %v1543_v5 = vpop.f32.mrb[4].mxu1  ;;  %1140 = vst.msk [vmem:[%s1753_s29 + $0xc] sm:$0xf] %vm1136_vm1, %v1403_v0  ;;  %v586_v6 = vadd.f32 %v1511_v4, %v1740_v35  ;;  %v577_v8 = vpop.f32.mrb[5].mxu0 }
  0xef   : > { %1172 = vst.msk [vmem:[%s1753_s29 + $0x8c] sm:$0xf] %vm1136_vm1, %v1435_v1  ;;  %v714_v7 = vadd.f32 %v1543_v5, %v1740_v35  ;;  %v705_v9 = vpop.f32.mrb[5].mxu1  ;;  %1138 = vst.msk [vmem:[%s1753_s29 + $0x4] sm:$0xf] %vm1136_vm1, %v1401_v2  ;;  %v578_v10 = vadd.f32 %v1740_v35, %v577_v8  ;;  %v1512_v12 = vpop.f32.mrb[6].mxu0 }
  0xf0   : > { %1170 = vst.msk [vmem:[%s1753_s29 + $0x84] sm:$0xf] %vm1136_vm1, %v1433_v3  ;;  %v706_v11 = vadd.f32 %v1740_v35, %v705_v9  ;;  %v1544_v13 = vpop.f32.mrb[6].mxu1  ;;  %v822_v14 = vmax.f32 %v586_v6, 0.0  ;;  %v589_v16 = vadd.f32 %v1512_v12, %v1740_v35  ;;  %v580_v18 = vpop.f32.mrb[7].mxu0 }
  0xf1   : > { %v854_v15 = vmax.f32 %v714_v7, 0.0  ;;  %v717_v17 = vadd.f32 %v1544_v13, %v1740_v35  ;;  %v708_v19 = vpop.f32.mrb[7].mxu1  ;;  %v820_v20 = vmax.f32 %v578_v10, 0.0  ;;  %v581_v22 = vadd.f32 %v1740_v35, %v580_v18 }
  0xf2   : > { %v852_v21 = vmax.f32 %v706_v11, 0.0  ;;  %v709_v23 = vadd.f32 %v1740_v35, %v708_v19  ;;  %v1406_v24 = vpack.c.bf16 %v822_v14, %v822_v14  ;;  %v823_v26 = vmax.f32 %v589_v16, 0.0 }
  0xf3   : > { %v1438_v25 = vpack.c.bf16 %v854_v15, %v854_v15  ;;  %v855_v27 = vmax.f32 %v717_v17, 0.0  ;;  %v1404_v28 = vpack.c.bf16 %v820_v20, %v820_v20  ;;  %v821_v30 = vmax.f32 %v581_v22, 0.0 }
  0xf4   : > { %v1436_v29 = vpack.c.bf16 %v852_v21, %v852_v21  ;;  %v853_v31 = vmax.f32 %v709_v23, 0.0  ;;  %1143 = vst.msk [vmem:[%s1753_s29 + $0x18] sm:$0xf] %vm1136_vm1, %v1406_v24  ;;  %v1407_v32 = vpack.c.bf16 %v823_v26, %v823_v26 }
  0xf5   : > { %1175 = vst.msk [vmem:[%s1753_s29 + $0x98] sm:$0xf] %vm1136_vm1, %v1438_v25  ;;  %v1439_v33 = vpack.c.bf16 %v855_v27, %v855_v27  ;;  %1141 = vst.msk [vmem:[%s1753_s29 + $0x10] sm:$0xf] %vm1136_vm1, %v1404_v28  ;;  %v1405_v34 = vpack.c.bf16 %v821_v30, %v821_v30  ;;  %v1515_v37 = vpop.f32.mrb[8].mxu0 }
  0xf6   : > { %1173 = vst.msk [vmem:[%s1753_s29 + $0x90] sm:$0xf] %vm1136_vm1, %v1436_v29  ;;  %v1437_v36 = vpack.c.bf16 %v853_v31, %v853_v31  ;;  %v1547_v38 = vpop.f32.mrb[8].mxu1  ;;  %1144 = vst.msk [vmem:[%s1753_s29 + $0x1c] sm:$0xf] %vm1136_vm1, %v1407_v32  ;;  %v602_v39 = vadd.f32 %v1515_v37, %v1740_v35  ;;  %v593_v41 = vpop.f32.mrb[9].mxu0 }
  0xf7   : > { %1176 = vst.msk [vmem:[%s1753_s29 + $0x9c] sm:$0xf] %vm1136_vm1, %v1439_v33  ;;  %v730_v40 = vadd.f32 %v1547_v38, %v1740_v35  ;;  %v721_v42 = vpop.f32.mrb[9].mxu1  ;;  %1142 = vst.msk [vmem:[%s1753_s29 + $0x14] sm:$0xf] %vm1136_vm1, %v1405_v34  ;;  %v594_v43 = vadd.f32 %v1740_v35, %v593_v41  ;;  %v1516_v45 = vpop.f32.mrb[10].mxu0 }
  0xf8   : > { %1174 = vst.msk [vmem:[%s1753_s29 + $0x94] sm:$0xf] %vm1136_vm1, %v1437_v36  ;;  %v722_v44 = vadd.f32 %v1740_v35, %v721_v42  ;;  %v1548_v46 = vpop.f32.mrb[10].mxu1  ;;  %v826_v47 = vmax.f32 %v602_v39, 0.0  ;;  %v605_v49 = vadd.f32 %v1516_v45, %v1740_v35  ;;  %v596_v51 = vpop.f32.mrb[11].mxu0 }
  0xf9   : > { %v858_v48 = vmax.f32 %v730_v40, 0.0  ;;  %v733_v50 = vadd.f32 %v1548_v46, %v1740_v35  ;;  %v724_v52 = vpop.f32.mrb[11].mxu1  ;;  %v824_v53 = vmax.f32 %v594_v43, 0.0  ;;  %v597_v55 = vadd.f32 %v1740_v35, %v596_v51 }
  0xfa   : > { %v856_v54 = vmax.f32 %v722_v44, 0.0  ;;  %v725_v56 = vadd.f32 %v1740_v35, %v724_v52  ;;  %v1410_v57 = vpack.c.bf16 %v826_v47, %v826_v47  ;;  %v827_v59 = vmax.f32 %v605_v49, 0.0 }
  0xfb   : > { %v1442_v58 = vpack.c.bf16 %v858_v48, %v858_v48  ;;  %v859_v60 = vmax.f32 %v733_v50, 0.0  ;;  %v1408_v61 = vpack.c.bf16 %v824_v53, %v824_v53  ;;  %v825_v63 = vmax.f32 %v597_v55, 0.0 }
  0xfc   : > { %v1440_v62 = vpack.c.bf16 %v856_v54, %v856_v54  ;;  %v857_v0 = vmax.f32 %v725_v56, 0.0  ;;  %1147 = vst.msk [vmem:[%s1753_s29 + $0x28] sm:$0xf] %vm1136_vm1, %v1410_v57  ;;  %v1411_v1 = vpack.c.bf16 %v827_v59, %v827_v59 }
  0xfd   : > { %1179 = vst.msk [vmem:[%s1753_s29 + $0xa8] sm:$0xf] %vm1136_vm1, %v1442_v58  ;;  %v1443_v2 = vpack.c.bf16 %v859_v60, %v859_v60  ;;  %1145 = vst.msk [vmem:[%s1753_s29 + $0x20] sm:$0xf] %vm1136_vm1, %v1408_v61  ;;  %v1409_v3 = vpack.c.bf16 %v825_v63, %v825_v63  ;;  %v1519_v5 = vpop.f32.mrb[12].mxu0 }
  0xfe   : > { %1177 = vst.msk [vmem:[%s1753_s29 + $0xa0] sm:$0xf] %vm1136_vm1, %v1440_v62  ;;  %v1441_v4 = vpack.c.bf16 %v857_v0, %v857_v0  ;;  %v1551_v6 = vpop.f32.mrb[12].mxu1  ;;  %1148 = vst.msk [vmem:[%s1753_s29 + $0x2c] sm:$0xf] %vm1136_vm1, %v1411_v1  ;;  %v618_v7 = vadd.f32 %v1519_v5, %v1740_v35  ;;  %v609_v9 = vpop.f32.mrb[13].mxu0 }
  0xff   : > { %1180 = vst.msk [vmem:[%s1753_s29 + $0xac] sm:$0xf] %vm1136_vm1, %v1443_v2  ;;  %v746_v8 = vadd.f32 %v1551_v6, %v1740_v35  ;;  %v737_v10 = vpop.f32.mrb[13].mxu1  ;;  %1146 = vst.msk [vmem:[%s1753_s29 + $0x24] sm:$0xf] %vm1136_vm1, %v1409_v3  ;;  %v610_v11 = vadd.f32 %v1740_v35, %v609_v9  ;;  %v1520_v13 = vpop.f32.mrb[14].mxu0 }
 0x100   : > { %1178 = vst.msk [vmem:[%s1753_s29 + $0xa4] sm:$0xf] %vm1136_vm1, %v1441_v4  ;;  %v738_v12 = vadd.f32 %v1740_v35, %v737_v10  ;;  %v1552_v14 = vpop.f32.mrb[14].mxu1  ;;  %v830_v15 = vmax.f32 %v618_v7, 0.0  ;;  %v621_v17 = vadd.f32 %v1520_v13, %v1740_v35  ;;  %v612_v19 = vpop.f32.mrb[15].mxu0 }
 0x101   : > { %v862_v16 = vmax.f32 %v746_v8, 0.0  ;;  %v749_v18 = vadd.f32 %v1552_v14, %v1740_v35  ;;  %v740_v20 = vpop.f32.mrb[15].mxu1  ;;  %v828_v21 = vmax.f32 %v610_v11, 0.0  ;;  %v613_v23 = vadd.f32 %v1740_v35, %v612_v19 }
 0x102   : > { %v860_v22 = vmax.f32 %v738_v12, 0.0  ;;  %v741_v24 = vadd.f32 %v1740_v35, %v740_v20  ;;  %v1414_v25 = vpack.c.bf16 %v830_v15, %v830_v15  ;;  %v831_v27 = vmax.f32 %v621_v17, 0.0 }
 0x103   : > { %v1446_v26 = vpack.c.bf16 %v862_v16, %v862_v16  ;;  %v863_v28 = vmax.f32 %v749_v18, 0.0  ;;  %v1412_v29 = vpack.c.bf16 %v828_v21, %v828_v21  ;;  %v829_v31 = vmax.f32 %v613_v23, 0.0 }
 0x104   : > { %v1444_v30 = vpack.c.bf16 %v860_v22, %v860_v22  ;;  %v861_v32 = vmax.f32 %v741_v24, 0.0  ;;  %1151 = vst.msk [vmem:[%s1753_s29 + $0x38] sm:$0xf] %vm1136_vm1, %v1414_v25  ;;  %v1415_v33 = vpack.c.bf16 %v831_v27, %v831_v27 }
 0x105   : > { %1183 = vst.msk [vmem:[%s1753_s29 + $0xb8] sm:$0xf] %vm1136_vm1, %v1446_v26  ;;  %v1447_v34 = vpack.c.bf16 %v863_v28, %v863_v28  ;;  %1149 = vst.msk [vmem:[%s1753_s29 + $0x30] sm:$0xf] %vm1136_vm1, %v1412_v29  ;;  %v1413_v36 = vpack.c.bf16 %v829_v31, %v829_v31  ;;  %v1523_v38 = vpop.f32.mrb[16].mxu0 }
 0x106   : > { %1181 = vst.msk [vmem:[%s1753_s29 + $0xb0] sm:$0xf] %vm1136_vm1, %v1444_v30  ;;  %v1445_v37 = vpack.c.bf16 %v861_v32, %v861_v32  ;;  %v1555_v39 = vpop.f32.mrb[16].mxu1  ;;  %1152 = vst.msk [vmem:[%s1753_s29 + $0x3c] sm:$0xf] %vm1136_vm1, %v1415_v33  ;;  %v634_v40 = vadd.f32 %v1523_v38, %v1740_v35  ;;  %v625_v42 = vpop.f32.mrb[17].mxu0 }
 0x107   : > { %1184 = vst.msk [vmem:[%s1753_s29 + $0xbc] sm:$0xf] %vm1136_vm1, %v1447_v34  ;;  %v762_v41 = vadd.f32 %v1555_v39, %v1740_v35  ;;  %v753_v43 = vpop.f32.mrb[17].mxu1  ;;  %1150 = vst.msk [vmem:[%s1753_s29 + $0x34] sm:$0xf] %vm1136_vm1, %v1413_v36  ;;  %v626_v44 = vadd.f32 %v1740_v35, %v625_v42  ;;  %v1524_v46 = vpop.f32.mrb[18].mxu0 }
 0x108   : > { %1182 = vst.msk [vmem:[%s1753_s29 + $0xb4] sm:$0xf] %vm1136_vm1, %v1445_v37  ;;  %v754_v45 = vadd.f32 %v1740_v35, %v753_v43  ;;  %v1556_v47 = vpop.f32.mrb[18].mxu1  ;;  %v834_v48 = vmax.f32 %v634_v40, 0.0  ;;  %v637_v50 = vadd.f32 %v1524_v46, %v1740_v35  ;;  %v628_v52 = vpop.f32.mrb[19].mxu0 }
 0x109   : > { %v866_v49 = vmax.f32 %v762_v41, 0.0  ;;  %v765_v51 = vadd.f32 %v1556_v47, %v1740_v35  ;;  %v756_v53 = vpop.f32.mrb[19].mxu1  ;;  %v832_v54 = vmax.f32 %v626_v44, 0.0  ;;  %v629_v56 = vadd.f32 %v1740_v35, %v628_v52 }
 0x10a   : > { %v864_v55 = vmax.f32 %v754_v45, 0.0  ;;  %v757_v57 = vadd.f32 %v1740_v35, %v756_v53  ;;  %v1418_v58 = vpack.c.bf16 %v834_v48, %v834_v48  ;;  %v835_v60 = vmax.f32 %v637_v50, 0.0 }
 0x10b   : > { %v1450_v59 = vpack.c.bf16 %v866_v49, %v866_v49  ;;  %v867_v61 = vmax.f32 %v765_v51, 0.0  ;;  %v1416_v62 = vpack.c.bf16 %v832_v54, %v832_v54  ;;  %v833_v0 = vmax.f32 %v629_v56, 0.0 }
 0x10c   : > { %v1448_v63 = vpack.c.bf16 %v864_v55, %v864_v55  ;;  %v865_v1 = vmax.f32 %v757_v57, 0.0  ;;  %1155 = vst.msk [vmem:[%s1753_s29 + $0x48] sm:$0xf] %vm1136_vm1, %v1418_v58  ;;  %v1419_v2 = vpack.c.bf16 %v835_v60, %v835_v60 }
 0x10d   : > { %1187 = vst.msk [vmem:[%s1753_s29 + $0xc8] sm:$0xf] %vm1136_vm1, %v1450_v59  ;;  %v1451_v3 = vpack.c.bf16 %v867_v61, %v867_v61  ;;  %1153 = vst.msk [vmem:[%s1753_s29 + $0x40] sm:$0xf] %vm1136_vm1, %v1416_v62  ;;  %v1417_v4 = vpack.c.bf16 %v833_v0, %v833_v0  ;;  %v1527_v6 = vpop.f32.mrb[20].mxu0 }
 0x10e   : > { %1185 = vst.msk [vmem:[%s1753_s29 + $0xc0] sm:$0xf] %vm1136_vm1, %v1448_v63  ;;  %v1449_v5 = vpack.c.bf16 %v865_v1, %v865_v1  ;;  %v1559_v7 = vpop.f32.mrb[20].mxu1  ;;  %1156 = vst.msk [vmem:[%s1753_s29 + $0x4c] sm:$0xf] %vm1136_vm1, %v1419_v2  ;;  %v650_v8 = vadd.f32 %v1527_v6, %v1740_v35  ;;  %v641_v10 = vpop.f32.mrb[21].mxu0 }
 0x10f   : > { %1188 = vst.msk [vmem:[%s1753_s29 + $0xcc] sm:$0xf] %vm1136_vm1, %v1451_v3  ;;  %v778_v9 = vadd.f32 %v1559_v7, %v1740_v35  ;;  %v769_v11 = vpop.f32.mrb[21].mxu1  ;;  %1154 = vst.msk [vmem:[%s1753_s29 + $0x44] sm:$0xf] %vm1136_vm1, %v1417_v4  ;;  %v642_v12 = vadd.f32 %v1740_v35, %v641_v10  ;;  %v1528_v14 = vpop.f32.mrb[22].mxu0 }
 0x110   : > { %1186 = vst.msk [vmem:[%s1753_s29 + $0xc4] sm:$0xf] %vm1136_vm1, %v1449_v5  ;;  %v770_v13 = vadd.f32 %v1740_v35, %v769_v11  ;;  %v1560_v15 = vpop.f32.mrb[22].mxu1  ;;  %v838_v16 = vmax.f32 %v650_v8, 0.0  ;;  %v653_v18 = vadd.f32 %v1528_v14, %v1740_v35  ;;  %v644_v20 = vpop.f32.mrb[23].mxu0 }
 0x111   : > { %v870_v17 = vmax.f32 %v778_v9, 0.0  ;;  %v781_v19 = vadd.f32 %v1560_v15, %v1740_v35  ;;  %v772_v21 = vpop.f32.mrb[23].mxu1  ;;  %v836_v22 = vmax.f32 %v642_v12, 0.0  ;;  %v645_v24 = vadd.f32 %v1740_v35, %v644_v20 }
 0x112   : > { %v868_v23 = vmax.f32 %v770_v13, 0.0  ;;  %v773_v25 = vadd.f32 %v1740_v35, %v772_v21  ;;  %v1422_v26 = vpack.c.bf16 %v838_v16, %v838_v16  ;;  %v839_v28 = vmax.f32 %v653_v18, 0.0 }
 0x113   : > { %v1454_v27 = vpack.c.bf16 %v870_v17, %v870_v17  ;;  %v871_v29 = vmax.f32 %v781_v19, 0.0  ;;  %v1420_v30 = vpack.c.bf16 %v836_v22, %v836_v22  ;;  %v837_v32 = vmax.f32 %v645_v24, 0.0 }
 0x114   : > { %v1452_v31 = vpack.c.bf16 %v868_v23, %v868_v23  ;;  %v869_v33 = vmax.f32 %v773_v25, 0.0  ;;  %1159 = vst.msk [vmem:[%s1753_s29 + $0x58] sm:$0xf] %vm1136_vm1, %v1422_v26  ;;  %v1423_v34 = vpack.c.bf16 %v839_v28, %v839_v28 }
 0x115   : > { %1191 = vst.msk [vmem:[%s1753_s29 + $0xd8] sm:$0xf] %vm1136_vm1, %v1454_v27  ;;  %v1455_v36 = vpack.c.bf16 %v871_v29, %v871_v29  ;;  %1157 = vst.msk [vmem:[%s1753_s29 + $0x50] sm:$0xf] %vm1136_vm1, %v1420_v30  ;;  %v1421_v37 = vpack.c.bf16 %v837_v32, %v837_v32  ;;  %v1531_v39 = vpop.f32.mrb[24].mxu0 }
 0x116   : > { %1189 = vst.msk [vmem:[%s1753_s29 + $0xd0] sm:$0xf] %vm1136_vm1, %v1452_v31  ;;  %v1453_v38 = vpack.c.bf16 %v869_v33, %v869_v33  ;;  %v1563_v40 = vpop.f32.mrb[24].mxu1  ;;  %1160 = vst.msk [vmem:[%s1753_s29 + $0x5c] sm:$0xf] %vm1136_vm1, %v1423_v34  ;;  %v666_v41 = vadd.f32 %v1531_v39, %v1740_v35  ;;  %v657_v43 = vpop.f32.mrb[25].mxu0 }
 0x117   : > { %1192 = vst.msk [vmem:[%s1753_s29 + $0xdc] sm:$0xf] %vm1136_vm1, %v1455_v36  ;;  %v794_v42 = vadd.f32 %v1563_v40, %v1740_v35  ;;  %v785_v44 = vpop.f32.mrb[25].mxu1  ;;  %1158 = vst.msk [vmem:[%s1753_s29 + $0x54] sm:$0xf] %vm1136_vm1, %v1421_v37  ;;  %v658_v45 = vadd.f32 %v1740_v35, %v657_v43  ;;  %v1532_v47 = vpop.f32.mrb[26].mxu0 }
 0x118   : > { %1190 = vst.msk [vmem:[%s1753_s29 + $0xd4] sm:$0xf] %vm1136_vm1, %v1453_v38  ;;  %v786_v46 = vadd.f32 %v1740_v35, %v785_v44  ;;  %v1564_v48 = vpop.f32.mrb[26].mxu1  ;;  %v842_v49 = vmax.f32 %v666_v41, 0.0  ;;  %v669_v51 = vadd.f32 %v1532_v47, %v1740_v35  ;;  %v660_v53 = vpop.f32.mrb[27].mxu0 }
 0x119   : > { %v874_v50 = vmax.f32 %v794_v42, 0.0  ;;  %v797_v52 = vadd.f32 %v1564_v48, %v1740_v35  ;;  %v788_v54 = vpop.f32.mrb[27].mxu1  ;;  %v840_v55 = vmax.f32 %v658_v45, 0.0  ;;  %v661_v57 = vadd.f32 %v1740_v35, %v660_v53 }
 0x11a   : > { %v872_v56 = vmax.f32 %v786_v46, 0.0  ;;  %v789_v58 = vadd.f32 %v1740_v35, %v788_v54  ;;  %v1426_v59 = vpack.c.bf16 %v842_v49, %v842_v49  ;;  %v843_v61 = vmax.f32 %v669_v51, 0.0 }
 0x11b   : > { %v1458_v60 = vpack.c.bf16 %v874_v50, %v874_v50  ;;  %v875_v62 = vmax.f32 %v797_v52, 0.0  ;;  %v1424_v63 = vpack.c.bf16 %v840_v55, %v840_v55  ;;  %v841_v1 = vmax.f32 %v661_v57, 0.0 }
 0x11c   : > { %v1456_v0 = vpack.c.bf16 %v872_v56, %v872_v56  ;;  %v873_v2 = vmax.f32 %v789_v58, 0.0  ;;  %1163 = vst.msk [vmem:[%s1753_s29 + $0x68] sm:$0xf] %vm1136_vm1, %v1426_v59  ;;  %v1427_v3 = vpack.c.bf16 %v843_v61, %v843_v61 }
 0x11d   : > { %1195 = vst.msk [vmem:[%s1753_s29 + $0xe8] sm:$0xf] %vm1136_vm1, %v1458_v60  ;;  %v1459_v4 = vpack.c.bf16 %v875_v62, %v875_v62  ;;  %1161 = vst.msk [vmem:[%s1753_s29 + $0x60] sm:$0xf] %vm1136_vm1, %v1424_v63  ;;  %v1425_v5 = vpack.c.bf16 %v841_v1, %v841_v1  ;;  %v1535_v7 = vpop.f32.mrb[28].mxu0 }
 0x11e   : > { %1193 = vst.msk [vmem:[%s1753_s29 + $0xe0] sm:$0xf] %vm1136_vm1, %v1456_v0  ;;  %v1457_v6 = vpack.c.bf16 %v873_v2, %v873_v2  ;;  %v1567_v8 = vpop.f32.mrb[28].mxu1  ;;  %1164 = vst.msk [vmem:[%s1753_s29 + $0x6c] sm:$0xf] %vm1136_vm1, %v1427_v3  ;;  %v682_v9 = vadd.f32 %v1535_v7, %v1740_v35  ;;  %v673_v11 = vpop.f32.mrb[29].mxu0 }
 0x11f   : > { %1196 = vst.msk [vmem:[%s1753_s29 + $0xec] sm:$0xf] %vm1136_vm1, %v1459_v4  ;;  %v810_v10 = vadd.f32 %v1567_v8, %v1740_v35  ;;  %v801_v12 = vpop.f32.mrb[29].mxu1  ;;  %1162 = vst.msk [vmem:[%s1753_s29 + $0x64] sm:$0xf] %vm1136_vm1, %v1425_v5  ;;  %v674_v13 = vadd.f32 %v1740_v35, %v673_v11  ;;  %v1536_v15 = vpop.f32.mrb[30].mxu0 }
 0x120   : > { %1194 = vst.msk [vmem:[%s1753_s29 + $0xe4] sm:$0xf] %vm1136_vm1, %v1457_v6  ;;  %v802_v14 = vadd.f32 %v1740_v35, %v801_v12  ;;  %v1568_v16 = vpop.f32.mrb[30].mxu1  ;;  %v846_v17 = vmax.f32 %v682_v9, 0.0  ;;  %v685_v19 = vadd.f32 %v1536_v15, %v1740_v35  ;;  %v676_v21 = vpop.f32.mrb[31].mxu0 }
 0x121   : > { %v878_v18 = vmax.f32 %v810_v10, 0.0  ;;  %v813_v20 = vadd.f32 %v1568_v16, %v1740_v35  ;;  %v804_v22 = vpop.f32.mrb[31].mxu1  ;;  %v844_v23 = vmax.f32 %v674_v13, 0.0  ;;  %v677_v25 = vadd.f32 %v1740_v35, %v676_v21 }
 0x122   : > { %v876_v24 = vmax.f32 %v802_v14, 0.0  ;;  %v805_v26 = vadd.f32 %v1740_v35, %v804_v22  ;;  %v1430_v27 = vpack.c.bf16 %v846_v17, %v846_v17  ;;  %v847_v29 = vmax.f32 %v685_v19, 0.0 }
 0x123   : > { %v1462_v28 = vpack.c.bf16 %v878_v18, %v878_v18  ;;  %v879_v30 = vmax.f32 %v813_v20, 0.0  ;;  %v1428_v31 = vpack.c.bf16 %v844_v23, %v844_v23  ;;  %v845_v33 = vmax.f32 %v677_v25, 0.0 }
 0x124   : > { %v1460_v32 = vpack.c.bf16 %v876_v24, %v876_v24  ;;  %v877_v34 = vmax.f32 %v805_v26, 0.0  ;;  %1167 = vst.msk [vmem:[%s1753_s29 + $0x78] sm:$0xf] %vm1136_vm1, %v1430_v27  ;;  %v1431_v36 = vpack.c.bf16 %v847_v29, %v847_v29 }
 0x125   : > { %1199 = vst.msk [vmem:[%s1753_s29 + $0xf8] sm:$0xf] %vm1136_vm1, %v1462_v28  ;;  %v1463_v37 = vpack.c.bf16 %v879_v30, %v879_v30  ;;  %1165 = vst.msk [vmem:[%s1753_s29 + $0x70] sm:$0xf] %vm1136_vm1, %v1428_v31  ;;  %v1429_v35 = vpack.c.bf16 %v845_v33, %v845_v33 }
 0x126   : > { %1197 = vst.msk [vmem:[%s1753_s29 + $0xf0] sm:$0xf] %vm1136_vm1, %v1460_v32  ;;  %v1461_v38 = vpack.c.bf16 %v877_v34, %v877_v34  ;;  %1168 = vst.msk [vmem:[%s1753_s29 + $0x7c] sm:$0xf] %vm1136_vm1, %v1431_v36 }
 0x127   : > { %1200 = vst.msk [vmem:[%s1753_s29 + $0xfc] sm:$0xf] %vm1136_vm1, %v1463_v37  ;;  %1166 = vst.msk [vmem:[%s1753_s29 + $0x74] sm:$0xf] %vm1136_vm1, %v1429_v35 }
 0x128   : > { %1198 = vst.msk [vmem:[%s1753_s29 + $0xf4] sm:$0xf] %vm1136_vm1, %v1461_v38 }
 0x129 PF: > { %s13_s12 = sadd.s32 1, %s1624_s12  }
 0x12a   : > { %p10_p4 = scmp.ge.s32.totalorder %s13_s12, 6  }
 0x12c   :  { %12 = sbr.rel (!%p10_p4) target bundleno = 1 (0x1), region = 62 }

// kernel: encoder_lsun_forward.6
= control target key start
LH: loop header
LB: loop body
LE: loop exit
PB: predicated region body
PF: predicated region fallthrough
CT: control target
= control target key end

     0   :  { %v4704_v0 = vmov 0   ;;  %s5927_s1 = inlined_call_operand.vmem [shape: bf16[1024,128], index: 1, kind: input, shape index: {}]   ;;  %s5928_s0 = inlined_call_operand.vmem [shape: bf16[512,1024], index: 0, kind: input, shape index: {}]   ;;  %s5929_s2 = inlined_call_operand.vmem [shape: f32[1,128], index: 2, kind: input, shape index: {}]   ;;  %s5930_s3 = inlined_call_operand.vmem [shape: bf16[512,128], index: 3, kind: output, shape index: {}]  }
   0x1   :  { %2070 = vmatprep.subr.bf16.mxu1 %v4704_v0  ;;  %2648 = vmatprep.subr.bf16.mxu0 %v4704_v0  ;;  %v4639_v1 = vld [vmem:[%s5927_s1] sm:$0xff]   ;;  %v4641_v3 = vld [vmem:[%s5927_s1 + $0x8] sm:$0xff]   ;;  %v4643_v5 = vld [vmem:[%s5927_s1 + $0x10] sm:$0xff]  }
   0x2   :  { %v4640_v2 = vld [vmem:[%s5927_s1 + $0x100] sm:$0xff]   ;;  %2071 = vmatpush1.bf16.msra.mxu1 %v4639_v1  ;;  %v4642_v4 = vld [vmem:[%s5927_s1 + $0x108] sm:$0xff]   ;;  %v4644_v6 = vld [vmem:[%s5927_s1 + $0x110] sm:$0xff]  }
   0x3   :  { %2649 = vmatpush1.bf16.msra.mxu0 %v4640_v2  ;;  %2072 = vmatprep.subr.bf16.mxu1 %v4704_v0  ;;  %v4645_v7 = vld [vmem:[%s5927_s1 + $0x18] sm:$0xff]   ;;  %v4647_v9 = vld [vmem:[%s5927_s1 + $0x20] sm:$0xff]   ;;  %v4649_v11 = vld [vmem:[%s5927_s1 + $0x28] sm:$0xff]  }
   0x4   :  { %2650 = vmatprep.subr.bf16.mxu0 %v4704_v0  ;;  %v4646_v8 = vld [vmem:[%s5927_s1 + $0x118] sm:$0xff]   ;;  %v4648_v10 = vld [vmem:[%s5927_s1 + $0x120] sm:$0xff]   ;;  %v4650_v12 = vld [vmem:[%s5927_s1 + $0x128] sm:$0xff]  }
   0x5   :  { %v4651_v13 = vld [vmem:[%s5927_s1 + $0x30] sm:$0xff]   ;;  %v4653_v15 = vld [vmem:[%s5927_s1 + $0x38] sm:$0xff]   ;;  %v4655_v17 = vld [vmem:[%s5927_s1 + $0x40] sm:$0xff]  }
   0x6   :  { %2073 = vmatpush1.bf16.msra.mxu1 %v4641_v3  ;;  %v4652_v14 = vld [vmem:[%s5927_s1 + $0x130] sm:$0xff]   ;;  %v4654_v16 = vld [vmem:[%s5927_s1 + $0x138] sm:$0xff]   ;;  %v4656_v18 = vld [vmem:[%s5927_s1 + $0x140] sm:$0xff]  }
   0x7   :  { %2651 = vmatpush1.bf16.msra.mxu0 %v4642_v4  ;;  %2074 = vmatprep.subr.bf16.mxu1 %v4704_v0  ;;  %v4800_v19 = vld [vmem:[%s5928_s0] sm:$0xff]  ;;  %v4810_v21 = vld [vmem:[%s5928_s0 + $0x10] sm:$0xff]  ;;  %v4657_v24 = vld [vmem:[%s5927_s1 + $0x48] sm:$0xff]  }
   0x8   :  { %2652 = vmatprep.subr.bf16.mxu0 %v4704_v0  ;;  %v4805_v20 = vld [vmem:[%s5928_s0 + $0x20] sm:$0xff]  ;;  %v4817_v23 = vld [vmem:[%s5928_s0 + $0x30] sm:$0xff]  ;;  %v4658_v26 = vld [vmem:[%s5927_s1 + $0x148] sm:$0xff]  }
   0x9   :  { %v3616_v22 = vcombine.high %v4800_v19, %v4805_v20  ;;  %v3620_v25 = vcombine.high %v4810_v21, %v4817_v23  ;;  %v4659_v27 = vld [vmem:[%s5927_s1 + $0x50] sm:$0xff]   ;;  %v4661_v29 = vld [vmem:[%s5927_s1 + $0x58] sm:$0xff]   ;;  %v4663_v31 = vld [vmem:[%s5927_s1 + $0x60] sm:$0xff]   ;;  %v3615_v42 = vcombine.low %v4800_v19, %v4805_v20  ;;  %v3619_v44 = vcombine.low %v4810_v21, %v4817_v23 }
   0xa   :  { %2075 = vmatpush1.bf16.msra.mxu1 %v4643_v5  ;;  %v4660_v28 = vld [vmem:[%s5927_s1 + $0x150] sm:$0xff]   ;;  %v4662_v30 = vld [vmem:[%s5927_s1 + $0x158] sm:$0xff]   ;;  %v4664_v32 = vld [vmem:[%s5927_s1 + $0x160] sm:$0xff]  }
   0xb   :  { %2653 = vmatpush1.bf16.msra.mxu0 %v4644_v6  ;;  %2076 = vmatprep.subr.bf16.mxu1 %v4704_v0  ;;  %v4665_v33 = vld [vmem:[%s5927_s1 + $0x68] sm:$0xff]   ;;  %v4667_v35 = vld [vmem:[%s5927_s1 + $0x70] sm:$0xff]   ;;  %v4669_v37 = vld [vmem:[%s5927_s1 + $0x78] sm:$0xff]  }
   0xc   :  { %2654 = vmatprep.subr.bf16.mxu0 %v4704_v0  ;;  %2102 = vmatprep.mubr.bf16.mxu1 %v3616_v22  ;;  %v4666_v34 = vld [vmem:[%s5927_s1 + $0x168] sm:$0xff]   ;;  %v4668_v36 = vld [vmem:[%s5927_s1 + $0x170] sm:$0xff]   ;;  %v4670_v38 = vld [vmem:[%s5927_s1 + $0x178] sm:$0xff]  }
   0xd   :  { %2680 = vmatprep.mubr.bf16.mxu0 %v3620_v25  ;;  %v23_v39 = vld [vmem:[%s5928_s0 + $0x40] sm:$0xff]  ;;  %v25_v41 = vld [vmem:[%s5928_s0 + $0x50] sm:$0xff]  ;;  %v4673_v51 = vld [vmem:[%s5927_s1 + $0x88] sm:$0xff]  }
   0xe   :  { %2077 = vmatpush1.bf16.msra.mxu1 %v4645_v7  ;;  %v27_v40 = vld [vmem:[%s5928_s0 + $0x60] sm:$0xff]  ;;  %v29_v43 = vld [vmem:[%s5928_s0 + $0x70] sm:$0xff]  ;;  %v4674_v52 = vld [vmem:[%s5927_s1 + $0x188] sm:$0xff]  }
   0xf   :  { %2655 = vmatpush1.bf16.msra.mxu0 %v4646_v8  ;;  %2078 = vmatprep.subr.bf16.mxu1 %v4704_v0  ;;  %v4671_v45 = vld [vmem:[%s5927_s1 + $0x80] sm:$0xff]   ;;  %v3624_v47 = vcombine.high %v23_v39, %v27_v40  ;;  %v3628_v48 = vcombine.high %v25_v41, %v29_v43  ;;  %v33_v53 = vld [vmem:[%s5928_s0 + $0x90] sm:$0xff]  ;;  %v3623_v55 = vcombine.low %v23_v39, %v27_v40  ;;  %v4677_v2 = vld [vmem:[%s5927_s1 + $0x98] sm:$0xff]  }
  0x10   :  { %2656 = vmatprep.subr.bf16.mxu0 %v4704_v0  ;;  %v4672_v46 = vld [vmem:[%s5927_s1 + $0x180] sm:$0xff]   ;;  %v37_v54 = vld [vmem:[%s5928_s0 + $0xb0] sm:$0xff]  ;;  %v3627_v56 = vcombine.low %v25_v41, %v29_v43  ;;  %v4678_v3 = vld [vmem:[%s5927_s1 + $0x198] sm:$0xff]  }
  0x11   :  { %v31_v49 = vld [vmem:[%s5928_s0 + $0x80] sm:$0xff]  ;;  %v3636_v58 = vcombine.high %v33_v53, %v37_v54  ;;  %v4675_v59 = vld [vmem:[%s5927_s1 + $0x90] sm:$0xff]   ;;  %v3635_v6 = vcombine.low %v33_v53, %v37_v54  ;;  %v4690_v39 = vld [vmem:[%s5927_s1 + $0x1c8] sm:$0xff]  }
  0x12   :  { %2079 = vmatpush1.bf16.msra.mxu1 %v4647_v9  ;;  %v35_v50 = vld [vmem:[%s5928_s0 + $0xa0] sm:$0xff]  ;;  %v4676_v60 = vld [vmem:[%s5927_s1 + $0x190] sm:$0xff]   ;;  %v4693_v54 = vld [vmem:[%s5927_s1 + $0xd8] sm:$0xff]  }
  0x13   :  { %2657 = vmatpush1.bf16.msra.mxu0 %v4648_v10  ;;  %2080 = vmatprep.subr.bf16.mxu1 %v4704_v0  ;;  %v3632_v57 = vcombine.high %v31_v49, %v35_v50  ;;  %v39_v61 = vld [vmem:[%s5928_s0 + $0xc0] sm:$0xff]  ;;  %v41_v63 = vld [vmem:[%s5928_s0 + $0xd0] sm:$0xff]  ;;  %v3631_v4 = vcombine.low %v31_v49, %v35_v50 }
  0x14   :  { %2658 = vmatprep.subr.bf16.mxu0 %v4704_v0  ;;  %v43_v62 = vld [vmem:[%s5928_s0 + $0xe0] sm:$0xff]  ;;  %v45_v1 = vld [vmem:[%s5928_s0 + $0xf0] sm:$0xff] }
  0x15   :  { %v4679_v5 = vld [vmem:[%s5927_s1 + $0xa0] sm:$0xff]   ;;  %v3640_v7 = vcombine.high %v39_v61, %v43_v62  ;;  %v3644_v9 = vcombine.high %v41_v63, %v45_v1  ;;  %v4683_v20 = vld [vmem:[%s5927_s1 + $0xb0] sm:$0xff]  }
  0x16   :  { %2081 = vmatpush1.bf16.msra.mxu1 %v4649_v11  ;;  %v4680_v8 = vld [vmem:[%s5927_s1 + $0x1a0] sm:$0xff]   ;;  %v4684_v21 = vld [vmem:[%s5927_s1 + $0x1b0] sm:$0xff]  }
  0x17   :  { %2659 = vmatpush1.bf16.msra.mxu0 %v4650_v12  ;;  %2082 = vmatprep.subr.bf16.mxu1 %v4704_v0  ;;  %v47_v10 = vld [vmem:[%s5928_s0 + $0x100] sm:$0xff]  ;;  %v49_v12 = vld [vmem:[%s5928_s0 + $0x110] sm:$0xff] }
  0x18   :  { %2660 = vmatprep.subr.bf16.mxu0 %v4704_v0  ;;  %v51_v11 = vld [vmem:[%s5928_s0 + $0x120] sm:$0xff]  ;;  %v57_v25 = vld [vmem:[%s5928_s0 + $0x150] sm:$0xff] }
  0x19   :  { %v55_v22 = vld [vmem:[%s5928_s0 + $0x140] sm:$0xff]  ;;  %v77_v49 = vld [vmem:[%s5928_s0 + $0x1f0] sm:$0xff] }
  0x1a   :  { %2083 = vmatpush1.bf16.msra.mxu1 %v4651_v13  ;;  %v53_v13 = vld [vmem:[%s5928_s0 + $0x130] sm:$0xff]  ;;  %v59_v23 = vld [vmem:[%s5928_s0 + $0x160] sm:$0xff] }
  0x1b   :  { %2661 = vmatpush1.bf16.msra.mxu0 %v4652_v14  ;;  %2084 = vmatprep.subr.bf16.mxu1 %v4704_v0  ;;  %v4681_v14 = vld [vmem:[%s5927_s1 + $0xa8] sm:$0xff]   ;;  %v3652_v19 = vcombine.high %v49_v12, %v53_v13  ;;  %v3655_v40 = vcombine.low %v55_v22, %v59_v23 }
  0x1c   :  { %2662 = vmatprep.subr.bf16.mxu0 %v4704_v0 }
  0x1e   :  { %2085 = vmatpush1.bf16.msra.mxu1 %v4653_v15  ;;  %v4682_v15 = vld [vmem:[%s5927_s1 + $0x1a8] sm:$0xff]  }
  0x1f   :  { %2663 = vmatpush1.bf16.msra.mxu0 %v4654_v16  ;;  %2086 = vmatprep.subr.bf16.mxu1 %v4704_v0  ;;  %v3639_v16 = vcombine.low %v39_v61, %v43_v62 }
  0x20   :  { %2664 = vmatprep.subr.bf16.mxu0 %v4704_v0 }
  0x22   :  { %2087 = vmatpush1.bf16.msra.mxu1 %v4655_v17  ;;  %v3643_v17 = vcombine.low %v41_v63, %v45_v1  ;;  %v87_v1 = vld [vmem:[%s5928_s0 + $0x240] sm:$0xff] }
  0x23   :  { %2665 = vmatpush1.bf16.msra.mxu0 %v4656_v18  ;;  %2088 = vmatprep.subr.bf16.mxu1 %v4704_v0  ;;  %v3648_v18 = vcombine.high %v47_v10, %v51_v11 }
  0x24   :  { %2666 = vmatprep.subr.bf16.mxu0 %v4704_v0 }
  0x26   :  { %2089 = vmatpush1.bf16.msra.mxu1 %v4657_v24  ;;  %v4685_v24 = vld [vmem:[%s5927_s1 + $0xb8] sm:$0xff]  }
  0x27   :  { %2667 = vmatpush1.bf16.msra.mxu0 %v4658_v26  ;;  %2090 = vmatprep.subr.bf16.mxu1 %v4704_v0  ;;  %v61_v26 = vld [vmem:[%s5928_s0 + $0x170] sm:$0xff] }
  0x28   :  { %2668 = vmatprep.subr.bf16.mxu0 %v4704_v0  ;;  %v3659_v41 = vcombine.low %v57_v25, %v61_v26 }
  0x2a   :  { %2091 = vmatpush1.bf16.msra.mxu1 %v4659_v27  ;;  %v4686_v27 = vld [vmem:[%s5927_s1 + $0x1b8] sm:$0xff]  }
  0x2b   :  { %2669 = vmatpush1.bf16.msra.mxu0 %v4660_v28  ;;  %2092 = vmatprep.subr.bf16.mxu1 %v4704_v0  ;;  %v3647_v28 = vcombine.low %v47_v10, %v51_v11  ;;  %v4696_v10 = vld [vmem:[%s5927_s1 + $0x1e0] sm:$0xff]  }
  0x2c   :  { %2670 = vmatprep.subr.bf16.mxu0 %v4704_v0  ;;  %v95_v11 = vld [vmem:[%s5928_s0 + $0x280] sm:$0xff] }
  0x2e   :  { %2093 = vmatpush1.bf16.msra.mxu1 %v4661_v29  ;;  %v3651_v29 = vcombine.low %v49_v12, %v53_v13  ;;  %v99_v12 = vld [vmem:[%s5928_s0 + $0x2a0] sm:$0xff]  ;;  %v97_v13 = vld [vmem:[%s5928_s0 + $0x290] sm:$0xff] }
  0x2f   :  { %2671 = vmatpush1.bf16.msra.mxu0 %v4662_v30  ;;  %2094 = vmatprep.subr.bf16.mxu1 %v4704_v0  ;;  %v3656_v30 = vcombine.high %v55_v22, %v59_v23  ;;  %v109_v22 = vld [vmem:[%s5928_s0 + $0x2f0] sm:$0xff]  ;;  %v3695_v23 = vcombine.low %v95_v11, %v99_v12 }
  0x30   :  { %2672 = vmatprep.subr.bf16.mxu0 %v4704_v0 }
  0x32   :  { %2095 = vmatpush1.bf16.msra.mxu1 %v4663_v31  ;;  %v3660_v31 = vcombine.high %v57_v25, %v61_v26 }
  0x33   :  { %2673 = vmatpush1.bf16.msra.mxu0 %v4664_v32  ;;  %2096 = vmatprep.subr.bf16.mxu1 %v4704_v0  ;;  %v4687_v32 = vld [vmem:[%s5927_s1 + $0xc0] sm:$0xff]  }
  0x34   :  { %2674 = vmatprep.subr.bf16.mxu0 %v4704_v0 }
  0x36   :  { %2097 = vmatpush1.bf16.msra.mxu1 %v4665_v33  ;;  %v4688_v33 = vld [vmem:[%s5927_s1 + $0x1c0] sm:$0xff]  }
  0x37   :  { %2675 = vmatpush1.bf16.msra.mxu0 %v4666_v34  ;;  %2098 = vmatprep.subr.bf16.mxu1 %v4704_v0  ;;  %v63_v34 = vld [vmem:[%s5928_s0 + $0x180] sm:$0xff] }
  0x38   :  { %2676 = vmatprep.subr.bf16.mxu0 %v4704_v0 }
  0x3a   :  { %2099 = vmatpush1.bf16.msra.mxu1 %v4667_v35  ;;  %v67_v35 = vld [vmem:[%s5928_s0 + $0x1a0] sm:$0xff] }
  0x3b   :  { %2677 = vmatpush1.bf16.msra.mxu0 %v4668_v36  ;;  %2100 = vmatprep.subr.bf16.mxu1 %v4704_v0  ;;  %v4689_v36 = vld [vmem:[%s5927_s1 + $0xc8] sm:$0xff]   ;;  %v3663_v50 = vcombine.low %v63_v34, %v67_v35 }
  0x3c   :  { %2678 = vmatprep.subr.bf16.mxu0 %v4704_v0 }
  0x3e   :  { %2101 = vmatpush1.bf16.msra.mxu1 %v4669_v37  ;;  %v65_v37 = vld [vmem:[%s5928_s0 + $0x190] sm:$0xff] }
  0x3f   :  { %2679 = vmatpush1.bf16.msra.mxu0 %v4670_v38  ;;  %2359 = vmatprep.subr.bf16.mxu1 %v4704_v0  ;;  %v69_v38 = vld [vmem:[%s5928_s0 + $0x1b0] sm:$0xff] }
  0x40   :  { %2937 = vmatprep.subr.bf16.mxu0 %v4704_v0  ;;  %v3668_v43 = vcombine.high %v65_v37, %v69_v38 }
  0x41   :  { %2103 = vmatmul.mubr.bf16.vlgmr.msra.gmra.mrb[0].mxu1 %v3615_v42  ;;  %v3664_v42 = vcombine.high %v63_v34, %v67_v35 }
  0x42   :  { %2681 = vmatmul.mubr.bf16.vlgmr.msra.gmra.mrb[0].mxu0 %v3619_v44  ;;  %2360 = vmatpush1.bf16.msra.mxu1 %v4671_v45  ;;  %v4691_v44 = vld [vmem:[%s5927_s1 + $0xd0] sm:$0xff]  }
  0x43   :  { %2938 = vmatpush1.bf16.msra.mxu0 %v4672_v46  ;;  %2110 = vmatprep.mubr.bf16.mxu1 %v3624_v47  ;;  %v4692_v45 = vld [vmem:[%s5927_s1 + $0x1d0] sm:$0xff]   ;;  %v71_v46 = vld [vmem:[%s5928_s0 + $0x1c0] sm:$0xff] }
  0x44   :  { %2688 = vmatprep.mubr.bf16.mxu0 %v3628_v48  ;;  %2361 = vmatprep.subr.bf16.mxu1 %v4704_v0  ;;  %v75_v47 = vld [vmem:[%s5928_s0 + $0x1e0] sm:$0xff]  ;;  %v73_v48 = vld [vmem:[%s5928_s0 + $0x1d0] sm:$0xff] }
  0x45   :  { %2939 = vmatprep.subr.bf16.mxu0 %v4704_v0  ;;  %v3676_v53 = vcombine.high %v73_v48, %v77_v49  ;;  %v3675_v61 = vcombine.low %v73_v48, %v77_v49  ;;  %v131_v48 = vld [vmem:[%s5928_s0 + $0x3a0] sm:$0xff]  ;;  %v129_v49 = vld [vmem:[%s5928_s0 + $0x390] sm:$0xff] }
  0x46   :  { %2362 = vmatpush1.bf16.msra.mxu1 %v4673_v51  ;;  %v3667_v51 = vcombine.low %v65_v37, %v69_v38  ;;  %v119_v37 = vld [vmem:[%s5928_s0 + $0x340] sm:$0xff] }
  0x47   :  { %2940 = vmatpush1.bf16.msra.mxu0 %v4674_v52  ;;  %2363 = vmatprep.subr.bf16.mxu1 %v4704_v0  ;;  %v3672_v52 = vcombine.high %v71_v46, %v75_v47  ;;  %v123_v38 = vld [vmem:[%s5928_s0 + $0x360] sm:$0xff] }
  0x48   :  { %2941 = vmatprep.subr.bf16.mxu0 %v4704_v0 }
  0x49   :  { %2111 = vmatmul.mubr.bf16.gmra.mrb[4].mxu1 %v3623_v55  ;;  %v4694_v55 = vld [vmem:[%s5927_s1 + $0x1d8] sm:$0xff]  }
  0x4a   :  { %2689 = vmatmul.mubr.bf16.gmra.mrb[4].mxu0 %v3627_v56  ;;  %2118 = vmatprep.mubr.bf16.mxu1 %v3632_v57  ;;  %v79_v56 = vld [vmem:[%s5928_s0 + $0x200] sm:$0xff] }
  0x4b   :  { %2696 = vmatprep.mubr.bf16.mxu0 %v3636_v58  ;;  %2364 = vmatpush1.bf16.msra.mxu1 %v4675_v59  ;;  %v83_v57 = vld [vmem:[%s5928_s0 + $0x220] sm:$0xff]  ;;  %v81_v58 = vld [vmem:[%s5928_s0 + $0x210] sm:$0xff] }
  0x4c   :  { %2942 = vmatpush1.bf16.msra.mxu0 %v4676_v60  ;;  %2365 = vmatprep.subr.bf16.mxu1 %v4704_v0  ;;  %v85_v59 = vld [vmem:[%s5928_s0 + $0x230] sm:$0xff]  ;;  %v3671_v60 = vcombine.low %v71_v46, %v75_v47  ;;  %v3680_v62 = vcombine.high %v79_v56, %v83_v57  ;;  %v127_v47 = vld [vmem:[%s5928_s0 + $0x380] sm:$0xff] }
  0x4d   :  { %2943 = vmatprep.subr.bf16.mxu0 %v4704_v0  ;;  %v3684_v63 = vcombine.high %v81_v58, %v85_v59  ;;  %v4700_v46 = vld [vmem:[%s5927_s1 + $0x1f0] sm:$0xff]  }
  0x4f   :  { %2366 = vmatpush1.bf16.msra.mxu1 %v4677_v2  ;;  %v91_v2 = vld [vmem:[%s5928_s0 + $0x260] sm:$0xff] }
  0x50   :  { %2944 = vmatpush1.bf16.msra.mxu0 %v4678_v3  ;;  %2367 = vmatprep.subr.bf16.mxu1 %v4704_v0  ;;  %v89_v3 = vld [vmem:[%s5928_s0 + $0x250] sm:$0xff] }
  0x51   :  { %2119 = vmatmul.mubr.bf16.gmra.mrb[8].mxu1 %v3631_v4  ;;  %2945 = vmatprep.subr.bf16.mxu0 %v4704_v0  ;;  %v93_v4 = vld [vmem:[%s5928_s0 + $0x270] sm:$0xff] }
  0x52   :  { %2697 = vmatmul.mubr.bf16.gmra.mrb[8].mxu0 %v3635_v6  ;;  %2126 = vmatprep.mubr.bf16.mxu1 %v3640_v7  ;;  %v3683_v6 = vcombine.low %v81_v58, %v85_v59  ;;  %v3688_v7 = vcombine.high %v87_v1, %v91_v2  ;;  %v3727_v58 = vcombine.low %v127_v47, %v131_v48 }
  0x53   :  { %2704 = vmatprep.mubr.bf16.mxu0 %v3644_v9  ;;  %2368 = vmatpush1.bf16.msra.mxu1 %v4679_v5  ;;  %v3679_v5 = vcombine.low %v79_v56, %v83_v57  ;;  %v4695_v9 = vld [vmem:[%s5927_s1 + $0xe0] sm:$0xff]   ;;  %v137_v57 = vld [vmem:[%s5928_s0 + $0x3d0] sm:$0xff] }
  0x54   :  { %2946 = vmatpush1.bf16.msra.mxu0 %v4680_v8  ;;  %2369 = vmatprep.subr.bf16.mxu1 %v4704_v0  ;;  %v3692_v8 = vcombine.high %v89_v3, %v93_v4  ;;  %v139_v56 = vld [vmem:[%s5928_s0 + $0x3e0] sm:$0xff] }
  0x55   :  { %2947 = vmatprep.subr.bf16.mxu0 %v4704_v0 }
  0x57   :  { %2370 = vmatpush1.bf16.msra.mxu1 %v4681_v14  ;;  %v101_v14 = vld [vmem:[%s5928_s0 + $0x2b0] sm:$0xff] }
  0x58   :  { %2948 = vmatpush1.bf16.msra.mxu0 %v4682_v15  ;;  %2371 = vmatprep.subr.bf16.mxu1 %v4704_v0  ;;  %v3687_v15 = vcombine.low %v87_v1, %v91_v2  ;;  %v143_v1 = vld [vmem:[%s5928_s0 + $0x400] sm:$0xff] }
  0x59   :  { %2127 = vmatmul.mubr.bf16.gmra.mrb[12].mxu1 %v3639_v16  ;;  %2949 = vmatprep.subr.bf16.mxu0 %v4704_v0  ;;  %v3691_v16 = vcombine.low %v89_v3, %v93_v4  ;;  %v147_v2 = vld [vmem:[%s5928_s0 + $0x420] sm:$0xff]  ;;  %v145_v3 = vld [vmem:[%s5928_s0 + $0x410] sm:$0xff] }
  0x5a   :  { %2705 = vmatmul.mubr.bf16.gmra.mrb[12].mxu0 %v3643_v17  ;;  %2134 = vmatprep.mubr.bf16.mxu1 %v3648_v18  ;;  %v3696_v17 = vcombine.high %v95_v11, %v99_v12  ;;  %v3700_v18 = vcombine.high %v97_v13, %v101_v14  ;;  %v149_v4 = vld [vmem:[%s5928_s0 + $0x430] sm:$0xff] }
  0x5b   :  { %2712 = vmatprep.mubr.bf16.mxu0 %v3652_v19  ;;  %2372 = vmatpush1.bf16.msra.mxu1 %v4683_v20  ;;  %v103_v19 = vld [vmem:[%s5928_s0 + $0x2c0] sm:$0xff]  ;;  %v153_v11 = vld [vmem:[%s5928_s0 + $0x450] sm:$0xff] }
  0x5c   :  { %2950 = vmatpush1.bf16.msra.mxu0 %v4684_v21  ;;  %2373 = vmatprep.subr.bf16.mxu1 %v4704_v0  ;;  %v107_v20 = vld [vmem:[%s5928_s0 + $0x2e0] sm:$0xff]  ;;  %v105_v21 = vld [vmem:[%s5928_s0 + $0x2d0] sm:$0xff] }
  0x5d   :  { %2951 = vmatprep.subr.bf16.mxu0 %v4704_v0  ;;  %v3704_v25 = vcombine.high %v103_v19, %v107_v20  ;;  %v3708_v26 = vcombine.high %v105_v21, %v109_v22  ;;  %v3707_v34 = vcombine.low %v105_v21, %v109_v22  ;;  %v157_v12 = vld [vmem:[%s5928_s0 + $0x470] sm:$0xff] }
  0x5e   :  { %v3755_v22 = vcombine.low %v153_v11, %v157_v12 }
  0x5f   :  { %2374 = vmatpush1.bf16.msra.mxu1 %v4685_v24  ;;  %v3699_v24 = vcombine.low %v97_v13, %v101_v14  ;;  %v3743_v13 = vcombine.low %v143_v1, %v147_v2  ;;  %v3747_v14 = vcombine.low %v145_v3, %v149_v4 }
  0x60   :  { %2952 = vmatpush1.bf16.msra.mxu0 %v4686_v27  ;;  %2375 = vmatprep.subr.bf16.mxu1 %v4704_v0  ;;  %v4697_v27 = vld [vmem:[%s5927_s1 + $0xe8] sm:$0xff]  }
  0x61   :  { %2135 = vmatmul.mubr.bf16.gmra.mrb[16].mxu1 %v3647_v28  ;;  %2953 = vmatprep.subr.bf16.mxu0 %v4704_v0  ;;  %v4698_v28 = vld [vmem:[%s5927_s1 + $0x1e8] sm:$0xff]  }
  0x62   :  { %2713 = vmatmul.mubr.bf16.gmra.mrb[16].mxu0 %v3651_v29  ;;  %2142 = vmatprep.mubr.bf16.mxu1 %v3656_v30  ;;  %v111_v29 = vld [vmem:[%s5928_s0 + $0x300] sm:$0xff] }
  0x63   :  { %2720 = vmatprep.mubr.bf16.mxu0 %v3660_v31  ;;  %2376 = vmatpush1.bf16.msra.mxu1 %v4687_v32  ;;  %v115_v30 = vld [vmem:[%s5928_s0 + $0x320] sm:$0xff]  ;;  %v113_v31 = vld [vmem:[%s5928_s0 + $0x310] sm:$0xff] }
  0x64   :  { %2954 = vmatpush1.bf16.msra.mxu0 %v4688_v33  ;;  %2377 = vmatprep.subr.bf16.mxu1 %v4704_v0  ;;  %v117_v32 = vld [vmem:[%s5928_s0 + $0x330] sm:$0xff]  ;;  %v3703_v33 = vcombine.low %v103_v19, %v107_v20  ;;  %v3712_v35 = vcombine.high %v111_v29, %v115_v30 }
  0x65   :  { %2955 = vmatprep.subr.bf16.mxu0 %v4704_v0  ;;  %v161_v19 = vld [vmem:[%s5928_s0 + $0x490] sm:$0xff] }
  0x66   :  { %v165_v20 = vld [vmem:[%s5928_s0 + $0x4b0] sm:$0xff] }
  0x67   :  { %2378 = vmatpush1.bf16.msra.mxu1 %v4689_v36  ;;  %v3716_v36 = vcombine.high %v113_v31, %v117_v32 }
  0x68   :  { %2956 = vmatpush1.bf16.msra.mxu0 %v4690_v39  ;;  %2379 = vmatprep.subr.bf16.mxu1 %v4704_v0  ;;  %v121_v39 = vld [vmem:[%s5928_s0 + $0x350] sm:$0xff] }
  0x69   :  { %2143 = vmatmul.mubr.bf16.gmra.mrb[20].mxu1 %v3655_v40  ;;  %2957 = vmatprep.subr.bf16.mxu0 %v4704_v0  ;;  %v125_v40 = vld [vmem:[%s5928_s0 + $0x370] sm:$0xff] }
  0x6a   :  { %2721 = vmatmul.mubr.bf16.gmra.mrb[20].mxu0 %v3659_v41  ;;  %2150 = vmatprep.mubr.bf16.mxu1 %v3664_v42  ;;  %v3711_v41 = vcombine.low %v111_v29, %v115_v30  ;;  %v3715_v42 = vcombine.low %v113_v31, %v117_v32  ;;  %v3763_v30 = vcombine.low %v161_v19, %v165_v20 }
  0x6b   :  { %2728 = vmatprep.mubr.bf16.mxu0 %v3668_v43  ;;  %2380 = vmatpush1.bf16.msra.mxu1 %v4691_v44  ;;  %v3720_v43 = vcombine.high %v119_v37, %v123_v38  ;;  %v3724_v44 = vcombine.high %v121_v39, %v125_v40 }
  0x6c   :  { %2958 = vmatpush1.bf16.msra.mxu0 %v4692_v45  ;;  %2381 = vmatprep.subr.bf16.mxu1 %v4704_v0  ;;  %v4699_v45 = vld [vmem:[%s5927_s1 + $0xf0] sm:$0xff]  }
  0x6d   :  { %2959 = vmatprep.subr.bf16.mxu0 %v4704_v0 }
  0x6f   :  { %2382 = vmatpush1.bf16.msra.mxu1 %v4693_v54 }
  0x70   :  { %2960 = vmatpush1.bf16.msra.mxu0 %v4694_v55  ;;  %2383 = vmatprep.subr.bf16.mxu1 %v4704_v0  ;;  %v135_v55 = vld [vmem:[%s5928_s0 + $0x3c0] sm:$0xff] }
  0x71   :  { %2151 = vmatmul.mubr.bf16.gmra.mrb[24].mxu1 %v3663_v50  ;;  %2961 = vmatprep.subr.bf16.mxu0 %v4704_v0  ;;  %v133_v50 = vld [vmem:[%s5928_s0 + $0x3b0] sm:$0xff] }
  0x72   :  { %2729 = vmatmul.mubr.bf16.gmra.mrb[24].mxu0 %v3667_v51  ;;  %2158 = vmatprep.mubr.bf16.mxu1 %v3672_v52  ;;  %v3719_v51 = vcombine.low %v119_v37, %v123_v38  ;;  %v3723_v52 = vcombine.low %v121_v39, %v125_v40  ;;  %v3732_v54 = vcombine.high %v129_v49, %v133_v50 }
  0x73   :  { %2736 = vmatprep.mubr.bf16.mxu0 %v3676_v53  ;;  %2384 = vmatpush1.bf16.msra.mxu1 %v4695_v9  ;;  %v3728_v53 = vcombine.high %v127_v47, %v131_v48  ;;  %v3731_v59 = vcombine.low %v129_v49, %v133_v50  ;;  %v151_v9 = vld [vmem:[%s5928_s0 + $0x440] sm:$0xff] }
  0x74   :  { %2962 = vmatpush1.bf16.msra.mxu0 %v4696_v10  ;;  %2385 = vmatprep.subr.bf16.mxu1 %v4704_v0  ;;  %v155_v10 = vld [vmem:[%s5928_s0 + $0x460] sm:$0xff] }
  0x75   :  { %2963 = vmatprep.subr.bf16.mxu0 %v4704_v0  ;;  %v3751_v21 = vcombine.low %v151_v9, %v155_v10  ;;  %v191_v49 = vld [vmem:[%s5928_s0 + $0x580] sm:$0xff] }
  0x76   :  { %v195_v50 = vld [vmem:[%s5928_s0 + $0x5a0] sm:$0xff] }
  0x77   :  { %2386 = vmatpush1.bf16.msra.mxu1 %v4697_v27  ;;  %v169_v27 = vld [vmem:[%s5928_s0 + $0x4d0] sm:$0xff] }
  0x78   :  { %2964 = vmatpush1.bf16.msra.mxu0 %v4698_v28  ;;  %2387 = vmatprep.subr.bf16.mxu1 %v4704_v0  ;;  %v173_v28 = vld [vmem:[%s5928_s0 + $0x4f0] sm:$0xff] }
  0x79   :  { %2159 = vmatmul.mubr.bf16.gmra.mrb[28].mxu1 %v3671_v60  ;;  %2965 = vmatprep.subr.bf16.mxu0 %v4704_v0  ;;  %v3736_v60 = vcombine.high %v135_v55, %v139_v56  ;;  %v3772_v32 = vcombine.high %v169_v27, %v173_v28  ;;  %v3771_v38 = vcombine.low %v169_v27, %v173_v28  ;;  %v233_v27 = vld [vmem:[%s5928_s0 + $0x6d0] sm:$0xff] }
  0x7a   :  { %2737 = vmatmul.mubr.bf16.gmra.mrb[28].mxu0 %v3675_v61  ;;  %2166 = vmatprep.mubr.bf16.mxu1 %v3680_v62  ;;  %v4701_v62 = vld [vmem:[%s5927_s1 + $0xf8] sm:$0xff]   ;;  %v237_v28 = vld [vmem:[%s5928_s0 + $0x6f0] sm:$0xff] }
  0x7b   :  { %2744 = vmatprep.mubr.bf16.mxu0 %v3684_v63  ;;  %2388 = vmatpush1.bf16.msra.mxu1 %v4699_v45  ;;  %v4702_v63 = vld [vmem:[%s5927_s1 + $0x1f8] sm:$0xff]  }
  0x7c   :  { %2966 = vmatpush1.bf16.msra.mxu0 %v4700_v46  ;;  %2389 = vmatprep.subr.bf16.mxu1 %v4704_v0 }
  0x7d   :  { %2967 = vmatprep.subr.bf16.mxu0 %v4704_v0  ;;  %v141_v0 = vld [vmem:[%s5928_s0 + $0x3f0] sm:$0xff] }
  0x7e   :  { %v3740_v61 = vcombine.high %v137_v57, %v141_v0 }
  0x7f   :  { %2390 = vmatpush1.bf16.msra.mxu1 %v4701_v62 }
  0x80   :  { %2968 = vmatpush1.bf16.msra.mxu0 %v4702_v63 }
  0x81   :  { %2167 = vmatmul.mubr.bf16.gmra.mrb[32].mxu1 %v3679_v5  ;;  %v3735_v5 = vcombine.low %v135_v55, %v139_v56  ;;  %v3792_v55 = vcombine.high %v191_v49, %v195_v50 }
  0x82   :  { %2745 = vmatmul.mubr.bf16.gmra.mrb[32].mxu0 %v3683_v6  ;;  %2174 = vmatprep.mubr.bf16.mxu1 %v3688_v7  ;;  %v3739_v6 = vcombine.low %v137_v57, %v141_v0  ;;  %v3744_v7 = vcombine.high %v143_v1, %v147_v2  ;;  %v199_v57 = vld [vmem:[%s5928_s0 + $0x5c0] sm:$0xff] }
  0x83   :  { %2752 = vmatprep.mubr.bf16.mxu0 %v3692_v8  ;;  %v3748_v8 = vcombine.high %v145_v3, %v149_v4  ;;  %v203_v0 = vld [vmem:[%s5928_s0 + $0x5e0] sm:$0xff]  ;;  %v209_v3 = vld [vmem:[%s5928_s0 + $0x610] sm:$0xff] }
  0x84   :  { %v3800_v62 = vcombine.high %v199_v57, %v203_v0  ;;  %v207_v1 = vld [vmem:[%s5928_s0 + $0x600] sm:$0xff]  ;;  %v213_v4 = vld [vmem:[%s5928_s0 + $0x630] sm:$0xff] }
  0x85   :  { %v211_v2 = vld [vmem:[%s5928_s0 + $0x620] sm:$0xff] }
  0x89   :  { %2175 = vmatmul.mubr.bf16.gmra.mrb[36].mxu1 %v3687_v15  ;;  %v3752_v15 = vcombine.high %v151_v9, %v155_v10  ;;  %v215_v9 = vld [vmem:[%s5928_s0 + $0x640] sm:$0xff] }
  0x8a   :  { %2753 = vmatmul.mubr.bf16.gmra.mrb[36].mxu0 %v3691_v16  ;;  %2182 = vmatprep.mubr.bf16.mxu1 %v3696_v17  ;;  %v3756_v16 = vcombine.high %v153_v11, %v157_v12  ;;  %v159_v17 = vld [vmem:[%s5928_s0 + $0x480] sm:$0xff]  ;;  %v217_v11 = vld [vmem:[%s5928_s0 + $0x650] sm:$0xff] }
  0x8b   :  { %2760 = vmatprep.mubr.bf16.mxu0 %v3700_v18  ;;  %v163_v18 = vld [vmem:[%s5928_s0 + $0x4a0] sm:$0xff]  ;;  %v221_v12 = vld [vmem:[%s5928_s0 + $0x670] sm:$0xff] }
  0x8c   :  { %v3759_v29 = vcombine.low %v159_v17, %v163_v18  ;;  %v219_v10 = vld [vmem:[%s5928_s0 + $0x660] sm:$0xff] }
  0x91   :  { %2183 = vmatmul.mubr.bf16.gmra.mrb[40].mxu1 %v3695_v23  ;;  %v3760_v23 = vcombine.high %v159_v17, %v163_v18  ;;  %v223_v17 = vld [vmem:[%s5928_s0 + $0x680] sm:$0xff] }
  0x92   :  { %2761 = vmatmul.mubr.bf16.gmra.mrb[40].mxu0 %v3699_v24  ;;  %2190 = vmatprep.mubr.bf16.mxu1 %v3704_v25  ;;  %v3764_v24 = vcombine.high %v161_v19, %v165_v20  ;;  %v167_v25 = vld [vmem:[%s5928_s0 + $0x4c0] sm:$0xff]  ;;  %v225_v19 = vld [vmem:[%s5928_s0 + $0x690] sm:$0xff] }
  0x93   :  { %2768 = vmatprep.mubr.bf16.mxu0 %v3708_v26  ;;  %v171_v26 = vld [vmem:[%s5928_s0 + $0x4e0] sm:$0xff]  ;;  %v229_v20 = vld [vmem:[%s5928_s0 + $0x6b0] sm:$0xff] }
  0x94   :  { %v3768_v31 = vcombine.high %v167_v25, %v171_v26  ;;  %v3767_v37 = vcombine.low %v167_v25, %v171_v26  ;;  %v227_v18 = vld [vmem:[%s5928_s0 + $0x6a0] sm:$0xff] }
  0x95   :  { %v231_v25 = vld [vmem:[%s5928_s0 + $0x6c0] sm:$0xff] }
  0x96   :  { %v235_v26 = vld [vmem:[%s5928_s0 + $0x6e0] sm:$0xff] }
  0x99   :  { %2191 = vmatmul.mubr.bf16.gmra.mrb[44].mxu1 %v3703_v33  ;;  %v175_v33 = vld [vmem:[%s5928_s0 + $0x500] sm:$0xff] }
  0x9a   :  { %2769 = vmatmul.mubr.bf16.gmra.mrb[44].mxu0 %v3707_v34  ;;  %2198 = vmatprep.mubr.bf16.mxu1 %v3712_v35  ;;  %v179_v34 = vld [vmem:[%s5928_s0 + $0x520] sm:$0xff]  ;;  %v177_v35 = vld [vmem:[%s5928_s0 + $0x510] sm:$0xff] }
  0x9b   :  { %2776 = vmatprep.mubr.bf16.mxu0 %v3716_v36  ;;  %v181_v36 = vld [vmem:[%s5928_s0 + $0x530] sm:$0xff]  ;;  %v3776_v39 = vcombine.high %v175_v33, %v179_v34  ;;  %v3775_v45 = vcombine.low %v175_v33, %v179_v34  ;;  %v239_v33 = vld [vmem:[%s5928_s0 + $0x700] sm:$0xff] }
  0x9c   :  { %v3780_v40 = vcombine.high %v177_v35, %v181_v36  ;;  %v3779_v46 = vcombine.low %v177_v35, %v181_v36  ;;  %v243_v34 = vld [vmem:[%s5928_s0 + $0x720] sm:$0xff]  ;;  %v241_v35 = vld [vmem:[%s5928_s0 + $0x710] sm:$0xff] }
  0x9d   :  { %v245_v36 = vld [vmem:[%s5928_s0 + $0x730] sm:$0xff] }
  0xa1   :  { %2199 = vmatmul.mubr.bf16.gmra.mrb[48].mxu1 %v3711_v41  ;;  %v183_v41 = vld [vmem:[%s5928_s0 + $0x540] sm:$0xff] }
  0xa2   :  { %2777 = vmatmul.mubr.bf16.gmra.mrb[48].mxu0 %v3715_v42  ;;  %2206 = vmatprep.mubr.bf16.mxu1 %v3720_v43  ;;  %v187_v42 = vld [vmem:[%s5928_s0 + $0x560] sm:$0xff]  ;;  %v185_v43 = vld [vmem:[%s5928_s0 + $0x550] sm:$0xff] }
  0xa3   :  { %2784 = vmatprep.mubr.bf16.mxu0 %v3724_v44  ;;  %v189_v44 = vld [vmem:[%s5928_s0 + $0x570] sm:$0xff]  ;;  %v3784_v47 = vcombine.high %v183_v41, %v187_v42 }
  0xa4   :  { %v3788_v48 = vcombine.high %v185_v43, %v189_v44 }
  0xa9   :  { %2207 = vmatmul.mubr.bf16.gmra.mrb[52].mxu1 %v3719_v51  ;;  %v193_v51 = vld [vmem:[%s5928_s0 + $0x590] sm:$0xff] }
  0xaa   :  { %2785 = vmatmul.mubr.bf16.gmra.mrb[52].mxu0 %v3723_v52  ;;  %2214 = vmatprep.mubr.bf16.mxu1 %v3728_v53  ;;  %v197_v52 = vld [vmem:[%s5928_s0 + $0x5b0] sm:$0xff]  ;;  %v3783_v53 = vcombine.low %v183_v41, %v187_v42  ;;  %v247_v41 = vld [vmem:[%s5928_s0 + $0x740] sm:$0xff] }
  0xab   :  { %2792 = vmatprep.mubr.bf16.mxu0 %v3732_v54  ;;  %v3787_v54 = vcombine.low %v185_v43, %v189_v44  ;;  %v3796_v56 = vcombine.high %v193_v51, %v197_v52  ;;  %v251_v42 = vld [vmem:[%s5928_s0 + $0x760] sm:$0xff]  ;;  %v249_v43 = vld [vmem:[%s5928_s0 + $0x750] sm:$0xff] }
  0xac   :  { %v253_v44 = vld [vmem:[%s5928_s0 + $0x770] sm:$0xff] }
  0xb1   :  { %2215 = vmatmul.mubr.bf16.gmra.mrb[56].mxu1 %v3727_v58  ;;  %v201_v58 = vld [vmem:[%s5928_s0 + $0x5d0] sm:$0xff] }
  0xb2   :  { %2793 = vmatmul.mubr.bf16.gmra.mrb[56].mxu0 %v3731_v59  ;;  %2222 = vmatprep.mubr.bf16.mxu1 %v3736_v60  ;;  %v205_v59 = vld [vmem:[%s5928_s0 + $0x5f0] sm:$0xff]  ;;  %v3791_v60 = vcombine.low %v191_v49, %v195_v50  ;;  %v255_v49 = vld [vmem:[%s5928_s0 + $0x780] sm:$0xff] }
  0xb3   :  { %2800 = vmatprep.mubr.bf16.mxu0 %v3740_v61  ;;  %v3795_v61 = vcombine.low %v193_v51, %v197_v52  ;;  %v3804_v63 = vcombine.high %v201_v58, %v205_v59  ;;  %v259_v50 = vld [vmem:[%s5928_s0 + $0x7a0] sm:$0xff]  ;;  %v257_v51 = vld [vmem:[%s5928_s0 + $0x790] sm:$0xff] }
  0xb4   :  { %v261_v52 = vld [vmem:[%s5928_s0 + $0x7b0] sm:$0xff] }
  0xb9   :  { %2223 = vmatmul.mubr.bf16.gmra.mrb[60].mxu1 %v3735_v5  ;;  %v3799_v5 = vcombine.low %v199_v57, %v203_v0  ;;  %v263_v57 = vld [vmem:[%s5928_s0 + $0x7c0] sm:$0xff] }
  0xba   :  { %2801 = vmatmul.mubr.bf16.gmra.mrb[60].mxu0 %v3739_v6  ;;  %2230 = vmatprep.mubr.bf16.mxu1 %v3744_v7  ;;  %v3803_v6 = vcombine.low %v201_v58, %v205_v59  ;;  %v3808_v7 = vcombine.high %v207_v1, %v211_v2  ;;  %v267_v0 = vld [vmem:[%s5928_s0 + $0x7e0] sm:$0xff]  ;;  %v265_v58 = vld [vmem:[%s5928_s0 + $0x7d0] sm:$0xff] }
  0xbb   :  { %2808 = vmatprep.mubr.bf16.mxu0 %v3748_v8  ;;  %v3812_v8 = vcombine.high %v209_v3, %v213_v4  ;;  %v269_v59 = vld [vmem:[%s5928_s0 + $0x7f0] sm:$0xff] }
  0xc1   :  { %2231 = vmatmul.mubr.bf16.gmra.mrb[64].mxu1 %v3743_v13  ;;  %v3807_v13 = vcombine.low %v207_v1, %v211_v2  ;;  %v16_v1 = vld [vmem:[%s5928_s0 + $0x8] sm:$0xff] }
  0xc2   :  { %2809 = vmatmul.mubr.bf16.gmra.mrb[64].mxu0 %v3747_v14  ;;  %2238 = vmatprep.mubr.bf16.mxu1 %v3752_v15  ;;  %v3811_v14 = vcombine.low %v209_v3, %v213_v4  ;;  %v3816_v15 = vcombine.high %v215_v9, %v219_v10  ;;  %v20_v2 = vld [vmem:[%s5928_s0 + $0x28] sm:$0xff]  ;;  %v18_v3 = vld [vmem:[%s5928_s0 + $0x18] sm:$0xff] }
  0xc3   :  { %2816 = vmatprep.mubr.bf16.mxu0 %v3756_v16  ;;  %v3820_v16 = vcombine.high %v217_v11, %v221_v12  ;;  %v22_v4 = vld [vmem:[%s5928_s0 + $0x38] sm:$0xff] }
  0xc9   :  { %2239 = vmatmul.mubr.bf16.gmra.mrb[68].mxu1 %v3751_v21  ;;  %v3815_v21 = vcombine.low %v215_v9, %v219_v10  ;;  %v24_v9 = vld [vmem:[%s5928_s0 + $0x48] sm:$0xff] }
  0xca   :  { %2817 = vmatmul.mubr.bf16.gmra.mrb[68].mxu0 %v3755_v22  ;;  %2246 = vmatprep.mubr.bf16.mxu1 %v3760_v23  ;;  %v3819_v22 = vcombine.low %v217_v11, %v221_v12  ;;  %v3824_v23 = vcombine.high %v223_v17, %v227_v18  ;;  %v28_v10 = vld [vmem:[%s5928_s0 + $0x68] sm:$0xff]  ;;  %v26_v11 = vld [vmem:[%s5928_s0 + $0x58] sm:$0xff] }
  0xcb   :  { %2824 = vmatprep.mubr.bf16.mxu0 %v3764_v24  ;;  %v3828_v24 = vcombine.high %v225_v19, %v229_v20  ;;  %v30_v12 = vld [vmem:[%s5928_s0 + $0x78] sm:$0xff] }
  0xd1   :  { %2247 = vmatmul.mubr.bf16.gmra.mrb[72].mxu1 %v3759_v29  ;;  %v3823_v29 = vcombine.low %v223_v17, %v227_v18  ;;  %v32_v17 = vld [vmem:[%s5928_s0 + $0x88] sm:$0xff] }
  0xd2   :  { %2825 = vmatmul.mubr.bf16.gmra.mrb[72].mxu0 %v3763_v30  ;;  %2254 = vmatprep.mubr.bf16.mxu1 %v3768_v31  ;;  %v3827_v30 = vcombine.low %v225_v19, %v229_v20  ;;  %v3832_v31 = vcombine.high %v231_v25, %v235_v26  ;;  %v36_v18 = vld [vmem:[%s5928_s0 + $0xa8] sm:$0xff]  ;;  %v34_v19 = vld [vmem:[%s5928_s0 + $0x98] sm:$0xff] }
  0xd3   :  { %2832 = vmatprep.mubr.bf16.mxu0 %v3772_v32  ;;  %v3836_v32 = vcombine.high %v233_v27, %v237_v28  ;;  %v38_v20 = vld [vmem:[%s5928_s0 + $0xb8] sm:$0xff] }
  0xd9   :  { %2255 = vmatmul.mubr.bf16.gmra.mrb[76].mxu1 %v3767_v37  ;;  %v3831_v37 = vcombine.low %v231_v25, %v235_v26  ;;  %v40_v25 = vld [vmem:[%s5928_s0 + $0xc8] sm:$0xff] }
  0xda   :  { %2833 = vmatmul.mubr.bf16.gmra.mrb[76].mxu0 %v3771_v38  ;;  %2262 = vmatprep.mubr.bf16.mxu1 %v3776_v39  ;;  %v3835_v38 = vcombine.low %v233_v27, %v237_v28  ;;  %v3840_v39 = vcombine.high %v239_v33, %v243_v34  ;;  %v44_v26 = vld [vmem:[%s5928_s0 + $0xe8] sm:$0xff]  ;;  %v42_v27 = vld [vmem:[%s5928_s0 + $0xd8] sm:$0xff] }
  0xdb   :  { %2840 = vmatprep.mubr.bf16.mxu0 %v3780_v40  ;;  %v3844_v40 = vcombine.high %v241_v35, %v245_v36  ;;  %v46_v28 = vld [vmem:[%s5928_s0 + $0xf8] sm:$0xff] }
  0xe1   :  { %2263 = vmatmul.mubr.bf16.gmra.mrb[80].mxu1 %v3775_v45  ;;  %v3839_v45 = vcombine.low %v239_v33, %v243_v34  ;;  %v48_v33 = vld [vmem:[%s5928_s0 + $0x108] sm:$0xff] }
  0xe2   :  { %2841 = vmatmul.mubr.bf16.gmra.mrb[80].mxu0 %v3779_v46  ;;  %2270 = vmatprep.mubr.bf16.mxu1 %v3784_v47  ;;  %v3843_v46 = vcombine.low %v241_v35, %v245_v36  ;;  %v3848_v47 = vcombine.high %v247_v41, %v251_v42  ;;  %v52_v34 = vld [vmem:[%s5928_s0 + $0x128] sm:$0xff]  ;;  %v50_v35 = vld [vmem:[%s5928_s0 + $0x118] sm:$0xff] }
  0xe3   :  { %2848 = vmatprep.mubr.bf16.mxu0 %v3788_v48  ;;  %v3852_v48 = vcombine.high %v249_v43, %v253_v44  ;;  %v54_v36 = vld [vmem:[%s5928_s0 + $0x138] sm:$0xff] }
  0xe9   :  { %2271 = vmatmul.mubr.bf16.gmra.mrb[84].mxu1 %v3783_v53  ;;  %v3847_v53 = vcombine.low %v247_v41, %v251_v42  ;;  %v56_v41 = vld [vmem:[%s5928_s0 + $0x148] sm:$0xff] }
  0xea   :  { %2849 = vmatmul.mubr.bf16.gmra.mrb[84].mxu0 %v3787_v54  ;;  %2278 = vmatprep.mubr.bf16.mxu1 %v3792_v55  ;;  %v3851_v54 = vcombine.low %v249_v43, %v253_v44  ;;  %v3856_v55 = vcombine.high %v255_v49, %v259_v50  ;;  %v60_v42 = vld [vmem:[%s5928_s0 + $0x168] sm:$0xff]  ;;  %v58_v43 = vld [vmem:[%s5928_s0 + $0x158] sm:$0xff] }
  0xeb   :  { %2856 = vmatprep.mubr.bf16.mxu0 %v3796_v56  ;;  %v3860_v56 = vcombine.high %v257_v51, %v261_v52  ;;  %v62_v44 = vld [vmem:[%s5928_s0 + $0x178] sm:$0xff] }
  0xf1   :  { %2279 = vmatmul.mubr.bf16.gmra.mrb[88].mxu1 %v3791_v60  ;;  %v3855_v60 = vcombine.low %v255_v49, %v259_v50  ;;  %v64_v49 = vld [vmem:[%s5928_s0 + $0x188] sm:$0xff] }
  0xf2   :  { %2857 = vmatmul.mubr.bf16.gmra.mrb[88].mxu0 %v3795_v61  ;;  %2286 = vmatprep.mubr.bf16.mxu1 %v3800_v62  ;;  %v3859_v61 = vcombine.low %v257_v51, %v261_v52  ;;  %v3864_v62 = vcombine.high %v263_v57, %v267_v0  ;;  %v68_v50 = vld [vmem:[%s5928_s0 + $0x1a8] sm:$0xff]  ;;  %v66_v51 = vld [vmem:[%s5928_s0 + $0x198] sm:$0xff] }
  0xf3   :  { %2864 = vmatprep.mubr.bf16.mxu0 %v3804_v63  ;;  %v3868_v63 = vcombine.high %v265_v58, %v269_v59  ;;  %v70_v52 = vld [vmem:[%s5928_s0 + $0x1b8] sm:$0xff] }
  0xf9   :  { %2287 = vmatmul.mubr.bf16.gmra.mrb[92].mxu1 %v3799_v5  ;;  %v3863_v5 = vcombine.low %v263_v57, %v267_v0  ;;  %v72_v57 = vld [vmem:[%s5928_s0 + $0x1c8] sm:$0xff] }
  0xfa   :  { %2865 = vmatmul.mubr.bf16.gmra.mrb[92].mxu0 %v3803_v6  ;;  %2294 = vmatprep.mubr.bf16.mxu1 %v3808_v7  ;;  %v3867_v6 = vcombine.low %v265_v58, %v269_v59  ;;  %v3618_v7 = vcombine.high %v16_v1, %v20_v2  ;;  %v76_v0 = vld [vmem:[%s5928_s0 + $0x1e8] sm:$0xff]  ;;  %v74_v58 = vld [vmem:[%s5928_s0 + $0x1d8] sm:$0xff] }
  0xfb   :  { %2872 = vmatprep.mubr.bf16.mxu0 %v3812_v8  ;;  %v3622_v8 = vcombine.high %v18_v3, %v22_v4  ;;  %v78_v59 = vld [vmem:[%s5928_s0 + $0x1f8] sm:$0xff] }
 0x101   :  { %2295 = vmatmul.mubr.bf16.gmra.mrb[96].mxu1 %v3807_v13  ;;  %v3617_v13 = vcombine.low %v16_v1, %v20_v2  ;;  %v80_v1 = vld [vmem:[%s5928_s0 + $0x208] sm:$0xff] }
 0x102   :  { %2873 = vmatmul.mubr.bf16.gmra.mrb[96].mxu0 %v3811_v14  ;;  %2302 = vmatprep.mubr.bf16.mxu1 %v3816_v15  ;;  %v3621_v14 = vcombine.low %v18_v3, %v22_v4  ;;  %v3626_v15 = vcombine.high %v24_v9, %v28_v10  ;;  %v84_v2 = vld [vmem:[%s5928_s0 + $0x228] sm:$0xff]  ;;  %v82_v3 = vld [vmem:[%s5928_s0 + $0x218] sm:$0xff] }
 0x103   :  { %2880 = vmatprep.mubr.bf16.mxu0 %v3820_v16  ;;  %v3630_v16 = vcombine.high %v26_v11, %v30_v12  ;;  %v86_v4 = vld [vmem:[%s5928_s0 + $0x238] sm:$0xff] }
 0x109   :  { %2303 = vmatmul.mubr.bf16.gmra.mrb[100].mxu1 %v3815_v21  ;;  %v3625_v21 = vcombine.low %v24_v9, %v28_v10  ;;  %v88_v9 = vld [vmem:[%s5928_s0 + $0x248] sm:$0xff] }
 0x10a   :  { %2881 = vmatmul.mubr.bf16.gmra.mrb[100].mxu0 %v3819_v22  ;;  %2310 = vmatprep.mubr.bf16.mxu1 %v3824_v23  ;;  %v3629_v22 = vcombine.low %v26_v11, %v30_v12  ;;  %v3634_v23 = vcombine.high %v32_v17, %v36_v18  ;;  %v92_v10 = vld [vmem:[%s5928_s0 + $0x268] sm:$0xff]  ;;  %v90_v11 = vld [vmem:[%s5928_s0 + $0x258] sm:$0xff] }
 0x10b   :  { %2888 = vmatprep.mubr.bf16.mxu0 %v3828_v24  ;;  %v3638_v24 = vcombine.high %v34_v19, %v38_v20  ;;  %v94_v12 = vld [vmem:[%s5928_s0 + $0x278] sm:$0xff] }
 0x111   :  { %2311 = vmatmul.mubr.bf16.gmra.mrb[104].mxu1 %v3823_v29  ;;  %v3633_v29 = vcombine.low %v32_v17, %v36_v18  ;;  %v96_v17 = vld [vmem:[%s5928_s0 + $0x288] sm:$0xff] }
 0x112   :  { %2889 = vmatmul.mubr.bf16.gmra.mrb[104].mxu0 %v3827_v30  ;;  %2318 = vmatprep.mubr.bf16.mxu1 %v3832_v31  ;;  %v3637_v30 = vcombine.low %v34_v19, %v38_v20  ;;  %v3642_v31 = vcombine.high %v40_v25, %v44_v26  ;;  %v100_v18 = vld [vmem:[%s5928_s0 + $0x2a8] sm:$0xff]  ;;  %v98_v19 = vld [vmem:[%s5928_s0 + $0x298] sm:$0xff] }
 0x113   :  { %2896 = vmatprep.mubr.bf16.mxu0 %v3836_v32  ;;  %v3646_v32 = vcombine.high %v42_v27, %v46_v28  ;;  %v102_v20 = vld [vmem:[%s5928_s0 + $0x2b8] sm:$0xff] }
 0x119   :  { %2319 = vmatmul.mubr.bf16.gmra.mrb[108].mxu1 %v3831_v37  ;;  %v3641_v37 = vcombine.low %v40_v25, %v44_v26  ;;  %v104_v25 = vld [vmem:[%s5928_s0 + $0x2c8] sm:$0xff] }
 0x11a   :  { %2897 = vmatmul.mubr.bf16.gmra.mrb[108].mxu0 %v3835_v38  ;;  %2326 = vmatprep.mubr.bf16.mxu1 %v3840_v39  ;;  %v3645_v38 = vcombine.low %v42_v27, %v46_v28  ;;  %v3650_v39 = vcombine.high %v48_v33, %v52_v34  ;;  %v108_v26 = vld [vmem:[%s5928_s0 + $0x2e8] sm:$0xff]  ;;  %v106_v27 = vld [vmem:[%s5928_s0 + $0x2d8] sm:$0xff] }
 0x11b   :  { %2904 = vmatprep.mubr.bf16.mxu0 %v3844_v40  ;;  %v3654_v40 = vcombine.high %v50_v35, %v54_v36  ;;  %v110_v28 = vld [vmem:[%s5928_s0 + $0x2f8] sm:$0xff] }
 0x121   :  { %2327 = vmatmul.mubr.bf16.gmra.mrb[112].mxu1 %v3839_v45  ;;  %v3649_v45 = vcombine.low %v48_v33, %v52_v34  ;;  %v112_v33 = vld [vmem:[%s5928_s0 + $0x308] sm:$0xff] }
 0x122   :  { %2905 = vmatmul.mubr.bf16.gmra.mrb[112].mxu0 %v3843_v46  ;;  %2334 = vmatprep.mubr.bf16.mxu1 %v3848_v47  ;;  %v3653_v46 = vcombine.low %v50_v35, %v54_v36  ;;  %v3658_v47 = vcombine.high %v56_v41, %v60_v42  ;;  %v116_v34 = vld [vmem:[%s5928_s0 + $0x328] sm:$0xff]  ;;  %v114_v35 = vld [vmem:[%s5928_s0 + $0x318] sm:$0xff] }
 0x123   :  { %2912 = vmatprep.mubr.bf16.mxu0 %v3852_v48  ;;  %v3662_v48 = vcombine.high %v58_v43, %v62_v44  ;;  %v118_v36 = vld [vmem:[%s5928_s0 + $0x338] sm:$0xff] }
 0x129   :  { %2335 = vmatmul.mubr.bf16.gmra.mrb[116].mxu1 %v3847_v53  ;;  %v3657_v53 = vcombine.low %v56_v41, %v60_v42  ;;  %v120_v41 = vld [vmem:[%s5928_s0 + $0x348] sm:$0xff] }
 0x12a   :  { %2913 = vmatmul.mubr.bf16.gmra.mrb[116].mxu0 %v3851_v54  ;;  %2342 = vmatprep.mubr.bf16.mxu1 %v3856_v55  ;;  %v3661_v54 = vcombine.low %v58_v43, %v62_v44  ;;  %v3666_v55 = vcombine.high %v64_v49, %v68_v50  ;;  %v124_v42 = vld [vmem:[%s5928_s0 + $0x368] sm:$0xff]  ;;  %v122_v43 = vld [vmem:[%s5928_s0 + $0x358] sm:$0xff] }
 0x12b   :  { %2920 = vmatprep.mubr.bf16.mxu0 %v3860_v56  ;;  %v3670_v56 = vcombine.high %v66_v51, %v70_v52  ;;  %v126_v44 = vld [vmem:[%s5928_s0 + $0x378] sm:$0xff] }
 0x131   :  { %2343 = vmatmul.mubr.bf16.gmra.mrb[120].mxu1 %v3855_v60  ;;  %v3665_v60 = vcombine.low %v64_v49, %v68_v50  ;;  %v128_v49 = vld [vmem:[%s5928_s0 + $0x388] sm:$0xff] }
 0x132   :  { %2921 = vmatmul.mubr.bf16.gmra.mrb[120].mxu0 %v3859_v61  ;;  %2350 = vmatprep.mubr.bf16.mxu1 %v3864_v62  ;;  %v3669_v61 = vcombine.low %v66_v51, %v70_v52  ;;  %v3674_v62 = vcombine.high %v72_v57, %v76_v0  ;;  %v132_v50 = vld [vmem:[%s5928_s0 + $0x3a8] sm:$0xff]  ;;  %v130_v51 = vld [vmem:[%s5928_s0 + $0x398] sm:$0xff] }
 0x133   :  { %2928 = vmatprep.mubr.bf16.mxu0 %v3868_v63  ;;  %v3678_v63 = vcombine.high %v74_v58, %v78_v59  ;;  %v134_v52 = vld [vmem:[%s5928_s0 + $0x3b8] sm:$0xff] }
 0x139   :  { %2351 = vmatmul.mubr.bf16.gmra.mrb[124].mxu1 %v3863_v5  ;;  %v3673_v5 = vcombine.low %v72_v57, %v76_v0  ;;  %v136_v57 = vld [vmem:[%s5928_s0 + $0x3c8] sm:$0xff] }
 0x13a   :  { %2929 = vmatmul.mubr.bf16.gmra.mrb[124].mxu0 %v3867_v6  ;;  %2391 = vmatprep.mubr.bf16.mxu1 %v3618_v7  ;;  %v3677_v6 = vcombine.low %v74_v58, %v78_v59  ;;  %v3682_v7 = vcombine.high %v80_v1, %v84_v2  ;;  %v140_v0 = vld [vmem:[%s5928_s0 + $0x3e8] sm:$0xff]  ;;  %v138_v58 = vld [vmem:[%s5928_s0 + $0x3d8] sm:$0xff] }
 0x13b   :  { %2969 = vmatprep.mubr.bf16.mxu0 %v3622_v8  ;;  %v3686_v8 = vcombine.high %v82_v3, %v86_v4  ;;  %v142_v59 = vld [vmem:[%s5928_s0 + $0x3f8] sm:$0xff] }
 0x141   :  { %2392 = vmatmul.mubr.bf16.vlgmr.msra.gmra.mrb[0].mxu1 %v3617_v13  ;;  %v3681_v13 = vcombine.low %v80_v1, %v84_v2  ;;  %v144_v1 = vld [vmem:[%s5928_s0 + $0x408] sm:$0xff] }
 0x142   :  { %2970 = vmatmul.mubr.bf16.vlgmr.msra.gmra.mrb[0].mxu0 %v3621_v14  ;;  %2399 = vmatprep.mubr.bf16.mxu1 %v3626_v15  ;;  %v3685_v14 = vcombine.low %v82_v3, %v86_v4  ;;  %v3690_v15 = vcombine.high %v88_v9, %v92_v10  ;;  %v148_v2 = vld [vmem:[%s5928_s0 + $0x428] sm:$0xff]  ;;  %v146_v3 = vld [vmem:[%s5928_s0 + $0x418] sm:$0xff] }
 0x143   :  { %2977 = vmatprep.mubr.bf16.mxu0 %v3630_v16  ;;  %v3694_v16 = vcombine.high %v90_v11, %v94_v12  ;;  %v150_v4 = vld [vmem:[%s5928_s0 + $0x438] sm:$0xff] }
 0x149   :  { %2400 = vmatmul.mubr.bf16.gmra.mrb[4].mxu1 %v3625_v21  ;;  %v3689_v21 = vcombine.low %v88_v9, %v92_v10  ;;  %v152_v9 = vld [vmem:[%s5928_s0 + $0x448] sm:$0xff] }
 0x14a   :  { %2978 = vmatmul.mubr.bf16.gmra.mrb[4].mxu0 %v3629_v22  ;;  %2407 = vmatprep.mubr.bf16.mxu1 %v3634_v23  ;;  %v3693_v22 = vcombine.low %v90_v11, %v94_v12  ;;  %v3698_v23 = vcombine.high %v96_v17, %v100_v18  ;;  %v156_v10 = vld [vmem:[%s5928_s0 + $0x468] sm:$0xff]  ;;  %v154_v11 = vld [vmem:[%s5928_s0 + $0x458] sm:$0xff] }
 0x14b   :  { %2985 = vmatprep.mubr.bf16.mxu0 %v3638_v24  ;;  %v3702_v24 = vcombine.high %v98_v19, %v102_v20  ;;  %v158_v12 = vld [vmem:[%s5928_s0 + $0x478] sm:$0xff] }
 0x151   :  { %2408 = vmatmul.mubr.bf16.gmra.mrb[8].mxu1 %v3633_v29  ;;  %v3697_v29 = vcombine.low %v96_v17, %v100_v18  ;;  %v160_v17 = vld [vmem:[%s5928_s0 + $0x488] sm:$0xff] }
 0x152   :  { %2986 = vmatmul.mubr.bf16.gmra.mrb[8].mxu0 %v3637_v30  ;;  %2415 = vmatprep.mubr.bf16.mxu1 %v3642_v31  ;;  %v3701_v30 = vcombine.low %v98_v19, %v102_v20  ;;  %v3706_v31 = vcombine.high %v104_v25, %v108_v26  ;;  %v164_v18 = vld [vmem:[%s5928_s0 + $0x4a8] sm:$0xff]  ;;  %v162_v19 = vld [vmem:[%s5928_s0 + $0x498] sm:$0xff] }
 0x153   :  { %2993 = vmatprep.mubr.bf16.mxu0 %v3646_v32  ;;  %v3710_v32 = vcombine.high %v106_v27, %v110_v28  ;;  %v166_v20 = vld [vmem:[%s5928_s0 + $0x4b8] sm:$0xff] }
 0x159   :  { %2416 = vmatmul.mubr.bf16.gmra.mrb[12].mxu1 %v3641_v37  ;;  %v3705_v37 = vcombine.low %v104_v25, %v108_v26  ;;  %v168_v25 = vld [vmem:[%s5928_s0 + $0x4c8] sm:$0xff] }
 0x15a   :  { %2994 = vmatmul.mubr.bf16.gmra.mrb[12].mxu0 %v3645_v38  ;;  %2423 = vmatprep.mubr.bf16.mxu1 %v3650_v39  ;;  %v3709_v38 = vcombine.low %v106_v27, %v110_v28  ;;  %v3714_v39 = vcombine.high %v112_v33, %v116_v34  ;;  %v172_v26 = vld [vmem:[%s5928_s0 + $0x4e8] sm:$0xff]  ;;  %v170_v27 = vld [vmem:[%s5928_s0 + $0x4d8] sm:$0xff] }
 0x15b   :  { %3001 = vmatprep.mubr.bf16.mxu0 %v3654_v40  ;;  %v3718_v40 = vcombine.high %v114_v35, %v118_v36  ;;  %v174_v28 = vld [vmem:[%s5928_s0 + $0x4f8] sm:$0xff] }
 0x161   :  { %2424 = vmatmul.mubr.bf16.gmra.mrb[16].mxu1 %v3649_v45  ;;  %v3713_v45 = vcombine.low %v112_v33, %v116_v34  ;;  %v176_v33 = vld [vmem:[%s5928_s0 + $0x508] sm:$0xff] }
 0x162   :  { %3002 = vmatmul.mubr.bf16.gmra.mrb[16].mxu0 %v3653_v46  ;;  %2431 = vmatprep.mubr.bf16.mxu1 %v3658_v47  ;;  %v3717_v46 = vcombine.low %v114_v35, %v118_v36  ;;  %v3722_v47 = vcombine.high %v120_v41, %v124_v42  ;;  %v180_v34 = vld [vmem:[%s5928_s0 + $0x528] sm:$0xff]  ;;  %v178_v35 = vld [vmem:[%s5928_s0 + $0x518] sm:$0xff] }
 0x163   :  { %3009 = vmatprep.mubr.bf16.mxu0 %v3662_v48  ;;  %v3726_v48 = vcombine.high %v122_v43, %v126_v44  ;;  %v182_v36 = vld [vmem:[%s5928_s0 + $0x538] sm:$0xff] }
 0x169   :  { %2432 = vmatmul.mubr.bf16.gmra.mrb[20].mxu1 %v3657_v53  ;;  %v3721_v53 = vcombine.low %v120_v41, %v124_v42  ;;  %v184_v41 = vld [vmem:[%s5928_s0 + $0x548] sm:$0xff] }
 0x16a   :  { %3010 = vmatmul.mubr.bf16.gmra.mrb[20].mxu0 %v3661_v54  ;;  %2439 = vmatprep.mubr.bf16.mxu1 %v3666_v55  ;;  %v3725_v54 = vcombine.low %v122_v43, %v126_v44  ;;  %v3730_v55 = vcombine.high %v128_v49, %v132_v50  ;;  %v188_v42 = vld [vmem:[%s5928_s0 + $0x568] sm:$0xff]  ;;  %v186_v43 = vld [vmem:[%s5928_s0 + $0x558] sm:$0xff] }
 0x16b   :  { %3017 = vmatprep.mubr.bf16.mxu0 %v3670_v56  ;;  %v3734_v56 = vcombine.high %v130_v51, %v134_v52  ;;  %v190_v44 = vld [vmem:[%s5928_s0 + $0x578] sm:$0xff] }
 0x171   :  { %2440 = vmatmul.mubr.bf16.gmra.mrb[24].mxu1 %v3665_v60  ;;  %v3729_v60 = vcombine.low %v128_v49, %v132_v50  ;;  %v192_v49 = vld [vmem:[%s5928_s0 + $0x588] sm:$0xff] }
 0x172   :  { %3018 = vmatmul.mubr.bf16.gmra.mrb[24].mxu0 %v3669_v61  ;;  %2447 = vmatprep.mubr.bf16.mxu1 %v3674_v62  ;;  %v3733_v61 = vcombine.low %v130_v51, %v134_v52  ;;  %v3738_v62 = vcombine.high %v136_v57, %v140_v0  ;;  %v196_v50 = vld [vmem:[%s5928_s0 + $0x5a8] sm:$0xff]  ;;  %v194_v51 = vld [vmem:[%s5928_s0 + $0x598] sm:$0xff] }
 0x173   :  { %3025 = vmatprep.mubr.bf16.mxu0 %v3678_v63  ;;  %v3742_v63 = vcombine.high %v138_v58, %v142_v59  ;;  %v198_v52 = vld [vmem:[%s5928_s0 + $0x5b8] sm:$0xff] }
 0x179   :  { %2448 = vmatmul.mubr.bf16.gmra.mrb[28].mxu1 %v3673_v5  ;;  %v3737_v5 = vcombine.low %v136_v57, %v140_v0  ;;  %v200_v57 = vld [vmem:[%s5928_s0 + $0x5c8] sm:$0xff] }
 0x17a   :  { %3026 = vmatmul.mubr.bf16.gmra.mrb[28].mxu0 %v3677_v6  ;;  %2455 = vmatprep.mubr.bf16.mxu1 %v3682_v7  ;;  %v3741_v6 = vcombine.low %v138_v58, %v142_v59  ;;  %v3746_v7 = vcombine.high %v144_v1, %v148_v2  ;;  %v204_v0 = vld [vmem:[%s5928_s0 + $0x5e8] sm:$0xff]  ;;  %v202_v58 = vld [vmem:[%s5928_s0 + $0x5d8] sm:$0xff] }
 0x17b   :  { %3033 = vmatprep.mubr.bf16.mxu0 %v3686_v8  ;;  %v3750_v8 = vcombine.high %v146_v3, %v150_v4  ;;  %v206_v59 = vld [vmem:[%s5928_s0 + $0x5f8] sm:$0xff] }
 0x181   :  { %2456 = vmatmul.mubr.bf16.gmra.mrb[32].mxu1 %v3681_v13  ;;  %v3745_v13 = vcombine.low %v144_v1, %v148_v2  ;;  %v208_v1 = vld [vmem:[%s5928_s0 + $0x608] sm:$0xff] }
 0x182   :  { %3034 = vmatmul.mubr.bf16.gmra.mrb[32].mxu0 %v3685_v14  ;;  %2463 = vmatprep.mubr.bf16.mxu1 %v3690_v15  ;;  %v3749_v14 = vcombine.low %v146_v3, %v150_v4  ;;  %v3754_v15 = vcombine.high %v152_v9, %v156_v10  ;;  %v212_v2 = vld [vmem:[%s5928_s0 + $0x628] sm:$0xff]  ;;  %v210_v3 = vld [vmem:[%s5928_s0 + $0x618] sm:$0xff] }
 0x183   :  { %3041 = vmatprep.mubr.bf16.mxu0 %v3694_v16  ;;  %v3758_v16 = vcombine.high %v154_v11, %v158_v12  ;;  %v214_v4 = vld [vmem:[%s5928_s0 + $0x638] sm:$0xff] }
 0x189   :  { %2464 = vmatmul.mubr.bf16.gmra.mrb[36].mxu1 %v3689_v21  ;;  %v3753_v21 = vcombine.low %v152_v9, %v156_v10  ;;  %v216_v9 = vld [vmem:[%s5928_s0 + $0x648] sm:$0xff] }
 0x18a   :  { %3042 = vmatmul.mubr.bf16.gmra.mrb[36].mxu0 %v3693_v22  ;;  %2471 = vmatprep.mubr.bf16.mxu1 %v3698_v23  ;;  %v3757_v22 = vcombine.low %v154_v11, %v158_v12  ;;  %v3762_v23 = vcombine.high %v160_v17, %v164_v18  ;;  %v220_v10 = vld [vmem:[%s5928_s0 + $0x668] sm:$0xff]  ;;  %v218_v11 = vld [vmem:[%s5928_s0 + $0x658] sm:$0xff] }
 0x18b   :  { %3049 = vmatprep.mubr.bf16.mxu0 %v3702_v24  ;;  %v3766_v24 = vcombine.high %v162_v19, %v166_v20  ;;  %v222_v12 = vld [vmem:[%s5928_s0 + $0x678] sm:$0xff] }
 0x191   :  { %2472 = vmatmul.mubr.bf16.gmra.mrb[40].mxu1 %v3697_v29  ;;  %v3761_v29 = vcombine.low %v160_v17, %v164_v18  ;;  %v224_v17 = vld [vmem:[%s5928_s0 + $0x688] sm:$0xff] }
 0x192   :  { %3050 = vmatmul.mubr.bf16.gmra.mrb[40].mxu0 %v3701_v30  ;;  %2479 = vmatprep.mubr.bf16.mxu1 %v3706_v31  ;;  %v3765_v30 = vcombine.low %v162_v19, %v166_v20  ;;  %v3770_v31 = vcombine.high %v168_v25, %v172_v26  ;;  %v228_v18 = vld [vmem:[%s5928_s0 + $0x6a8] sm:$0xff]  ;;  %v226_v19 = vld [vmem:[%s5928_s0 + $0x698] sm:$0xff] }
 0x193   :  { %3057 = vmatprep.mubr.bf16.mxu0 %v3710_v32  ;;  %v3774_v32 = vcombine.high %v170_v27, %v174_v28  ;;  %v230_v20 = vld [vmem:[%s5928_s0 + $0x6b8] sm:$0xff] }
 0x199   :  { %2480 = vmatmul.mubr.bf16.gmra.mrb[44].mxu1 %v3705_v37  ;;  %v3769_v37 = vcombine.low %v168_v25, %v172_v26  ;;  %v232_v25 = vld [vmem:[%s5928_s0 + $0x6c8] sm:$0xff] }
 0x19a   :  { %3058 = vmatmul.mubr.bf16.gmra.mrb[44].mxu0 %v3709_v38  ;;  %2487 = vmatprep.mubr.bf16.mxu1 %v3714_v39  ;;  %v3773_v38 = vcombine.low %v170_v27, %v174_v28  ;;  %v3778_v39 = vcombine.high %v176_v33, %v180_v34  ;;  %v236_v26 = vld [vmem:[%s5928_s0 + $0x6e8] sm:$0xff]  ;;  %v234_v27 = vld [vmem:[%s5928_s0 + $0x6d8] sm:$0xff] }
 0x19b   :  { %3065 = vmatprep.mubr.bf16.mxu0 %v3718_v40  ;;  %v3782_v40 = vcombine.high %v178_v35, %v182_v36  ;;  %v238_v28 = vld [vmem:[%s5928_s0 + $0x6f8] sm:$0xff] }
 0x1a1   :  { %2488 = vmatmul.mubr.bf16.gmra.mrb[48].mxu1 %v3713_v45  ;;  %v3777_v45 = vcombine.low %v176_v33, %v180_v34  ;;  %v5720_v33 = vld [vmem:[%s5929_s2] ss:$0 sm:$0xff]  ;;  %v240_v34 = vld [vmem:[%s5928_s0 + $0x708] sm:$0xff] }
 0x1a2   :  { %3066 = vmatmul.mubr.bf16.gmra.mrb[48].mxu0 %v3717_v46  ;;  %2495 = vmatprep.mubr.bf16.mxu1 %v3722_v47  ;;  %v3781_v46 = vcombine.low %v178_v35, %v182_v36  ;;  %v3786_v47 = vcombine.high %v184_v41, %v188_v42  ;;  %v244_v35 = vld [vmem:[%s5928_s0 + $0x728] sm:$0xff] }
 0x1a3   :  { %3073 = vmatprep.mubr.bf16.mxu0 %v3726_v48  ;;  %v3790_v48 = vcombine.high %v186_v43, %v190_v44 }
 0x1a9   :  { %2496 = vmatmul.mubr.bf16.gmra.mrb[52].mxu1 %v3721_v53  ;;  %v3785_v53 = vcombine.low %v184_v41, %v188_v42  ;;  %v3833_v42 = vcombine.low %v232_v25, %v236_v26 }
 0x1aa   :  { %3074 = vmatmul.mubr.bf16.gmra.mrb[52].mxu0 %v3725_v54  ;;  %2503 = vmatprep.mubr.bf16.mxu1 %v3730_v55  ;;  %v3789_v54 = vcombine.low %v186_v43, %v190_v44  ;;  %v3794_v55 = vcombine.high %v192_v49, %v196_v50 }
 0x1ab   :  { %3081 = vmatprep.mubr.bf16.mxu0 %v3734_v56  ;;  %v3798_v56 = vcombine.high %v194_v51, %v198_v52 }
 0x1b1   :  { %2504 = vmatmul.mubr.bf16.gmra.mrb[56].mxu1 %v3729_v60  ;;  %v3793_v60 = vcombine.low %v192_v49, %v196_v50 }
 0x1b2   :  { %3082 = vmatmul.mubr.bf16.gmra.mrb[56].mxu0 %v3733_v61  ;;  %2511 = vmatprep.mubr.bf16.mxu1 %v3738_v62  ;;  %v3797_v61 = vcombine.low %v194_v51, %v198_v52  ;;  %v3802_v62 = vcombine.high %v200_v57, %v204_v0 }
 0x1b3   :  { %3089 = vmatprep.mubr.bf16.mxu0 %v3742_v63  ;;  %v3806_v63 = vcombine.high %v202_v58, %v206_v59 }
 0x1b9   :  { %2512 = vmatmul.mubr.bf16.gmra.mrb[60].mxu1 %v3737_v5  ;;  %v3801_v5 = vcombine.low %v200_v57, %v204_v0  ;;  %v252_v57 = vld [vmem:[%s5928_s0 + $0x768] sm:$0xff] }
 0x1ba   :  { %3090 = vmatmul.mubr.bf16.gmra.mrb[60].mxu0 %v3741_v6  ;;  %2519 = vmatprep.mubr.bf16.mxu1 %v3746_v7  ;;  %v3805_v6 = vcombine.low %v202_v58, %v206_v59  ;;  %v3810_v7 = vcombine.high %v208_v1, %v212_v2  ;;  %v250_v58 = vld [vmem:[%s5928_s0 + $0x758] sm:$0xff] }
 0x1bb   :  { %3097 = vmatprep.mubr.bf16.mxu0 %v3750_v8  ;;  %v3814_v8 = vcombine.high %v210_v3, %v214_v4  ;;  %v254_v59 = vld [vmem:[%s5928_s0 + $0x778] sm:$0xff] }
 0x1c1   :  { %2520 = vmatmul.mubr.bf16.gmra.mrb[64].mxu1 %v3745_v13  ;;  %v3809_v13 = vcombine.low %v208_v1, %v212_v2  ;;  %v3841_v1 = vcombine.low %v240_v34, %v244_v35 }
 0x1c2   :  { %3098 = vmatmul.mubr.bf16.gmra.mrb[64].mxu0 %v3749_v14  ;;  %2527 = vmatprep.mubr.bf16.mxu1 %v3754_v15  ;;  %v3813_v14 = vcombine.low %v210_v3, %v214_v4  ;;  %v3818_v15 = vcombine.high %v216_v9, %v220_v10 }
 0x1c3   :  { %3105 = vmatprep.mubr.bf16.mxu0 %v3758_v16  ;;  %v3822_v16 = vcombine.high %v218_v11, %v222_v12 }
 0x1c9   :  { %2528 = vmatmul.mubr.bf16.gmra.mrb[68].mxu1 %v3753_v21  ;;  %v3817_v21 = vcombine.low %v216_v9, %v220_v10  ;;  %v3854_v10 = vcombine.high %v250_v58, %v254_v59 }
 0x1ca   :  { %3106 = vmatmul.mubr.bf16.gmra.mrb[68].mxu0 %v3757_v22  ;;  %2535 = vmatprep.mubr.bf16.mxu1 %v3762_v23  ;;  %v3821_v22 = vcombine.low %v218_v11, %v222_v12  ;;  %v3826_v23 = vcombine.high %v224_v17, %v228_v18 }
 0x1cb   :  { %3113 = vmatprep.mubr.bf16.mxu0 %v3766_v24  ;;  %v3830_v24 = vcombine.high %v226_v19, %v230_v20 }
 0x1d1   :  { %2536 = vmatmul.mubr.bf16.gmra.mrb[72].mxu1 %v3761_v29  ;;  %v3825_v29 = vcombine.low %v224_v17, %v228_v18  ;;  %v258_v18 = vld [vmem:[%s5928_s0 + $0x798] sm:$0xff] }
 0x1d2   :  { %3114 = vmatmul.mubr.bf16.gmra.mrb[72].mxu0 %v3765_v30  ;;  %2543 = vmatprep.mubr.bf16.mxu1 %v3770_v31  ;;  %v3829_v30 = vcombine.low %v226_v19, %v230_v20  ;;  %v3834_v31 = vcombine.high %v232_v25, %v236_v26  ;;  %v262_v19 = vld [vmem:[%s5928_s0 + $0x7b8] sm:$0xff] }
 0x1d3   :  { %3121 = vmatprep.mubr.bf16.mxu0 %v3774_v32  ;;  %v3838_v32 = vcombine.high %v234_v27, %v238_v28 }
 0x1d9   :  { %2544 = vmatmul.mubr.bf16.gmra.mrb[76].mxu1 %v3769_v37  ;;  %v242_v37 = vld [vmem:[%s5928_s0 + $0x718] sm:$0xff] }
 0x1da   :  { %3122 = vmatmul.mubr.bf16.gmra.mrb[76].mxu0 %v3773_v38  ;;  %2551 = vmatprep.mubr.bf16.mxu1 %v3778_v39  ;;  %v246_v38 = vld [vmem:[%s5928_s0 + $0x738] sm:$0xff] }
 0x1db   :  { %3129 = vmatprep.mubr.bf16.mxu0 %v3782_v40  ;;  %v3846_v51 = vcombine.high %v242_v37, %v246_v38  ;;  %v3845_v4 = vcombine.low %v242_v37, %v246_v38 }
 0x1e1   :  { %2552 = vmatmul.mubr.bf16.gmra.mrb[80].mxu1 %v3777_v45  ;;  %v3837_v45 = vcombine.low %v234_v27, %v238_v28  ;;  %v3853_v27 = vcombine.low %v250_v58, %v254_v59 }
 0x1e2   :  { %3130 = vmatmul.mubr.bf16.gmra.mrb[80].mxu0 %v3781_v46  ;;  %2559 = vmatprep.mubr.bf16.mxu1 %v3786_v47  ;;  %v3842_v46 = vcombine.high %v240_v34, %v244_v35  ;;  %v3862_v34 = vcombine.high %v258_v18, %v262_v19 }
 0x1e3   :  { %3137 = vmatprep.mubr.bf16.mxu0 %v3790_v48 }
 0x1e9   :  { %2560 = vmatmul.mubr.bf16.gmra.mrb[84].mxu1 %v3785_v53 }
 0x1ea   :  { %3138 = vmatmul.mubr.bf16.gmra.mrb[84].mxu0 %v3789_v54  ;;  %2567 = vmatprep.mubr.bf16.mxu1 %v3794_v55 }
 0x1eb   :  { %3145 = vmatprep.mubr.bf16.mxu0 %v3798_v56  ;;  %v248_v56 = vld [vmem:[%s5928_s0 + $0x748] sm:$0xff] }
 0x1f1   :  { %2568 = vmatmul.mubr.bf16.gmra.mrb[88].mxu1 %v3793_v60 }
 0x1f2   :  { %3146 = vmatmul.mubr.bf16.gmra.mrb[88].mxu0 %v3797_v61  ;;  %2575 = vmatprep.mubr.bf16.mxu1 %v3802_v62 }
 0x1f3   :  { %3153 = vmatprep.mubr.bf16.mxu0 %v3806_v63 }
 0x1f9   :  { %2576 = vmatmul.mubr.bf16.gmra.mrb[92].mxu1 %v3801_v5  ;;  %v3850_v5 = vcombine.high %v248_v56, %v252_v57 }
 0x1fa   :  { %3154 = vmatmul.mubr.bf16.gmra.mrb[92].mxu0 %v3805_v6  ;;  %2583 = vmatprep.mubr.bf16.mxu1 %v3810_v7 }
 0x1fb   :  { %3161 = vmatprep.mubr.bf16.mxu0 %v3814_v8 }
 0x201   :  { %2584 = vmatmul.mubr.bf16.gmra.mrb[96].mxu1 %v3809_v13 }
 0x202   :  { %3162 = vmatmul.mubr.bf16.gmra.mrb[96].mxu0 %v3813_v14  ;;  %2591 = vmatprep.mubr.bf16.mxu1 %v3818_v15  ;;  %v256_v15 = vld [vmem:[%s5928_s0 + $0x788] sm:$0xff] }
 0x203   :  { %3169 = vmatprep.mubr.bf16.mxu0 %v3822_v16  ;;  %v260_v16 = vld [vmem:[%s5928_s0 + $0x7a8] sm:$0xff] }
 0x204   :  { %v3858_v28 = vcombine.high %v256_v15, %v260_v16 }
 0x209   :  { %2592 = vmatmul.mubr.bf16.gmra.mrb[100].mxu1 %v3817_v21 }
 0x20a   :  { %3170 = vmatmul.mubr.bf16.gmra.mrb[100].mxu0 %v3821_v22  ;;  %2599 = vmatprep.mubr.bf16.mxu1 %v3826_v23 }
 0x20b   :  { %3177 = vmatprep.mubr.bf16.mxu0 %v3830_v24  ;;  %v3849_v24 = vcombine.low %v248_v56, %v252_v57 }
 0x211   :  { %2600 = vmatmul.mubr.bf16.gmra.mrb[104].mxu1 %v3825_v29 }
 0x212   :  { %3178 = vmatmul.mubr.bf16.gmra.mrb[104].mxu0 %v3829_v30  ;;  %2607 = vmatprep.mubr.bf16.mxu1 %v3834_v31 }
 0x213   :  { %3185 = vmatprep.mubr.bf16.mxu0 %v3838_v32 }
 0x214   :  { %v2393_v36 = vpop.f32.mrb[0].mxu1 }
 0x215   :  { %v4254_v39 = vadd.f32 %v5720_v33, %v2393_v36  ;;  %v2971_v40 = vpop.f32.mrb[0].mxu0  ;;  %v2395_v41 = vpop.f32.mrb[1].mxu1 }
 0x216   :  { %v2973_v43 = vpop.f32.mrb[1].mxu0  ;;  %v2396_v44 = vpop.f32.mrb[2].mxu1 }
 0x217   :  { %v4255_v47 = vadd.f32 %v4254_v39, %v2971_v40  ;;  %v4256_v48 = vadd.f32 %v5720_v33, %v2396_v44  ;;  %v2974_v49 = vpop.f32.mrb[2].mxu0  ;;  %v2398_v50 = vpop.f32.mrb[3].mxu1  ;;  %v264_v39 = vld [vmem:[%s5928_s0 + $0x7c8] sm:$0xff]  ;;  %v270_v43 = vld [vmem:[%s5928_s0 + $0x7f8] sm:$0xff] }
 0x218   :  { %v2976_v52 = vpop.f32.mrb[3].mxu0  ;;  %v268_v40 = vld [vmem:[%s5928_s0 + $0x7e8] sm:$0xff] }
 0x219   :  { %v4257_v53 = vadd.f32 %v4256_v48, %v2974_v49  ;;  %2608 = vmatmul.mubr.bf16.gmra.mrb[108].mxu1 %v3833_v42  ;;  %v3226_v54 = vmax.f32 %v4255_v47, 0.0  ;;  %v266_v42 = vld [vmem:[%s5928_s0 + $0x7d8] sm:$0xff]  ;;  %v3857_v48 = vcombine.low %v256_v15, %v260_v16  ;;  %v3866_v52 = vcombine.high %v264_v39, %v268_v40 }
 0x21a   :  { %3186 = vmatmul.mubr.bf16.gmra.mrb[108].mxu0 %v3837_v45  ;;  %2615 = vmatprep.mubr.bf16.mxu1 %v3842_v46  ;;  %v3870_v57 = vcombine.high %v266_v42, %v270_v43 }
 0x21b   :  { %v3227_v55 = vmax.f32 %v4257_v53, 0.0  ;;  %3193 = vmatprep.mubr.bf16.mxu0 %v3846_v51  ;;  %v3861_v51 = vcombine.low %v258_v18, %v262_v19 }
 0x21c   :  { %v2401_v0 = vpop.f32.mrb[4].mxu1 }
 0x21d   :  { %v4066_v60 = vpack.c.bf16 %v3227_v55, %v3226_v54  ;;  %v4258_v61 = vadd.f32 %v5720_v33, %v2401_v0  ;;  %v2979_v62 = vpop.f32.mrb[4].mxu0  ;;  %v2403_v63 = vpop.f32.mrb[5].mxu1 }
 0x21e   :  { %v2981_v2 = vpop.f32.mrb[5].mxu0  ;;  %v2404_v3 = vpop.f32.mrb[6].mxu1 }
 0x21f   :  { %4067 = vst [vmem:[%s5930_s3] sm:$0xff] %v4066_v60   ;;  %v4259_v6 = vadd.f32 %v4258_v61, %v2979_v62  ;;  %v4260_v7 = vadd.f32 %v5720_v33, %v2404_v3  ;;  %v2982_v8 = vpop.f32.mrb[6].mxu0  ;;  %v2406_v9 = vpop.f32.mrb[7].mxu1  ;;  %v3865_v3 = vcombine.low %v264_v39, %v268_v40 }
 0x220   :  { %v2984_v11 = vpop.f32.mrb[7].mxu0 }
 0x221   :  { %v4261_v12 = vadd.f32 %v4260_v7, %v2982_v8  ;;  %2616 = vmatmul.mubr.bf16.gmra.mrb[112].mxu1 %v3841_v1  ;;  %v3228_v13 = vmax.f32 %v4259_v6, 0.0  ;;  %v3869_v6 = vcombine.low %v266_v42, %v270_v43 }
 0x222   :  { %3194 = vmatmul.mubr.bf16.gmra.mrb[112].mxu0 %v3845_v4  ;;  %2623 = vmatprep.mubr.bf16.mxu1 %v3850_v5 }
 0x223   :  { %v3229_v14 = vmax.f32 %v4261_v12, 0.0  ;;  %3201 = vmatprep.mubr.bf16.mxu0 %v3854_v10 }
 0x224   :  { %v2409_v17 = vpop.f32.mrb[8].mxu1 }
 0x225   :  { %v4071_v20 = vpack.c.bf16 %v3229_v14, %v3228_v13  ;;  %v4262_v21 = vadd.f32 %v5720_v33, %v2409_v17  ;;  %v2987_v22 = vpop.f32.mrb[8].mxu0  ;;  %v2411_v23 = vpop.f32.mrb[9].mxu1 }
 0x226   :  { %v2989_v25 = vpop.f32.mrb[9].mxu0  ;;  %v2412_v26 = vpop.f32.mrb[10].mxu1 }
 0x227   :  { %4223 = vst [vmem:[%s5930_s3 + $0x8] sm:$0xff] %v4071_v20   ;;  %v4263_v29 = vadd.f32 %v4262_v21, %v2987_v22  ;;  %v4264_v30 = vadd.f32 %v5720_v33, %v2412_v26  ;;  %v2990_v31 = vpop.f32.mrb[10].mxu0  ;;  %v2414_v32 = vpop.f32.mrb[11].mxu1 }
 0x228   :  { %v2992_v35 = vpop.f32.mrb[11].mxu0 }
 0x229   :  { %v4265_v36 = vadd.f32 %v4264_v30, %v2990_v31  ;;  %2624 = vmatmul.mubr.bf16.gmra.mrb[116].mxu1 %v3849_v24  ;;  %v3230_v37 = vmax.f32 %v4263_v29, 0.0 }
 0x22a   :  { %3202 = vmatmul.mubr.bf16.gmra.mrb[116].mxu0 %v3853_v27  ;;  %2631 = vmatprep.mubr.bf16.mxu1 %v3858_v28 }
 0x22b   :  { %v3231_v38 = vmax.f32 %v4265_v36, 0.0  ;;  %3209 = vmatprep.mubr.bf16.mxu0 %v3862_v34 }
 0x22c   :  { %v2417_v41 = vpop.f32.mrb[12].mxu1 }
 0x22d   :  { %v4076_v44 = vpack.c.bf16 %v3231_v38, %v3230_v37  ;;  %v4266_v45 = vadd.f32 %v5720_v33, %v2417_v41  ;;  %v2995_v46 = vpop.f32.mrb[12].mxu0  ;;  %v2419_v47 = vpop.f32.mrb[13].mxu1 }
 0x22e   :  { %v2997_v49 = vpop.f32.mrb[13].mxu0  ;;  %v2420_v50 = vpop.f32.mrb[14].mxu1 }
 0x22f   :  { %4224 = vst [vmem:[%s5930_s3 + $0x10] sm:$0xff] %v4076_v44   ;;  %v4267_v53 = vadd.f32 %v4266_v45, %v2995_v46  ;;  %v4268_v54 = vadd.f32 %v5720_v33, %v2420_v50  ;;  %v2998_v55 = vpop.f32.mrb[14].mxu0  ;;  %v2422_v56 = vpop.f32.mrb[15].mxu1 }
 0x230   :  { %v3000_v0 = vpop.f32.mrb[15].mxu0 }
 0x231   :  { %v4269_v58 = vadd.f32 %v4268_v54, %v2998_v55  ;;  %2632 = vmatmul.mubr.bf16.gmra.mrb[120].mxu1 %v3857_v48  ;;  %v3232_v59 = vmax.f32 %v4267_v53, 0.0 }
 0x232   :  { %3210 = vmatmul.mubr.bf16.gmra.mrb[120].mxu0 %v3861_v51  ;;  %2639 = vmatprep.mubr.bf16.mxu1 %v3866_v52 }
 0x233   :  { %v3233_v60 = vmax.f32 %v4269_v58, 0.0  ;;  %3217 = vmatprep.mubr.bf16.mxu0 %v3870_v57 }
 0x234   :  { %v2425_v61 = vpop.f32.mrb[16].mxu1 }
 0x235   :  { %v4081_v62 = vpack.c.bf16 %v3233_v60, %v3232_v59  ;;  %v4270_v63 = vadd.f32 %v5720_v33, %v2425_v61  ;;  %v3003_v1 = vpop.f32.mrb[16].mxu0  ;;  %v2427_v2 = vpop.f32.mrb[17].mxu1 }
 0x236   :  { %v3005_v4 = vpop.f32.mrb[17].mxu0  ;;  %v2428_v5 = vpop.f32.mrb[18].mxu1 }
 0x237   :  { %4225 = vst [vmem:[%s5930_s3 + $0x18] sm:$0xff] %v4081_v62   ;;  %v4271_v7 = vadd.f32 %v4270_v63, %v3003_v1  ;;  %v4272_v8 = vadd.f32 %v5720_v33, %v2428_v5  ;;  %v3006_v9 = vpop.f32.mrb[18].mxu0  ;;  %v2430_v10 = vpop.f32.mrb[19].mxu1 }
 0x238   :  { %v3008_v11 = vpop.f32.mrb[19].mxu0 }
 0x239   :  { %v4273_v12 = vadd.f32 %v4272_v8, %v3006_v9  ;;  %2640 = vmatmul.mubr.bf16.gmra.mrb[124].mxu1 %v3865_v3  ;;  %v3234_v13 = vmax.f32 %v4271_v7, 0.0 }
 0x23a   :  { %3218 = vmatmul.mubr.bf16.gmra.mrb[124].mxu0 %v3869_v6 }
 0x23b   :  { %v3235_v14 = vmax.f32 %v4273_v12, 0.0 }
 0x23c   :  { %v2433_v15 = vpop.f32.mrb[20].mxu1 }
 0x23d   :  { %v4086_v16 = vpack.c.bf16 %v3235_v14, %v3234_v13  ;;  %v4274_v17 = vadd.f32 %v5720_v33, %v2433_v15  ;;  %v3011_v18 = vpop.f32.mrb[20].mxu0  ;;  %v2435_v19 = vpop.f32.mrb[21].mxu1 }
 0x23e   :  { %v3013_v20 = vpop.f32.mrb[21].mxu0  ;;  %v2436_v21 = vpop.f32.mrb[22].mxu1 }
 0x23f   :  { %4226 = vst [vmem:[%s5930_s3 + $0x20] sm:$0xff] %v4086_v16   ;;  %v4275_v22 = vadd.f32 %v4274_v17, %v3011_v18  ;;  %v4276_v23 = vadd.f32 %v5720_v33, %v2436_v21  ;;  %v3014_v24 = vpop.f32.mrb[22].mxu0  ;;  %v2438_v25 = vpop.f32.mrb[23].mxu1 }
 0x240   :  { %v3016_v26 = vpop.f32.mrb[23].mxu0 }
 0x241   :  { %v4277_v27 = vadd.f32 %v4276_v23, %v3014_v24  ;;  %v3236_v28 = vmax.f32 %v4275_v22, 0.0 }
 0x243   :  { %v3237_v29 = vmax.f32 %v4277_v27, 0.0 }
 0x244   :  { %v2441_v30 = vpop.f32.mrb[24].mxu1 }
 0x245   :  { %v4091_v31 = vpack.c.bf16 %v3237_v29, %v3236_v28  ;;  %v4278_v32 = vadd.f32 %v5720_v33, %v2441_v30  ;;  %v3019_v34 = vpop.f32.mrb[24].mxu0  ;;  %v2443_v35 = vpop.f32.mrb[25].mxu1 }
 0x246   :  { %v3021_v36 = vpop.f32.mrb[25].mxu0  ;;  %v2444_v37 = vpop.f32.mrb[26].mxu1 }
 0x247   :  { %4227 = vst [vmem:[%s5930_s3 + $0x28] sm:$0xff] %v4091_v31   ;;  %v4279_v38 = vadd.f32 %v4278_v32, %v3019_v34  ;;  %v4280_v39 = vadd.f32 %v5720_v33, %v2444_v37  ;;  %v3022_v40 = vpop.f32.mrb[26].mxu0  ;;  %v2446_v41 = vpop.f32.mrb[27].mxu1 }
 0x248   :  { %v3024_v42 = vpop.f32.mrb[27].mxu0 }
 0x249   :  { %v4281_v43 = vadd.f32 %v4280_v39, %v3022_v40  ;;  %v3238_v44 = vmax.f32 %v4279_v38, 0.0 }
 0x24b   :  { %v3239_v45 = vmax.f32 %v4281_v43, 0.0 }
 0x24c   :  { %v2449_v46 = vpop.f32.mrb[28].mxu1 }
 0x24d   :  { %v4096_v47 = vpack.c.bf16 %v3239_v45, %v3238_v44  ;;  %v4282_v48 = vadd.f32 %v5720_v33, %v2449_v46  ;;  %v3027_v49 = vpop.f32.mrb[28].mxu0  ;;  %v2451_v50 = vpop.f32.mrb[29].mxu1 }
 0x24e   :  { %v3029_v51 = vpop.f32.mrb[29].mxu0  ;;  %v2452_v52 = vpop.f32.mrb[30].mxu1 }
 0x24f   :  { %4228 = vst [vmem:[%s5930_s3 + $0x30] sm:$0xff] %v4096_v47   ;;  %v4283_v53 = vadd.f32 %v4282_v48, %v3027_v49  ;;  %v4284_v54 = vadd.f32 %v5720_v33, %v2452_v52  ;;  %v3030_v55 = vpop.f32.mrb[30].mxu0  ;;  %v2454_v56 = vpop.f32.mrb[31].mxu1 }
 0x250   :  { %v3032_v57 = vpop.f32.mrb[31].mxu0 }
 0x251   :  { %v4285_v0 = vadd.f32 %v4284_v54, %v3030_v55  ;;  %v3240_v58 = vmax.f32 %v4283_v53, 0.0 }
 0x253   :  { %v3241_v59 = vmax.f32 %v4285_v0, 0.0 }
 0x254   :  { %v2457_v60 = vpop.f32.mrb[32].mxu1 }
 0x255   :  { %v4101_v61 = vpack.c.bf16 %v3241_v59, %v3240_v58  ;;  %v4286_v62 = vadd.f32 %v5720_v33, %v2457_v60  ;;  %v3035_v63 = vpop.f32.mrb[32].mxu0  ;;  %v2459_v1 = vpop.f32.mrb[33].mxu1 }
 0x256   :  { %v3037_v2 = vpop.f32.mrb[33].mxu0  ;;  %v2460_v3 = vpop.f32.mrb[34].mxu1 }
 0x257   :  { %4229 = vst [vmem:[%s5930_s3 + $0x38] sm:$0xff] %v4101_v61   ;;  %v4287_v4 = vadd.f32 %v4286_v62, %v3035_v63  ;;  %v4288_v5 = vadd.f32 %v5720_v33, %v2460_v3  ;;  %v3038_v6 = vpop.f32.mrb[34].mxu0  ;;  %v2462_v7 = vpop.f32.mrb[35].mxu1 }
 0x258   :  { %v3040_v8 = vpop.f32.mrb[35].mxu0 }
 0x259   :  { %v4289_v9 = vadd.f32 %v4288_v5, %v3038_v6  ;;  %v3242_v10 = vmax.f32 %v4287_v4, 0.0 }
 0x25b   :  { %v3243_v11 = vmax.f32 %v4289_v9, 0.0 }
 0x25c   :  { %v2465_v12 = vpop.f32.mrb[36].mxu1 }
 0x25d   :  { %v4106_v13 = vpack.c.bf16 %v3243_v11, %v3242_v10  ;;  %v4290_v14 = vadd.f32 %v5720_v33, %v2465_v12  ;;  %v3043_v15 = vpop.f32.mrb[36].mxu0  ;;  %v2467_v16 = vpop.f32.mrb[37].mxu1 }
 0x25e   :  { %v3045_v17 = vpop.f32.mrb[37].mxu0  ;;  %v2468_v18 = vpop.f32.mrb[38].mxu1 }
 0x25f   :  { %4230 = vst [vmem:[%s5930_s3 + $0x40] sm:$0xff] %v4106_v13   ;;  %v4291_v19 = vadd.f32 %v4290_v14, %v3043_v15  ;;  %v4292_v20 = vadd.f32 %v5720_v33, %v2468_v18  ;;  %v3046_v21 = vpop.f32.mrb[38].mxu0  ;;  %v2470_v22 = vpop.f32.mrb[39].mxu1 }
 0x260   :  { %v3048_v23 = vpop.f32.mrb[39].mxu0 }
 0x261   :  { %v4293_v24 = vadd.f32 %v4292_v20, %v3046_v21  ;;  %v3244_v25 = vmax.f32 %v4291_v19, 0.0 }
 0x263   :  { %v3245_v26 = vmax.f32 %v4293_v24, 0.0 }
 0x264   :  { %v2473_v27 = vpop.f32.mrb[40].mxu1 }
 0x265   :  { %v4111_v28 = vpack.c.bf16 %v3245_v26, %v3244_v25  ;;  %v4294_v29 = vadd.f32 %v5720_v33, %v2473_v27  ;;  %v3051_v30 = vpop.f32.mrb[40].mxu0  ;;  %v2475_v31 = vpop.f32.mrb[41].mxu1 }
 0x266   :  { %v3053_v32 = vpop.f32.mrb[41].mxu0  ;;  %v2476_v34 = vpop.f32.mrb[42].mxu1 }
 0x267   :  { %4231 = vst [vmem:[%s5930_s3 + $0x48] sm:$0xff] %v4111_v28   ;;  %v4295_v35 = vadd.f32 %v4294_v29, %v3051_v30  ;;  %v4296_v36 = vadd.f32 %v5720_v33, %v2476_v34  ;;  %v3054_v37 = vpop.f32.mrb[42].mxu0  ;;  %v2478_v38 = vpop.f32.mrb[43].mxu1 }
 0x268   :  { %v3056_v39 = vpop.f32.mrb[43].mxu0 }
 0x269   :  { %v4297_v40 = vadd.f32 %v4296_v36, %v3054_v37  ;;  %v3246_v41 = vmax.f32 %v4295_v35, 0.0 }
 0x26b   :  { %v3247_v42 = vmax.f32 %v4297_v40, 0.0 }
 0x26c   :  { %v2481_v43 = vpop.f32.mrb[44].mxu1 }
 0x26d   :  { %v4116_v44 = vpack.c.bf16 %v3247_v42, %v3246_v41  ;;  %v4298_v45 = vadd.f32 %v5720_v33, %v2481_v43  ;;  %v3059_v46 = vpop.f32.mrb[44].mxu0  ;;  %v2483_v47 = vpop.f32.mrb[45].mxu1 }
 0x26e   :  { %v3061_v48 = vpop.f32.mrb[45].mxu0  ;;  %v2484_v49 = vpop.f32.mrb[46].mxu1 }
 0x26f   :  { %4232 = vst [vmem:[%s5930_s3 + $0x50] sm:$0xff] %v4116_v44   ;;  %v4299_v50 = vadd.f32 %v4298_v45, %v3059_v46  ;;  %v4300_v51 = vadd.f32 %v5720_v33, %v2484_v49  ;;  %v3062_v52 = vpop.f32.mrb[46].mxu0  ;;  %v2486_v53 = vpop.f32.mrb[47].mxu1 }
 0x270   :  { %v3064_v54 = vpop.f32.mrb[47].mxu0 }
 0x271   :  { %v4301_v55 = vadd.f32 %v4300_v51, %v3062_v52  ;;  %v3248_v56 = vmax.f32 %v4299_v50, 0.0 }
 0x273   :  { %v3249_v57 = vmax.f32 %v4301_v55, 0.0 }
 0x274   :  { %v2489_v0 = vpop.f32.mrb[48].mxu1 }
 0x275   :  { %v4121_v58 = vpack.c.bf16 %v3249_v57, %v3248_v56  ;;  %v4302_v59 = vadd.f32 %v5720_v33, %v2489_v0  ;;  %v3067_v60 = vpop.f32.mrb[48].mxu0  ;;  %v2491_v61 = vpop.f32.mrb[49].mxu1 }
 0x276   :  { %v3069_v62 = vpop.f32.mrb[49].mxu0  ;;  %v2492_v63 = vpop.f32.mrb[50].mxu1 }
 0x277   :  { %4233 = vst [vmem:[%s5930_s3 + $0x58] sm:$0xff] %v4121_v58   ;;  %v4303_v1 = vadd.f32 %v4302_v59, %v3067_v60  ;;  %v4304_v2 = vadd.f32 %v5720_v33, %v2492_v63  ;;  %v3070_v3 = vpop.f32.mrb[50].mxu0  ;;  %v2494_v4 = vpop.f32.mrb[51].mxu1 }
 0x278   :  { %v3072_v5 = vpop.f32.mrb[51].mxu0 }
 0x279   :  { %v4305_v6 = vadd.f32 %v4304_v2, %v3070_v3  ;;  %v3250_v7 = vmax.f32 %v4303_v1, 0.0 }
 0x27b   :  { %v3251_v8 = vmax.f32 %v4305_v6, 0.0 }
 0x27c   :  { %v2497_v9 = vpop.f32.mrb[52].mxu1 }
 0x27d   :  { %v4126_v10 = vpack.c.bf16 %v3251_v8, %v3250_v7  ;;  %v4306_v11 = vadd.f32 %v5720_v33, %v2497_v9  ;;  %v3075_v12 = vpop.f32.mrb[52].mxu0  ;;  %v2499_v13 = vpop.f32.mrb[53].mxu1 }
 0x27e   :  { %v3077_v14 = vpop.f32.mrb[53].mxu0  ;;  %v2500_v15 = vpop.f32.mrb[54].mxu1 }
 0x27f   :  { %4234 = vst [vmem:[%s5930_s3 + $0x60] sm:$0xff] %v4126_v10   ;;  %v4307_v16 = vadd.f32 %v4306_v11, %v3075_v12  ;;  %v4308_v17 = vadd.f32 %v5720_v33, %v2500_v15  ;;  %v3078_v18 = vpop.f32.mrb[54].mxu0  ;;  %v2502_v19 = vpop.f32.mrb[55].mxu1 }
 0x280   :  { %v3080_v20 = vpop.f32.mrb[55].mxu0 }
 0x281   :  { %v4309_v21 = vadd.f32 %v4308_v17, %v3078_v18  ;;  %v3252_v22 = vmax.f32 %v4307_v16, 0.0 }
 0x283   :  { %v3253_v23 = vmax.f32 %v4309_v21, 0.0 }
 0x284   :  { %v2505_v24 = vpop.f32.mrb[56].mxu1 }
 0x285   :  { %v4131_v25 = vpack.c.bf16 %v3253_v23, %v3252_v22  ;;  %v4310_v26 = vadd.f32 %v5720_v33, %v2505_v24  ;;  %v3083_v27 = vpop.f32.mrb[56].mxu0  ;;  %v2507_v28 = vpop.f32.mrb[57].mxu1 }
 0x286   :  { %v3085_v29 = vpop.f32.mrb[57].mxu0  ;;  %v2508_v30 = vpop.f32.mrb[58].mxu1 }
 0x287   :  { %4235 = vst [vmem:[%s5930_s3 + $0x68] sm:$0xff] %v4131_v25   ;;  %v4311_v31 = vadd.f32 %v4310_v26, %v3083_v27  ;;  %v4312_v32 = vadd.f32 %v5720_v33, %v2508_v30  ;;  %v3086_v34 = vpop.f32.mrb[58].mxu0  ;;  %v2510_v35 = vpop.f32.mrb[59].mxu1 }
 0x288   :  { %v3088_v36 = vpop.f32.mrb[59].mxu0 }
 0x289   :  { %v4313_v37 = vadd.f32 %v4312_v32, %v3086_v34  ;;  %v3254_v38 = vmax.f32 %v4311_v31, 0.0 }
 0x28b   :  { %v3255_v39 = vmax.f32 %v4313_v37, 0.0 }
 0x28c   :  { %v2513_v40 = vpop.f32.mrb[60].mxu1 }
 0x28d   :  { %v4136_v41 = vpack.c.bf16 %v3255_v39, %v3254_v38  ;;  %v4314_v42 = vadd.f32 %v5720_v33, %v2513_v40  ;;  %v3091_v43 = vpop.f32.mrb[60].mxu0  ;;  %v2515_v44 = vpop.f32.mrb[61].mxu1 }
 0x28e   :  { %v3093_v45 = vpop.f32.mrb[61].mxu0  ;;  %v2516_v46 = vpop.f32.mrb[62].mxu1 }
 0x28f   :  { %4236 = vst [vmem:[%s5930_s3 + $0x70] sm:$0xff] %v4136_v41   ;;  %v4315_v47 = vadd.f32 %v4314_v42, %v3091_v43  ;;  %v4316_v48 = vadd.f32 %v5720_v33, %v2516_v46  ;;  %v3094_v49 = vpop.f32.mrb[62].mxu0  ;;  %v2518_v50 = vpop.f32.mrb[63].mxu1 }
 0x290   :  { %v3096_v51 = vpop.f32.mrb[63].mxu0 }
 0x291   :  { %v4317_v52 = vadd.f32 %v4316_v48, %v3094_v49  ;;  %v3256_v53 = vmax.f32 %v4315_v47, 0.0 }
 0x293   :  { %v3257_v54 = vmax.f32 %v4317_v52, 0.0 }
 0x294   :  { %v2521_v55 = vpop.f32.mrb[64].mxu1 }
 0x295   :  { %v4141_v56 = vpack.c.bf16 %v3257_v54, %v3256_v53  ;;  %v4318_v57 = vadd.f32 %v5720_v33, %v2521_v55  ;;  %v3099_v0 = vpop.f32.mrb[64].mxu0  ;;  %v2523_v58 = vpop.f32.mrb[65].mxu1 }
 0x296   :  { %v3101_v59 = vpop.f32.mrb[65].mxu0  ;;  %v2524_v60 = vpop.f32.mrb[66].mxu1 }
 0x297   :  { %4237 = vst [vmem:[%s5930_s3 + $0x78] sm:$0xff] %v4141_v56   ;;  %v4319_v61 = vadd.f32 %v4318_v57, %v3099_v0  ;;  %v4320_v62 = vadd.f32 %v5720_v33, %v2524_v60  ;;  %v3102_v63 = vpop.f32.mrb[66].mxu0  ;;  %v2526_v1 = vpop.f32.mrb[67].mxu1 }
 0x298   :  { %v3104_v2 = vpop.f32.mrb[67].mxu0 }
 0x299   :  { %v4321_v3 = vadd.f32 %v4320_v62, %v3102_v63  ;;  %v3258_v4 = vmax.f32 %v4319_v61, 0.0 }
 0x29b   :  { %v3259_v5 = vmax.f32 %v4321_v3, 0.0 }
 0x29c   :  { %v2529_v6 = vpop.f32.mrb[68].mxu1 }
 0x29d   :  { %v4146_v7 = vpack.c.bf16 %v3259_v5, %v3258_v4  ;;  %v4322_v8 = vadd.f32 %v5720_v33, %v2529_v6  ;;  %v3107_v9 = vpop.f32.mrb[68].mxu0  ;;  %v2531_v10 = vpop.f32.mrb[69].mxu1 }
 0x29e   :  { %v3109_v11 = vpop.f32.mrb[69].mxu0  ;;  %v2532_v12 = vpop.f32.mrb[70].mxu1 }
 0x29f   :  { %4238 = vst [vmem:[%s5930_s3 + $0x80] sm:$0xff] %v4146_v7   ;;  %v4323_v13 = vadd.f32 %v4322_v8, %v3107_v9  ;;  %v4324_v14 = vadd.f32 %v5720_v33, %v2532_v12  ;;  %v3110_v15 = vpop.f32.mrb[70].mxu0  ;;  %v2534_v16 = vpop.f32.mrb[71].mxu1 }
 0x2a0   :  { %v3112_v17 = vpop.f32.mrb[71].mxu0 }
 0x2a1   :  { %v4325_v18 = vadd.f32 %v4324_v14, %v3110_v15  ;;  %v3260_v19 = vmax.f32 %v4323_v13, 0.0 }
 0x2a3   :  { %v3261_v20 = vmax.f32 %v4325_v18, 0.0 }
 0x2a4   :  { %v2537_v21 = vpop.f32.mrb[72].mxu1 }
 0x2a5   :  { %v4151_v22 = vpack.c.bf16 %v3261_v20, %v3260_v19  ;;  %v4326_v23 = vadd.f32 %v5720_v33, %v2537_v21  ;;  %v3115_v24 = vpop.f32.mrb[72].mxu0  ;;  %v2539_v25 = vpop.f32.mrb[73].mxu1 }
 0x2a6   :  { %v3117_v26 = vpop.f32.mrb[73].mxu0  ;;  %v2540_v27 = vpop.f32.mrb[74].mxu1 }
 0x2a7   :  { %4239 = vst [vmem:[%s5930_s3 + $0x88] sm:$0xff] %v4151_v22   ;;  %v4327_v28 = vadd.f32 %v4326_v23, %v3115_v24  ;;  %v4328_v29 = vadd.f32 %v5720_v33, %v2540_v27  ;;  %v3118_v30 = vpop.f32.mrb[74].mxu0  ;;  %v2542_v31 = vpop.f32.mrb[75].mxu1 }
 0x2a8   :  { %v3120_v32 = vpop.f32.mrb[75].mxu0 }
 0x2a9   :  { %v4329_v34 = vadd.f32 %v4328_v29, %v3118_v30  ;;  %v3262_v35 = vmax.f32 %v4327_v28, 0.0 }
 0x2ab   :  { %v3263_v36 = vmax.f32 %v4329_v34, 0.0 }
 0x2ac   :  { %v2545_v37 = vpop.f32.mrb[76].mxu1 }
 0x2ad   :  { %v4156_v38 = vpack.c.bf16 %v3263_v36, %v3262_v35  ;;  %v4330_v39 = vadd.f32 %v5720_v33, %v2545_v37  ;;  %v3123_v40 = vpop.f32.mrb[76].mxu0  ;;  %v2547_v41 = vpop.f32.mrb[77].mxu1 }
 0x2ae   :  { %v3125_v42 = vpop.f32.mrb[77].mxu0  ;;  %v2548_v43 = vpop.f32.mrb[78].mxu1 }
 0x2af   :  { %4240 = vst [vmem:[%s5930_s3 + $0x90] sm:$0xff] %v4156_v38   ;;  %v4331_v44 = vadd.f32 %v4330_v39, %v3123_v40  ;;  %v4332_v45 = vadd.f32 %v5720_v33, %v2548_v43  ;;  %v3126_v46 = vpop.f32.mrb[78].mxu0  ;;  %v2550_v47 = vpop.f32.mrb[79].mxu1 }
 0x2b0   :  { %v3128_v48 = vpop.f32.mrb[79].mxu0 }
 0x2b1   :  { %v4333_v49 = vadd.f32 %v4332_v45, %v3126_v46  ;;  %v3264_v50 = vmax.f32 %v4331_v44, 0.0 }
 0x2b3   :  { %v3265_v51 = vmax.f32 %v4333_v49, 0.0 }
 0x2b4   :  { %v2553_v52 = vpop.f32.mrb[80].mxu1 }
 0x2b5   :  { %v4161_v53 = vpack.c.bf16 %v3265_v51, %v3264_v50  ;;  %v4334_v54 = vadd.f32 %v5720_v33, %v2553_v52  ;;  %v3131_v55 = vpop.f32.mrb[80].mxu0  ;;  %v2555_v56 = vpop.f32.mrb[81].mxu1 }
 0x2b6   :  { %v3133_v57 = vpop.f32.mrb[81].mxu0  ;;  %v2556_v0 = vpop.f32.mrb[82].mxu1 }
 0x2b7   :  { %4241 = vst [vmem:[%s5930_s3 + $0x98] sm:$0xff] %v4161_v53   ;;  %v4335_v58 = vadd.f32 %v4334_v54, %v3131_v55  ;;  %v4336_v59 = vadd.f32 %v5720_v33, %v2556_v0  ;;  %v3134_v60 = vpop.f32.mrb[82].mxu0  ;;  %v2558_v61 = vpop.f32.mrb[83].mxu1 }
 0x2b8   :  { %v3136_v62 = vpop.f32.mrb[83].mxu0 }
 0x2b9   :  { %v4337_v63 = vadd.f32 %v4336_v59, %v3134_v60  ;;  %v3266_v1 = vmax.f32 %v4335_v58, 0.0 }
 0x2bb   :  { %v3267_v2 = vmax.f32 %v4337_v63, 0.0 }
 0x2bc   :  { %v2561_v3 = vpop.f32.mrb[84].mxu1 }
 0x2bd   :  { %v4166_v4 = vpack.c.bf16 %v3267_v2, %v3266_v1  ;;  %v4338_v5 = vadd.f32 %v5720_v33, %v2561_v3  ;;  %v3139_v6 = vpop.f32.mrb[84].mxu0  ;;  %v2563_v7 = vpop.f32.mrb[85].mxu1 }
 0x2be   :  { %v3141_v8 = vpop.f32.mrb[85].mxu0  ;;  %v2564_v9 = vpop.f32.mrb[86].mxu1 }
 0x2bf   :  { %4242 = vst [vmem:[%s5930_s3 + $0xa0] sm:$0xff] %v4166_v4   ;;  %v4339_v10 = vadd.f32 %v4338_v5, %v3139_v6  ;;  %v4340_v11 = vadd.f32 %v5720_v33, %v2564_v9  ;;  %v3142_v12 = vpop.f32.mrb[86].mxu0  ;;  %v2566_v13 = vpop.f32.mrb[87].mxu1 }
 0x2c0   :  { %v3144_v14 = vpop.f32.mrb[87].mxu0 }
 0x2c1   :  { %v4341_v15 = vadd.f32 %v4340_v11, %v3142_v12  ;;  %v3268_v16 = vmax.f32 %v4339_v10, 0.0 }
 0x2c3   :  { %v3269_v17 = vmax.f32 %v4341_v15, 0.0 }
 0x2c4   :  { %v2569_v18 = vpop.f32.mrb[88].mxu1 }
 0x2c5   :  { %v4171_v19 = vpack.c.bf16 %v3269_v17, %v3268_v16  ;;  %v4342_v20 = vadd.f32 %v5720_v33, %v2569_v18  ;;  %v3147_v21 = vpop.f32.mrb[88].mxu0  ;;  %v2571_v22 = vpop.f32.mrb[89].mxu1 }
 0x2c6   :  { %v3149_v23 = vpop.f32.mrb[89].mxu0  ;;  %v2572_v24 = vpop.f32.mrb[90].mxu1 }
 0x2c7   :  { %4243 = vst [vmem:[%s5930_s3 + $0xa8] sm:$0xff] %v4171_v19   ;;  %v4343_v25 = vadd.f32 %v4342_v20, %v3147_v21  ;;  %v4344_v26 = vadd.f32 %v5720_v33, %v2572_v24  ;;  %v3150_v27 = vpop.f32.mrb[90].mxu0  ;;  %v2574_v28 = vpop.f32.mrb[91].mxu1 }
 0x2c8   :  { %v3152_v29 = vpop.f32.mrb[91].mxu0 }
 0x2c9   :  { %v4345_v30 = vadd.f32 %v4344_v26, %v3150_v27  ;;  %v3270_v31 = vmax.f32 %v4343_v25, 0.0 }
 0x2cb   :  { %v3271_v32 = vmax.f32 %v4345_v30, 0.0 }
 0x2cc   :  { %v2577_v34 = vpop.f32.mrb[92].mxu1 }
 0x2cd   :  { %v4176_v35 = vpack.c.bf16 %v3271_v32, %v3270_v31  ;;  %v4346_v36 = vadd.f32 %v5720_v33, %v2577_v34  ;;  %v3155_v37 = vpop.f32.mrb[92].mxu0  ;;  %v2579_v38 = vpop.f32.mrb[93].mxu1 }
 0x2ce   :  { %v3157_v39 = vpop.f32.mrb[93].mxu0  ;;  %v2580_v40 = vpop.f32.mrb[94].mxu1 }
 0x2cf   :  { %4244 = vst [vmem:[%s5930_s3 + $0xb0] sm:$0xff] %v4176_v35   ;;  %v4347_v41 = vadd.f32 %v4346_v36, %v3155_v37  ;;  %v4348_v42 = vadd.f32 %v5720_v33, %v2580_v40  ;;  %v3158_v43 = vpop.f32.mrb[94].mxu0  ;;  %v2582_v44 = vpop.f32.mrb[95].mxu1 }
 0x2d0   :  { %v3160_v45 = vpop.f32.mrb[95].mxu0 }
 0x2d1   :  { %v4349_v46 = vadd.f32 %v4348_v42, %v3158_v43  ;;  %v3272_v47 = vmax.f32 %v4347_v41, 0.0 }
 0x2d3   :  { %v3273_v48 = vmax.f32 %v4349_v46, 0.0 }
 0x2d4   :  { %v2585_v49 = vpop.f32.mrb[96].mxu1 }
 0x2d5   :  { %v4181_v50 = vpack.c.bf16 %v3273_v48, %v3272_v47  ;;  %v4350_v51 = vadd.f32 %v5720_v33, %v2585_v49  ;;  %v3163_v52 = vpop.f32.mrb[96].mxu0  ;;  %v2587_v53 = vpop.f32.mrb[97].mxu1 }
 0x2d6   :  { %v3165_v54 = vpop.f32.mrb[97].mxu0  ;;  %v2588_v55 = vpop.f32.mrb[98].mxu1 }
 0x2d7   :  { %4245 = vst [vmem:[%s5930_s3 + $0xb8] sm:$0xff] %v4181_v50   ;;  %v4351_v56 = vadd.f32 %v4350_v51, %v3163_v52  ;;  %v4352_v57 = vadd.f32 %v5720_v33, %v2588_v55  ;;  %v3166_v0 = vpop.f32.mrb[98].mxu0  ;;  %v2590_v58 = vpop.f32.mrb[99].mxu1 }
 0x2d8   :  { %v3168_v59 = vpop.f32.mrb[99].mxu0 }
 0x2d9   :  { %v4353_v60 = vadd.f32 %v4352_v57, %v3166_v0  ;;  %v3274_v61 = vmax.f32 %v4351_v56, 0.0 }
 0x2db   :  { %v3275_v62 = vmax.f32 %v4353_v60, 0.0 }
 0x2dc   :  { %v2593_v63 = vpop.f32.mrb[100].mxu1 }
 0x2dd   :  { %v4186_v1 = vpack.c.bf16 %v3275_v62, %v3274_v61  ;;  %v4354_v2 = vadd.f32 %v5720_v33, %v2593_v63  ;;  %v3171_v3 = vpop.f32.mrb[100].mxu0  ;;  %v2595_v4 = vpop.f32.mrb[101].mxu1  ;;  %v4703_v62 = vld [vmem:[%s5929_s2] ss:$0 sm:$0xff] }
 0x2de   :  { %v3173_v5 = vpop.f32.mrb[101].mxu0  ;;  %v2596_v6 = vpop.f32.mrb[102].mxu1 }
 0x2df   :  { %4246 = vst [vmem:[%s5930_s3 + $0xc0] sm:$0xff] %v4186_v1   ;;  %v4355_v7 = vadd.f32 %v4354_v2, %v3171_v3  ;;  %v4356_v8 = vadd.f32 %v5720_v33, %v2596_v6  ;;  %v3174_v9 = vpop.f32.mrb[102].mxu0  ;;  %v2598_v10 = vpop.f32.mrb[103].mxu1 }
 0x2e0   :  { %v3176_v11 = vpop.f32.mrb[103].mxu0 }
 0x2e1   :  { %v4357_v12 = vadd.f32 %v4356_v8, %v3174_v9  ;;  %v3276_v13 = vmax.f32 %v4355_v7, 0.0 }
 0x2e3   :  { %v3277_v14 = vmax.f32 %v4357_v12, 0.0 }
 0x2e4   :  { %v2601_v15 = vpop.f32.mrb[104].mxu1 }
 0x2e5   :  { %v4191_v16 = vpack.c.bf16 %v3277_v14, %v3276_v13  ;;  %v4358_v17 = vadd.f32 %v5720_v33, %v2601_v15  ;;  %v3179_v18 = vpop.f32.mrb[104].mxu0  ;;  %v2603_v19 = vpop.f32.mrb[105].mxu1 }
 0x2e6   :  { %v3181_v20 = vpop.f32.mrb[105].mxu0  ;;  %v2604_v21 = vpop.f32.mrb[106].mxu1 }
 0x2e7   :  { %4247 = vst [vmem:[%s5930_s3 + $0xc8] sm:$0xff] %v4191_v16   ;;  %v4359_v22 = vadd.f32 %v4358_v17, %v3179_v18  ;;  %v4360_v23 = vadd.f32 %v5720_v33, %v2604_v21  ;;  %v3182_v24 = vpop.f32.mrb[106].mxu0  ;;  %v2606_v25 = vpop.f32.mrb[107].mxu1 }
 0x2e8   :  { %v3184_v26 = vpop.f32.mrb[107].mxu0 }
 0x2e9   :  { %v4361_v27 = vadd.f32 %v4360_v23, %v3182_v24  ;;  %v3278_v28 = vmax.f32 %v4359_v22, 0.0 }
 0x2eb   :  { %v3279_v29 = vmax.f32 %v4361_v27, 0.0 }
 0x2ec   :  { %v2609_v30 = vpop.f32.mrb[108].mxu1 }
 0x2ed   :  { %v4196_v31 = vpack.c.bf16 %v3279_v29, %v3278_v28  ;;  %v4362_v32 = vadd.f32 %v5720_v33, %v2609_v30  ;;  %v3187_v34 = vpop.f32.mrb[108].mxu0  ;;  %v2611_v35 = vpop.f32.mrb[109].mxu1 }
 0x2ee   :  { %v3189_v36 = vpop.f32.mrb[109].mxu0  ;;  %v2612_v37 = vpop.f32.mrb[110].mxu1 }
 0x2ef   :  { %4248 = vst [vmem:[%s5930_s3 + $0xd0] sm:$0xff] %v4196_v31   ;;  %v4363_v38 = vadd.f32 %v4362_v32, %v3187_v34  ;;  %v4364_v39 = vadd.f32 %v5720_v33, %v2612_v37  ;;  %v3190_v40 = vpop.f32.mrb[110].mxu0  ;;  %v2614_v41 = vpop.f32.mrb[111].mxu1 }
 0x2f0   :  { %v3192_v42 = vpop.f32.mrb[111].mxu0 }
 0x2f1   :  { %v4365_v43 = vadd.f32 %v4364_v39, %v3190_v40  ;;  %v3280_v44 = vmax.f32 %v4363_v38, 0.0 }
 0x2f3   :  { %v3281_v45 = vmax.f32 %v4365_v43, 0.0 }
 0x2f4   :  { %v2617_v46 = vpop.f32.mrb[112].mxu1 }
 0x2f5   :  { %v4201_v47 = vpack.c.bf16 %v3281_v45, %v3280_v44  ;;  %v4366_v48 = vadd.f32 %v5720_v33, %v2617_v46  ;;  %v3195_v49 = vpop.f32.mrb[112].mxu0  ;;  %v2619_v50 = vpop.f32.mrb[113].mxu1 }
 0x2f6   :  { %v3197_v51 = vpop.f32.mrb[113].mxu0  ;;  %v2620_v52 = vpop.f32.mrb[114].mxu1 }
 0x2f7   :  { %4249 = vst [vmem:[%s5930_s3 + $0xd8] sm:$0xff] %v4201_v47   ;;  %v4367_v53 = vadd.f32 %v4366_v48, %v3195_v49  ;;  %v4368_v54 = vadd.f32 %v5720_v33, %v2620_v52  ;;  %v3198_v55 = vpop.f32.mrb[114].mxu0  ;;  %v2622_v56 = vpop.f32.mrb[115].mxu1 }
 0x2f8   :  { %v3200_v57 = vpop.f32.mrb[115].mxu0 }
 0x2f9   :  { %v4369_v0 = vadd.f32 %v4368_v54, %v3198_v55  ;;  %v3282_v58 = vmax.f32 %v4367_v53, 0.0 }
 0x2fb   :  { %v3283_v59 = vmax.f32 %v4369_v0, 0.0 }
 0x2fc   :  { %v2625_v60 = vpop.f32.mrb[116].mxu1 }
 0x2fd   :  { %v4206_v61 = vpack.c.bf16 %v3283_v59, %v3282_v58  ;;  %v4370_v63 = vadd.f32 %v4703_v62, %v2625_v60  ;;  %v3203_v1 = vpop.f32.mrb[116].mxu0  ;;  %v2627_v2 = vpop.f32.mrb[117].mxu1 }
 0x2fe   :  { %v3205_v3 = vpop.f32.mrb[117].mxu0  ;;  %v2628_v4 = vpop.f32.mrb[118].mxu1 }
 0x2ff   :  { %4250 = vst [vmem:[%s5930_s3 + $0xe0] sm:$0xff] %v4206_v61   ;;  %v4371_v33 = vadd.f32 %v4370_v63, %v3203_v1  ;;  %v4372_v5 = vadd.f32 %v4703_v62, %v2628_v4  ;;  %v3206_v6 = vpop.f32.mrb[118].mxu0  ;;  %v2630_v7 = vpop.f32.mrb[119].mxu1 }
 0x300   :  { %v3208_v8 = vpop.f32.mrb[119].mxu0 }
 0x301   :  { %v4373_v9 = vadd.f32 %v4372_v5, %v3206_v6  ;;  %v3284_v10 = vmax.f32 %v4371_v33, 0.0 }
 0x303   :  { %v3285_v11 = vmax.f32 %v4373_v9, 0.0 }
 0x304   :  { %v2633_v12 = vpop.f32.mrb[120].mxu1 }
 0x305   :  { %v4211_v13 = vpack.c.bf16 %v3285_v11, %v3284_v10  ;;  %v4374_v14 = vadd.f32 %v4703_v62, %v2633_v12  ;;  %v3211_v15 = vpop.f32.mrb[120].mxu0  ;;  %v2635_v16 = vpop.f32.mrb[121].mxu1 }
 0x306   :  { %v3213_v17 = vpop.f32.mrb[121].mxu0  ;;  %v2636_v18 = vpop.f32.mrb[122].mxu1 }
 0x307   :  { %4251 = vst [vmem:[%s5930_s3 + $0xe8] sm:$0xff] %v4211_v13   ;;  %v4375_v19 = vadd.f32 %v4374_v14, %v3211_v15  ;;  %v4376_v20 = vadd.f32 %v4703_v62, %v2636_v18  ;;  %v3214_v21 = vpop.f32.mrb[122].mxu0  ;;  %v2638_v22 = vpop.f32.mrb[123].mxu1 }
 0x308   :  { %v3216_v23 = vpop.f32.mrb[123].mxu0 }
 0x309   :  { %v4377_v24 = vadd.f32 %v4376_v20, %v3214_v21  ;;  %v3286_v25 = vmax.f32 %v4375_v19, 0.0 }
 0x30b   :  { %v3287_v26 = vmax.f32 %v4377_v24, 0.0 }
 0x30c   :  { %v2641_v27 = vpop.f32.mrb[124].mxu1 }
 0x30d   :  { %v4216_v28 = vpack.c.bf16 %v3287_v26, %v3286_v25  ;;  %v4378_v29 = vadd.f32 %v4703_v62, %v2641_v27  ;;  %v3219_v30 = vpop.f32.mrb[124].mxu0  ;;  %v2643_v31 = vpop.f32.mrb[125].mxu1 }
 0x30e   :  { %v3221_v32 = vpop.f32.mrb[125].mxu0  ;;  %v2644_v34 = vpop.f32.mrb[126].mxu1 }
 0x30f   :  { %4252 = vst [vmem:[%s5930_s3 + $0xf0] sm:$0xff] %v4216_v28   ;;  %v4379_v35 = vadd.f32 %v4378_v29, %v3219_v30  ;;  %v4380_v36 = vadd.f32 %v4703_v62, %v2644_v34  ;;  %v3222_v37 = vpop.f32.mrb[126].mxu0  ;;  %v2646_v38 = vpop.f32.mrb[127].mxu1 }
 0x310   :  { %v3224_v39 = vpop.f32.mrb[127].mxu0 }
 0x311   :  { %v4381_v40 = vadd.f32 %v4380_v36, %v3222_v37  ;;  %v3288_v41 = vmax.f32 %v4379_v35, 0.0 }
 0x313   :  { %v3289_v42 = vmax.f32 %v4381_v40, 0.0 }
 0x315   :  { %v4221_v43 = vpack.c.bf16 %v3289_v42, %v3288_v41 }
 0x317   :  { %4253 = vst [vmem:[%s5930_s3 + $0xf8] sm:$0xff] %v4221_v43  }

// kernel: encoder_lsun_forward.7
= control target key start
LH: loop header
LB: loop body
LE: loop exit
PB: predicated region body
PF: predicated region fallthrough
CT: control target
= control target key end

     0   :  { %s5697_s1 = inlined_call_operand.vmem [shape: bf16[2048,256], index: 1, kind: input, shape index: {}]   ;;  %s5698_s0 = inlined_call_operand.vmem [shape: bf16[128,2048], index: 0, kind: input, shape index: {}]   ;;  %s5699_s2 = inlined_call_operand.vmem [shape: f32[1,256], index: 2, kind: input, shape index: {}]   ;;  %s5700_s3 = inlined_call_operand.vmem [shape: bf16[128,256], index: 3, kind: output, shape index: {}]  }
   0x1   :  { %v4054_v0 = vld [vmem:[%s5697_s1 + $0x4] ss:$8 sps:$4 sm:$0xff]   ;;  %v4058_v2 = vld [vmem:[%s5697_s1] ss:$8 sps:$4 sm:$0xff]   ;;  %v4060_v4 = vld [vmem:[%s5697_s1 + $0x14] ss:$8 sps:$4 sm:$0xff]  }
   0x2   :  { %v4056_v1 = vld [vmem:[%s5697_s1 + $0x404] ss:$8 sps:$4 sm:$0xff]   ;;  %2330 = vmatprep.subr.bf16.mxu1 %v4054_v0  ;;  %v4059_v3 = vld [vmem:[%s5697_s1 + $0x400] ss:$8 sps:$4 sm:$0xff]   ;;  %v4062_v5 = vld [vmem:[%s5697_s1 + $0x414] ss:$8 sps:$4 sm:$0xff]  }
   0x3   :  { %2782 = vmatprep.subr.bf16.mxu0 %v4056_v1  ;;  %2331 = vmatpush1.bf16.msra.mxu1 %v4058_v2  ;;  %v4064_v6 = vld [vmem:[%s5697_s1 + $0x10] ss:$8 sps:$4 sm:$0xff]   ;;  %v4066_v8 = vld [vmem:[%s5697_s1 + $0x24] ss:$8 sps:$4 sm:$0xff]   ;;  %v4070_v10 = vld [vmem:[%s5697_s1 + $0x20] ss:$8 sps:$4 sm:$0xff]  }
   0x4   :  { %2783 = vmatpush1.bf16.msra.mxu0 %v4059_v3  ;;  %2332 = vmatprep.subr.bf16.mxu1 %v4060_v4  ;;  %v4065_v7 = vld [vmem:[%s5697_s1 + $0x410] ss:$8 sps:$4 sm:$0xff]   ;;  %v4068_v9 = vld [vmem:[%s5697_s1 + $0x424] ss:$8 sps:$4 sm:$0xff]   ;;  %v4071_v11 = vld [vmem:[%s5697_s1 + $0x420] ss:$8 sps:$4 sm:$0xff]  }
   0x5   :  { %2784 = vmatprep.subr.bf16.mxu0 %v4062_v5  ;;  %v4072_v12 = vld [vmem:[%s5697_s1 + $0x34] ss:$8 sps:$4 sm:$0xff]   ;;  %v4076_v14 = vld [vmem:[%s5697_s1 + $0x30] ss:$8 sps:$4 sm:$0xff]   ;;  %v4078_v16 = vld [vmem:[%s5697_s1 + $0x44] ss:$8 sps:$4 sm:$0xff]  }
   0x6   :  { %v4074_v13 = vld [vmem:[%s5697_s1 + $0x434] ss:$8 sps:$4 sm:$0xff]   ;;  %v4077_v15 = vld [vmem:[%s5697_s1 + $0x430] ss:$8 sps:$4 sm:$0xff]   ;;  %v4080_v17 = vld [vmem:[%s5697_s1 + $0x444] ss:$8 sps:$4 sm:$0xff]  }
   0x7   :  { %2333 = vmatpush1.bf16.msra.mxu1 %v4064_v6  ;;  %v4082_v18 = vld [vmem:[%s5697_s1 + $0x40] ss:$8 sps:$4 sm:$0xff]   ;;  %v4084_v20 = vld [vmem:[%s5697_s1 + $0x54] ss:$8 sps:$4 sm:$0xff]   ;;  %v4088_v22 = vld [vmem:[%s5697_s1 + $0x50] ss:$8 sps:$4 sm:$0xff]  }
   0x8   :  { %2785 = vmatpush1.bf16.msra.mxu0 %v4065_v7  ;;  %2334 = vmatprep.subr.bf16.mxu1 %v4066_v8  ;;  %v4083_v19 = vld [vmem:[%s5697_s1 + $0x440] ss:$8 sps:$4 sm:$0xff]   ;;  %v4086_v21 = vld [vmem:[%s5697_s1 + $0x454] ss:$8 sps:$4 sm:$0xff]   ;;  %v4089_v23 = vld [vmem:[%s5697_s1 + $0x450] ss:$8 sps:$4 sm:$0xff]  }
   0x9   :  { %2786 = vmatprep.subr.bf16.mxu0 %v4068_v9  ;;  %v4090_v24 = vld [vmem:[%s5697_s1 + $0x64] ss:$8 sps:$4 sm:$0xff]   ;;  %v4094_v26 = vld [vmem:[%s5697_s1 + $0x60] ss:$8 sps:$4 sm:$0xff]   ;;  %v4096_v28 = vld [vmem:[%s5697_s1 + $0x74] ss:$8 sps:$4 sm:$0xff]  }
   0xa   :  { %v4092_v25 = vld [vmem:[%s5697_s1 + $0x464] ss:$8 sps:$4 sm:$0xff]   ;;  %v4095_v27 = vld [vmem:[%s5697_s1 + $0x460] ss:$8 sps:$4 sm:$0xff]   ;;  %v4098_v29 = vld [vmem:[%s5697_s1 + $0x474] ss:$8 sps:$4 sm:$0xff]  }
   0xb   :  { %2335 = vmatpush1.bf16.msra.mxu1 %v4070_v10  ;;  %v4100_v30 = vld [vmem:[%s5697_s1 + $0x70] ss:$8 sps:$4 sm:$0xff]   ;;  %v4102_v32 = vld [vmem:[%s5697_s1 + $0x84] ss:$8 sps:$4 sm:$0xff]   ;;  %v4106_v34 = vld [vmem:[%s5697_s1 + $0x80] ss:$8 sps:$4 sm:$0xff]  }
   0xc   :  { %2787 = vmatpush1.bf16.msra.mxu0 %v4071_v11  ;;  %2336 = vmatprep.subr.bf16.mxu1 %v4072_v12  ;;  %v4101_v31 = vld [vmem:[%s5697_s1 + $0x470] ss:$8 sps:$4 sm:$0xff]   ;;  %v4104_v33 = vld [vmem:[%s5697_s1 + $0x484] ss:$8 sps:$4 sm:$0xff]   ;;  %v4107_v35 = vld [vmem:[%s5697_s1 + $0x480] ss:$8 sps:$4 sm:$0xff]  }
   0xd   :  { %2788 = vmatprep.subr.bf16.mxu0 %v4074_v13  ;;  %v4108_v36 = vld [vmem:[%s5697_s1 + $0x94] ss:$8 sps:$4 sm:$0xff]   ;;  %v4112_v38 = vld [vmem:[%s5697_s1 + $0x90] ss:$8 sps:$4 sm:$0xff]   ;;  %v4114_v40 = vld [vmem:[%s5697_s1 + $0xa4] ss:$8 sps:$4 sm:$0xff]  }
   0xe   :  { %v4110_v37 = vld [vmem:[%s5697_s1 + $0x494] ss:$8 sps:$4 sm:$0xff]   ;;  %v4113_v39 = vld [vmem:[%s5697_s1 + $0x490] ss:$8 sps:$4 sm:$0xff]   ;;  %v4116_v41 = vld [vmem:[%s5697_s1 + $0x4a4] ss:$8 sps:$4 sm:$0xff]  }
   0xf   :  { %2337 = vmatpush1.bf16.msra.mxu1 %v4076_v14  ;;  %v4118_v42 = vld [vmem:[%s5697_s1 + $0xa0] ss:$8 sps:$4 sm:$0xff]   ;;  %v4120_v44 = vld [vmem:[%s5697_s1 + $0xb4] ss:$8 sps:$4 sm:$0xff]   ;;  %v4124_v46 = vld [vmem:[%s5697_s1 + $0xb0] ss:$8 sps:$4 sm:$0xff]  }
  0x10   :  { %2789 = vmatpush1.bf16.msra.mxu0 %v4077_v15  ;;  %2338 = vmatprep.subr.bf16.mxu1 %v4078_v16  ;;  %v4119_v43 = vld [vmem:[%s5697_s1 + $0x4a0] ss:$8 sps:$4 sm:$0xff]   ;;  %v4122_v45 = vld [vmem:[%s5697_s1 + $0x4b4] ss:$8 sps:$4 sm:$0xff]   ;;  %v4125_v47 = vld [vmem:[%s5697_s1 + $0x4b0] ss:$8 sps:$4 sm:$0xff]  }
  0x11   :  { %2790 = vmatprep.subr.bf16.mxu0 %v4080_v17  ;;  %v14_v48 = vld [vmem:[%s5698_s0] sm:$0xff]  ;;  %v4132_v58 = vld [vmem:[%s5697_s1 + $0xd4] ss:$8 sps:$4 sm:$0xff]   ;;  %v4136_v60 = vld [vmem:[%s5697_s1 + $0xd0] ss:$8 sps:$4 sm:$0xff]  }
  0x12   :  { %v22_v49 = vld [vmem:[%s5698_s0 + $0x40] sm:$0xff]  ;;  %v4134_v59 = vld [vmem:[%s5697_s1 + $0x4d4] ss:$8 sps:$4 sm:$0xff]   ;;  %v4137_v61 = vld [vmem:[%s5697_s1 + $0x4d0] ss:$8 sps:$4 sm:$0xff]  }
  0x13   :  { %2339 = vmatpush1.bf16.msra.mxu1 %v4082_v18  ;;  %v18_v50 = vld [vmem:[%s5698_s0 + $0x20] sm:$0xff]  ;;  %v3383_v53 = vcombine.high %v14_v48, %v22_v49  ;;  %v4144_v2 = vld [vmem:[%s5697_s1 + $0xf4] ss:$8 sps:$4 sm:$0xff]   ;;  %v4148_v4 = vld [vmem:[%s5697_s1 + $0xf0] ss:$8 sps:$4 sm:$0xff]   ;;  %v3382_v11 = vcombine.low %v14_v48, %v22_v49 }
  0x14   :  { %2791 = vmatpush1.bf16.msra.mxu0 %v4083_v19  ;;  %2340 = vmatprep.subr.bf16.mxu1 %v4084_v20  ;;  %v26_v51 = vld [vmem:[%s5698_s0 + $0x60] sm:$0xff]  ;;  %v4146_v3 = vld [vmem:[%s5697_s1 + $0x4f4] ss:$8 sps:$4 sm:$0xff]   ;;  %v4149_v5 = vld [vmem:[%s5697_s1 + $0x4f0] ss:$8 sps:$4 sm:$0xff]  }
  0x15   :  { %2792 = vmatprep.subr.bf16.mxu0 %v4086_v21  ;;  %v4126_v52 = vld [vmem:[%s5697_s1 + $0xc4] ss:$8 sps:$4 sm:$0xff]   ;;  %v3391_v55 = vcombine.high %v18_v50, %v26_v51  ;;  %2362 = vmatprep.mubr.bf16.mxu1 %v3383_v53  ;;  %v4130_v56 = vld [vmem:[%s5697_s1 + $0xc0] ss:$8 sps:$4 sm:$0xff]   ;;  %v3390_v12 = vcombine.low %v18_v50, %v26_v51  ;;  %v4158_v16 = vld [vmem:[%s5697_s1 + $0x114] ss:$8 sps:$4 sm:$0xff]  }
  0x16   :  { %v4128_v54 = vld [vmem:[%s5697_s1 + $0x4c4] ss:$8 sps:$4 sm:$0xff]   ;;  %v4131_v57 = vld [vmem:[%s5697_s1 + $0x4c0] ss:$8 sps:$4 sm:$0xff]   ;;  %v4161_v17 = vld [vmem:[%s5697_s1 + $0x514] ss:$8 sps:$4 sm:$0xff]  }
  0x17   :  { %2341 = vmatpush1.bf16.msra.mxu1 %v4088_v22  ;;  %2814 = vmatprep.mubr.bf16.mxu0 %v3391_v55  ;;  %v4138_v62 = vld [vmem:[%s5697_s1 + $0xe4] ss:$8 sps:$4 sm:$0xff]   ;;  %v4142_v0 = vld [vmem:[%s5697_s1 + $0xe0] ss:$8 sps:$4 sm:$0xff]   ;;  %v4156_v20 = vld [vmem:[%s5697_s1 + $0x110] ss:$8 sps:$4 sm:$0xff]  }
  0x18   :  { %2793 = vmatpush1.bf16.msra.mxu0 %v4089_v23  ;;  %2342 = vmatprep.subr.bf16.mxu1 %v4090_v24  ;;  %v4140_v63 = vld [vmem:[%s5697_s1 + $0x4e4] ss:$8 sps:$4 sm:$0xff]   ;;  %v4143_v1 = vld [vmem:[%s5697_s1 + $0x4e0] ss:$8 sps:$4 sm:$0xff]   ;;  %v4159_v21 = vld [vmem:[%s5697_s1 + $0x510] ss:$8 sps:$4 sm:$0xff]  }
  0x19   :  { %2794 = vmatprep.subr.bf16.mxu0 %v4092_v25  ;;  %v4152_v6 = vld [vmem:[%s5697_s1 + $0x104] ss:$8 sps:$4 sm:$0xff]   ;;  %v4150_v8 = vld [vmem:[%s5697_s1 + $0x100] ss:$8 sps:$4 sm:$0xff]   ;;  %v4182_v48 = vld [vmem:[%s5697_s1 + $0x154] ss:$8 sps:$4 sm:$0xff]  }
  0x1a   :  { %v4155_v7 = vld [vmem:[%s5697_s1 + $0x504] ss:$8 sps:$4 sm:$0xff]   ;;  %v4153_v9 = vld [vmem:[%s5697_s1 + $0x500] ss:$8 sps:$4 sm:$0xff]   ;;  %v4185_v49 = vld [vmem:[%s5697_s1 + $0x554] ss:$8 sps:$4 sm:$0xff]  }
  0x1b   :  { %2343 = vmatpush1.bf16.msra.mxu1 %v4094_v26  ;;  %v30_v10 = vld [vmem:[%s5698_s0 + $0x80] sm:$0xff]  ;;  %v4183_v53 = vld [vmem:[%s5697_s1 + $0x550] ss:$8 sps:$4 sm:$0xff]  }
  0x1c   :  { %2795 = vmatpush1.bf16.msra.mxu0 %v4095_v27  ;;  %2344 = vmatprep.subr.bf16.mxu1 %v4096_v28  ;;  %v38_v13 = vld [vmem:[%s5698_s0 + $0xc0] sm:$0xff] }
  0x1d   :  { %2796 = vmatprep.subr.bf16.mxu0 %v4098_v29  ;;  %v34_v14 = vld [vmem:[%s5698_s0 + $0xa0] sm:$0xff]  ;;  %v3399_v18 = vcombine.high %v30_v10, %v38_v13  ;;  %v3398_v28 = vcombine.low %v30_v10, %v38_v13 }
  0x1e   :  { %v42_v15 = vld [vmem:[%s5698_s0 + $0xe0] sm:$0xff] }
  0x1f   :  { %2345 = vmatpush1.bf16.msra.mxu1 %v4100_v30  ;;  %v3407_v19 = vcombine.high %v34_v14, %v42_v15  ;;  %v4164_v22 = vld [vmem:[%s5697_s1 + $0x124] ss:$8 sps:$4 sm:$0xff]   ;;  %v4162_v24 = vld [vmem:[%s5697_s1 + $0x120] ss:$8 sps:$4 sm:$0xff]   ;;  %v3406_v29 = vcombine.low %v34_v14, %v42_v15 }
  0x20   :  { %2797 = vmatpush1.bf16.msra.mxu0 %v4101_v31  ;;  %2346 = vmatprep.subr.bf16.mxu1 %v4102_v32  ;;  %v4167_v23 = vld [vmem:[%s5697_s1 + $0x524] ss:$8 sps:$4 sm:$0xff]   ;;  %v4165_v25 = vld [vmem:[%s5697_s1 + $0x520] ss:$8 sps:$4 sm:$0xff]   ;;  %v4170_v32 = vld [vmem:[%s5697_s1 + $0x134] ss:$8 sps:$4 sm:$0xff]  }
  0x21   :  { %2798 = vmatprep.subr.bf16.mxu0 %v4104_v33  ;;  %v46_v26 = vld [vmem:[%s5698_s0 + $0x100] sm:$0xff]  ;;  %v4173_v33 = vld [vmem:[%s5697_s1 + $0x534] ss:$8 sps:$4 sm:$0xff]  }
  0x22   :  { %v54_v27 = vld [vmem:[%s5698_s0 + $0x140] sm:$0xff] }
  0x23   :  { %2347 = vmatpush1.bf16.msra.mxu1 %v4106_v34  ;;  %v50_v30 = vld [vmem:[%s5698_s0 + $0x120] sm:$0xff]  ;;  %v3415_v34 = vcombine.high %v46_v26, %v54_v27 }
  0x24   :  { %2799 = vmatpush1.bf16.msra.mxu0 %v4107_v35  ;;  %2348 = vmatprep.subr.bf16.mxu1 %v4108_v36  ;;  %v58_v31 = vld [vmem:[%s5698_s0 + $0x160] sm:$0xff]  ;;  %v4168_v36 = vld [vmem:[%s5697_s1 + $0x130] ss:$8 sps:$4 sm:$0xff]  }
  0x25   :  { %2800 = vmatprep.subr.bf16.mxu0 %v4110_v37  ;;  %v3423_v35 = vcombine.high %v50_v30, %v58_v31  ;;  %v4171_v37 = vld [vmem:[%s5697_s1 + $0x530] ss:$8 sps:$4 sm:$0xff]   ;;  %v4191_v55 = vld [vmem:[%s5697_s1 + $0x564] ss:$8 sps:$4 sm:$0xff]   ;;  %v4198_v14 = vld [vmem:[%s5697_s1 + $0x180] ss:$8 sps:$4 sm:$0xff]  }
  0x26   :  { %v106_v13 = vld [vmem:[%s5698_s0 + $0x2e0] sm:$0xff] }
  0x27   :  { %2349 = vmatpush1.bf16.msra.mxu1 %v4112_v38  ;;  %v4176_v38 = vld [vmem:[%s5697_s1 + $0x144] ss:$8 sps:$4 sm:$0xff]   ;;  %v4201_v15 = vld [vmem:[%s5697_s1 + $0x580] ss:$8 sps:$4 sm:$0xff]  }
  0x28   :  { %2801 = vmatpush1.bf16.msra.mxu0 %v4113_v39  ;;  %2350 = vmatprep.subr.bf16.mxu1 %v4114_v40  ;;  %v4179_v39 = vld [vmem:[%s5697_s1 + $0x544] ss:$8 sps:$4 sm:$0xff]   ;;  %v4174_v40 = vld [vmem:[%s5697_s1 + $0x140] ss:$8 sps:$4 sm:$0xff]  }
  0x29   :  { %2802 = vmatprep.subr.bf16.mxu0 %v4116_v41  ;;  %v4177_v41 = vld [vmem:[%s5697_s1 + $0x540] ss:$8 sps:$4 sm:$0xff]  }
  0x2b   :  { %2351 = vmatpush1.bf16.msra.mxu1 %v4118_v42  ;;  %v62_v42 = vld [vmem:[%s5698_s0 + $0x180] sm:$0xff] }
  0x2c   :  { %2803 = vmatpush1.bf16.msra.mxu0 %v4119_v43  ;;  %2352 = vmatprep.subr.bf16.mxu1 %v4120_v44  ;;  %v70_v43 = vld [vmem:[%s5698_s0 + $0x1c0] sm:$0xff]  ;;  %v3414_v44 = vcombine.low %v46_v26, %v54_v27 }
  0x2d   :  { %2804 = vmatprep.subr.bf16.mxu0 %v4122_v45  ;;  %v3422_v45 = vcombine.low %v50_v30, %v58_v31  ;;  %v3431_v50 = vcombine.high %v62_v42, %v70_v43  ;;  %v110_v26 = vld [vmem:[%s5698_s0 + $0x300] sm:$0xff] }
  0x2e   :  { %v114_v30 = vld [vmem:[%s5698_s0 + $0x320] sm:$0xff] }
  0x2f   :  { %2353 = vmatpush1.bf16.msra.mxu1 %v4124_v46  ;;  %v66_v46 = vld [vmem:[%s5698_s0 + $0x1a0] sm:$0xff] }
  0x30   :  { %2805 = vmatpush1.bf16.msra.mxu0 %v4125_v47  ;;  %2354 = vmatprep.subr.bf16.mxu1 %v4126_v52  ;;  %v74_v47 = vld [vmem:[%s5698_s0 + $0x1e0] sm:$0xff]  ;;  %v4180_v52 = vld [vmem:[%s5697_s1 + $0x150] ss:$8 sps:$4 sm:$0xff]  }
  0x31   :  { %2806 = vmatprep.subr.bf16.mxu0 %v4128_v54  ;;  %v3439_v51 = vcombine.high %v66_v46, %v74_v47  ;;  %v4188_v54 = vld [vmem:[%s5697_s1 + $0x164] ss:$8 sps:$4 sm:$0xff]  }
  0x32   :  { %v122_v31 = vld [vmem:[%s5698_s0 + $0x360] sm:$0xff] }
  0x33   :  { %2355 = vmatpush1.bf16.msra.mxu1 %v4130_v56  ;;  %v4186_v56 = vld [vmem:[%s5697_s1 + $0x160] ss:$8 sps:$4 sm:$0xff]  }
  0x34   :  { %2807 = vmatpush1.bf16.msra.mxu0 %v4131_v57  ;;  %2356 = vmatprep.subr.bf16.mxu1 %v4132_v58  ;;  %v78_v57 = vld [vmem:[%s5698_s0 + $0x200] sm:$0xff] }
  0x35   :  { %2808 = vmatprep.subr.bf16.mxu0 %v4134_v59  ;;  %v86_v58 = vld [vmem:[%s5698_s0 + $0x240] sm:$0xff]  ;;  %v3430_v59 = vcombine.low %v62_v42, %v70_v43 }
  0x36   :  { %v3446_v10 = vcombine.low %v78_v57, %v86_v58  ;;  %v126_v42 = vld [vmem:[%s5698_s0 + $0x380] sm:$0xff] }
  0x37   :  { %2357 = vmatpush1.bf16.msra.mxu1 %v4136_v60  ;;  %v3438_v60 = vcombine.low %v66_v46, %v74_v47  ;;  %v134_v43 = vld [vmem:[%s5698_s0 + $0x3c0] sm:$0xff] }
  0x38   :  { %2809 = vmatpush1.bf16.msra.mxu0 %v4137_v61  ;;  %2358 = vmatprep.subr.bf16.mxu1 %v4138_v62  ;;  %v82_v61 = vld [vmem:[%s5698_s0 + $0x220] sm:$0xff] }
  0x39   :  { %2810 = vmatprep.subr.bf16.mxu0 %v4140_v63  ;;  %v90_v62 = vld [vmem:[%s5698_s0 + $0x260] sm:$0xff] }
  0x3a   :  { %v4189_v63 = vld [vmem:[%s5697_s1 + $0x560] ss:$8 sps:$4 sm:$0xff]  }
  0x3b   :  { %2359 = vmatpush1.bf16.msra.mxu1 %v4142_v0  ;;  %v4194_v0 = vld [vmem:[%s5697_s1 + $0x174] ss:$8 sps:$4 sm:$0xff]   ;;  %v130_v46 = vld [vmem:[%s5698_s0 + $0x3a0] sm:$0xff] }
  0x3c   :  { %2811 = vmatpush1.bf16.msra.mxu0 %v4143_v1  ;;  %2360 = vmatprep.subr.bf16.mxu1 %v4144_v2  ;;  %v4197_v1 = vld [vmem:[%s5697_s1 + $0x574] ss:$8 sps:$4 sm:$0xff]   ;;  %v3447_v2 = vcombine.high %v78_v57, %v86_v58  ;;  %v138_v47 = vld [vmem:[%s5698_s0 + $0x3e0] sm:$0xff]  ;;  %v15_v58 = vld [vmem:[%s5698_s0 + $0x8] sm:$0xff] }
  0x3d   :  { %2812 = vmatprep.subr.bf16.mxu0 %v4146_v3  ;;  %v3455_v3 = vcombine.high %v82_v61, %v90_v62  ;;  %v4237_v57 = vld [vmem:[%s5697_s1 + $0x5e0] ss:$8 sps:$4 sm:$0xff]  }
  0x3f   :  { %2361 = vmatpush1.bf16.msra.mxu1 %v4148_v4  ;;  %v4192_v4 = vld [vmem:[%s5697_s1 + $0x170] ss:$8 sps:$4 sm:$0xff]  }
  0x40   :  { %2813 = vmatpush1.bf16.msra.mxu0 %v4149_v5  ;;  %2443 = vmatprep.subr.bf16.mxu1 %v4152_v6  ;;  %v4195_v5 = vld [vmem:[%s5697_s1 + $0x570] ss:$8 sps:$4 sm:$0xff]   ;;  %v4200_v6 = vld [vmem:[%s5697_s1 + $0x184] ss:$8 sps:$4 sm:$0xff]  }
  0x41   :  { %2895 = vmatprep.subr.bf16.mxu0 %v4155_v7  ;;  %v4203_v7 = vld [vmem:[%s5697_s1 + $0x584] ss:$8 sps:$4 sm:$0xff]  }
  0x42   :  { %2363 = vmatmul.mubr.bf16.vlgmr.msra.gmra.mrb[0].mxu1 %v3382_v11  ;;  %v3454_v11 = vcombine.low %v82_v61, %v90_v62  ;;  %v3502_v61 = vcombine.low %v130_v46, %v138_v47  ;;  %v19_v62 = vld [vmem:[%s5698_s0 + $0x28] sm:$0xff] }
  0x43   :  { %2815 = vmatmul.mubr.bf16.vlgmr.msra.gmra.mrb[0].mxu0 %v3390_v12  ;;  %2444 = vmatpush1.bf16.msra.mxu1 %v4150_v8  ;;  %v94_v8 = vld [vmem:[%s5698_s0 + $0x280] sm:$0xff] }
  0x44   :  { %2896 = vmatpush1.bf16.msra.mxu0 %v4153_v9  ;;  %2445 = vmatprep.subr.bf16.mxu1 %v4158_v16  ;;  %v102_v9 = vld [vmem:[%s5698_s0 + $0x2c0] sm:$0xff]  ;;  %v4206_v16 = vld [vmem:[%s5697_s1 + $0x194] ss:$8 sps:$4 sm:$0xff]  }
  0x45   :  { %2897 = vmatprep.subr.bf16.mxu0 %v4161_v17  ;;  %2372 = vmatprep.mubr.bf16.mxu1 %v3399_v18  ;;  %v98_v12 = vld [vmem:[%s5698_s0 + $0x2a0] sm:$0xff]  ;;  %v4209_v17 = vld [vmem:[%s5697_s1 + $0x594] ss:$8 sps:$4 sm:$0xff]   ;;  %v3463_v18 = vcombine.high %v94_v8, %v102_v9  ;;  %v3462_v27 = vcombine.low %v94_v8, %v102_v9  ;;  %v31_v9 = vld [vmem:[%s5698_s0 + $0x88] sm:$0xff] }
  0x46   :  { %2824 = vmatprep.mubr.bf16.mxu0 %v3407_v19  ;;  %v3471_v19 = vcombine.high %v98_v12, %v106_v13  ;;  %v4246_v8 = vld [vmem:[%s5697_s1 + $0x200] ss:$8 sps:$4 sm:$0xff]  }
  0x47   :  { %2446 = vmatpush1.bf16.msra.mxu1 %v4156_v20  ;;  %v4204_v20 = vld [vmem:[%s5697_s1 + $0x190] ss:$8 sps:$4 sm:$0xff]  }
  0x48   :  { %2898 = vmatpush1.bf16.msra.mxu0 %v4159_v21  ;;  %2447 = vmatprep.subr.bf16.mxu1 %v4164_v22  ;;  %v4207_v21 = vld [vmem:[%s5697_s1 + $0x590] ss:$8 sps:$4 sm:$0xff]   ;;  %v4212_v22 = vld [vmem:[%s5697_s1 + $0x1a4] ss:$8 sps:$4 sm:$0xff]  }
  0x49   :  { %2899 = vmatprep.subr.bf16.mxu0 %v4167_v23  ;;  %v4215_v23 = vld [vmem:[%s5697_s1 + $0x5a4] ss:$8 sps:$4 sm:$0xff]  }
  0x4a   :  { %2373 = vmatmul.mubr.bf16.gmra.mrb[4].mxu1 %v3398_v28  ;;  %v3470_v28 = vcombine.low %v98_v12, %v106_v13  ;;  %v35_v13 = vld [vmem:[%s5698_s0 + $0xa8] sm:$0xff] }
  0x4b   :  { %2825 = vmatmul.mubr.bf16.gmra.mrb[4].mxu0 %v3406_v29  ;;  %2448 = vmatpush1.bf16.msra.mxu1 %v4162_v24  ;;  %v4210_v24 = vld [vmem:[%s5697_s1 + $0x1a0] ss:$8 sps:$4 sm:$0xff]  }
  0x4c   :  { %2900 = vmatpush1.bf16.msra.mxu0 %v4165_v25  ;;  %2449 = vmatprep.subr.bf16.mxu1 %v4170_v32  ;;  %v4213_v25 = vld [vmem:[%s5697_s1 + $0x5a0] ss:$8 sps:$4 sm:$0xff]   ;;  %v4218_v32 = vld [vmem:[%s5697_s1 + $0x1b4] ss:$8 sps:$4 sm:$0xff]  }
  0x4d   :  { %2901 = vmatprep.subr.bf16.mxu0 %v4173_v33  ;;  %2382 = vmatprep.mubr.bf16.mxu1 %v3415_v34  ;;  %v118_v29 = vld [vmem:[%s5698_s0 + $0x340] sm:$0xff]  ;;  %v4221_v33 = vld [vmem:[%s5697_s1 + $0x5b4] ss:$8 sps:$4 sm:$0xff]  }
  0x4e   :  { %2834 = vmatprep.mubr.bf16.mxu0 %v3423_v35  ;;  %v3479_v34 = vcombine.high %v110_v26, %v118_v29  ;;  %v3487_v35 = vcombine.high %v114_v30, %v122_v31 }
  0x4f   :  { %2450 = vmatpush1.bf16.msra.mxu1 %v4168_v36  ;;  %v4216_v36 = vld [vmem:[%s5697_s1 + $0x1b0] ss:$8 sps:$4 sm:$0xff]  }
  0x50   :  { %2902 = vmatpush1.bf16.msra.mxu0 %v4171_v37  ;;  %2451 = vmatprep.subr.bf16.mxu1 %v4176_v38  ;;  %v4219_v37 = vld [vmem:[%s5697_s1 + $0x5b0] ss:$8 sps:$4 sm:$0xff]   ;;  %v4224_v38 = vld [vmem:[%s5697_s1 + $0x1c4] ss:$8 sps:$4 sm:$0xff]  }
  0x51   :  { %2903 = vmatprep.subr.bf16.mxu0 %v4179_v39  ;;  %v4227_v39 = vld [vmem:[%s5697_s1 + $0x5c4] ss:$8 sps:$4 sm:$0xff]  }
  0x52   :  { %2383 = vmatmul.mubr.bf16.gmra.mrb[8].mxu1 %v3414_v44  ;;  %v3478_v44 = vcombine.low %v110_v26, %v118_v29  ;;  %v59_v29 = vld [vmem:[%s5698_s0 + $0x168] sm:$0xff] }
  0x53   :  { %2835 = vmatmul.mubr.bf16.gmra.mrb[8].mxu0 %v3422_v45  ;;  %2452 = vmatpush1.bf16.msra.mxu1 %v4174_v40  ;;  %v4222_v40 = vld [vmem:[%s5697_s1 + $0x1c0] ss:$8 sps:$4 sm:$0xff]   ;;  %v3486_v45 = vcombine.low %v114_v30, %v122_v31 }
  0x54   :  { %2904 = vmatpush1.bf16.msra.mxu0 %v4177_v41  ;;  %2453 = vmatprep.subr.bf16.mxu1 %v4182_v48  ;;  %v4225_v41 = vld [vmem:[%s5697_s1 + $0x5c0] ss:$8 sps:$4 sm:$0xff]   ;;  %v4230_v48 = vld [vmem:[%s5697_s1 + $0x1d4] ss:$8 sps:$4 sm:$0xff]  }
  0x55   :  { %2905 = vmatprep.subr.bf16.mxu0 %v4185_v49  ;;  %2392 = vmatprep.mubr.bf16.mxu1 %v3431_v50  ;;  %v4233_v49 = vld [vmem:[%s5697_s1 + $0x5d4] ss:$8 sps:$4 sm:$0xff]   ;;  %v3495_v50 = vcombine.high %v126_v42, %v134_v43  ;;  %v4258_v30 = vld [vmem:[%s5697_s1 + $0x220] ss:$8 sps:$4 sm:$0xff]  }
  0x56   :  { %2844 = vmatprep.mubr.bf16.mxu0 %v3439_v51  ;;  %v3503_v51 = vcombine.high %v130_v46, %v138_v47  ;;  %v4261_v31 = vld [vmem:[%s5697_s1 + $0x620] ss:$8 sps:$4 sm:$0xff]  }
  0x57   :  { %2454 = vmatpush1.bf16.msra.mxu1 %v4180_v52  ;;  %v4228_v52 = vld [vmem:[%s5697_s1 + $0x1d0] ss:$8 sps:$4 sm:$0xff]   ;;  %v67_v46 = vld [vmem:[%s5698_s0 + $0x1a8] sm:$0xff] }
  0x58   :  { %2906 = vmatpush1.bf16.msra.mxu0 %v4183_v53  ;;  %2455 = vmatprep.subr.bf16.mxu1 %v4188_v54  ;;  %v4231_v53 = vld [vmem:[%s5697_s1 + $0x5d0] ss:$8 sps:$4 sm:$0xff]   ;;  %v4236_v54 = vld [vmem:[%s5697_s1 + $0x1e4] ss:$8 sps:$4 sm:$0xff]  }
  0x59   :  { %2907 = vmatprep.subr.bf16.mxu0 %v4191_v55  ;;  %v4239_v55 = vld [vmem:[%s5697_s1 + $0x5e4] ss:$8 sps:$4 sm:$0xff]  }
  0x5a   :  { %2393 = vmatmul.mubr.bf16.gmra.mrb[12].mxu1 %v3430_v59  ;;  %v23_v59 = vld [vmem:[%s5698_s0 + $0x48] sm:$0xff] }
  0x5b   :  { %2845 = vmatmul.mubr.bf16.gmra.mrb[12].mxu0 %v3438_v60  ;;  %2456 = vmatpush1.bf16.msra.mxu1 %v4186_v56  ;;  %v4234_v56 = vld [vmem:[%s5697_s1 + $0x1e0] ss:$8 sps:$4 sm:$0xff]   ;;  %v3494_v60 = vcombine.low %v126_v42, %v134_v43 }
  0x5c   :  { %2908 = vmatpush1.bf16.msra.mxu0 %v4189_v63  ;;  %2457 = vmatprep.subr.bf16.mxu1 %v4194_v0  ;;  %v27_v63 = vld [vmem:[%s5698_s0 + $0x68] sm:$0xff]  ;;  %v4242_v0 = vld [vmem:[%s5697_s1 + $0x1f4] ss:$8 sps:$4 sm:$0xff]  }
  0x5d   :  { %2909 = vmatprep.subr.bf16.mxu0 %v4197_v1  ;;  %2402 = vmatprep.mubr.bf16.mxu1 %v3447_v2  ;;  %v4245_v1 = vld [vmem:[%s5697_s1 + $0x5f4] ss:$8 sps:$4 sm:$0xff]   ;;  %v3385_v2 = vcombine.high %v15_v58, %v23_v59  ;;  %v3392_v12 = vcombine.low %v19_v62, %v27_v63  ;;  %v63_v42 = vld [vmem:[%s5698_s0 + $0x188] sm:$0xff] }
  0x5e   :  { %2854 = vmatprep.mubr.bf16.mxu0 %v3455_v3  ;;  %v3393_v3 = vcombine.high %v19_v62, %v27_v63  ;;  %v75_v47 = vld [vmem:[%s5698_s0 + $0x1e8] sm:$0xff] }
  0x5f   :  { %2458 = vmatpush1.bf16.msra.mxu1 %v4192_v4  ;;  %v4240_v4 = vld [vmem:[%s5697_s1 + $0x1f0] ss:$8 sps:$4 sm:$0xff]   ;;  %v83_v62 = vld [vmem:[%s5698_s0 + $0x228] sm:$0xff] }
  0x60   :  { %2910 = vmatpush1.bf16.msra.mxu0 %v4195_v5  ;;  %2459 = vmatprep.subr.bf16.mxu1 %v4200_v6  ;;  %v4243_v5 = vld [vmem:[%s5697_s1 + $0x5f0] ss:$8 sps:$4 sm:$0xff]   ;;  %v4248_v6 = vld [vmem:[%s5697_s1 + $0x204] ss:$8 sps:$4 sm:$0xff]  }
  0x61   :  { %2911 = vmatprep.subr.bf16.mxu0 %v4203_v7  ;;  %v4251_v7 = vld [vmem:[%s5697_s1 + $0x604] ss:$8 sps:$4 sm:$0xff]  }
  0x62   :  { %2403 = vmatmul.mubr.bf16.gmra.mrb[16].mxu1 %v3446_v10  ;;  %v39_v10 = vld [vmem:[%s5698_s0 + $0xc8] sm:$0xff] }
  0x63   :  { %2855 = vmatmul.mubr.bf16.gmra.mrb[16].mxu0 %v3454_v11  ;;  %2460 = vmatpush1.bf16.msra.mxu1 %v4198_v14  ;;  %v3384_v11 = vcombine.low %v15_v58, %v23_v59  ;;  %v43_v14 = vld [vmem:[%s5698_s0 + $0xe8] sm:$0xff]  ;;  %v3400_v26 = vcombine.low %v31_v9, %v39_v10 }
  0x64   :  { %2912 = vmatpush1.bf16.msra.mxu0 %v4201_v15  ;;  %2461 = vmatprep.subr.bf16.mxu1 %v4206_v16  ;;  %v4249_v15 = vld [vmem:[%s5697_s1 + $0x600] ss:$8 sps:$4 sm:$0xff]   ;;  %v4254_v16 = vld [vmem:[%s5697_s1 + $0x214] ss:$8 sps:$4 sm:$0xff]  }
  0x65   :  { %2913 = vmatprep.subr.bf16.mxu0 %v4209_v17  ;;  %2412 = vmatprep.mubr.bf16.mxu1 %v3463_v18  ;;  %v4257_v17 = vld [vmem:[%s5697_s1 + $0x614] ss:$8 sps:$4 sm:$0xff]   ;;  %v3401_v18 = vcombine.high %v31_v9, %v39_v10  ;;  %v79_v58 = vld [vmem:[%s5698_s0 + $0x208] sm:$0xff] }
  0x66   :  { %2864 = vmatprep.mubr.bf16.mxu0 %v3471_v19  ;;  %v3409_v19 = vcombine.high %v35_v13, %v43_v14  ;;  %v87_v59 = vld [vmem:[%s5698_s0 + $0x248] sm:$0xff] }
  0x67   :  { %2462 = vmatpush1.bf16.msra.mxu1 %v4204_v20  ;;  %v4252_v20 = vld [vmem:[%s5697_s1 + $0x210] ss:$8 sps:$4 sm:$0xff]   ;;  %v91_v63 = vld [vmem:[%s5698_s0 + $0x268] sm:$0xff] }
  0x68   :  { %2914 = vmatpush1.bf16.msra.mxu0 %v4207_v21  ;;  %2463 = vmatprep.subr.bf16.mxu1 %v4212_v22  ;;  %v4255_v21 = vld [vmem:[%s5697_s1 + $0x610] ss:$8 sps:$4 sm:$0xff]   ;;  %v4260_v22 = vld [vmem:[%s5697_s1 + $0x224] ss:$8 sps:$4 sm:$0xff]   ;;  %v4297_v9 = vld [vmem:[%s5697_s1 + $0x680] ss:$8 sps:$4 sm:$0xff]  }
  0x69   :  { %2915 = vmatprep.subr.bf16.mxu0 %v4215_v23  ;;  %v4263_v23 = vld [vmem:[%s5697_s1 + $0x624] ss:$8 sps:$4 sm:$0xff]  }
  0x6a   :  { %2413 = vmatmul.mubr.bf16.gmra.mrb[20].mxu1 %v3462_v27  ;;  %v3408_v27 = vcombine.low %v35_v13, %v43_v14  ;;  %v95_v10 = vld [vmem:[%s5698_s0 + $0x288] sm:$0xff]  ;;  %v3456_v13 = vcombine.low %v83_v62, %v91_v63 }
  0x6b   :  { %2865 = vmatmul.mubr.bf16.gmra.mrb[20].mxu0 %v3470_v28  ;;  %2464 = vmatpush1.bf16.msra.mxu1 %v4210_v24  ;;  %v47_v24 = vld [vmem:[%s5698_s0 + $0x108] sm:$0xff] }
  0x6c   :  { %2916 = vmatpush1.bf16.msra.mxu0 %v4213_v25  ;;  %2465 = vmatprep.subr.bf16.mxu1 %v4218_v32  ;;  %v55_v25 = vld [vmem:[%s5698_s0 + $0x148] sm:$0xff]  ;;  %v4266_v32 = vld [vmem:[%s5697_s1 + $0x234] ss:$8 sps:$4 sm:$0xff]  }
  0x6d   :  { %2917 = vmatprep.subr.bf16.mxu0 %v4221_v33  ;;  %2422 = vmatprep.mubr.bf16.mxu1 %v3479_v34  ;;  %v51_v28 = vld [vmem:[%s5698_s0 + $0x128] sm:$0xff]  ;;  %v4269_v33 = vld [vmem:[%s5697_s1 + $0x634] ss:$8 sps:$4 sm:$0xff]   ;;  %v3417_v34 = vcombine.high %v47_v24, %v55_v25  ;;  %v3416_v43 = vcombine.low %v47_v24, %v55_v25 }
  0x6e   :  { %2874 = vmatprep.mubr.bf16.mxu0 %v3487_v35  ;;  %v3425_v35 = vcombine.high %v51_v28, %v59_v29  ;;  %v99_v14 = vld [vmem:[%s5698_s0 + $0x2a8] sm:$0xff] }
  0x6f   :  { %2466 = vmatpush1.bf16.msra.mxu1 %v4216_v36  ;;  %v4264_v36 = vld [vmem:[%s5697_s1 + $0x230] ss:$8 sps:$4 sm:$0xff]   ;;  %v4306_v24 = vld [vmem:[%s5697_s1 + $0x2a0] ss:$8 sps:$4 sm:$0xff]  }
  0x70   :  { %2918 = vmatpush1.bf16.msra.mxu0 %v4219_v37  ;;  %2467 = vmatprep.subr.bf16.mxu1 %v4224_v38  ;;  %v4267_v37 = vld [vmem:[%s5697_s1 + $0x630] ss:$8 sps:$4 sm:$0xff]   ;;  %v4272_v38 = vld [vmem:[%s5697_s1 + $0x244] ss:$8 sps:$4 sm:$0xff]  }
  0x71   :  { %2919 = vmatprep.subr.bf16.mxu0 %v4227_v39  ;;  %v4275_v39 = vld [vmem:[%s5697_s1 + $0x644] ss:$8 sps:$4 sm:$0xff]  }
  0x72   :  { %2423 = vmatmul.mubr.bf16.gmra.mrb[24].mxu1 %v3478_v44  ;;  %v3424_v44 = vcombine.low %v51_v28, %v59_v29  ;;  %v111_v25 = vld [vmem:[%s5698_s0 + $0x308] sm:$0xff] }
  0x73   :  { %2875 = vmatmul.mubr.bf16.gmra.mrb[24].mxu0 %v3486_v45  ;;  %2468 = vmatpush1.bf16.msra.mxu1 %v4222_v40  ;;  %v4270_v40 = vld [vmem:[%s5697_s1 + $0x240] ss:$8 sps:$4 sm:$0xff]  }
  0x74   :  { %2920 = vmatpush1.bf16.msra.mxu0 %v4225_v41  ;;  %2469 = vmatprep.subr.bf16.mxu1 %v4230_v48  ;;  %v4273_v41 = vld [vmem:[%s5697_s1 + $0x640] ss:$8 sps:$4 sm:$0xff]   ;;  %v4278_v48 = vld [vmem:[%s5697_s1 + $0x254] ss:$8 sps:$4 sm:$0xff]  }
  0x75   :  { %2921 = vmatprep.subr.bf16.mxu0 %v4233_v49  ;;  %2432 = vmatprep.mubr.bf16.mxu1 %v3495_v50  ;;  %v71_v45 = vld [vmem:[%s5698_s0 + $0x1c8] sm:$0xff]  ;;  %v4281_v49 = vld [vmem:[%s5697_s1 + $0x654] ss:$8 sps:$4 sm:$0xff]  }
  0x76   :  { %2884 = vmatprep.mubr.bf16.mxu0 %v3503_v51  ;;  %v3433_v50 = vcombine.high %v63_v42, %v71_v45  ;;  %v3441_v51 = vcombine.high %v67_v46, %v75_v47  ;;  %v115_v29 = vld [vmem:[%s5698_s0 + $0x328] sm:$0xff] }
  0x77   :  { %2470 = vmatpush1.bf16.msra.mxu1 %v4228_v52  ;;  %v4276_v52 = vld [vmem:[%s5697_s1 + $0x250] ss:$8 sps:$4 sm:$0xff]  }
  0x78   :  { %2922 = vmatpush1.bf16.msra.mxu0 %v4231_v53  ;;  %2471 = vmatprep.subr.bf16.mxu1 %v4236_v54  ;;  %v4279_v53 = vld [vmem:[%s5697_s1 + $0x650] ss:$8 sps:$4 sm:$0xff]   ;;  %v4284_v54 = vld [vmem:[%s5697_s1 + $0x264] ss:$8 sps:$4 sm:$0xff]  }
  0x79   :  { %2923 = vmatprep.subr.bf16.mxu0 %v4239_v55  ;;  %v4287_v55 = vld [vmem:[%s5697_s1 + $0x664] ss:$8 sps:$4 sm:$0xff]  }
  0x7a   :  { %2433 = vmatmul.mubr.bf16.gmra.mrb[28].mxu1 %v3494_v60  ;;  %v3432_v60 = vcombine.low %v63_v42, %v71_v45  ;;  %v139_v45 = vld [vmem:[%s5698_s0 + $0x3e8] sm:$0xff] }
  0x7b   :  { %2885 = vmatmul.mubr.bf16.gmra.mrb[28].mxu0 %v3502_v61  ;;  %2472 = vmatpush1.bf16.msra.mxu1 %v4234_v56  ;;  %v4282_v56 = vld [vmem:[%s5697_s1 + $0x260] ss:$8 sps:$4 sm:$0xff]   ;;  %v3440_v61 = vcombine.low %v67_v46, %v75_v47 }
  0x7c   :  { %2924 = vmatpush1.bf16.msra.mxu0 %v4237_v57  ;;  %2473 = vmatprep.subr.bf16.mxu1 %v4242_v0  ;;  %v4285_v57 = vld [vmem:[%s5697_s1 + $0x660] ss:$8 sps:$4 sm:$0xff]   ;;  %v4290_v0 = vld [vmem:[%s5697_s1 + $0x274] ss:$8 sps:$4 sm:$0xff]  }
  0x7d   :  { %2925 = vmatprep.subr.bf16.mxu0 %v4245_v1  ;;  %2475 = vmatprep.mubr.bf16.mxu1 %v3385_v2  ;;  %v4293_v1 = vld [vmem:[%s5697_s1 + $0x674] ss:$8 sps:$4 sm:$0xff]   ;;  %v3449_v2 = vcombine.high %v79_v58, %v87_v59  ;;  %v4318_v46 = vld [vmem:[%s5697_s1 + $0x2c0] ss:$8 sps:$4 sm:$0xff]  }
  0x7e   :  { %2927 = vmatprep.mubr.bf16.mxu0 %v3393_v3  ;;  %v3457_v3 = vcombine.high %v83_v62, %v91_v63  ;;  %v4321_v47 = vld [vmem:[%s5697_s1 + $0x6c0] ss:$8 sps:$4 sm:$0xff]   ;;  %v20_v62 = vld [vmem:[%s5698_s0 + $0x30] sm:$0xff] }
  0x7f   :  { %2474 = vmatpush1.bf16.msra.mxu1 %v4240_v4  ;;  %v4288_v4 = vld [vmem:[%s5697_s1 + $0x270] ss:$8 sps:$4 sm:$0xff]  }
  0x80   :  { %2926 = vmatpush1.bf16.msra.mxu0 %v4243_v5  ;;  %2556 = vmatprep.subr.bf16.mxu1 %v4248_v6  ;;  %v4291_v5 = vld [vmem:[%s5697_s1 + $0x670] ss:$8 sps:$4 sm:$0xff]   ;;  %v4296_v6 = vld [vmem:[%s5697_s1 + $0x284] ss:$8 sps:$4 sm:$0xff]  }
  0x81   :  { %3008 = vmatprep.subr.bf16.mxu0 %v4251_v7  ;;  %v4299_v7 = vld [vmem:[%s5697_s1 + $0x684] ss:$8 sps:$4 sm:$0xff]   ;;  %v28_v63 = vld [vmem:[%s5698_s0 + $0x70] sm:$0xff] }
  0x82   :  { %2476 = vmatmul.mubr.bf16.vlgmr.msra.gmra.mrb[0].mxu1 %v3384_v11  ;;  %v103_v11 = vld [vmem:[%s5698_s0 + $0x2c8] sm:$0xff] }
  0x83   :  { %2928 = vmatmul.mubr.bf16.vlgmr.msra.gmra.mrb[0].mxu0 %v3392_v12  ;;  %2557 = vmatpush1.bf16.msra.mxu1 %v4246_v8  ;;  %v4294_v8 = vld [vmem:[%s5697_s1 + $0x280] ss:$8 sps:$4 sm:$0xff]   ;;  %v3448_v12 = vcombine.low %v79_v58, %v87_v59  ;;  %v16_v58 = vld [vmem:[%s5698_s0 + $0x10] sm:$0xff] }
  0x84   :  { %3009 = vmatpush1.bf16.msra.mxu0 %v4249_v15  ;;  %2558 = vmatprep.subr.bf16.mxu1 %v4254_v16  ;;  %v107_v15 = vld [vmem:[%s5698_s0 + $0x2e8] sm:$0xff]  ;;  %v4302_v16 = vld [vmem:[%s5697_s1 + $0x294] ss:$8 sps:$4 sm:$0xff]  }
  0x85   :  { %3010 = vmatprep.subr.bf16.mxu0 %v4257_v17  ;;  %2485 = vmatprep.mubr.bf16.mxu1 %v3401_v18  ;;  %v4305_v17 = vld [vmem:[%s5697_s1 + $0x694] ss:$8 sps:$4 sm:$0xff]   ;;  %v3465_v18 = vcombine.high %v95_v10, %v103_v11  ;;  %v3472_v28 = vcombine.low %v99_v14, %v107_v15 }
  0x86   :  { %2937 = vmatprep.mubr.bf16.mxu0 %v3409_v19  ;;  %v3473_v19 = vcombine.high %v99_v14, %v107_v15  ;;  %v36_v14 = vld [vmem:[%s5698_s0 + $0xb0] sm:$0xff] }
  0x87   :  { %2559 = vmatpush1.bf16.msra.mxu1 %v4252_v20  ;;  %v4300_v20 = vld [vmem:[%s5697_s1 + $0x290] ss:$8 sps:$4 sm:$0xff]  }
  0x88   :  { %3011 = vmatpush1.bf16.msra.mxu0 %v4255_v21  ;;  %2560 = vmatprep.subr.bf16.mxu1 %v4260_v22  ;;  %v4303_v21 = vld [vmem:[%s5697_s1 + $0x690] ss:$8 sps:$4 sm:$0xff]   ;;  %v4308_v22 = vld [vmem:[%s5697_s1 + $0x2a4] ss:$8 sps:$4 sm:$0xff]  }
  0x89   :  { %3012 = vmatprep.subr.bf16.mxu0 %v4263_v23  ;;  %v4311_v23 = vld [vmem:[%s5697_s1 + $0x6a4] ss:$8 sps:$4 sm:$0xff]   ;;  %v44_v15 = vld [vmem:[%s5698_s0 + $0xf0] sm:$0xff] }
  0x8a   :  { %2486 = vmatmul.mubr.bf16.gmra.mrb[4].mxu1 %v3400_v26  ;;  %v119_v26 = vld [vmem:[%s5698_s0 + $0x348] sm:$0xff] }
  0x8b   :  { %2938 = vmatmul.mubr.bf16.gmra.mrb[4].mxu0 %v3408_v27  ;;  %2561 = vmatpush1.bf16.msra.mxu1 %v4258_v30  ;;  %v3464_v27 = vcombine.low %v95_v10, %v103_v11  ;;  %v123_v30 = vld [vmem:[%s5698_s0 + $0x368] sm:$0xff]  ;;  %v3480_v42 = vcombine.low %v111_v25, %v119_v26  ;;  %v32_v10 = vld [vmem:[%s5698_s0 + $0x90] sm:$0xff] }
  0x8c   :  { %3013 = vmatpush1.bf16.msra.mxu0 %v4261_v31  ;;  %2562 = vmatprep.subr.bf16.mxu1 %v4266_v32  ;;  %v4309_v31 = vld [vmem:[%s5697_s1 + $0x6a0] ss:$8 sps:$4 sm:$0xff]   ;;  %v4314_v32 = vld [vmem:[%s5697_s1 + $0x2b4] ss:$8 sps:$4 sm:$0xff]  }
  0x8d   :  { %3014 = vmatprep.subr.bf16.mxu0 %v4269_v33  ;;  %2495 = vmatprep.mubr.bf16.mxu1 %v3417_v34  ;;  %v4317_v33 = vld [vmem:[%s5697_s1 + $0x6b4] ss:$8 sps:$4 sm:$0xff]   ;;  %v3481_v34 = vcombine.high %v111_v25, %v119_v26  ;;  %v4357_v25 = vld [vmem:[%s5697_s1 + $0x720] ss:$8 sps:$4 sm:$0xff]  }
  0x8e   :  { %2947 = vmatprep.mubr.bf16.mxu0 %v3425_v35  ;;  %v3489_v35 = vcombine.high %v115_v29, %v123_v30  ;;  %v40_v11 = vld [vmem:[%s5698_s0 + $0xd0] sm:$0xff] }
  0x8f   :  { %2563 = vmatpush1.bf16.msra.mxu1 %v4264_v36  ;;  %v4312_v36 = vld [vmem:[%s5697_s1 + $0x2b0] ss:$8 sps:$4 sm:$0xff]  }
  0x90   :  { %3015 = vmatpush1.bf16.msra.mxu0 %v4267_v37  ;;  %2564 = vmatprep.subr.bf16.mxu1 %v4272_v38  ;;  %v4315_v37 = vld [vmem:[%s5697_s1 + $0x6b0] ss:$8 sps:$4 sm:$0xff]   ;;  %v4320_v38 = vld [vmem:[%s5697_s1 + $0x2c4] ss:$8 sps:$4 sm:$0xff]  }
  0x91   :  { %3016 = vmatprep.subr.bf16.mxu0 %v4275_v39  ;;  %v4323_v39 = vld [vmem:[%s5697_s1 + $0x6c4] ss:$8 sps:$4 sm:$0xff]   ;;  %v48_v26 = vld [vmem:[%s5698_s0 + $0x110] sm:$0xff] }
  0x92   :  { %2496 = vmatmul.mubr.bf16.gmra.mrb[8].mxu1 %v3416_v43  ;;  %v3488_v43 = vcombine.low %v115_v29, %v123_v30  ;;  %v3410_v29 = vcombine.low %v36_v14, %v44_v15  ;;  %v52_v30 = vld [vmem:[%s5698_s0 + $0x130] sm:$0xff] }
  0x93   :  { %2948 = vmatmul.mubr.bf16.gmra.mrb[8].mxu0 %v3424_v44  ;;  %2565 = vmatpush1.bf16.msra.mxu1 %v4270_v40  ;;  %v127_v40 = vld [vmem:[%s5698_s0 + $0x388] sm:$0xff] }
  0x94   :  { %3017 = vmatpush1.bf16.msra.mxu0 %v4273_v41  ;;  %2566 = vmatprep.subr.bf16.mxu1 %v4278_v48  ;;  %v135_v41 = vld [vmem:[%s5698_s0 + $0x3c8] sm:$0xff]  ;;  %v4326_v48 = vld [vmem:[%s5697_s1 + $0x2d4] ss:$8 sps:$4 sm:$0xff]  }
  0x95   :  { %3018 = vmatprep.subr.bf16.mxu0 %v4281_v49  ;;  %2505 = vmatprep.mubr.bf16.mxu1 %v3433_v50  ;;  %v131_v44 = vld [vmem:[%s5698_s0 + $0x3a8] sm:$0xff]  ;;  %v4329_v49 = vld [vmem:[%s5697_s1 + $0x6d4] ss:$8 sps:$4 sm:$0xff]   ;;  %v3497_v50 = vcombine.high %v127_v40, %v135_v41  ;;  %v3496_v59 = vcombine.low %v127_v40, %v135_v41 }
  0x96   :  { %2957 = vmatprep.mubr.bf16.mxu0 %v3441_v51  ;;  %v3505_v51 = vcombine.high %v131_v44, %v139_v45  ;;  %v64_v40 = vld [vmem:[%s5698_s0 + $0x190] sm:$0xff] }
  0x97   :  { %2567 = vmatpush1.bf16.msra.mxu1 %v4276_v52  ;;  %v4324_v52 = vld [vmem:[%s5697_s1 + $0x2d0] ss:$8 sps:$4 sm:$0xff]  }
  0x98   :  { %3019 = vmatpush1.bf16.msra.mxu0 %v4279_v53  ;;  %2568 = vmatprep.subr.bf16.mxu1 %v4284_v54  ;;  %v4327_v53 = vld [vmem:[%s5697_s1 + $0x6d0] ss:$8 sps:$4 sm:$0xff]   ;;  %v4332_v54 = vld [vmem:[%s5697_s1 + $0x2e4] ss:$8 sps:$4 sm:$0xff]  }
  0x99   :  { %3020 = vmatprep.subr.bf16.mxu0 %v4287_v55  ;;  %v4335_v55 = vld [vmem:[%s5697_s1 + $0x6e4] ss:$8 sps:$4 sm:$0xff]  }
  0x9a   :  { %2506 = vmatmul.mubr.bf16.gmra.mrb[12].mxu1 %v3432_v60  ;;  %v3504_v60 = vcombine.low %v131_v44, %v139_v45  ;;  %v68_v44 = vld [vmem:[%s5698_s0 + $0x1b0] sm:$0xff] }
  0x9b   :  { %2958 = vmatmul.mubr.bf16.gmra.mrb[12].mxu0 %v3440_v61  ;;  %2569 = vmatpush1.bf16.msra.mxu1 %v4282_v56  ;;  %v4330_v56 = vld [vmem:[%s5697_s1 + $0x2e0] ss:$8 sps:$4 sm:$0xff]   ;;  %v24_v61 = vld [vmem:[%s5698_s0 + $0x50] sm:$0xff] }
  0x9c   :  { %3021 = vmatpush1.bf16.msra.mxu0 %v4285_v57  ;;  %2570 = vmatprep.subr.bf16.mxu1 %v4290_v0  ;;  %v4333_v57 = vld [vmem:[%s5697_s1 + $0x6e0] ss:$8 sps:$4 sm:$0xff]   ;;  %v4338_v0 = vld [vmem:[%s5697_s1 + $0x2f4] ss:$8 sps:$4 sm:$0xff]  }
  0x9d   :  { %3022 = vmatprep.subr.bf16.mxu0 %v4293_v1  ;;  %2515 = vmatprep.mubr.bf16.mxu1 %v3449_v2  ;;  %v4341_v1 = vld [vmem:[%s5697_s1 + $0x6f4] ss:$8 sps:$4 sm:$0xff]   ;;  %v3387_v2 = vcombine.high %v16_v58, %v24_v61 }
  0x9e   :  { %2967 = vmatprep.mubr.bf16.mxu0 %v3457_v3  ;;  %v3395_v3 = vcombine.high %v20_v62, %v28_v63  ;;  %v76_v45 = vld [vmem:[%s5698_s0 + $0x1f0] sm:$0xff] }
  0x9f   :  { %2571 = vmatpush1.bf16.msra.mxu1 %v4288_v4  ;;  %v4336_v4 = vld [vmem:[%s5697_s1 + $0x2f0] ss:$8 sps:$4 sm:$0xff]  }
  0xa0   :  { %3023 = vmatpush1.bf16.msra.mxu0 %v4291_v5  ;;  %2572 = vmatprep.subr.bf16.mxu1 %v4296_v6  ;;  %v4339_v5 = vld [vmem:[%s5697_s1 + $0x6f0] ss:$8 sps:$4 sm:$0xff]   ;;  %v4344_v6 = vld [vmem:[%s5697_s1 + $0x304] ss:$8 sps:$4 sm:$0xff]  }
  0xa1   :  { %3024 = vmatprep.subr.bf16.mxu0 %v4299_v7  ;;  %v4347_v7 = vld [vmem:[%s5697_s1 + $0x704] ss:$8 sps:$4 sm:$0xff]  }
  0xa2   :  { %2516 = vmatmul.mubr.bf16.gmra.mrb[16].mxu1 %v3448_v12  ;;  %v3386_v12 = vcombine.low %v16_v58, %v24_v61  ;;  %v3442_v58 = vcombine.low %v68_v44, %v76_v45  ;;  %v92_v61 = vld [vmem:[%s5698_s0 + $0x270] sm:$0xff] }
  0xa3   :  { %2968 = vmatmul.mubr.bf16.gmra.mrb[16].mxu0 %v3456_v13  ;;  %2573 = vmatpush1.bf16.msra.mxu1 %v4294_v8  ;;  %v4342_v8 = vld [vmem:[%s5697_s1 + $0x300] ss:$8 sps:$4 sm:$0xff]   ;;  %v3394_v13 = vcombine.low %v20_v62, %v28_v63 }
  0xa4   :  { %3025 = vmatpush1.bf16.msra.mxu0 %v4297_v9  ;;  %2574 = vmatprep.subr.bf16.mxu1 %v4302_v16  ;;  %v4345_v9 = vld [vmem:[%s5697_s1 + $0x700] ss:$8 sps:$4 sm:$0xff]   ;;  %v4350_v16 = vld [vmem:[%s5697_s1 + $0x314] ss:$8 sps:$4 sm:$0xff]  }
  0xa5   :  { %3026 = vmatprep.subr.bf16.mxu0 %v4305_v17  ;;  %2525 = vmatprep.mubr.bf16.mxu1 %v3465_v18  ;;  %v4353_v17 = vld [vmem:[%s5697_s1 + $0x714] ss:$8 sps:$4 sm:$0xff]   ;;  %v3403_v18 = vcombine.high %v32_v10, %v40_v11  ;;  %v4378_v62 = vld [vmem:[%s5697_s1 + $0x360] ss:$8 sps:$4 sm:$0xff]  }
  0xa6   :  { %2977 = vmatprep.mubr.bf16.mxu0 %v3473_v19  ;;  %v3411_v19 = vcombine.high %v36_v14, %v44_v15  ;;  %v4381_v63 = vld [vmem:[%s5697_s1 + $0x760] ss:$8 sps:$4 sm:$0xff]  }
  0xa7   :  { %2575 = vmatpush1.bf16.msra.mxu1 %v4300_v20  ;;  %v4348_v20 = vld [vmem:[%s5697_s1 + $0x310] ss:$8 sps:$4 sm:$0xff]   ;;  %v4390_v14 = vld [vmem:[%s5697_s1 + $0x380] ss:$8 sps:$4 sm:$0xff]  }
  0xa8   :  { %3027 = vmatpush1.bf16.msra.mxu0 %v4303_v21  ;;  %2576 = vmatprep.subr.bf16.mxu1 %v4308_v22  ;;  %v4351_v21 = vld [vmem:[%s5697_s1 + $0x710] ss:$8 sps:$4 sm:$0xff]   ;;  %v4356_v22 = vld [vmem:[%s5697_s1 + $0x324] ss:$8 sps:$4 sm:$0xff]   ;;  %v4393_v15 = vld [vmem:[%s5697_s1 + $0x780] ss:$8 sps:$4 sm:$0xff]  }
  0xa9   :  { %3028 = vmatprep.subr.bf16.mxu0 %v4311_v23  ;;  %v4359_v23 = vld [vmem:[%s5697_s1 + $0x724] ss:$8 sps:$4 sm:$0xff]  }
  0xaa   :  { %2526 = vmatmul.mubr.bf16.gmra.mrb[20].mxu1 %v3464_v27  ;;  %v56_v27 = vld [vmem:[%s5698_s0 + $0x150] sm:$0xff] }
  0xab   :  { %2978 = vmatmul.mubr.bf16.gmra.mrb[20].mxu0 %v3472_v28  ;;  %2577 = vmatpush1.bf16.msra.mxu1 %v4306_v24  ;;  %v4354_v24 = vld [vmem:[%s5697_s1 + $0x320] ss:$8 sps:$4 sm:$0xff]   ;;  %v3402_v28 = vcombine.low %v32_v10, %v40_v11  ;;  %v3418_v41 = vcombine.low %v48_v26, %v56_v27  ;;  %v104_v11 = vld [vmem:[%s5698_s0 + $0x2d0] sm:$0xff] }
  0xac   :  { %3029 = vmatpush1.bf16.msra.mxu0 %v4309_v31  ;;  %2578 = vmatprep.subr.bf16.mxu1 %v4314_v32  ;;  %v60_v31 = vld [vmem:[%s5698_s0 + $0x170] sm:$0xff] }
  0xad   :  { %3030 = vmatprep.subr.bf16.mxu0 %v4317_v33  ;;  %2535 = vmatprep.mubr.bf16.mxu1 %v3481_v34  ;;  %v4362_v32 = vld [vmem:[%s5697_s1 + $0x334] ss:$8 sps:$4 sm:$0xff]   ;;  %v3419_v34 = vcombine.high %v48_v26, %v56_v27 }
  0xae   :  { %2987 = vmatprep.mubr.bf16.mxu0 %v3489_v35  ;;  %v4365_v33 = vld [vmem:[%s5697_s1 + $0x734] ss:$8 sps:$4 sm:$0xff]   ;;  %v3427_v35 = vcombine.high %v52_v30, %v60_v31 }
  0xaf   :  { %2579 = vmatpush1.bf16.msra.mxu1 %v4312_v36  ;;  %v4360_v36 = vld [vmem:[%s5697_s1 + $0x330] ss:$8 sps:$4 sm:$0xff]  }
  0xb0   :  { %3031 = vmatpush1.bf16.msra.mxu0 %v4315_v37  ;;  %2580 = vmatprep.subr.bf16.mxu1 %v4320_v38  ;;  %v4363_v37 = vld [vmem:[%s5697_s1 + $0x730] ss:$8 sps:$4 sm:$0xff]   ;;  %v4368_v38 = vld [vmem:[%s5697_s1 + $0x344] ss:$8 sps:$4 sm:$0xff]  }
  0xb1   :  { %3032 = vmatprep.subr.bf16.mxu0 %v4323_v39  ;;  %v4371_v39 = vld [vmem:[%s5697_s1 + $0x744] ss:$8 sps:$4 sm:$0xff]   ;;  %v120_v27 = vld [vmem:[%s5698_s0 + $0x350] sm:$0xff] }
  0xb2   :  { %2536 = vmatmul.mubr.bf16.gmra.mrb[24].mxu1 %v3480_v42  ;;  %v3426_v42 = vcombine.low %v52_v30, %v60_v31  ;;  %v4402_v30 = vld [vmem:[%s5697_s1 + $0x3a0] ss:$8 sps:$4 sm:$0xff]  }
  0xb3   :  { %2988 = vmatmul.mubr.bf16.gmra.mrb[24].mxu0 %v3488_v43  ;;  %2581 = vmatpush1.bf16.msra.mxu1 %v4318_v46  ;;  %v72_v43 = vld [vmem:[%s5698_s0 + $0x1d0] sm:$0xff]  ;;  %v4366_v46 = vld [vmem:[%s5697_s1 + $0x340] ss:$8 sps:$4 sm:$0xff]  }
  0xb4   :  { %3033 = vmatpush1.bf16.msra.mxu0 %v4321_v47  ;;  %2582 = vmatprep.subr.bf16.mxu1 %v4326_v48  ;;  %v4369_v47 = vld [vmem:[%s5697_s1 + $0x740] ss:$8 sps:$4 sm:$0xff]   ;;  %v4374_v48 = vld [vmem:[%s5697_s1 + $0x354] ss:$8 sps:$4 sm:$0xff]  }
  0xb5   :  { %3034 = vmatprep.subr.bf16.mxu0 %v4329_v49  ;;  %2545 = vmatprep.mubr.bf16.mxu1 %v3497_v50  ;;  %v4377_v49 = vld [vmem:[%s5697_s1 + $0x754] ss:$8 sps:$4 sm:$0xff]   ;;  %v3435_v50 = vcombine.high %v64_v40, %v72_v43  ;;  %v4405_v31 = vld [vmem:[%s5697_s1 + $0x7a0] ss:$8 sps:$4 sm:$0xff]  }
  0xb6   :  { %2997 = vmatprep.mubr.bf16.mxu0 %v3505_v51  ;;  %v3443_v51 = vcombine.high %v68_v44, %v76_v45  ;;  %v132_v44 = vld [vmem:[%s5698_s0 + $0x3b0] sm:$0xff] }
  0xb7   :  { %2583 = vmatpush1.bf16.msra.mxu1 %v4324_v52  ;;  %v4372_v52 = vld [vmem:[%s5697_s1 + $0x350] ss:$8 sps:$4 sm:$0xff]  }
  0xb8   :  { %3035 = vmatpush1.bf16.msra.mxu0 %v4327_v53  ;;  %2584 = vmatprep.subr.bf16.mxu1 %v4332_v54  ;;  %v4375_v53 = vld [vmem:[%s5697_s1 + $0x750] ss:$8 sps:$4 sm:$0xff]   ;;  %v4380_v54 = vld [vmem:[%s5697_s1 + $0x364] ss:$8 sps:$4 sm:$0xff]  }
  0xb9   :  { %3036 = vmatprep.subr.bf16.mxu0 %v4335_v55  ;;  %v4383_v55 = vld [vmem:[%s5697_s1 + $0x764] ss:$8 sps:$4 sm:$0xff]   ;;  %v140_v45 = vld [vmem:[%s5698_s0 + $0x3f0] sm:$0xff] }
  0xba   :  { %2546 = vmatmul.mubr.bf16.gmra.mrb[28].mxu1 %v3496_v59  ;;  %v88_v59 = vld [vmem:[%s5698_s0 + $0x250] sm:$0xff] }
  0xbb   :  { %2998 = vmatmul.mubr.bf16.gmra.mrb[28].mxu0 %v3504_v60  ;;  %2585 = vmatpush1.bf16.msra.mxu1 %v4330_v56  ;;  %v80_v56 = vld [vmem:[%s5698_s0 + $0x210] sm:$0xff] }
  0xbc   :  { %3037 = vmatpush1.bf16.msra.mxu0 %v4333_v57  ;;  %2586 = vmatprep.subr.bf16.mxu1 %v4338_v0  ;;  %v3434_v57 = vcombine.low %v64_v40, %v72_v43  ;;  %v84_v60 = vld [vmem:[%s5698_s0 + $0x230] sm:$0xff] }
  0xbd   :  { %3038 = vmatprep.subr.bf16.mxu0 %v4341_v1  ;;  %2588 = vmatprep.mubr.bf16.mxu1 %v3387_v2  ;;  %v4386_v0 = vld [vmem:[%s5697_s1 + $0x374] ss:$8 sps:$4 sm:$0xff]   ;;  %v3451_v2 = vcombine.high %v80_v56, %v88_v59  ;;  %v3458_v10 = vcombine.low %v84_v60, %v92_v61 }
  0xbe   :  { %3040 = vmatprep.mubr.bf16.mxu0 %v3395_v3  ;;  %v4389_v1 = vld [vmem:[%s5697_s1 + $0x774] ss:$8 sps:$4 sm:$0xff]   ;;  %v3459_v3 = vcombine.high %v84_v60, %v92_v61 }
  0xbf   :  { %2587 = vmatpush1.bf16.msra.mxu1 %v4336_v4  ;;  %v4384_v4 = vld [vmem:[%s5697_s1 + $0x370] ss:$8 sps:$4 sm:$0xff]  }
  0xc0   :  { %3039 = vmatpush1.bf16.msra.mxu0 %v4339_v5  ;;  %2669 = vmatprep.subr.bf16.mxu1 %v4344_v6  ;;  %v4387_v5 = vld [vmem:[%s5697_s1 + $0x770] ss:$8 sps:$4 sm:$0xff]   ;;  %v4392_v6 = vld [vmem:[%s5697_s1 + $0x384] ss:$8 sps:$4 sm:$0xff]  }
  0xc1   :  { %3121 = vmatprep.subr.bf16.mxu0 %v4347_v7  ;;  %v4395_v7 = vld [vmem:[%s5697_s1 + $0x784] ss:$8 sps:$4 sm:$0xff]   ;;  %v128_v40 = vld [vmem:[%s5698_s0 + $0x390] sm:$0xff]  ;;  %v21_v60 = vld [vmem:[%s5698_s0 + $0x38] sm:$0xff] }
  0xc2   :  { %2589 = vmatmul.mubr.bf16.vlgmr.msra.gmra.mrb[0].mxu1 %v3386_v12  ;;  %v100_v12 = vld [vmem:[%s5698_s0 + $0x2b0] sm:$0xff]  ;;  %v29_v61 = vld [vmem:[%s5698_s0 + $0x78] sm:$0xff] }
  0xc3   :  { %3041 = vmatmul.mubr.bf16.vlgmr.msra.gmra.mrb[0].mxu0 %v3394_v13  ;;  %2670 = vmatpush1.bf16.msra.mxu1 %v4342_v8  ;;  %v96_v8 = vld [vmem:[%s5698_s0 + $0x290] sm:$0xff] }
  0xc4   :  { %3122 = vmatpush1.bf16.msra.mxu0 %v4345_v9  ;;  %2671 = vmatprep.subr.bf16.mxu1 %v4350_v16  ;;  %v3450_v9 = vcombine.low %v80_v56, %v88_v59  ;;  %v108_v13 = vld [vmem:[%s5698_s0 + $0x2f0] sm:$0xff]  ;;  %v17_v56 = vld [vmem:[%s5698_s0 + $0x18] sm:$0xff] }
  0xc5   :  { %3123 = vmatprep.subr.bf16.mxu0 %v4353_v17  ;;  %2598 = vmatprep.mubr.bf16.mxu1 %v3403_v18  ;;  %v4398_v16 = vld [vmem:[%s5697_s1 + $0x394] ss:$8 sps:$4 sm:$0xff]   ;;  %v3467_v18 = vcombine.high %v96_v8, %v104_v11  ;;  %v3474_v26 = vcombine.low %v100_v12, %v108_v13 }
  0xc6   :  { %3050 = vmatprep.mubr.bf16.mxu0 %v3411_v19  ;;  %v4401_v17 = vld [vmem:[%s5697_s1 + $0x794] ss:$8 sps:$4 sm:$0xff]   ;;  %v3475_v19 = vcombine.high %v100_v12, %v108_v13 }
  0xc7   :  { %2672 = vmatpush1.bf16.msra.mxu1 %v4348_v20  ;;  %v4396_v20 = vld [vmem:[%s5697_s1 + $0x390] ss:$8 sps:$4 sm:$0xff]  }
  0xc8   :  { %3124 = vmatpush1.bf16.msra.mxu0 %v4351_v21  ;;  %2673 = vmatprep.subr.bf16.mxu1 %v4356_v22  ;;  %v4399_v21 = vld [vmem:[%s5697_s1 + $0x790] ss:$8 sps:$4 sm:$0xff]   ;;  %v4404_v22 = vld [vmem:[%s5697_s1 + $0x3a4] ss:$8 sps:$4 sm:$0xff]  }
  0xc9   :  { %3125 = vmatprep.subr.bf16.mxu0 %v4359_v23  ;;  %v4407_v23 = vld [vmem:[%s5697_s1 + $0x7a4] ss:$8 sps:$4 sm:$0xff]   ;;  %v136_v43 = vld [vmem:[%s5698_s0 + $0x3d0] sm:$0xff]  ;;  %v25_v59 = vld [vmem:[%s5698_s0 + $0x58] sm:$0xff] }
  0xca   :  { %2599 = vmatmul.mubr.bf16.gmra.mrb[4].mxu1 %v3402_v28  ;;  %v116_v28 = vld [vmem:[%s5698_s0 + $0x330] sm:$0xff] }
  0xcb   :  { %3051 = vmatmul.mubr.bf16.gmra.mrb[4].mxu0 %v3410_v29  ;;  %2674 = vmatpush1.bf16.msra.mxu1 %v4354_v24  ;;  %v112_v24 = vld [vmem:[%s5698_s0 + $0x310] sm:$0xff] }
  0xcc   :  { %3126 = vmatpush1.bf16.msra.mxu0 %v4357_v25  ;;  %2675 = vmatprep.subr.bf16.mxu1 %v4362_v32  ;;  %v3466_v25 = vcombine.low %v96_v8, %v104_v11  ;;  %v124_v29 = vld [vmem:[%s5698_s0 + $0x370] sm:$0xff]  ;;  %v37_v8 = vld [vmem:[%s5698_s0 + $0xb8] sm:$0xff]  ;;  %v3396_v11 = vcombine.low %v21_v60, %v29_v61 }
  0xcd   :  { %3127 = vmatprep.subr.bf16.mxu0 %v4365_v33  ;;  %2608 = vmatprep.mubr.bf16.mxu1 %v3419_v34  ;;  %v4410_v32 = vld [vmem:[%s5697_s1 + $0x3b4] ss:$8 sps:$4 sm:$0xff]   ;;  %v3483_v34 = vcombine.high %v112_v24, %v120_v27 }
  0xce   :  { %3060 = vmatprep.mubr.bf16.mxu0 %v3427_v35  ;;  %v4413_v33 = vld [vmem:[%s5697_s1 + $0x7b4] ss:$8 sps:$4 sm:$0xff]   ;;  %v3491_v35 = vcombine.high %v116_v28, %v124_v29 }
  0xcf   :  { %2676 = vmatpush1.bf16.msra.mxu1 %v4360_v36  ;;  %v4408_v36 = vld [vmem:[%s5697_s1 + $0x3b0] ss:$8 sps:$4 sm:$0xff]  }
  0xd0   :  { %3128 = vmatpush1.bf16.msra.mxu0 %v4363_v37  ;;  %2677 = vmatprep.subr.bf16.mxu1 %v4368_v38  ;;  %v4411_v37 = vld [vmem:[%s5697_s1 + $0x7b0] ss:$8 sps:$4 sm:$0xff]   ;;  %v4416_v38 = vld [vmem:[%s5697_s1 + $0x3c4] ss:$8 sps:$4 sm:$0xff]  }
  0xd1   :  { %3129 = vmatprep.subr.bf16.mxu0 %v4371_v39  ;;  %v4419_v39 = vld [vmem:[%s5697_s1 + $0x7c4] ss:$8 sps:$4 sm:$0xff]  }
  0xd2   :  { %2609 = vmatmul.mubr.bf16.gmra.mrb[8].mxu1 %v3418_v41  ;;  %v3482_v41 = vcombine.low %v112_v24, %v120_v27  ;;  %v69_v24 = vld [vmem:[%s5698_s0 + $0x1b8] sm:$0xff] }
  0xd3   :  { %3061 = vmatmul.mubr.bf16.gmra.mrb[8].mxu0 %v3426_v42  ;;  %2678 = vmatpush1.bf16.msra.mxu1 %v4366_v46  ;;  %v3490_v42 = vcombine.low %v116_v28, %v124_v29  ;;  %v4414_v46 = vld [vmem:[%s5697_s1 + $0x3c0] ss:$8 sps:$4 sm:$0xff]  }
  0xd4   :  { %3130 = vmatpush1.bf16.msra.mxu0 %v4369_v47  ;;  %2679 = vmatprep.subr.bf16.mxu1 %v4374_v48  ;;  %v4417_v47 = vld [vmem:[%s5697_s1 + $0x7c0] ss:$8 sps:$4 sm:$0xff]   ;;  %v4422_v48 = vld [vmem:[%s5697_s1 + $0x3d4] ss:$8 sps:$4 sm:$0xff]  }
  0xd5   :  { %3131 = vmatprep.subr.bf16.mxu0 %v4377_v49  ;;  %2618 = vmatprep.mubr.bf16.mxu1 %v3435_v50  ;;  %v4425_v49 = vld [vmem:[%s5697_s1 + $0x7d4] ss:$8 sps:$4 sm:$0xff]   ;;  %v3499_v50 = vcombine.high %v128_v40, %v136_v43 }
  0xd6   :  { %3070 = vmatprep.mubr.bf16.mxu0 %v3443_v51  ;;  %v3507_v51 = vcombine.high %v132_v44, %v140_v45 }
  0xd7   :  { %2680 = vmatpush1.bf16.msra.mxu1 %v4372_v52  ;;  %v4420_v52 = vld [vmem:[%s5697_s1 + $0x3d0] ss:$8 sps:$4 sm:$0xff]  }
  0xd8   :  { %3132 = vmatpush1.bf16.msra.mxu0 %v4375_v53  ;;  %2681 = vmatprep.subr.bf16.mxu1 %v4380_v54  ;;  %v4423_v53 = vld [vmem:[%s5697_s1 + $0x7d0] ss:$8 sps:$4 sm:$0xff]   ;;  %v4428_v54 = vld [vmem:[%s5697_s1 + $0x3e4] ss:$8 sps:$4 sm:$0xff]  }
  0xd9   :  { %3133 = vmatprep.subr.bf16.mxu0 %v4383_v55  ;;  %v4431_v55 = vld [vmem:[%s5697_s1 + $0x7e4] ss:$8 sps:$4 sm:$0xff]  }
  0xda   :  { %2619 = vmatmul.mubr.bf16.gmra.mrb[12].mxu1 %v3434_v57  ;;  %v3498_v57 = vcombine.low %v128_v40, %v136_v43  ;;  %v101_v40 = vld [vmem:[%s5698_s0 + $0x2b8] sm:$0xff] }
  0xdb   :  { %3071 = vmatmul.mubr.bf16.gmra.mrb[12].mxu0 %v3442_v58  ;;  %2682 = vmatpush1.bf16.msra.mxu1 %v4378_v62  ;;  %v3506_v58 = vcombine.low %v132_v44, %v140_v45  ;;  %v4426_v62 = vld [vmem:[%s5697_s1 + $0x3e0] ss:$8 sps:$4 sm:$0xff]  }
  0xdc   :  { %3134 = vmatpush1.bf16.msra.mxu0 %v4381_v63  ;;  %2683 = vmatprep.subr.bf16.mxu1 %v4386_v0  ;;  %v4429_v63 = vld [vmem:[%s5697_s1 + $0x7e0] ss:$8 sps:$4 sm:$0xff]   ;;  %v4434_v0 = vld [vmem:[%s5697_s1 + $0x3f4] ss:$8 sps:$4 sm:$0xff]  }
  0xdd   :  { %3135 = vmatprep.subr.bf16.mxu0 %v4389_v1  ;;  %2628 = vmatprep.mubr.bf16.mxu1 %v3451_v2  ;;  %v4437_v1 = vld [vmem:[%s5697_s1 + $0x7f4] ss:$8 sps:$4 sm:$0xff]   ;;  %v3389_v2 = vcombine.high %v17_v56, %v25_v59 }
  0xde   :  { %3080 = vmatprep.mubr.bf16.mxu0 %v3459_v3  ;;  %v3397_v3 = vcombine.high %v21_v60, %v29_v61 }
  0xdf   :  { %2684 = vmatpush1.bf16.msra.mxu1 %v4384_v4  ;;  %v4432_v4 = vld [vmem:[%s5697_s1 + $0x3f0] ss:$8 sps:$4 sm:$0xff]  }
  0xe0   :  { %3136 = vmatpush1.bf16.msra.mxu0 %v4387_v5  ;;  %2685 = vmatprep.subr.bf16.mxu1 %v4392_v6  ;;  %v4435_v5 = vld [vmem:[%s5697_s1 + $0x7f0] ss:$8 sps:$4 sm:$0xff]  }
  0xe1   :  { %3137 = vmatprep.subr.bf16.mxu0 %v4395_v7  ;;  %v33_v6 = vld [vmem:[%s5698_s0 + $0x98] sm:$0xff] }
  0xe2   :  { %2629 = vmatmul.mubr.bf16.gmra.mrb[16].mxu1 %v3450_v9  ;;  %v41_v7 = vld [vmem:[%s5698_s0 + $0xd8] sm:$0xff] }
  0xe3   :  { %3081 = vmatmul.mubr.bf16.gmra.mrb[16].mxu0 %v3458_v10  ;;  %2686 = vmatpush1.bf16.msra.mxu1 %v4390_v14  ;;  %v45_v9 = vld [vmem:[%s5698_s0 + $0xf8] sm:$0xff]  ;;  %v3388_v10 = vcombine.low %v17_v56, %v25_v59  ;;  %v3405_v12 = vcombine.high %v33_v6, %v41_v7 }
  0xe4   :  { %3138 = vmatpush1.bf16.msra.mxu0 %v4393_v15  ;;  %2687 = vmatprep.subr.bf16.mxu1 %v4398_v16  ;;  %v3413_v13 = vcombine.high %v37_v8, %v45_v9  ;;  %v49_v14 = vld [vmem:[%s5698_s0 + $0x118] sm:$0xff] }
  0xe5   :  { %3139 = vmatprep.subr.bf16.mxu0 %v4401_v17  ;;  %2638 = vmatprep.mubr.bf16.mxu1 %v3467_v18  ;;  %v57_v15 = vld [vmem:[%s5698_s0 + $0x158] sm:$0xff]  ;;  %v3404_v18 = vcombine.low %v33_v6, %v41_v7 }
  0xe6   :  { %3090 = vmatprep.mubr.bf16.mxu0 %v3475_v19  ;;  %v53_v16 = vld [vmem:[%s5698_s0 + $0x138] sm:$0xff]  ;;  %v3412_v19 = vcombine.low %v37_v8, %v45_v9 }
  0xe7   :  { %2688 = vmatpush1.bf16.msra.mxu1 %v4396_v20  ;;  %v61_v17 = vld [vmem:[%s5698_s0 + $0x178] sm:$0xff]  ;;  %v3421_v20 = vcombine.high %v49_v14, %v57_v15 }
  0xe8   :  { %3140 = vmatpush1.bf16.msra.mxu0 %v4399_v21  ;;  %2689 = vmatprep.subr.bf16.mxu1 %v4404_v22  ;;  %v3429_v21 = vcombine.high %v53_v16, %v61_v17  ;;  %v65_v22 = vld [vmem:[%s5698_s0 + $0x198] sm:$0xff]  ;;  %v3428_v27 = vcombine.low %v53_v16, %v61_v17 }
  0xe9   :  { %3141 = vmatprep.subr.bf16.mxu0 %v4407_v23  ;;  %v73_v23 = vld [vmem:[%s5698_s0 + $0x1d8] sm:$0xff] }
  0xea   :  { %2639 = vmatmul.mubr.bf16.gmra.mrb[20].mxu1 %v3466_v25  ;;  %v77_v25 = vld [vmem:[%s5698_s0 + $0x1f8] sm:$0xff]  ;;  %v3437_v28 = vcombine.high %v65_v22, %v73_v23 }
  0xeb   :  { %3091 = vmatmul.mubr.bf16.gmra.mrb[20].mxu0 %v3474_v26  ;;  %2690 = vmatpush1.bf16.msra.mxu1 %v4402_v30  ;;  %v3420_v26 = vcombine.low %v49_v14, %v57_v15  ;;  %v3445_v29 = vcombine.high %v69_v24, %v77_v25  ;;  %v81_v30 = vld [vmem:[%s5698_s0 + $0x218] sm:$0xff] }
  0xec   :  { %3142 = vmatpush1.bf16.msra.mxu0 %v4405_v31  ;;  %2691 = vmatprep.subr.bf16.mxu1 %v4410_v32  ;;  %v89_v31 = vld [vmem:[%s5698_s0 + $0x258] sm:$0xff] }
  0xed   :  { %3143 = vmatprep.subr.bf16.mxu0 %v4413_v33  ;;  %2648 = vmatprep.mubr.bf16.mxu1 %v3483_v34  ;;  %v85_v32 = vld [vmem:[%s5698_s0 + $0x238] sm:$0xff]  ;;  %v3436_v34 = vcombine.low %v65_v22, %v73_v23 }
  0xee   :  { %3100 = vmatprep.mubr.bf16.mxu0 %v3491_v35  ;;  %v93_v33 = vld [vmem:[%s5698_s0 + $0x278] sm:$0xff]  ;;  %v3444_v35 = vcombine.low %v69_v24, %v77_v25 }
  0xef   :  { %2692 = vmatpush1.bf16.msra.mxu1 %v4408_v36  ;;  %v3453_v36 = vcombine.high %v81_v30, %v89_v31  ;;  %v3460_v43 = vcombine.low %v85_v32, %v93_v33  ;;  %v133_v56 = vld [vmem:[%s5698_s0 + $0x3b8] sm:$0xff] }
  0xf0   :  { %3144 = vmatpush1.bf16.msra.mxu0 %v4411_v37  ;;  %2693 = vmatprep.subr.bf16.mxu1 %v4416_v38  ;;  %v3461_v37 = vcombine.high %v85_v32, %v93_v33  ;;  %v97_v38 = vld [vmem:[%s5698_s0 + $0x298] sm:$0xff] }
  0xf1   :  { %3145 = vmatprep.subr.bf16.mxu0 %v4419_v39  ;;  %v105_v39 = vld [vmem:[%s5698_s0 + $0x2d8] sm:$0xff] }
  0xf2   :  { %2649 = vmatmul.mubr.bf16.gmra.mrb[24].mxu1 %v3482_v41  ;;  %v109_v41 = vld [vmem:[%s5698_s0 + $0x2f8] sm:$0xff]  ;;  %v3469_v44 = vcombine.high %v97_v38, %v105_v39 }
  0xf3   :  { %3101 = vmatmul.mubr.bf16.gmra.mrb[24].mxu0 %v3490_v42  ;;  %2694 = vmatpush1.bf16.msra.mxu1 %v4414_v46  ;;  %v3452_v42 = vcombine.low %v81_v30, %v89_v31  ;;  %v3477_v45 = vcombine.high %v101_v40, %v109_v41  ;;  %v113_v46 = vld [vmem:[%s5698_s0 + $0x318] sm:$0xff] }
  0xf4   :  { %3146 = vmatpush1.bf16.msra.mxu0 %v4417_v47  ;;  %2695 = vmatprep.subr.bf16.mxu1 %v4422_v48  ;;  %v121_v47 = vld [vmem:[%s5698_s0 + $0x358] sm:$0xff] }
  0xf5   :  { %3147 = vmatprep.subr.bf16.mxu0 %v4425_v49  ;;  %2658 = vmatprep.mubr.bf16.mxu1 %v3499_v50  ;;  %v117_v48 = vld [vmem:[%s5698_s0 + $0x338] sm:$0xff]  ;;  %v3468_v50 = vcombine.low %v97_v38, %v105_v39 }
  0xf6   :  { %3110 = vmatprep.mubr.bf16.mxu0 %v3507_v51  ;;  %v125_v49 = vld [vmem:[%s5698_s0 + $0x378] sm:$0xff]  ;;  %v3476_v51 = vcombine.low %v101_v40, %v109_v41 }
  0xf7   :  { %2696 = vmatpush1.bf16.msra.mxu1 %v4420_v52  ;;  %v3485_v52 = vcombine.high %v113_v46, %v121_v47  ;;  %v3492_v59 = vcombine.low %v117_v48, %v125_v49 }
  0xf8   :  { %3148 = vmatpush1.bf16.msra.mxu0 %v4423_v53  ;;  %2697 = vmatprep.subr.bf16.mxu1 %v4428_v54  ;;  %v3493_v53 = vcombine.high %v117_v48, %v125_v49  ;;  %v129_v54 = vld [vmem:[%s5698_s0 + $0x398] sm:$0xff] }
  0xf9   :  { %3149 = vmatprep.subr.bf16.mxu0 %v4431_v55  ;;  %v137_v55 = vld [vmem:[%s5698_s0 + $0x3d8] sm:$0xff] }
  0xfa   :  { %2659 = vmatmul.mubr.bf16.gmra.mrb[28].mxu1 %v3498_v57  ;;  %v141_v57 = vld [vmem:[%s5698_s0 + $0x3f8] sm:$0xff]  ;;  %v3501_v60 = vcombine.high %v129_v54, %v137_v55 }
  0xfb   :  { %3111 = vmatmul.mubr.bf16.gmra.mrb[28].mxu0 %v3506_v58  ;;  %2698 = vmatpush1.bf16.msra.mxu1 %v4426_v62  ;;  %v3484_v58 = vcombine.low %v113_v46, %v121_v47  ;;  %v3509_v61 = vcombine.high %v133_v56, %v141_v57  ;;  %v3500_v62 = vcombine.low %v129_v54, %v137_v55 }
  0xfc   :  { %3150 = vmatpush1.bf16.msra.mxu0 %v4429_v63  ;;  %2699 = vmatprep.subr.bf16.mxu1 %v4434_v0  ;;  %v3508_v63 = vcombine.low %v133_v56, %v141_v57  ;;  %v400_v0 = vlaneseq }
  0xfd   :  { %3151 = vmatprep.subr.bf16.mxu0 %v4437_v1  ;;  %2701 = vmatprep.mubr.bf16.mxu1 %v3389_v2 }
  0xfe   :  { %3153 = vmatprep.mubr.bf16.mxu0 %v3397_v3  ;;  %v401_v1 = vshrl.u32 %v400_v0, 7  ;;  %v398_v3 = vld [vmem:[%s5699_s2] sm:$0x3] }
  0xff   :  { %2700 = vmatpush1.bf16.msra.mxu1 %v4432_v4 }
 0x100   :  { %3152 = vmatpush1.bf16.msra.mxu0 %v4435_v5  ;;  %v402_v2 = vsub.s32 0, %v401_v1  ;;  %v406_v4 = vsub.s32 1, %v401_v1 }
 0x102   :  { %2702 = vmatmul.mubr.bf16.vlgmr.msra.gmra.mrb[0].mxu1 %v3388_v10  ;;  %v5613_v5 = vrot.slane %v398_v3, %v402_v2  ;;  %v5615_v6 = vrot.slane %v398_v3, %v406_v4 }
 0x103   :  { %3154 = vmatmul.mubr.bf16.vlgmr.msra.gmra.mrb[0].mxu0 %v3396_v11  ;;  %2711 = vmatprep.mubr.bf16.mxu1 %v3405_v12 }
 0x104   :  { %3163 = vmatprep.mubr.bf16.mxu0 %v3413_v13 }
 0x10a   :  { %2712 = vmatmul.mubr.bf16.gmra.mrb[4].mxu1 %v3404_v18 }
 0x10b   :  { %3164 = vmatmul.mubr.bf16.gmra.mrb[4].mxu0 %v3412_v19  ;;  %2721 = vmatprep.mubr.bf16.mxu1 %v3421_v20 }
 0x10c   :  { %3173 = vmatprep.mubr.bf16.mxu0 %v3429_v21 }
 0x112   :  { %2722 = vmatmul.mubr.bf16.gmra.mrb[8].mxu1 %v3420_v26 }
 0x113   :  { %3174 = vmatmul.mubr.bf16.gmra.mrb[8].mxu0 %v3428_v27  ;;  %2731 = vmatprep.mubr.bf16.mxu1 %v3437_v28 }
 0x114   :  { %3183 = vmatprep.mubr.bf16.mxu0 %v3445_v29 }
 0x11a   :  { %2732 = vmatmul.mubr.bf16.gmra.mrb[12].mxu1 %v3436_v34 }
 0x11b   :  { %3184 = vmatmul.mubr.bf16.gmra.mrb[12].mxu0 %v3444_v35  ;;  %2741 = vmatprep.mubr.bf16.mxu1 %v3453_v36 }
 0x11c   :  { %3193 = vmatprep.mubr.bf16.mxu0 %v3461_v37 }
 0x122   :  { %2742 = vmatmul.mubr.bf16.gmra.mrb[16].mxu1 %v3452_v42 }
 0x123   :  { %3194 = vmatmul.mubr.bf16.gmra.mrb[16].mxu0 %v3460_v43  ;;  %2751 = vmatprep.mubr.bf16.mxu1 %v3469_v44 }
 0x124   :  { %3203 = vmatprep.mubr.bf16.mxu0 %v3477_v45 }
 0x12a   :  { %2752 = vmatmul.mubr.bf16.gmra.mrb[20].mxu1 %v3468_v50 }
 0x12b   :  { %3204 = vmatmul.mubr.bf16.gmra.mrb[20].mxu0 %v3476_v51  ;;  %2761 = vmatprep.mubr.bf16.mxu1 %v3485_v52 }
 0x12c   :  { %3213 = vmatprep.mubr.bf16.mxu0 %v3493_v53 }
 0x132   :  { %2762 = vmatmul.mubr.bf16.gmra.mrb[24].mxu1 %v3484_v58 }
 0x133   :  { %3214 = vmatmul.mubr.bf16.gmra.mrb[24].mxu0 %v3492_v59  ;;  %2771 = vmatprep.mubr.bf16.mxu1 %v3501_v60 }
 0x134   :  { %3223 = vmatprep.mubr.bf16.mxu0 %v3509_v61 }
 0x13a   :  { %2772 = vmatmul.mubr.bf16.gmra.mrb[28].mxu1 %v3500_v62 }
 0x13b   :  { %3224 = vmatmul.mubr.bf16.gmra.mrb[28].mxu0 %v3508_v63 }
 0x1d5   :  { %v2703_v7 = vpop.f32.mrb[0].mxu1 }
 0x1d6   :  { %v3155_v8 = vpop.f32.mrb[0].mxu0  ;;  %v3798_v9 = vadd.f32 %v2703_v7, %v5613_v5  ;;  %v2705_v10 = vpop.f32.mrb[1].mxu1 }
 0x1d7   :  { %v3157_v11 = vpop.f32.mrb[1].mxu0  ;;  %v3800_v12 = vadd.f32 %v2705_v10, %v5615_v6  ;;  %v2707_v13 = vpop.f32.mrb[2].mxu1 }
 0x1d8   :  { %v3159_v14 = vpop.f32.mrb[2].mxu0  ;;  %v3799_v15 = vadd.f32 %v3798_v9, %v3155_v8  ;;  %v3802_v16 = vadd.f32 %v2707_v13, %v5613_v5  ;;  %v2709_v17 = vpop.f32.mrb[3].mxu1 }
 0x1d9   :  { %v3161_v18 = vpop.f32.mrb[3].mxu0  ;;  %v3801_v19 = vadd.f32 %v3800_v12, %v3157_v11  ;;  %v3804_v20 = vadd.f32 %v2709_v17, %v5615_v6 }
 0x1da   :  { %v3234_v21 = vmax.f32 %v3799_v15, 0.0  ;;  %v3803_v22 = vadd.f32 %v3802_v16, %v3159_v14 }
 0x1db   :  { %v3235_v23 = vmax.f32 %v3801_v19, 0.0  ;;  %v3805_v24 = vadd.f32 %v3804_v20, %v3161_v18 }
 0x1dc   :  { %v3236_v25 = vmax.f32 %v3803_v22, 0.0 }
 0x1dd   :  { %v3782_v26 = vpack.c.bf16 %v3235_v23, %v3234_v21  ;;  %v3237_v27 = vmax.f32 %v3805_v24, 0.0  ;;  %v2713_v28 = vpop.f32.mrb[4].mxu1 }
 0x1de   :  { %v3165_v29 = vpop.f32.mrb[4].mxu0  ;;  %v3806_v30 = vadd.f32 %v2713_v28, %v5613_v5  ;;  %v2715_v31 = vpop.f32.mrb[5].mxu1 }
 0x1df   :  { %v3167_v32 = vpop.f32.mrb[5].mxu0  ;;  %3362 = vst [vmem:[%s5700_s3] sm:$0xff] %v3782_v26  ;;  %v3783_v33 = vpack.c.bf16 %v3237_v27, %v3236_v25  ;;  %v3808_v34 = vadd.f32 %v2715_v31, %v5615_v6  ;;  %v2717_v35 = vpop.f32.mrb[6].mxu1 }
 0x1e0   :  { %v3169_v36 = vpop.f32.mrb[6].mxu0  ;;  %v3807_v37 = vadd.f32 %v3806_v30, %v3165_v29  ;;  %v3810_v38 = vadd.f32 %v2717_v35, %v5613_v5  ;;  %v2719_v39 = vpop.f32.mrb[7].mxu1 }
 0x1e1   :  { %v3171_v40 = vpop.f32.mrb[7].mxu0  ;;  %3363 = vst [vmem:[%s5700_s3 + $0x8] sm:$0xff] %v3783_v33  ;;  %v3809_v41 = vadd.f32 %v3808_v34, %v3167_v32  ;;  %v3812_v42 = vadd.f32 %v2719_v39, %v5615_v6 }
 0x1e2   :  { %v3238_v43 = vmax.f32 %v3807_v37, 0.0  ;;  %v3811_v44 = vadd.f32 %v3810_v38, %v3169_v36 }
 0x1e3   :  { %v3239_v45 = vmax.f32 %v3809_v41, 0.0  ;;  %v3813_v46 = vadd.f32 %v3812_v42, %v3171_v40 }
 0x1e4   :  { %v3240_v47 = vmax.f32 %v3811_v44, 0.0 }
 0x1e5   :  { %v3784_v48 = vpack.c.bf16 %v3239_v45, %v3238_v43  ;;  %v3241_v49 = vmax.f32 %v3813_v46, 0.0  ;;  %v2723_v50 = vpop.f32.mrb[8].mxu1 }
 0x1e6   :  { %v3175_v51 = vpop.f32.mrb[8].mxu0  ;;  %v3814_v52 = vadd.f32 %v2723_v50, %v5613_v5  ;;  %v2725_v53 = vpop.f32.mrb[9].mxu1 }
 0x1e7   :  { %v3177_v54 = vpop.f32.mrb[9].mxu0  ;;  %3364 = vst [vmem:[%s5700_s3 + $0x10] sm:$0xff] %v3784_v48  ;;  %v3785_v55 = vpack.c.bf16 %v3241_v49, %v3240_v47  ;;  %v3816_v56 = vadd.f32 %v2725_v53, %v5615_v6  ;;  %v2727_v57 = vpop.f32.mrb[10].mxu1 }
 0x1e8   :  { %v3179_v58 = vpop.f32.mrb[10].mxu0  ;;  %v3815_v59 = vadd.f32 %v3814_v52, %v3175_v51  ;;  %v3818_v60 = vadd.f32 %v2727_v57, %v5613_v5  ;;  %v2729_v61 = vpop.f32.mrb[11].mxu1 }
 0x1e9   :  { %v3181_v62 = vpop.f32.mrb[11].mxu0  ;;  %3365 = vst [vmem:[%s5700_s3 + $0x18] sm:$0xff] %v3785_v55  ;;  %v3817_v63 = vadd.f32 %v3816_v56, %v3177_v54  ;;  %v3820_v0 = vadd.f32 %v2729_v61, %v5615_v6 }
 0x1ea   :  { %v3242_v1 = vmax.f32 %v3815_v59, 0.0  ;;  %v3819_v2 = vadd.f32 %v3818_v60, %v3179_v58 }
 0x1eb   :  { %v3243_v3 = vmax.f32 %v3817_v63, 0.0  ;;  %v3821_v4 = vadd.f32 %v3820_v0, %v3181_v62 }
 0x1ec   :  { %v3244_v7 = vmax.f32 %v3819_v2, 0.0 }
 0x1ed   :  { %v3786_v8 = vpack.c.bf16 %v3243_v3, %v3242_v1  ;;  %v3245_v9 = vmax.f32 %v3821_v4, 0.0  ;;  %v2733_v10 = vpop.f32.mrb[12].mxu1 }
 0x1ee   :  { %v3185_v11 = vpop.f32.mrb[12].mxu0  ;;  %v3822_v12 = vadd.f32 %v2733_v10, %v5613_v5  ;;  %v2735_v13 = vpop.f32.mrb[13].mxu1 }
 0x1ef   :  { %v3187_v14 = vpop.f32.mrb[13].mxu0  ;;  %3366 = vst [vmem:[%s5700_s3 + $0x20] sm:$0xff] %v3786_v8  ;;  %v3787_v15 = vpack.c.bf16 %v3245_v9, %v3244_v7  ;;  %v3824_v16 = vadd.f32 %v2735_v13, %v5615_v6  ;;  %v2737_v17 = vpop.f32.mrb[14].mxu1 }
 0x1f0   :  { %v3189_v18 = vpop.f32.mrb[14].mxu0  ;;  %v3823_v19 = vadd.f32 %v3822_v12, %v3185_v11  ;;  %v3826_v20 = vadd.f32 %v2737_v17, %v5613_v5  ;;  %v2739_v21 = vpop.f32.mrb[15].mxu1 }
 0x1f1   :  { %v3191_v22 = vpop.f32.mrb[15].mxu0  ;;  %3367 = vst [vmem:[%s5700_s3 + $0x28] sm:$0xff] %v3787_v15  ;;  %v3825_v23 = vadd.f32 %v3824_v16, %v3187_v14  ;;  %v3828_v24 = vadd.f32 %v2739_v21, %v5615_v6 }
 0x1f2   :  { %v3246_v25 = vmax.f32 %v3823_v19, 0.0  ;;  %v3827_v26 = vadd.f32 %v3826_v20, %v3189_v18 }
 0x1f3   :  { %v3247_v27 = vmax.f32 %v3825_v23, 0.0  ;;  %v3829_v28 = vadd.f32 %v3828_v24, %v3191_v22 }
 0x1f4   :  { %v3248_v29 = vmax.f32 %v3827_v26, 0.0 }
 0x1f5   :  { %v3788_v30 = vpack.c.bf16 %v3247_v27, %v3246_v25  ;;  %v3249_v31 = vmax.f32 %v3829_v28, 0.0  ;;  %v2743_v32 = vpop.f32.mrb[16].mxu1 }
 0x1f6   :  { %v3195_v33 = vpop.f32.mrb[16].mxu0  ;;  %v3830_v34 = vadd.f32 %v2743_v32, %v5613_v5  ;;  %v2745_v35 = vpop.f32.mrb[17].mxu1 }
 0x1f7   :  { %v3197_v36 = vpop.f32.mrb[17].mxu0  ;;  %3368 = vst [vmem:[%s5700_s3 + $0x30] sm:$0xff] %v3788_v30  ;;  %v3789_v37 = vpack.c.bf16 %v3249_v31, %v3248_v29  ;;  %v3832_v38 = vadd.f32 %v2745_v35, %v5615_v6  ;;  %v2747_v39 = vpop.f32.mrb[18].mxu1 }
 0x1f8   :  { %v3199_v40 = vpop.f32.mrb[18].mxu0  ;;  %v3831_v41 = vadd.f32 %v3830_v34, %v3195_v33  ;;  %v3834_v42 = vadd.f32 %v2747_v39, %v5613_v5  ;;  %v2749_v43 = vpop.f32.mrb[19].mxu1 }
 0x1f9   :  { %v3201_v44 = vpop.f32.mrb[19].mxu0  ;;  %3369 = vst [vmem:[%s5700_s3 + $0x38] sm:$0xff] %v3789_v37  ;;  %v3833_v45 = vadd.f32 %v3832_v38, %v3197_v36  ;;  %v3836_v46 = vadd.f32 %v2749_v43, %v5615_v6 }
 0x1fa   :  { %v3250_v47 = vmax.f32 %v3831_v41, 0.0  ;;  %v3835_v48 = vadd.f32 %v3834_v42, %v3199_v40 }
 0x1fb   :  { %v3251_v49 = vmax.f32 %v3833_v45, 0.0  ;;  %v3837_v50 = vadd.f32 %v3836_v46, %v3201_v44 }
 0x1fc   :  { %v3252_v51 = vmax.f32 %v3835_v48, 0.0 }
 0x1fd   :  { %v3790_v52 = vpack.c.bf16 %v3251_v49, %v3250_v47  ;;  %v3253_v53 = vmax.f32 %v3837_v50, 0.0  ;;  %v2753_v54 = vpop.f32.mrb[20].mxu1 }
 0x1fe   :  { %v3205_v55 = vpop.f32.mrb[20].mxu0  ;;  %v3838_v56 = vadd.f32 %v2753_v54, %v5613_v5  ;;  %v2755_v57 = vpop.f32.mrb[21].mxu1 }
 0x1ff   :  { %v3207_v58 = vpop.f32.mrb[21].mxu0  ;;  %3370 = vst [vmem:[%s5700_s3 + $0x40] sm:$0xff] %v3790_v52  ;;  %v3791_v59 = vpack.c.bf16 %v3253_v53, %v3252_v51  ;;  %v3840_v60 = vadd.f32 %v2755_v57, %v5615_v6  ;;  %v2757_v61 = vpop.f32.mrb[22].mxu1 }
 0x200   :  { %v3209_v62 = vpop.f32.mrb[22].mxu0  ;;  %v3839_v63 = vadd.f32 %v3838_v56, %v3205_v55  ;;  %v3842_v0 = vadd.f32 %v2757_v61, %v5613_v5  ;;  %v2759_v1 = vpop.f32.mrb[23].mxu1 }
 0x201   :  { %v3211_v2 = vpop.f32.mrb[23].mxu0  ;;  %3371 = vst [vmem:[%s5700_s3 + $0x48] sm:$0xff] %v3791_v59  ;;  %v3841_v3 = vadd.f32 %v3840_v60, %v3207_v58  ;;  %v3844_v4 = vadd.f32 %v2759_v1, %v5615_v6 }
 0x202   :  { %v3254_v7 = vmax.f32 %v3839_v63, 0.0  ;;  %v3843_v8 = vadd.f32 %v3842_v0, %v3209_v62 }
 0x203   :  { %v3255_v9 = vmax.f32 %v3841_v3, 0.0  ;;  %v3845_v10 = vadd.f32 %v3844_v4, %v3211_v2 }
 0x204   :  { %v3256_v11 = vmax.f32 %v3843_v8, 0.0 }
 0x205   :  { %v3792_v12 = vpack.c.bf16 %v3255_v9, %v3254_v7  ;;  %v3257_v13 = vmax.f32 %v3845_v10, 0.0  ;;  %v2763_v14 = vpop.f32.mrb[24].mxu1 }
 0x206   :  { %v3215_v15 = vpop.f32.mrb[24].mxu0  ;;  %v3846_v16 = vadd.f32 %v2763_v14, %v5613_v5  ;;  %v2765_v17 = vpop.f32.mrb[25].mxu1 }
 0x207   :  { %v3217_v18 = vpop.f32.mrb[25].mxu0  ;;  %3372 = vst [vmem:[%s5700_s3 + $0x50] sm:$0xff] %v3792_v12  ;;  %v3793_v19 = vpack.c.bf16 %v3257_v13, %v3256_v11  ;;  %v3848_v20 = vadd.f32 %v2765_v17, %v5615_v6  ;;  %v2767_v21 = vpop.f32.mrb[26].mxu1 }
 0x208   :  { %v3219_v22 = vpop.f32.mrb[26].mxu0  ;;  %v3847_v23 = vadd.f32 %v3846_v16, %v3215_v15  ;;  %v3850_v24 = vadd.f32 %v2767_v21, %v5613_v5  ;;  %v2769_v25 = vpop.f32.mrb[27].mxu1 }
 0x209   :  { %v3221_v26 = vpop.f32.mrb[27].mxu0  ;;  %3373 = vst [vmem:[%s5700_s3 + $0x58] sm:$0xff] %v3793_v19  ;;  %v3849_v27 = vadd.f32 %v3848_v20, %v3217_v18  ;;  %v3852_v28 = vadd.f32 %v2769_v25, %v5615_v6 }
 0x20a   :  { %v3258_v29 = vmax.f32 %v3847_v23, 0.0  ;;  %v3851_v30 = vadd.f32 %v3850_v24, %v3219_v22 }
 0x20b   :  { %v3259_v31 = vmax.f32 %v3849_v27, 0.0  ;;  %v3853_v32 = vadd.f32 %v3852_v28, %v3221_v26 }
 0x20c   :  { %v3260_v33 = vmax.f32 %v3851_v30, 0.0 }
 0x20d   :  { %v3794_v34 = vpack.c.bf16 %v3259_v31, %v3258_v29  ;;  %v3261_v35 = vmax.f32 %v3853_v32, 0.0  ;;  %v2773_v36 = vpop.f32.mrb[28].mxu1 }
 0x20e   :  { %v3225_v37 = vpop.f32.mrb[28].mxu0  ;;  %v3854_v38 = vadd.f32 %v2773_v36, %v5613_v5  ;;  %v2775_v39 = vpop.f32.mrb[29].mxu1 }
 0x20f   :  { %v3227_v40 = vpop.f32.mrb[29].mxu0  ;;  %3374 = vst [vmem:[%s5700_s3 + $0x60] sm:$0xff] %v3794_v34  ;;  %v3795_v41 = vpack.c.bf16 %v3261_v35, %v3260_v33  ;;  %v3856_v42 = vadd.f32 %v2775_v39, %v5615_v6  ;;  %v2777_v43 = vpop.f32.mrb[30].mxu1 }
 0x210   :  { %v3229_v44 = vpop.f32.mrb[30].mxu0  ;;  %v3855_v45 = vadd.f32 %v3854_v38, %v3225_v37  ;;  %v3858_v46 = vadd.f32 %v2777_v43, %v5613_v5  ;;  %v2779_v47 = vpop.f32.mrb[31].mxu1 }
 0x211   :  { %v3231_v48 = vpop.f32.mrb[31].mxu0  ;;  %3375 = vst [vmem:[%s5700_s3 + $0x68] sm:$0xff] %v3795_v41  ;;  %v3857_v49 = vadd.f32 %v3856_v42, %v3227_v40  ;;  %v3860_v50 = vadd.f32 %v2779_v47, %v5615_v6 }
 0x212   :  { %v3262_v51 = vmax.f32 %v3855_v45, 0.0  ;;  %v3859_v52 = vadd.f32 %v3858_v46, %v3229_v44 }
 0x213   :  { %v3263_v53 = vmax.f32 %v3857_v49, 0.0  ;;  %v3861_v54 = vadd.f32 %v3860_v50, %v3231_v48 }
 0x214   :  { %v3264_v55 = vmax.f32 %v3859_v52, 0.0 }
 0x215   :  { %v3796_v56 = vpack.c.bf16 %v3263_v53, %v3262_v51  ;;  %v3265_v57 = vmax.f32 %v3861_v54, 0.0 }
 0x217   :  { %3376 = vst [vmem:[%s5700_s3 + $0x70] sm:$0xff] %v3796_v56  ;;  %v3797_v5 = vpack.c.bf16 %v3265_v57, %v3264_v55 }
 0x219   :  { %3377 = vst [vmem:[%s5700_s3 + $0x78] sm:$0xff] %v3797_v5 }

// kernel: encoder_lsun_forward.8
= control target key start
LH: loop header
LB: loop body
LE: loop exit
PB: predicated region body
PF: predicated region fallthrough
CT: control target
= control target key end

     0   :  { %s14663_s1 = inlined_call_operand.vmem [shape: bf16[4096,512], index: 1, kind: input, shape index: {}]   ;;  %s14664_s0 = inlined_call_operand.vmem [shape: bf16[32,4096], index: 0, kind: input, shape index: {}]   ;;  %s14665_s2 = inlined_call_operand.vmem [shape: f32[1,512], index: 2, kind: input, shape index: {}]   ;;  %s14666_s3 = inlined_call_operand.vmem [shape: bf16[32,512], index: 3, kind: output, shape index: {}]  }
   0x1   :  { %v9696_v0 = vld [vmem:[%s14663_s1 + $0x4] ss:$16 sps:$4 sm:$0xff]   ;;  %v9698_v1 = vld [vmem:[%s14663_s1 + $0xc] ss:$16 sps:$4 sm:$0xff]   ;;  %v9700_v2 = vld [vmem:[%s14663_s1] ss:$16 sps:$4 sm:$0xff]  }
   0x2   :  { %6564 = vmatprep.subr.bf16.mxu0 %v9696_v0  ;;  %v9701_v3 = vld [vmem:[%s14663_s1 + $0x8] ss:$16 sps:$4 sm:$0xff]   ;;  %7412 = vmatprep.subr.bf16.mxu1 %v9698_v1  ;;  %v9702_v4 = vld [vmem:[%s14663_s1 + $0x24] ss:$16 sps:$4 sm:$0xff]   ;;  %v9704_v5 = vld [vmem:[%s14663_s1 + $0x2c] ss:$16 sps:$4 sm:$0xff]  }
   0x3   :  { %6565 = vmatpush1.bf16.msra.mxu0 %v9700_v2  ;;  %7413 = vmatpush1.bf16.msra.mxu1 %v9701_v3  ;;  %v9706_v6 = vld [vmem:[%s14663_s1 + $0x20] ss:$16 sps:$4 sm:$0xff]   ;;  %v9707_v7 = vld [vmem:[%s14663_s1 + $0x28] ss:$16 sps:$4 sm:$0xff]   ;;  %v9708_v8 = vld [vmem:[%s14663_s1 + $0x44] ss:$16 sps:$4 sm:$0xff]  }
   0x4   :  { %6566 = vmatprep.subr.bf16.mxu0 %v9702_v4  ;;  %7414 = vmatprep.subr.bf16.mxu1 %v9704_v5  ;;  %v9710_v9 = vld [vmem:[%s14663_s1 + $0x4c] ss:$16 sps:$4 sm:$0xff]   ;;  %v9712_v10 = vld [vmem:[%s14663_s1 + $0x40] ss:$16 sps:$4 sm:$0xff]   ;;  %v9713_v11 = vld [vmem:[%s14663_s1 + $0x48] ss:$16 sps:$4 sm:$0xff]  }
   0x5   :  { %v9714_v12 = vld [vmem:[%s14663_s1 + $0x64] ss:$16 sps:$4 sm:$0xff]   ;;  %v9716_v13 = vld [vmem:[%s14663_s1 + $0x6c] ss:$16 sps:$4 sm:$0xff]   ;;  %v9718_v14 = vld [vmem:[%s14663_s1 + $0x60] ss:$16 sps:$4 sm:$0xff]  }
   0x6   :  { %v9719_v15 = vld [vmem:[%s14663_s1 + $0x68] ss:$16 sps:$4 sm:$0xff]   ;;  %v9720_v16 = vld [vmem:[%s14663_s1 + $0x84] ss:$16 sps:$4 sm:$0xff]   ;;  %v9722_v17 = vld [vmem:[%s14663_s1 + $0x8c] ss:$16 sps:$4 sm:$0xff]  }
   0x7   :  { %6567 = vmatpush1.bf16.msra.mxu0 %v9706_v6  ;;  %7415 = vmatpush1.bf16.msra.mxu1 %v9707_v7  ;;  %v9724_v18 = vld [vmem:[%s14663_s1 + $0x80] ss:$16 sps:$4 sm:$0xff]   ;;  %v9725_v19 = vld [vmem:[%s14663_s1 + $0x88] ss:$16 sps:$4 sm:$0xff]   ;;  %v9726_v20 = vld [vmem:[%s14663_s1 + $0xa4] ss:$16 sps:$4 sm:$0xff]  }
   0x8   :  { %6568 = vmatprep.subr.bf16.mxu0 %v9708_v8  ;;  %7416 = vmatprep.subr.bf16.mxu1 %v9710_v9  ;;  %v9728_v21 = vld [vmem:[%s14663_s1 + $0xac] ss:$16 sps:$4 sm:$0xff]   ;;  %v9730_v22 = vld [vmem:[%s14663_s1 + $0xa0] ss:$16 sps:$4 sm:$0xff]   ;;  %v9731_v23 = vld [vmem:[%s14663_s1 + $0xa8] ss:$16 sps:$4 sm:$0xff]  }
   0x9   :  { %v9732_v24 = vld [vmem:[%s14663_s1 + $0xc4] ss:$16 sps:$4 sm:$0xff]   ;;  %v9734_v25 = vld [vmem:[%s14663_s1 + $0xcc] ss:$16 sps:$4 sm:$0xff]   ;;  %v9736_v26 = vld [vmem:[%s14663_s1 + $0xc0] ss:$16 sps:$4 sm:$0xff]  }
   0xa   :  { %v9737_v27 = vld [vmem:[%s14663_s1 + $0xc8] ss:$16 sps:$4 sm:$0xff]   ;;  %v9738_v28 = vld [vmem:[%s14663_s1 + $0xe4] ss:$16 sps:$4 sm:$0xff]   ;;  %v9740_v29 = vld [vmem:[%s14663_s1 + $0xec] ss:$16 sps:$4 sm:$0xff]  }
   0xb   :  { %6569 = vmatpush1.bf16.msra.mxu0 %v9712_v10  ;;  %7417 = vmatpush1.bf16.msra.mxu1 %v9713_v11  ;;  %v9742_v30 = vld [vmem:[%s14663_s1 + $0xe0] ss:$16 sps:$4 sm:$0xff]   ;;  %v9743_v31 = vld [vmem:[%s14663_s1 + $0xe8] ss:$16 sps:$4 sm:$0xff]   ;;  %v9744_v32 = vld [vmem:[%s14663_s1 + $0x104] ss:$16 sps:$4 sm:$0xff]  }
   0xc   :  { %6570 = vmatprep.subr.bf16.mxu0 %v9714_v12  ;;  %7418 = vmatprep.subr.bf16.mxu1 %v9716_v13  ;;  %v9746_v33 = vld [vmem:[%s14663_s1 + $0x10c] ss:$16 sps:$4 sm:$0xff]   ;;  %v9748_v34 = vld [vmem:[%s14663_s1 + $0x100] ss:$16 sps:$4 sm:$0xff]   ;;  %v9749_v35 = vld [vmem:[%s14663_s1 + $0x108] ss:$16 sps:$4 sm:$0xff]  }
   0xd   :  { %v9750_v36 = vld [vmem:[%s14663_s1 + $0x124] ss:$16 sps:$4 sm:$0xff]   ;;  %v9752_v37 = vld [vmem:[%s14663_s1 + $0x12c] ss:$16 sps:$4 sm:$0xff]   ;;  %v9754_v38 = vld [vmem:[%s14663_s1 + $0x120] ss:$16 sps:$4 sm:$0xff]  }
   0xe   :  { %v9755_v39 = vld [vmem:[%s14663_s1 + $0x128] ss:$16 sps:$4 sm:$0xff]   ;;  %v9756_v40 = vld [vmem:[%s14663_s1 + $0x144] ss:$16 sps:$4 sm:$0xff]   ;;  %v9758_v41 = vld [vmem:[%s14663_s1 + $0x14c] ss:$16 sps:$4 sm:$0xff]  }
   0xf   :  { %6571 = vmatpush1.bf16.msra.mxu0 %v9718_v14  ;;  %7419 = vmatpush1.bf16.msra.mxu1 %v9719_v15  ;;  %v9760_v42 = vld [vmem:[%s14663_s1 + $0x140] ss:$16 sps:$4 sm:$0xff]   ;;  %v9761_v43 = vld [vmem:[%s14663_s1 + $0x148] ss:$16 sps:$4 sm:$0xff]   ;;  %v9762_v44 = vld [vmem:[%s14663_s1 + $0x164] ss:$16 sps:$4 sm:$0xff]  }
  0x10   :  { %6572 = vmatprep.subr.bf16.mxu0 %v9720_v16  ;;  %7420 = vmatprep.subr.bf16.mxu1 %v9722_v17  ;;  %v9764_v45 = vld [vmem:[%s14663_s1 + $0x16c] ss:$16 sps:$4 sm:$0xff]   ;;  %v14_v46 = vld [vmem:[%s14664_s0] sm:$0xff]  ;;  %v9767_v49 = vld [vmem:[%s14663_s1 + $0x168] ss:$16 sps:$4 sm:$0xff]  }
  0x11   :  { %v30_v47 = vld [vmem:[%s14664_s0 + $0x80] sm:$0xff]  ;;  %v9770_v52 = vld [vmem:[%s14663_s1 + $0x18c] ss:$16 sps:$4 sm:$0xff]   ;;  %v9773_v54 = vld [vmem:[%s14663_s1 + $0x188] ss:$16 sps:$4 sm:$0xff]  }
  0x12   :  { %v9766_v48 = vld [vmem:[%s14663_s1 + $0x160] ss:$16 sps:$4 sm:$0xff]   ;;  %v8337_v50 = vcombine.high %v14_v46, %v30_v47  ;;  %v9768_v51 = vld [vmem:[%s14663_s1 + $0x184] ss:$16 sps:$4 sm:$0xff]   ;;  %v9776_v56 = vld [vmem:[%s14663_s1 + $0x1ac] ss:$16 sps:$4 sm:$0xff]   ;;  %v8336_v5 = vcombine.low %v14_v46, %v30_v47 }
  0x13   :  { %6573 = vmatpush1.bf16.msra.mxu0 %v9724_v18  ;;  %7421 = vmatpush1.bf16.msra.mxu1 %v9725_v19  ;;  %v9772_v53 = vld [vmem:[%s14663_s1 + $0x180] ss:$16 sps:$4 sm:$0xff]   ;;  %v9774_v55 = vld [vmem:[%s14663_s1 + $0x1a4] ss:$16 sps:$4 sm:$0xff]   ;;  %v9779_v58 = vld [vmem:[%s14663_s1 + $0x1a8] ss:$16 sps:$4 sm:$0xff]  }
  0x14   :  { %6574 = vmatprep.subr.bf16.mxu0 %v9726_v20  ;;  %7422 = vmatprep.subr.bf16.mxu1 %v9728_v21  ;;  %v9778_v57 = vld [vmem:[%s14663_s1 + $0x1a0] ss:$16 sps:$4 sm:$0xff]   ;;  %v9780_v59 = vld [vmem:[%s14663_s1 + $0x1c4] ss:$16 sps:$4 sm:$0xff]   ;;  %v9782_v60 = vld [vmem:[%s14663_s1 + $0x1cc] ss:$16 sps:$4 sm:$0xff]  }
  0x15   :  { %6596 = vmatprep.mubr.bf16.mxu0 %v8337_v50  ;;  %7444 = vmatprep.mubr.bf16.mxu1 %v8337_v50  ;;  %v9784_v61 = vld [vmem:[%s14663_s1 + $0x1c0] ss:$16 sps:$4 sm:$0xff]   ;;  %v9785_v62 = vld [vmem:[%s14663_s1 + $0x1c8] ss:$16 sps:$4 sm:$0xff]   ;;  %v9786_v63 = vld [vmem:[%s14663_s1 + $0x1e4] ss:$16 sps:$4 sm:$0xff]  }
  0x16   :  { %v9788_v0 = vld [vmem:[%s14663_s1 + $0x1ec] ss:$16 sps:$4 sm:$0xff]   ;;  %v9790_v1 = vld [vmem:[%s14663_s1 + $0x1e0] ss:$16 sps:$4 sm:$0xff]   ;;  %v9791_v2 = vld [vmem:[%s14663_s1 + $0x1e8] ss:$16 sps:$4 sm:$0xff]  }
  0x17   :  { %6575 = vmatpush1.bf16.msra.mxu0 %v9730_v22  ;;  %7423 = vmatpush1.bf16.msra.mxu1 %v9731_v23  ;;  %v9794_v3 = vld [vmem:[%s14663_s1 + $0x204] ss:$16 sps:$4 sm:$0xff]   ;;  %v9797_v4 = vld [vmem:[%s14663_s1 + $0x20c] ss:$16 sps:$4 sm:$0xff]   ;;  %v9792_v6 = vld [vmem:[%s14663_s1 + $0x200] ss:$16 sps:$4 sm:$0xff]  }
  0x18   :  { %6576 = vmatprep.subr.bf16.mxu0 %v9732_v24  ;;  %7424 = vmatprep.subr.bf16.mxu1 %v9734_v25  ;;  %v9795_v7 = vld [vmem:[%s14663_s1 + $0x208] ss:$16 sps:$4 sm:$0xff]   ;;  %v9800_v8 = vld [vmem:[%s14663_s1 + $0x224] ss:$16 sps:$4 sm:$0xff]   ;;  %v9803_v9 = vld [vmem:[%s14663_s1 + $0x22c] ss:$16 sps:$4 sm:$0xff]  }
  0x19   :  { %v9798_v10 = vld [vmem:[%s14663_s1 + $0x220] ss:$16 sps:$4 sm:$0xff]   ;;  %v9801_v11 = vld [vmem:[%s14663_s1 + $0x228] ss:$16 sps:$4 sm:$0xff]   ;;  %v9806_v12 = vld [vmem:[%s14663_s1 + $0x244] ss:$16 sps:$4 sm:$0xff]  }
  0x1a   :  { %v9809_v13 = vld [vmem:[%s14663_s1 + $0x24c] ss:$16 sps:$4 sm:$0xff]   ;;  %v9804_v14 = vld [vmem:[%s14663_s1 + $0x240] ss:$16 sps:$4 sm:$0xff]   ;;  %v9807_v15 = vld [vmem:[%s14663_s1 + $0x248] ss:$16 sps:$4 sm:$0xff]  }
  0x1b   :  { %6577 = vmatpush1.bf16.msra.mxu0 %v9736_v26  ;;  %7425 = vmatpush1.bf16.msra.mxu1 %v9737_v27  ;;  %v9812_v16 = vld [vmem:[%s14663_s1 + $0x264] ss:$16 sps:$4 sm:$0xff]   ;;  %v9815_v17 = vld [vmem:[%s14663_s1 + $0x26c] ss:$16 sps:$4 sm:$0xff]   ;;  %v9810_v18 = vld [vmem:[%s14663_s1 + $0x260] ss:$16 sps:$4 sm:$0xff]  }
  0x1c   :  { %6578 = vmatprep.subr.bf16.mxu0 %v9738_v28  ;;  %7426 = vmatprep.subr.bf16.mxu1 %v9740_v29  ;;  %v9813_v19 = vld [vmem:[%s14663_s1 + $0x268] ss:$16 sps:$4 sm:$0xff]   ;;  %v9818_v20 = vld [vmem:[%s14663_s1 + $0x284] ss:$16 sps:$4 sm:$0xff]   ;;  %v9821_v21 = vld [vmem:[%s14663_s1 + $0x28c] ss:$16 sps:$4 sm:$0xff]  }
  0x1d   :  { %v9816_v22 = vld [vmem:[%s14663_s1 + $0x280] ss:$16 sps:$4 sm:$0xff]   ;;  %v9819_v23 = vld [vmem:[%s14663_s1 + $0x288] ss:$16 sps:$4 sm:$0xff]   ;;  %v9824_v24 = vld [vmem:[%s14663_s1 + $0x2a4] ss:$16 sps:$4 sm:$0xff]  }
  0x1e   :  { %v9827_v25 = vld [vmem:[%s14663_s1 + $0x2ac] ss:$16 sps:$4 sm:$0xff]   ;;  %v46_v26 = vld [vmem:[%s14664_s0 + $0x100] sm:$0xff]  ;;  %v9843_v46 = vld [vmem:[%s14663_s1 + $0x308] ss:$16 sps:$4 sm:$0xff]  }
  0x1f   :  { %6579 = vmatpush1.bf16.msra.mxu0 %v9742_v30  ;;  %7427 = vmatpush1.bf16.msra.mxu1 %v9743_v31  ;;  %v62_v27 = vld [vmem:[%s14664_s0 + $0x180] sm:$0xff]  ;;  %v9825_v30 = vld [vmem:[%s14663_s1 + $0x2a8] ss:$16 sps:$4 sm:$0xff]  }
  0x20   :  { %6580 = vmatprep.subr.bf16.mxu0 %v9744_v32  ;;  %7428 = vmatprep.subr.bf16.mxu1 %v9746_v33  ;;  %v8369_v28 = vcombine.high %v46_v26, %v62_v27  ;;  %v9822_v29 = vld [vmem:[%s14663_s1 + $0x2a0] ss:$16 sps:$4 sm:$0xff]   ;;  %v8368_v31 = vcombine.low %v46_v26, %v62_v27  ;;  %v9830_v32 = vld [vmem:[%s14663_s1 + $0x2c4] ss:$16 sps:$4 sm:$0xff]   ;;  %v9833_v33 = vld [vmem:[%s14663_s1 + $0x2cc] ss:$16 sps:$4 sm:$0xff]  }
  0x21   :  { %v9848_v47 = vld [vmem:[%s14663_s1 + $0x324] ss:$16 sps:$4 sm:$0xff]   ;;  %v9849_v50 = vld [vmem:[%s14663_s1 + $0x328] ss:$16 sps:$4 sm:$0xff]  }
  0x22   :  { %v11706_v27 = vld [vmem:[%s14664_s0 + $0x90] sm:$0xff] }
  0x23   :  { %6581 = vmatpush1.bf16.msra.mxu0 %v9748_v34  ;;  %7429 = vmatpush1.bf16.msra.mxu1 %v9749_v35  ;;  %v11537_v34 = vld [vmem:[%s14664_s0 + $0x8] sm:$0xff] }
  0x24   :  { %6582 = vmatprep.subr.bf16.mxu0 %v9750_v36  ;;  %7430 = vmatprep.subr.bf16.mxu1 %v9752_v37  ;;  %v11542_v35 = vld [vmem:[%s14664_s0 + $0x88] sm:$0xff]  ;;  %v9828_v36 = vld [vmem:[%s14663_s1 + $0x2c0] ss:$16 sps:$4 sm:$0xff]  }
  0x25   :  { %v9831_v37 = vld [vmem:[%s14663_s1 + $0x2c8] ss:$16 sps:$4 sm:$0xff]  }
  0x27   :  { %6583 = vmatpush1.bf16.msra.mxu0 %v9754_v38  ;;  %7431 = vmatpush1.bf16.msra.mxu1 %v9755_v39  ;;  %v8339_v38 = vcombine.high %v11537_v34, %v11542_v35  ;;  %v9836_v39 = vld [vmem:[%s14663_s1 + $0x2e4] ss:$16 sps:$4 sm:$0xff]  }
  0x28   :  { %6584 = vmatprep.subr.bf16.mxu0 %v9756_v40  ;;  %7432 = vmatprep.subr.bf16.mxu1 %v9758_v41  ;;  %v9839_v40 = vld [vmem:[%s14663_s1 + $0x2ec] ss:$16 sps:$4 sm:$0xff]   ;;  %v9834_v41 = vld [vmem:[%s14663_s1 + $0x2e0] ss:$16 sps:$4 sm:$0xff]  }
  0x2b   :  { %6585 = vmatpush1.bf16.msra.mxu0 %v9760_v42  ;;  %7433 = vmatpush1.bf16.msra.mxu1 %v9761_v43  ;;  %v9837_v42 = vld [vmem:[%s14663_s1 + $0x2e8] ss:$16 sps:$4 sm:$0xff]   ;;  %v9842_v43 = vld [vmem:[%s14663_s1 + $0x304] ss:$16 sps:$4 sm:$0xff]  }
  0x2c   :  { %6586 = vmatprep.subr.bf16.mxu0 %v9762_v44  ;;  %7434 = vmatprep.subr.bf16.mxu1 %v9764_v45  ;;  %v9845_v44 = vld [vmem:[%s14663_s1 + $0x30c] ss:$16 sps:$4 sm:$0xff]   ;;  %v9840_v45 = vld [vmem:[%s14663_s1 + $0x300] ss:$16 sps:$4 sm:$0xff]  }
  0x2f   :  { %6587 = vmatpush1.bf16.msra.mxu0 %v9766_v48  ;;  %7435 = vmatpush1.bf16.msra.mxu1 %v9767_v49  ;;  %v9851_v48 = vld [vmem:[%s14663_s1 + $0x32c] ss:$16 sps:$4 sm:$0xff]   ;;  %v9846_v49 = vld [vmem:[%s14663_s1 + $0x320] ss:$16 sps:$4 sm:$0xff]  }
  0x30   :  { %6588 = vmatprep.subr.bf16.mxu0 %v9768_v51  ;;  %7436 = vmatprep.subr.bf16.mxu1 %v9770_v52  ;;  %v9854_v51 = vld [vmem:[%s14663_s1 + $0x344] ss:$16 sps:$4 sm:$0xff]   ;;  %v9857_v52 = vld [vmem:[%s14663_s1 + $0x34c] ss:$16 sps:$4 sm:$0xff]  }
  0x33   :  { %6589 = vmatpush1.bf16.msra.mxu0 %v9772_v53  ;;  %7437 = vmatpush1.bf16.msra.mxu1 %v9773_v54  ;;  %v9852_v53 = vld [vmem:[%s14663_s1 + $0x340] ss:$16 sps:$4 sm:$0xff]   ;;  %v9855_v54 = vld [vmem:[%s14663_s1 + $0x348] ss:$16 sps:$4 sm:$0xff]  }
  0x34   :  { %6590 = vmatprep.subr.bf16.mxu0 %v9774_v55  ;;  %7438 = vmatprep.subr.bf16.mxu1 %v9776_v56  ;;  %v9860_v55 = vld [vmem:[%s14663_s1 + $0x364] ss:$16 sps:$4 sm:$0xff]   ;;  %v9863_v56 = vld [vmem:[%s14663_s1 + $0x36c] ss:$16 sps:$4 sm:$0xff]  }
  0x37   :  { %6591 = vmatpush1.bf16.msra.mxu0 %v9778_v57  ;;  %7439 = vmatpush1.bf16.msra.mxu1 %v9779_v58  ;;  %v9858_v57 = vld [vmem:[%s14663_s1 + $0x360] ss:$16 sps:$4 sm:$0xff]   ;;  %v9861_v58 = vld [vmem:[%s14663_s1 + $0x368] ss:$16 sps:$4 sm:$0xff]  }
  0x38   :  { %6592 = vmatprep.subr.bf16.mxu0 %v9780_v59  ;;  %7440 = vmatprep.subr.bf16.mxu1 %v9782_v60  ;;  %v9866_v59 = vld [vmem:[%s14663_s1 + $0x384] ss:$16 sps:$4 sm:$0xff]   ;;  %v9869_v60 = vld [vmem:[%s14663_s1 + $0x38c] ss:$16 sps:$4 sm:$0xff]  }
  0x3b   :  { %6593 = vmatpush1.bf16.msra.mxu0 %v9784_v61  ;;  %7441 = vmatpush1.bf16.msra.mxu1 %v9785_v62  ;;  %v9864_v61 = vld [vmem:[%s14663_s1 + $0x380] ss:$16 sps:$4 sm:$0xff]   ;;  %v9867_v62 = vld [vmem:[%s14663_s1 + $0x388] ss:$16 sps:$4 sm:$0xff]  }
  0x3c   :  { %6594 = vmatprep.subr.bf16.mxu0 %v9786_v63  ;;  %7442 = vmatprep.subr.bf16.mxu1 %v9788_v0  ;;  %v9872_v63 = vld [vmem:[%s14663_s1 + $0x3a4] ss:$16 sps:$4 sm:$0xff]   ;;  %v9875_v0 = vld [vmem:[%s14663_s1 + $0x3ac] ss:$16 sps:$4 sm:$0xff]  }
  0x3f   :  { %6595 = vmatpush1.bf16.msra.mxu0 %v9790_v1  ;;  %7443 = vmatpush1.bf16.msra.mxu1 %v9791_v2  ;;  %v9870_v1 = vld [vmem:[%s14663_s1 + $0x3a0] ss:$16 sps:$4 sm:$0xff]   ;;  %v9873_v2 = vld [vmem:[%s14663_s1 + $0x3a8] ss:$16 sps:$4 sm:$0xff]  }
  0x40   :  { %6617 = vmatprep.subr.bf16.mxu0 %v9794_v3  ;;  %7465 = vmatprep.subr.bf16.mxu1 %v9797_v4  ;;  %v9878_v3 = vld [vmem:[%s14663_s1 + $0x3c4] ss:$16 sps:$4 sm:$0xff]   ;;  %v9881_v4 = vld [vmem:[%s14663_s1 + $0x3cc] ss:$16 sps:$4 sm:$0xff]  }
  0x42   :  { %6597 = vmatmul.mubr.bf16.vlgmr.msra.gmra.mrb[0].mxu0 %v8336_v5  ;;  %7445 = vmatmul.mubr.bf16.vlgmr.msra.gmra.mrb[0].mxu1 %v8336_v5  ;;  %v9876_v5 = vld [vmem:[%s14663_s1 + $0x3c0] ss:$16 sps:$4 sm:$0xff]  }
  0x43   :  { %6618 = vmatpush1.bf16.msra.mxu0 %v9792_v6  ;;  %7466 = vmatpush1.bf16.msra.mxu1 %v9795_v7  ;;  %v9879_v6 = vld [vmem:[%s14663_s1 + $0x3c8] ss:$16 sps:$4 sm:$0xff]   ;;  %v9884_v7 = vld [vmem:[%s14663_s1 + $0x3e4] ss:$16 sps:$4 sm:$0xff]  }
  0x44   :  { %6619 = vmatprep.subr.bf16.mxu0 %v9800_v8  ;;  %7467 = vmatprep.subr.bf16.mxu1 %v9803_v9  ;;  %v9887_v8 = vld [vmem:[%s14663_s1 + $0x3ec] ss:$16 sps:$4 sm:$0xff]   ;;  %v9882_v9 = vld [vmem:[%s14663_s1 + $0x3e0] ss:$16 sps:$4 sm:$0xff]  }
  0x45   :  { %6606 = vmatprep.mubr.bf16.mxu0 %v8369_v28  ;;  %7454 = vmatprep.mubr.bf16.mxu1 %v8369_v28  ;;  %v9900_v28 = vld [vmem:[%s14663_s1 + $0x440] ss:$16 sps:$4 sm:$0xff]  }
  0x47   :  { %6620 = vmatpush1.bf16.msra.mxu0 %v9798_v10  ;;  %7468 = vmatpush1.bf16.msra.mxu1 %v9801_v11  ;;  %v9885_v10 = vld [vmem:[%s14663_s1 + $0x3e8] ss:$16 sps:$4 sm:$0xff]   ;;  %v9890_v11 = vld [vmem:[%s14663_s1 + $0x404] ss:$16 sps:$4 sm:$0xff]  }
  0x48   :  { %6621 = vmatprep.subr.bf16.mxu0 %v9806_v12  ;;  %7469 = vmatprep.subr.bf16.mxu1 %v9809_v13  ;;  %v9893_v12 = vld [vmem:[%s14663_s1 + $0x40c] ss:$16 sps:$4 sm:$0xff]   ;;  %v9888_v13 = vld [vmem:[%s14663_s1 + $0x400] ss:$16 sps:$4 sm:$0xff]  }
  0x4a   :  { %6607 = vmatmul.mubr.bf16.gmra.mrb[4].mxu0 %v8368_v31  ;;  %7455 = vmatmul.mubr.bf16.gmra.mrb[4].mxu1 %v8368_v31  ;;  %v9911_v31 = vld [vmem:[%s14663_s1 + $0x46c] ss:$16 sps:$4 sm:$0xff]  }
  0x4b   :  { %6622 = vmatpush1.bf16.msra.mxu0 %v9804_v14  ;;  %7470 = vmatpush1.bf16.msra.mxu1 %v9807_v15  ;;  %v9891_v14 = vld [vmem:[%s14663_s1 + $0x408] ss:$16 sps:$4 sm:$0xff]   ;;  %v8338_v15 = vcombine.low %v11537_v34, %v11542_v35  ;;  %v9914_v35 = vld [vmem:[%s14663_s1 + $0x484] ss:$16 sps:$4 sm:$0xff]  }
  0x4c   :  { %6623 = vmatprep.subr.bf16.mxu0 %v9812_v16  ;;  %7471 = vmatprep.subr.bf16.mxu1 %v9815_v17  ;;  %v47_v16 = vld [vmem:[%s14664_s0 + $0x108] sm:$0xff] }
  0x4d   :  { %6649 = vmatprep.mubr.bf16.mxu0 %v8339_v38  ;;  %7497 = vmatprep.mubr.bf16.mxu1 %v8339_v38  ;;  %v63_v17 = vld [vmem:[%s14664_s0 + $0x188] sm:$0xff] }
  0x4e   :  { %v8370_v26 = vcombine.low %v47_v16, %v63_v17  ;;  %v9909_v34 = vld [vmem:[%s14663_s1 + $0x468] ss:$16 sps:$4 sm:$0xff]  }
  0x4f   :  { %6624 = vmatpush1.bf16.msra.mxu0 %v9810_v18  ;;  %7472 = vmatpush1.bf16.msra.mxu1 %v9813_v19  ;;  %v9896_v18 = vld [vmem:[%s14663_s1 + $0x424] ss:$16 sps:$4 sm:$0xff]   ;;  %v9899_v19 = vld [vmem:[%s14663_s1 + $0x42c] ss:$16 sps:$4 sm:$0xff]   ;;  %v9915_v38 = vld [vmem:[%s14663_s1 + $0x488] ss:$16 sps:$4 sm:$0xff]  }
  0x50   :  { %6625 = vmatprep.subr.bf16.mxu0 %v9818_v20  ;;  %7473 = vmatprep.subr.bf16.mxu1 %v9821_v21  ;;  %v8371_v20 = vcombine.high %v47_v16, %v63_v17  ;;  %v9894_v21 = vld [vmem:[%s14663_s1 + $0x420] ss:$16 sps:$4 sm:$0xff]   ;;  %v9983_v16 = vld [vmem:[%s14663_s1 + $0x5ec] ss:$16 sps:$4 sm:$0xff]  }
  0x51   :  { %v9978_v17 = vld [vmem:[%s14663_s1 + $0x5e0] ss:$16 sps:$4 sm:$0xff]  }
  0x53   :  { %6626 = vmatpush1.bf16.msra.mxu0 %v9816_v22  ;;  %7474 = vmatpush1.bf16.msra.mxu1 %v9819_v23  ;;  %v9897_v22 = vld [vmem:[%s14663_s1 + $0x428] ss:$16 sps:$4 sm:$0xff]   ;;  %v9902_v23 = vld [vmem:[%s14663_s1 + $0x444] ss:$16 sps:$4 sm:$0xff]  }
  0x54   :  { %6627 = vmatprep.subr.bf16.mxu0 %v9824_v24  ;;  %7475 = vmatprep.subr.bf16.mxu1 %v9827_v25  ;;  %v9905_v24 = vld [vmem:[%s14663_s1 + $0x44c] ss:$16 sps:$4 sm:$0xff]   ;;  %v11701_v25 = vld [vmem:[%s14664_s0 + $0x10] sm:$0xff] }
  0x57   :  { %6628 = vmatpush1.bf16.msra.mxu0 %v9822_v29  ;;  %7476 = vmatpush1.bf16.msra.mxu1 %v9825_v30  ;;  %v9903_v29 = vld [vmem:[%s14663_s1 + $0x448] ss:$16 sps:$4 sm:$0xff]   ;;  %v9908_v30 = vld [vmem:[%s14663_s1 + $0x464] ss:$16 sps:$4 sm:$0xff]  }
  0x58   :  { %6629 = vmatprep.subr.bf16.mxu0 %v9830_v32  ;;  %7477 = vmatprep.subr.bf16.mxu1 %v9833_v33  ;;  %v8341_v32 = vcombine.high %v11701_v25, %v11706_v27  ;;  %v9906_v33 = vld [vmem:[%s14663_s1 + $0x460] ss:$16 sps:$4 sm:$0xff]  }
  0x5b   :  { %6630 = vmatpush1.bf16.msra.mxu0 %v9828_v36  ;;  %7478 = vmatpush1.bf16.msra.mxu1 %v9831_v37  ;;  %v9917_v36 = vld [vmem:[%s14663_s1 + $0x48c] ss:$16 sps:$4 sm:$0xff]   ;;  %v9912_v37 = vld [vmem:[%s14663_s1 + $0x480] ss:$16 sps:$4 sm:$0xff]  }
  0x5c   :  { %6631 = vmatprep.subr.bf16.mxu0 %v9836_v39  ;;  %7479 = vmatprep.subr.bf16.mxu1 %v9839_v40  ;;  %v9920_v39 = vld [vmem:[%s14663_s1 + $0x4a4] ss:$16 sps:$4 sm:$0xff]   ;;  %v9923_v40 = vld [vmem:[%s14663_s1 + $0x4ac] ss:$16 sps:$4 sm:$0xff]  }
  0x5f   :  { %6632 = vmatpush1.bf16.msra.mxu0 %v9834_v41  ;;  %7480 = vmatpush1.bf16.msra.mxu1 %v9837_v42  ;;  %v9918_v41 = vld [vmem:[%s14663_s1 + $0x4a0] ss:$16 sps:$4 sm:$0xff]   ;;  %v9921_v42 = vld [vmem:[%s14663_s1 + $0x4a8] ss:$16 sps:$4 sm:$0xff]  }
  0x60   :  { %6633 = vmatprep.subr.bf16.mxu0 %v9842_v43  ;;  %7481 = vmatprep.subr.bf16.mxu1 %v9845_v44  ;;  %v9926_v43 = vld [vmem:[%s14663_s1 + $0x4c4] ss:$16 sps:$4 sm:$0xff]   ;;  %v9929_v44 = vld [vmem:[%s14663_s1 + $0x4cc] ss:$16 sps:$4 sm:$0xff]  }
  0x63   :  { %6634 = vmatpush1.bf16.msra.mxu0 %v9840_v45  ;;  %7482 = vmatpush1.bf16.msra.mxu1 %v9843_v46  ;;  %v9924_v45 = vld [vmem:[%s14663_s1 + $0x4c0] ss:$16 sps:$4 sm:$0xff]   ;;  %v9927_v46 = vld [vmem:[%s14663_s1 + $0x4c8] ss:$16 sps:$4 sm:$0xff]  }
  0x64   :  { %6635 = vmatprep.subr.bf16.mxu0 %v9848_v47  ;;  %7483 = vmatprep.subr.bf16.mxu1 %v9851_v48  ;;  %v9932_v47 = vld [vmem:[%s14663_s1 + $0x4e4] ss:$16 sps:$4 sm:$0xff]   ;;  %v9935_v48 = vld [vmem:[%s14663_s1 + $0x4ec] ss:$16 sps:$4 sm:$0xff]  }
  0x67   :  { %6636 = vmatpush1.bf16.msra.mxu0 %v9846_v49  ;;  %7484 = vmatpush1.bf16.msra.mxu1 %v9849_v50  ;;  %v9930_v49 = vld [vmem:[%s14663_s1 + $0x4e0] ss:$16 sps:$4 sm:$0xff]   ;;  %v9933_v50 = vld [vmem:[%s14663_s1 + $0x4e8] ss:$16 sps:$4 sm:$0xff]  }
  0x68   :  { %6637 = vmatprep.subr.bf16.mxu0 %v9854_v51  ;;  %7485 = vmatprep.subr.bf16.mxu1 %v9857_v52  ;;  %v9938_v51 = vld [vmem:[%s14663_s1 + $0x504] ss:$16 sps:$4 sm:$0xff]   ;;  %v9941_v52 = vld [vmem:[%s14663_s1 + $0x50c] ss:$16 sps:$4 sm:$0xff]  }
  0x6b   :  { %6638 = vmatpush1.bf16.msra.mxu0 %v9852_v53  ;;  %7486 = vmatpush1.bf16.msra.mxu1 %v9855_v54  ;;  %v9936_v53 = vld [vmem:[%s14663_s1 + $0x500] ss:$16 sps:$4 sm:$0xff]   ;;  %v9939_v54 = vld [vmem:[%s14663_s1 + $0x508] ss:$16 sps:$4 sm:$0xff]  }
  0x6c   :  { %6639 = vmatprep.subr.bf16.mxu0 %v9860_v55  ;;  %7487 = vmatprep.subr.bf16.mxu1 %v9863_v56  ;;  %v9944_v55 = vld [vmem:[%s14663_s1 + $0x524] ss:$16 sps:$4 sm:$0xff]   ;;  %v9947_v56 = vld [vmem:[%s14663_s1 + $0x52c] ss:$16 sps:$4 sm:$0xff]  }
  0x6f   :  { %6640 = vmatpush1.bf16.msra.mxu0 %v9858_v57  ;;  %7488 = vmatpush1.bf16.msra.mxu1 %v9861_v58  ;;  %v9942_v57 = vld [vmem:[%s14663_s1 + $0x520] ss:$16 sps:$4 sm:$0xff]   ;;  %v9945_v58 = vld [vmem:[%s14663_s1 + $0x528] ss:$16 sps:$4 sm:$0xff]  }
  0x70   :  { %6641 = vmatprep.subr.bf16.mxu0 %v9866_v59  ;;  %7489 = vmatprep.subr.bf16.mxu1 %v9869_v60  ;;  %v9950_v59 = vld [vmem:[%s14663_s1 + $0x544] ss:$16 sps:$4 sm:$0xff]   ;;  %v9953_v60 = vld [vmem:[%s14663_s1 + $0x54c] ss:$16 sps:$4 sm:$0xff]  }
  0x73   :  { %6642 = vmatpush1.bf16.msra.mxu0 %v9864_v61  ;;  %7490 = vmatpush1.bf16.msra.mxu1 %v9867_v62  ;;  %v9948_v61 = vld [vmem:[%s14663_s1 + $0x540] ss:$16 sps:$4 sm:$0xff]   ;;  %v9951_v62 = vld [vmem:[%s14663_s1 + $0x548] ss:$16 sps:$4 sm:$0xff]  }
  0x74   :  { %6643 = vmatprep.subr.bf16.mxu0 %v9872_v63  ;;  %7491 = vmatprep.subr.bf16.mxu1 %v9875_v0  ;;  %v9956_v63 = vld [vmem:[%s14663_s1 + $0x564] ss:$16 sps:$4 sm:$0xff]   ;;  %v9959_v0 = vld [vmem:[%s14663_s1 + $0x56c] ss:$16 sps:$4 sm:$0xff]  }
  0x77   :  { %6644 = vmatpush1.bf16.msra.mxu0 %v9870_v1  ;;  %7492 = vmatpush1.bf16.msra.mxu1 %v9873_v2  ;;  %v9954_v1 = vld [vmem:[%s14663_s1 + $0x560] ss:$16 sps:$4 sm:$0xff]   ;;  %v9957_v2 = vld [vmem:[%s14663_s1 + $0x568] ss:$16 sps:$4 sm:$0xff]  }
  0x78   :  { %6645 = vmatprep.subr.bf16.mxu0 %v9878_v3  ;;  %7493 = vmatprep.subr.bf16.mxu1 %v9881_v4  ;;  %v9962_v3 = vld [vmem:[%s14663_s1 + $0x584] ss:$16 sps:$4 sm:$0xff]   ;;  %v9965_v4 = vld [vmem:[%s14663_s1 + $0x58c] ss:$16 sps:$4 sm:$0xff]  }
  0x7b   :  { %6646 = vmatpush1.bf16.msra.mxu0 %v9876_v5  ;;  %7494 = vmatpush1.bf16.msra.mxu1 %v9879_v6  ;;  %v9960_v5 = vld [vmem:[%s14663_s1 + $0x580] ss:$16 sps:$4 sm:$0xff]   ;;  %v9963_v6 = vld [vmem:[%s14663_s1 + $0x588] ss:$16 sps:$4 sm:$0xff]  }
  0x7c   :  { %6647 = vmatprep.subr.bf16.mxu0 %v9884_v7  ;;  %7495 = vmatprep.subr.bf16.mxu1 %v9887_v8  ;;  %v9968_v7 = vld [vmem:[%s14663_s1 + $0x5a4] ss:$16 sps:$4 sm:$0xff]   ;;  %v9971_v8 = vld [vmem:[%s14663_s1 + $0x5ac] ss:$16 sps:$4 sm:$0xff]  }
  0x7f   :  { %6648 = vmatpush1.bf16.msra.mxu0 %v9882_v9  ;;  %7496 = vmatpush1.bf16.msra.mxu1 %v9885_v10  ;;  %v9966_v9 = vld [vmem:[%s14663_s1 + $0x5a0] ss:$16 sps:$4 sm:$0xff]   ;;  %v9969_v10 = vld [vmem:[%s14663_s1 + $0x5a8] ss:$16 sps:$4 sm:$0xff]  }
  0x80   :  { %6670 = vmatprep.subr.bf16.mxu0 %v9890_v11  ;;  %7518 = vmatprep.subr.bf16.mxu1 %v9893_v12  ;;  %v9974_v11 = vld [vmem:[%s14663_s1 + $0x5c4] ss:$16 sps:$4 sm:$0xff]   ;;  %v9977_v12 = vld [vmem:[%s14663_s1 + $0x5cc] ss:$16 sps:$4 sm:$0xff]  }
  0x82   :  { %6650 = vmatmul.mubr.bf16.vlgmr.msra.gmra.mrb[0].mxu0 %v8338_v15  ;;  %7498 = vmatmul.mubr.bf16.vlgmr.msra.gmra.mrb[0].mxu1 %v8338_v15  ;;  %v9980_v15 = vld [vmem:[%s14663_s1 + $0x5e4] ss:$16 sps:$4 sm:$0xff]  }
  0x83   :  { %6671 = vmatpush1.bf16.msra.mxu0 %v9888_v13  ;;  %7519 = vmatpush1.bf16.msra.mxu1 %v9891_v14  ;;  %v9972_v13 = vld [vmem:[%s14663_s1 + $0x5c0] ss:$16 sps:$4 sm:$0xff]   ;;  %v9975_v14 = vld [vmem:[%s14663_s1 + $0x5c8] ss:$16 sps:$4 sm:$0xff]  }
  0x84   :  { %6672 = vmatprep.subr.bf16.mxu0 %v9896_v18  ;;  %7520 = vmatprep.subr.bf16.mxu1 %v9899_v19  ;;  %v9981_v18 = vld [vmem:[%s14663_s1 + $0x5e8] ss:$16 sps:$4 sm:$0xff]   ;;  %v9986_v19 = vld [vmem:[%s14663_s1 + $0x604] ss:$16 sps:$4 sm:$0xff]  }
  0x85   :  { %6659 = vmatprep.mubr.bf16.mxu0 %v8371_v20  ;;  %7507 = vmatprep.mubr.bf16.mxu1 %v8371_v20  ;;  %v9989_v20 = vld [vmem:[%s14663_s1 + $0x60c] ss:$16 sps:$4 sm:$0xff]  }
  0x87   :  { %6673 = vmatpush1.bf16.msra.mxu0 %v9894_v21  ;;  %7521 = vmatpush1.bf16.msra.mxu1 %v9897_v22  ;;  %v48_v21 = vld [vmem:[%s14664_s0 + $0x110] sm:$0xff]  ;;  %v8340_v22 = vcombine.low %v11701_v25, %v11706_v27  ;;  %v9995_v27 = vld [vmem:[%s14663_s1 + $0x62c] ss:$16 sps:$4 sm:$0xff]  }
  0x88   :  { %6674 = vmatprep.subr.bf16.mxu0 %v9902_v23  ;;  %7522 = vmatprep.subr.bf16.mxu1 %v9905_v24  ;;  %v64_v23 = vld [vmem:[%s14664_s0 + $0x190] sm:$0xff] }
  0x89   :  { %v9984_v24 = vld [vmem:[%s14663_s1 + $0x600] ss:$16 sps:$4 sm:$0xff]   ;;  %v9992_v25 = vld [vmem:[%s14663_s1 + $0x624] ss:$16 sps:$4 sm:$0xff]  }
  0x8a   :  { %6660 = vmatmul.mubr.bf16.gmra.mrb[4].mxu0 %v8370_v26  ;;  %7508 = vmatmul.mubr.bf16.gmra.mrb[4].mxu1 %v8370_v26  ;;  %v9987_v26 = vld [vmem:[%s14663_s1 + $0x608] ss:$16 sps:$4 sm:$0xff]  }
  0x8b   :  { %6675 = vmatpush1.bf16.msra.mxu0 %v9900_v28  ;;  %7523 = vmatpush1.bf16.msra.mxu1 %v9903_v29  ;;  %v8373_v28 = vcombine.high %v48_v21, %v64_v23  ;;  %v9990_v29 = vld [vmem:[%s14663_s1 + $0x620] ss:$16 sps:$4 sm:$0xff]  }
  0x8c   :  { %6676 = vmatprep.subr.bf16.mxu0 %v9908_v30  ;;  %7524 = vmatprep.subr.bf16.mxu1 %v9911_v31  ;;  %v9993_v30 = vld [vmem:[%s14663_s1 + $0x628] ss:$16 sps:$4 sm:$0xff]   ;;  %v9998_v31 = vld [vmem:[%s14663_s1 + $0x644] ss:$16 sps:$4 sm:$0xff]  }
  0x8d   :  { %6702 = vmatprep.mubr.bf16.mxu0 %v8341_v32  ;;  %7550 = vmatprep.mubr.bf16.mxu1 %v8341_v32  ;;  %v10001_v32 = vld [vmem:[%s14663_s1 + $0x64c] ss:$16 sps:$4 sm:$0xff]  }
  0x8f   :  { %6677 = vmatpush1.bf16.msra.mxu0 %v9906_v33  ;;  %7525 = vmatpush1.bf16.msra.mxu1 %v9909_v34  ;;  %v11913_v33 = vld [vmem:[%s14664_s0 + $0x18] sm:$0xff]  ;;  %v8372_v34 = vcombine.low %v48_v21, %v64_v23  ;;  %v10068_v21 = vld [vmem:[%s14663_s1 + $0x7c0] ss:$16 sps:$4 sm:$0xff]   ;;  %v10076_v23 = vld [vmem:[%s14663_s1 + $0x7e4] ss:$16 sps:$4 sm:$0xff]  }
  0x90   :  { %6678 = vmatprep.subr.bf16.mxu0 %v9914_v35  ;;  %7526 = vmatprep.subr.bf16.mxu1 %v9917_v36  ;;  %v11918_v35 = vld [vmem:[%s14664_s0 + $0x98] sm:$0xff]  ;;  %v9996_v36 = vld [vmem:[%s14663_s1 + $0x640] ss:$16 sps:$4 sm:$0xff]  }
  0x93   :  { %6679 = vmatpush1.bf16.msra.mxu0 %v9912_v37  ;;  %7527 = vmatpush1.bf16.msra.mxu1 %v9915_v38  ;;  %v9999_v37 = vld [vmem:[%s14663_s1 + $0x648] ss:$16 sps:$4 sm:$0xff]   ;;  %v10004_v38 = vld [vmem:[%s14663_s1 + $0x664] ss:$16 sps:$4 sm:$0xff]  }
  0x94   :  { %6680 = vmatprep.subr.bf16.mxu0 %v9920_v39  ;;  %7528 = vmatprep.subr.bf16.mxu1 %v9923_v40  ;;  %v10007_v39 = vld [vmem:[%s14663_s1 + $0x66c] ss:$16 sps:$4 sm:$0xff]   ;;  %v8343_v40 = vcombine.high %v11913_v33, %v11918_v35 }
  0x97   :  { %6681 = vmatpush1.bf16.msra.mxu0 %v9918_v41  ;;  %7529 = vmatpush1.bf16.msra.mxu1 %v9921_v42  ;;  %v10002_v41 = vld [vmem:[%s14663_s1 + $0x660] ss:$16 sps:$4 sm:$0xff]   ;;  %v10005_v42 = vld [vmem:[%s14663_s1 + $0x668] ss:$16 sps:$4 sm:$0xff]  }
  0x98   :  { %6682 = vmatprep.subr.bf16.mxu0 %v9926_v43  ;;  %7530 = vmatprep.subr.bf16.mxu1 %v9929_v44  ;;  %v10010_v43 = vld [vmem:[%s14663_s1 + $0x684] ss:$16 sps:$4 sm:$0xff]   ;;  %v10013_v44 = vld [vmem:[%s14663_s1 + $0x68c] ss:$16 sps:$4 sm:$0xff]  }
  0x9b   :  { %6683 = vmatpush1.bf16.msra.mxu0 %v9924_v45  ;;  %7531 = vmatpush1.bf16.msra.mxu1 %v9927_v46  ;;  %v10008_v45 = vld [vmem:[%s14663_s1 + $0x680] ss:$16 sps:$4 sm:$0xff]   ;;  %v10011_v46 = vld [vmem:[%s14663_s1 + $0x688] ss:$16 sps:$4 sm:$0xff]  }
  0x9c   :  { %6684 = vmatprep.subr.bf16.mxu0 %v9932_v47  ;;  %7532 = vmatprep.subr.bf16.mxu1 %v9935_v48  ;;  %v10016_v47 = vld [vmem:[%s14663_s1 + $0x6a4] ss:$16 sps:$4 sm:$0xff]   ;;  %v10019_v48 = vld [vmem:[%s14663_s1 + $0x6ac] ss:$16 sps:$4 sm:$0xff]  }
  0x9f   :  { %6685 = vmatpush1.bf16.msra.mxu0 %v9930_v49  ;;  %7533 = vmatpush1.bf16.msra.mxu1 %v9933_v50  ;;  %v10014_v49 = vld [vmem:[%s14663_s1 + $0x6a0] ss:$16 sps:$4 sm:$0xff]   ;;  %v10017_v50 = vld [vmem:[%s14663_s1 + $0x6a8] ss:$16 sps:$4 sm:$0xff]  }
  0xa0   :  { %6686 = vmatprep.subr.bf16.mxu0 %v9938_v51  ;;  %7534 = vmatprep.subr.bf16.mxu1 %v9941_v52  ;;  %v10022_v51 = vld [vmem:[%s14663_s1 + $0x6c4] ss:$16 sps:$4 sm:$0xff]   ;;  %v10025_v52 = vld [vmem:[%s14663_s1 + $0x6cc] ss:$16 sps:$4 sm:$0xff]  }
  0xa3   :  { %6687 = vmatpush1.bf16.msra.mxu0 %v9936_v53  ;;  %7535 = vmatpush1.bf16.msra.mxu1 %v9939_v54  ;;  %v10020_v53 = vld [vmem:[%s14663_s1 + $0x6c0] ss:$16 sps:$4 sm:$0xff]   ;;  %v10023_v54 = vld [vmem:[%s14663_s1 + $0x6c8] ss:$16 sps:$4 sm:$0xff]  }
  0xa4   :  { %6688 = vmatprep.subr.bf16.mxu0 %v9944_v55  ;;  %7536 = vmatprep.subr.bf16.mxu1 %v9947_v56  ;;  %v10028_v55 = vld [vmem:[%s14663_s1 + $0x6e4] ss:$16 sps:$4 sm:$0xff]   ;;  %v10031_v56 = vld [vmem:[%s14663_s1 + $0x6ec] ss:$16 sps:$4 sm:$0xff]  }
  0xa7   :  { %6689 = vmatpush1.bf16.msra.mxu0 %v9942_v57  ;;  %7537 = vmatpush1.bf16.msra.mxu1 %v9945_v58  ;;  %v10026_v57 = vld [vmem:[%s14663_s1 + $0x6e0] ss:$16 sps:$4 sm:$0xff]   ;;  %v10029_v58 = vld [vmem:[%s14663_s1 + $0x6e8] ss:$16 sps:$4 sm:$0xff]  }
  0xa8   :  { %6690 = vmatprep.subr.bf16.mxu0 %v9950_v59  ;;  %7538 = vmatprep.subr.bf16.mxu1 %v9953_v60  ;;  %v10034_v59 = vld [vmem:[%s14663_s1 + $0x704] ss:$16 sps:$4 sm:$0xff]   ;;  %v10037_v60 = vld [vmem:[%s14663_s1 + $0x70c] ss:$16 sps:$4 sm:$0xff]  }
  0xab   :  { %6691 = vmatpush1.bf16.msra.mxu0 %v9948_v61  ;;  %7539 = vmatpush1.bf16.msra.mxu1 %v9951_v62  ;;  %v10032_v61 = vld [vmem:[%s14663_s1 + $0x700] ss:$16 sps:$4 sm:$0xff]   ;;  %v10035_v62 = vld [vmem:[%s14663_s1 + $0x708] ss:$16 sps:$4 sm:$0xff]  }
  0xac   :  { %6692 = vmatprep.subr.bf16.mxu0 %v9956_v63  ;;  %7540 = vmatprep.subr.bf16.mxu1 %v9959_v0  ;;  %v10040_v63 = vld [vmem:[%s14663_s1 + $0x724] ss:$16 sps:$4 sm:$0xff]   ;;  %v10043_v0 = vld [vmem:[%s14663_s1 + $0x72c] ss:$16 sps:$4 sm:$0xff]  }
  0xaf   :  { %6693 = vmatpush1.bf16.msra.mxu0 %v9954_v1  ;;  %7541 = vmatpush1.bf16.msra.mxu1 %v9957_v2  ;;  %v10038_v1 = vld [vmem:[%s14663_s1 + $0x720] ss:$16 sps:$4 sm:$0xff]   ;;  %v10041_v2 = vld [vmem:[%s14663_s1 + $0x728] ss:$16 sps:$4 sm:$0xff]  }
  0xb0   :  { %6694 = vmatprep.subr.bf16.mxu0 %v9962_v3  ;;  %7542 = vmatprep.subr.bf16.mxu1 %v9965_v4  ;;  %v10046_v3 = vld [vmem:[%s14663_s1 + $0x744] ss:$16 sps:$4 sm:$0xff]   ;;  %v10049_v4 = vld [vmem:[%s14663_s1 + $0x74c] ss:$16 sps:$4 sm:$0xff]  }
  0xb3   :  { %6695 = vmatpush1.bf16.msra.mxu0 %v9960_v5  ;;  %7543 = vmatpush1.bf16.msra.mxu1 %v9963_v6  ;;  %v10044_v5 = vld [vmem:[%s14663_s1 + $0x740] ss:$16 sps:$4 sm:$0xff]   ;;  %v10047_v6 = vld [vmem:[%s14663_s1 + $0x748] ss:$16 sps:$4 sm:$0xff]  }
  0xb4   :  { %6696 = vmatprep.subr.bf16.mxu0 %v9968_v7  ;;  %7544 = vmatprep.subr.bf16.mxu1 %v9971_v8  ;;  %v10052_v7 = vld [vmem:[%s14663_s1 + $0x764] ss:$16 sps:$4 sm:$0xff]   ;;  %v10055_v8 = vld [vmem:[%s14663_s1 + $0x76c] ss:$16 sps:$4 sm:$0xff]  }
  0xb7   :  { %6697 = vmatpush1.bf16.msra.mxu0 %v9966_v9  ;;  %7545 = vmatpush1.bf16.msra.mxu1 %v9969_v10  ;;  %v10050_v9 = vld [vmem:[%s14663_s1 + $0x760] ss:$16 sps:$4 sm:$0xff]   ;;  %v10053_v10 = vld [vmem:[%s14663_s1 + $0x768] ss:$16 sps:$4 sm:$0xff]  }
  0xb8   :  { %6698 = vmatprep.subr.bf16.mxu0 %v9974_v11  ;;  %7546 = vmatprep.subr.bf16.mxu1 %v9977_v12  ;;  %v10058_v11 = vld [vmem:[%s14663_s1 + $0x784] ss:$16 sps:$4 sm:$0xff]   ;;  %v10061_v12 = vld [vmem:[%s14663_s1 + $0x78c] ss:$16 sps:$4 sm:$0xff]  }
  0xbb   :  { %6699 = vmatpush1.bf16.msra.mxu0 %v9972_v13  ;;  %7547 = vmatpush1.bf16.msra.mxu1 %v9975_v14  ;;  %v10056_v13 = vld [vmem:[%s14663_s1 + $0x780] ss:$16 sps:$4 sm:$0xff]   ;;  %v10059_v14 = vld [vmem:[%s14663_s1 + $0x788] ss:$16 sps:$4 sm:$0xff]  }
  0xbc   :  { %6700 = vmatprep.subr.bf16.mxu0 %v9980_v15  ;;  %7548 = vmatprep.subr.bf16.mxu1 %v9983_v16  ;;  %v10064_v15 = vld [vmem:[%s14663_s1 + $0x7a4] ss:$16 sps:$4 sm:$0xff]   ;;  %v10067_v16 = vld [vmem:[%s14663_s1 + $0x7ac] ss:$16 sps:$4 sm:$0xff]  }
  0xbf   :  { %6701 = vmatpush1.bf16.msra.mxu0 %v9978_v17  ;;  %7549 = vmatpush1.bf16.msra.mxu1 %v9981_v18  ;;  %v10062_v17 = vld [vmem:[%s14663_s1 + $0x7a0] ss:$16 sps:$4 sm:$0xff]   ;;  %v10065_v18 = vld [vmem:[%s14663_s1 + $0x7a8] ss:$16 sps:$4 sm:$0xff]  }
  0xc0   :  { %6723 = vmatprep.subr.bf16.mxu0 %v9986_v19  ;;  %7571 = vmatprep.subr.bf16.mxu1 %v9989_v20  ;;  %v10070_v19 = vld [vmem:[%s14663_s1 + $0x7c4] ss:$16 sps:$4 sm:$0xff]   ;;  %v10073_v20 = vld [vmem:[%s14663_s1 + $0x7cc] ss:$16 sps:$4 sm:$0xff]  }
  0xc2   :  { %6703 = vmatmul.mubr.bf16.vlgmr.msra.gmra.mrb[0].mxu0 %v8340_v22  ;;  %7551 = vmatmul.mubr.bf16.vlgmr.msra.gmra.mrb[0].mxu1 %v8340_v22  ;;  %v10071_v22 = vld [vmem:[%s14663_s1 + $0x7c8] ss:$16 sps:$4 sm:$0xff]  }
  0xc3   :  { %6724 = vmatpush1.bf16.msra.mxu0 %v9984_v24  ;;  %7572 = vmatpush1.bf16.msra.mxu1 %v9987_v26  ;;  %v10079_v24 = vld [vmem:[%s14663_s1 + $0x7ec] ss:$16 sps:$4 sm:$0xff]   ;;  %v10074_v26 = vld [vmem:[%s14663_s1 + $0x7e0] ss:$16 sps:$4 sm:$0xff]  }
  0xc4   :  { %6725 = vmatprep.subr.bf16.mxu0 %v9992_v25  ;;  %7573 = vmatprep.subr.bf16.mxu1 %v9995_v27  ;;  %v10077_v25 = vld [vmem:[%s14663_s1 + $0x7e8] ss:$16 sps:$4 sm:$0xff]   ;;  %v10082_v27 = vld [vmem:[%s14663_s1 + $0x804] ss:$16 sps:$4 sm:$0xff]  }
  0xc5   :  { %6712 = vmatprep.mubr.bf16.mxu0 %v8373_v28  ;;  %7560 = vmatprep.mubr.bf16.mxu1 %v8373_v28  ;;  %v10085_v28 = vld [vmem:[%s14663_s1 + $0x80c] ss:$16 sps:$4 sm:$0xff]  }
  0xc7   :  { %6726 = vmatpush1.bf16.msra.mxu0 %v9990_v29  ;;  %7574 = vmatpush1.bf16.msra.mxu1 %v9993_v30  ;;  %v49_v29 = vld [vmem:[%s14664_s0 + $0x118] sm:$0xff]  ;;  %v8342_v30 = vcombine.low %v11913_v33, %v11918_v35 }
  0xc8   :  { %6727 = vmatprep.subr.bf16.mxu0 %v9998_v31  ;;  %7575 = vmatprep.subr.bf16.mxu1 %v10001_v32  ;;  %v65_v31 = vld [vmem:[%s14664_s0 + $0x198] sm:$0xff]  ;;  %v10080_v32 = vld [vmem:[%s14663_s1 + $0x800] ss:$16 sps:$4 sm:$0xff]  }
  0xc9   :  { %v10091_v33 = vld [vmem:[%s14663_s1 + $0x82c] ss:$16 sps:$4 sm:$0xff]   ;;  %v8375_v35 = vcombine.high %v49_v29, %v65_v31 }
  0xca   :  { %6713 = vmatmul.mubr.bf16.gmra.mrb[4].mxu0 %v8372_v34  ;;  %7561 = vmatmul.mubr.bf16.gmra.mrb[4].mxu1 %v8372_v34  ;;  %v10083_v34 = vld [vmem:[%s14663_s1 + $0x808] ss:$16 sps:$4 sm:$0xff]  }
  0xcb   :  { %6728 = vmatpush1.bf16.msra.mxu0 %v9996_v36  ;;  %7576 = vmatpush1.bf16.msra.mxu1 %v9999_v37  ;;  %v10088_v36 = vld [vmem:[%s14663_s1 + $0x824] ss:$16 sps:$4 sm:$0xff]   ;;  %v10086_v37 = vld [vmem:[%s14663_s1 + $0x820] ss:$16 sps:$4 sm:$0xff]  }
  0xcc   :  { %6729 = vmatprep.subr.bf16.mxu0 %v10004_v38  ;;  %7577 = vmatprep.subr.bf16.mxu1 %v10007_v39  ;;  %v10089_v38 = vld [vmem:[%s14663_s1 + $0x828] ss:$16 sps:$4 sm:$0xff]   ;;  %v10094_v39 = vld [vmem:[%s14663_s1 + $0x844] ss:$16 sps:$4 sm:$0xff]  }
  0xcd   :  { %6755 = vmatprep.mubr.bf16.mxu0 %v8343_v40  ;;  %7603 = vmatprep.mubr.bf16.mxu1 %v8343_v40  ;;  %v10097_v40 = vld [vmem:[%s14663_s1 + $0x84c] ss:$16 sps:$4 sm:$0xff]  }
  0xcf   :  { %6730 = vmatpush1.bf16.msra.mxu0 %v10002_v41  ;;  %7578 = vmatpush1.bf16.msra.mxu1 %v10005_v42  ;;  %v12125_v41 = vld [vmem:[%s14664_s0 + $0x20] sm:$0xff]  ;;  %v8374_v42 = vcombine.low %v49_v29, %v65_v31 }
  0xd0   :  { %6731 = vmatprep.subr.bf16.mxu0 %v10010_v43  ;;  %7579 = vmatprep.subr.bf16.mxu1 %v10013_v44  ;;  %v12130_v43 = vld [vmem:[%s14664_s0 + $0xa0] sm:$0xff] }
  0xd1   :  { %v10092_v44 = vld [vmem:[%s14663_s1 + $0x840] ss:$16 sps:$4 sm:$0xff]   ;;  %v10172_v31 = vld [vmem:[%s14663_s1 + $0x9e4] ss:$16 sps:$4 sm:$0xff]  }
  0xd2   :  { %v10164_v29 = vld [vmem:[%s14663_s1 + $0x9c0] ss:$16 sps:$4 sm:$0xff]  }
  0xd3   :  { %6732 = vmatpush1.bf16.msra.mxu0 %v10008_v45  ;;  %7580 = vmatpush1.bf16.msra.mxu1 %v10011_v46  ;;  %v10095_v45 = vld [vmem:[%s14663_s1 + $0x848] ss:$16 sps:$4 sm:$0xff]   ;;  %v10100_v46 = vld [vmem:[%s14663_s1 + $0x864] ss:$16 sps:$4 sm:$0xff]  }
  0xd4   :  { %6733 = vmatprep.subr.bf16.mxu0 %v10016_v47  ;;  %7581 = vmatprep.subr.bf16.mxu1 %v10019_v48  ;;  %v10103_v47 = vld [vmem:[%s14663_s1 + $0x86c] ss:$16 sps:$4 sm:$0xff]   ;;  %v8345_v48 = vcombine.high %v12125_v41, %v12130_v43 }
  0xd7   :  { %6734 = vmatpush1.bf16.msra.mxu0 %v10014_v49  ;;  %7582 = vmatpush1.bf16.msra.mxu1 %v10017_v50  ;;  %v10098_v49 = vld [vmem:[%s14663_s1 + $0x860] ss:$16 sps:$4 sm:$0xff]   ;;  %v10101_v50 = vld [vmem:[%s14663_s1 + $0x868] ss:$16 sps:$4 sm:$0xff]  }
  0xd8   :  { %6735 = vmatprep.subr.bf16.mxu0 %v10022_v51  ;;  %7583 = vmatprep.subr.bf16.mxu1 %v10025_v52  ;;  %v10106_v51 = vld [vmem:[%s14663_s1 + $0x884] ss:$16 sps:$4 sm:$0xff]   ;;  %v10109_v52 = vld [vmem:[%s14663_s1 + $0x88c] ss:$16 sps:$4 sm:$0xff]  }
  0xdb   :  { %6736 = vmatpush1.bf16.msra.mxu0 %v10020_v53  ;;  %7584 = vmatpush1.bf16.msra.mxu1 %v10023_v54  ;;  %v10104_v53 = vld [vmem:[%s14663_s1 + $0x880] ss:$16 sps:$4 sm:$0xff]   ;;  %v10107_v54 = vld [vmem:[%s14663_s1 + $0x888] ss:$16 sps:$4 sm:$0xff]  }
  0xdc   :  { %6737 = vmatprep.subr.bf16.mxu0 %v10028_v55  ;;  %7585 = vmatprep.subr.bf16.mxu1 %v10031_v56  ;;  %v10112_v55 = vld [vmem:[%s14663_s1 + $0x8a4] ss:$16 sps:$4 sm:$0xff]   ;;  %v10115_v56 = vld [vmem:[%s14663_s1 + $0x8ac] ss:$16 sps:$4 sm:$0xff]  }
  0xdf   :  { %6738 = vmatpush1.bf16.msra.mxu0 %v10026_v57  ;;  %7586 = vmatpush1.bf16.msra.mxu1 %v10029_v58  ;;  %v10110_v57 = vld [vmem:[%s14663_s1 + $0x8a0] ss:$16 sps:$4 sm:$0xff]   ;;  %v10113_v58 = vld [vmem:[%s14663_s1 + $0x8a8] ss:$16 sps:$4 sm:$0xff]  }
  0xe0   :  { %6739 = vmatprep.subr.bf16.mxu0 %v10034_v59  ;;  %7587 = vmatprep.subr.bf16.mxu1 %v10037_v60  ;;  %v10118_v59 = vld [vmem:[%s14663_s1 + $0x8c4] ss:$16 sps:$4 sm:$0xff]   ;;  %v10121_v60 = vld [vmem:[%s14663_s1 + $0x8cc] ss:$16 sps:$4 sm:$0xff]  }
  0xe3   :  { %6740 = vmatpush1.bf16.msra.mxu0 %v10032_v61  ;;  %7588 = vmatpush1.bf16.msra.mxu1 %v10035_v62  ;;  %v10116_v61 = vld [vmem:[%s14663_s1 + $0x8c0] ss:$16 sps:$4 sm:$0xff]   ;;  %v10119_v62 = vld [vmem:[%s14663_s1 + $0x8c8] ss:$16 sps:$4 sm:$0xff]  }
  0xe4   :  { %6741 = vmatprep.subr.bf16.mxu0 %v10040_v63  ;;  %7589 = vmatprep.subr.bf16.mxu1 %v10043_v0  ;;  %v10124_v63 = vld [vmem:[%s14663_s1 + $0x8e4] ss:$16 sps:$4 sm:$0xff]   ;;  %v10127_v0 = vld [vmem:[%s14663_s1 + $0x8ec] ss:$16 sps:$4 sm:$0xff]  }
  0xe7   :  { %6742 = vmatpush1.bf16.msra.mxu0 %v10038_v1  ;;  %7590 = vmatpush1.bf16.msra.mxu1 %v10041_v2  ;;  %v10122_v1 = vld [vmem:[%s14663_s1 + $0x8e0] ss:$16 sps:$4 sm:$0xff]   ;;  %v10125_v2 = vld [vmem:[%s14663_s1 + $0x8e8] ss:$16 sps:$4 sm:$0xff]  }
  0xe8   :  { %6743 = vmatprep.subr.bf16.mxu0 %v10046_v3  ;;  %7591 = vmatprep.subr.bf16.mxu1 %v10049_v4  ;;  %v10130_v3 = vld [vmem:[%s14663_s1 + $0x904] ss:$16 sps:$4 sm:$0xff]   ;;  %v10133_v4 = vld [vmem:[%s14663_s1 + $0x90c] ss:$16 sps:$4 sm:$0xff]  }
  0xeb   :  { %6744 = vmatpush1.bf16.msra.mxu0 %v10044_v5  ;;  %7592 = vmatpush1.bf16.msra.mxu1 %v10047_v6  ;;  %v10128_v5 = vld [vmem:[%s14663_s1 + $0x900] ss:$16 sps:$4 sm:$0xff]   ;;  %v10131_v6 = vld [vmem:[%s14663_s1 + $0x908] ss:$16 sps:$4 sm:$0xff]  }
  0xec   :  { %6745 = vmatprep.subr.bf16.mxu0 %v10052_v7  ;;  %7593 = vmatprep.subr.bf16.mxu1 %v10055_v8  ;;  %v10136_v7 = vld [vmem:[%s14663_s1 + $0x924] ss:$16 sps:$4 sm:$0xff]   ;;  %v10139_v8 = vld [vmem:[%s14663_s1 + $0x92c] ss:$16 sps:$4 sm:$0xff]  }
  0xef   :  { %6746 = vmatpush1.bf16.msra.mxu0 %v10050_v9  ;;  %7594 = vmatpush1.bf16.msra.mxu1 %v10053_v10  ;;  %v10134_v9 = vld [vmem:[%s14663_s1 + $0x920] ss:$16 sps:$4 sm:$0xff]   ;;  %v10137_v10 = vld [vmem:[%s14663_s1 + $0x928] ss:$16 sps:$4 sm:$0xff]  }
  0xf0   :  { %6747 = vmatprep.subr.bf16.mxu0 %v10058_v11  ;;  %7595 = vmatprep.subr.bf16.mxu1 %v10061_v12  ;;  %v10142_v11 = vld [vmem:[%s14663_s1 + $0x944] ss:$16 sps:$4 sm:$0xff]   ;;  %v10145_v12 = vld [vmem:[%s14663_s1 + $0x94c] ss:$16 sps:$4 sm:$0xff]  }
  0xf3   :  { %6748 = vmatpush1.bf16.msra.mxu0 %v10056_v13  ;;  %7596 = vmatpush1.bf16.msra.mxu1 %v10059_v14  ;;  %v10140_v13 = vld [vmem:[%s14663_s1 + $0x940] ss:$16 sps:$4 sm:$0xff]   ;;  %v10143_v14 = vld [vmem:[%s14663_s1 + $0x948] ss:$16 sps:$4 sm:$0xff]  }
  0xf4   :  { %6749 = vmatprep.subr.bf16.mxu0 %v10064_v15  ;;  %7597 = vmatprep.subr.bf16.mxu1 %v10067_v16  ;;  %v10148_v15 = vld [vmem:[%s14663_s1 + $0x964] ss:$16 sps:$4 sm:$0xff]   ;;  %v10151_v16 = vld [vmem:[%s14663_s1 + $0x96c] ss:$16 sps:$4 sm:$0xff]  }
  0xf7   :  { %6750 = vmatpush1.bf16.msra.mxu0 %v10062_v17  ;;  %7598 = vmatpush1.bf16.msra.mxu1 %v10065_v18  ;;  %v10146_v17 = vld [vmem:[%s14663_s1 + $0x960] ss:$16 sps:$4 sm:$0xff]   ;;  %v10149_v18 = vld [vmem:[%s14663_s1 + $0x968] ss:$16 sps:$4 sm:$0xff]  }
  0xf8   :  { %6751 = vmatprep.subr.bf16.mxu0 %v10070_v19  ;;  %7599 = vmatprep.subr.bf16.mxu1 %v10073_v20  ;;  %v10154_v19 = vld [vmem:[%s14663_s1 + $0x984] ss:$16 sps:$4 sm:$0xff]   ;;  %v10157_v20 = vld [vmem:[%s14663_s1 + $0x98c] ss:$16 sps:$4 sm:$0xff]  }
  0xfb   :  { %6752 = vmatpush1.bf16.msra.mxu0 %v10068_v21  ;;  %7600 = vmatpush1.bf16.msra.mxu1 %v10071_v22  ;;  %v10152_v21 = vld [vmem:[%s14663_s1 + $0x980] ss:$16 sps:$4 sm:$0xff]   ;;  %v10155_v22 = vld [vmem:[%s14663_s1 + $0x988] ss:$16 sps:$4 sm:$0xff]  }
  0xfc   :  { %6753 = vmatprep.subr.bf16.mxu0 %v10076_v23  ;;  %7601 = vmatprep.subr.bf16.mxu1 %v10079_v24  ;;  %v10160_v23 = vld [vmem:[%s14663_s1 + $0x9a4] ss:$16 sps:$4 sm:$0xff]   ;;  %v10163_v24 = vld [vmem:[%s14663_s1 + $0x9ac] ss:$16 sps:$4 sm:$0xff]  }
  0xff   :  { %6754 = vmatpush1.bf16.msra.mxu0 %v10074_v26  ;;  %7602 = vmatpush1.bf16.msra.mxu1 %v10077_v25  ;;  %v10158_v26 = vld [vmem:[%s14663_s1 + $0x9a0] ss:$16 sps:$4 sm:$0xff]   ;;  %v10161_v25 = vld [vmem:[%s14663_s1 + $0x9a8] ss:$16 sps:$4 sm:$0xff]  }
 0x100   :  { %6776 = vmatprep.subr.bf16.mxu0 %v10082_v27  ;;  %7624 = vmatprep.subr.bf16.mxu1 %v10085_v28  ;;  %v10166_v27 = vld [vmem:[%s14663_s1 + $0x9c4] ss:$16 sps:$4 sm:$0xff]   ;;  %v10169_v28 = vld [vmem:[%s14663_s1 + $0x9cc] ss:$16 sps:$4 sm:$0xff]  }
 0x102   :  { %6756 = vmatmul.mubr.bf16.vlgmr.msra.gmra.mrb[0].mxu0 %v8342_v30  ;;  %7604 = vmatmul.mubr.bf16.vlgmr.msra.gmra.mrb[0].mxu1 %v8342_v30  ;;  %v10167_v30 = vld [vmem:[%s14663_s1 + $0x9c8] ss:$16 sps:$4 sm:$0xff]  }
 0x103   :  { %6777 = vmatpush1.bf16.msra.mxu0 %v10080_v32  ;;  %7625 = vmatpush1.bf16.msra.mxu1 %v10083_v34  ;;  %v10175_v32 = vld [vmem:[%s14663_s1 + $0x9ec] ss:$16 sps:$4 sm:$0xff]   ;;  %v10170_v34 = vld [vmem:[%s14663_s1 + $0x9e0] ss:$16 sps:$4 sm:$0xff]  }
 0x104   :  { %6778 = vmatprep.subr.bf16.mxu0 %v10088_v36  ;;  %7626 = vmatprep.subr.bf16.mxu1 %v10091_v33  ;;  %v10173_v36 = vld [vmem:[%s14663_s1 + $0x9e8] ss:$16 sps:$4 sm:$0xff]   ;;  %v10178_v33 = vld [vmem:[%s14663_s1 + $0xa04] ss:$16 sps:$4 sm:$0xff]  }
 0x105   :  { %6765 = vmatprep.mubr.bf16.mxu0 %v8375_v35  ;;  %7613 = vmatprep.mubr.bf16.mxu1 %v8375_v35  ;;  %v10181_v35 = vld [vmem:[%s14663_s1 + $0xa0c] ss:$16 sps:$4 sm:$0xff]  }
 0x107   :  { %6779 = vmatpush1.bf16.msra.mxu0 %v10086_v37  ;;  %7627 = vmatpush1.bf16.msra.mxu1 %v10089_v38  ;;  %v50_v37 = vld [vmem:[%s14664_s0 + $0x120] sm:$0xff] }
 0x108   :  { %6780 = vmatprep.subr.bf16.mxu0 %v10094_v39  ;;  %7628 = vmatprep.subr.bf16.mxu1 %v10097_v40  ;;  %v66_v38 = vld [vmem:[%s14664_s0 + $0x1a0] sm:$0xff]  ;;  %v8344_v39 = vcombine.low %v12125_v41, %v12130_v43  ;;  %v10187_v41 = vld [vmem:[%s14663_s1 + $0xa2c] ss:$16 sps:$4 sm:$0xff]  }
 0x109   :  { %v10176_v40 = vld [vmem:[%s14663_s1 + $0xa00] ss:$16 sps:$4 sm:$0xff]  }
 0x10a   :  { %6766 = vmatmul.mubr.bf16.gmra.mrb[4].mxu0 %v8374_v42  ;;  %7614 = vmatmul.mubr.bf16.gmra.mrb[4].mxu1 %v8374_v42  ;;  %v10179_v42 = vld [vmem:[%s14663_s1 + $0xa08] ss:$16 sps:$4 sm:$0xff]   ;;  %v10182_v43 = vld [vmem:[%s14663_s1 + $0xa20] ss:$16 sps:$4 sm:$0xff]  }
 0x10b   :  { %6781 = vmatpush1.bf16.msra.mxu0 %v10092_v44  ;;  %7629 = vmatpush1.bf16.msra.mxu1 %v10095_v45  ;;  %v10184_v44 = vld [vmem:[%s14663_s1 + $0xa24] ss:$16 sps:$4 sm:$0xff]   ;;  %v10185_v45 = vld [vmem:[%s14663_s1 + $0xa28] ss:$16 sps:$4 sm:$0xff]  }
 0x10c   :  { %6782 = vmatprep.subr.bf16.mxu0 %v10100_v46  ;;  %7630 = vmatprep.subr.bf16.mxu1 %v10103_v47  ;;  %v8377_v46 = vcombine.high %v50_v37, %v66_v38  ;;  %v10190_v47 = vld [vmem:[%s14663_s1 + $0xa44] ss:$16 sps:$4 sm:$0xff]  }
 0x10d   :  { %6808 = vmatprep.mubr.bf16.mxu0 %v8345_v48  ;;  %7656 = vmatprep.mubr.bf16.mxu1 %v8345_v48  ;;  %v10193_v48 = vld [vmem:[%s14663_s1 + $0xa4c] ss:$16 sps:$4 sm:$0xff]  }
 0x10f   :  { %6783 = vmatpush1.bf16.msra.mxu0 %v10098_v49  ;;  %7631 = vmatpush1.bf16.msra.mxu1 %v10101_v50  ;;  %v12337_v49 = vld [vmem:[%s14664_s0 + $0x28] sm:$0xff] }
 0x110   :  { %6784 = vmatprep.subr.bf16.mxu0 %v10106_v51  ;;  %7632 = vmatprep.subr.bf16.mxu1 %v10109_v52  ;;  %v12342_v50 = vld [vmem:[%s14664_s0 + $0xa8] sm:$0xff]  ;;  %v8376_v51 = vcombine.low %v50_v37, %v66_v38  ;;  %v10188_v52 = vld [vmem:[%s14663_s1 + $0xa40] ss:$16 sps:$4 sm:$0xff]  }
 0x111   :  { %v10260_v37 = vld [vmem:[%s14663_s1 + $0xbc0] ss:$16 sps:$4 sm:$0xff]   ;;  %v10263_v38 = vld [vmem:[%s14663_s1 + $0xbc8] ss:$16 sps:$4 sm:$0xff]  }
 0x113   :  { %6785 = vmatpush1.bf16.msra.mxu0 %v10104_v53  ;;  %7633 = vmatpush1.bf16.msra.mxu1 %v10107_v54  ;;  %v10191_v53 = vld [vmem:[%s14663_s1 + $0xa48] ss:$16 sps:$4 sm:$0xff]   ;;  %v10196_v54 = vld [vmem:[%s14663_s1 + $0xa64] ss:$16 sps:$4 sm:$0xff]  }
 0x114   :  { %6786 = vmatprep.subr.bf16.mxu0 %v10112_v55  ;;  %7634 = vmatprep.subr.bf16.mxu1 %v10115_v56  ;;  %v10199_v55 = vld [vmem:[%s14663_s1 + $0xa6c] ss:$16 sps:$4 sm:$0xff]   ;;  %v8347_v56 = vcombine.high %v12337_v49, %v12342_v50 }
 0x117   :  { %6787 = vmatpush1.bf16.msra.mxu0 %v10110_v57  ;;  %7635 = vmatpush1.bf16.msra.mxu1 %v10113_v58  ;;  %v10194_v57 = vld [vmem:[%s14663_s1 + $0xa60] ss:$16 sps:$4 sm:$0xff]   ;;  %v10197_v58 = vld [vmem:[%s14663_s1 + $0xa68] ss:$16 sps:$4 sm:$0xff]  }
 0x118   :  { %6788 = vmatprep.subr.bf16.mxu0 %v10118_v59  ;;  %7636 = vmatprep.subr.bf16.mxu1 %v10121_v60  ;;  %v10202_v59 = vld [vmem:[%s14663_s1 + $0xa84] ss:$16 sps:$4 sm:$0xff]   ;;  %v10205_v60 = vld [vmem:[%s14663_s1 + $0xa8c] ss:$16 sps:$4 sm:$0xff]  }
 0x11b   :  { %6789 = vmatpush1.bf16.msra.mxu0 %v10116_v61  ;;  %7637 = vmatpush1.bf16.msra.mxu1 %v10119_v62  ;;  %v10200_v61 = vld [vmem:[%s14663_s1 + $0xa80] ss:$16 sps:$4 sm:$0xff]   ;;  %v10203_v62 = vld [vmem:[%s14663_s1 + $0xa88] ss:$16 sps:$4 sm:$0xff]  }
 0x11c   :  { %6790 = vmatprep.subr.bf16.mxu0 %v10124_v63  ;;  %7638 = vmatprep.subr.bf16.mxu1 %v10127_v0  ;;  %v10208_v63 = vld [vmem:[%s14663_s1 + $0xaa4] ss:$16 sps:$4 sm:$0xff]   ;;  %v10211_v0 = vld [vmem:[%s14663_s1 + $0xaac] ss:$16 sps:$4 sm:$0xff]  }
 0x11f   :  { %6791 = vmatpush1.bf16.msra.mxu0 %v10122_v1  ;;  %7639 = vmatpush1.bf16.msra.mxu1 %v10125_v2  ;;  %v10206_v1 = vld [vmem:[%s14663_s1 + $0xaa0] ss:$16 sps:$4 sm:$0xff]   ;;  %v10209_v2 = vld [vmem:[%s14663_s1 + $0xaa8] ss:$16 sps:$4 sm:$0xff]  }
 0x120   :  { %6792 = vmatprep.subr.bf16.mxu0 %v10130_v3  ;;  %7640 = vmatprep.subr.bf16.mxu1 %v10133_v4  ;;  %v10214_v3 = vld [vmem:[%s14663_s1 + $0xac4] ss:$16 sps:$4 sm:$0xff]   ;;  %v10217_v4 = vld [vmem:[%s14663_s1 + $0xacc] ss:$16 sps:$4 sm:$0xff]  }
 0x123   :  { %6793 = vmatpush1.bf16.msra.mxu0 %v10128_v5  ;;  %7641 = vmatpush1.bf16.msra.mxu1 %v10131_v6  ;;  %v10212_v5 = vld [vmem:[%s14663_s1 + $0xac0] ss:$16 sps:$4 sm:$0xff]   ;;  %v10215_v6 = vld [vmem:[%s14663_s1 + $0xac8] ss:$16 sps:$4 sm:$0xff]  }
 0x124   :  { %6794 = vmatprep.subr.bf16.mxu0 %v10136_v7  ;;  %7642 = vmatprep.subr.bf16.mxu1 %v10139_v8  ;;  %v10220_v7 = vld [vmem:[%s14663_s1 + $0xae4] ss:$16 sps:$4 sm:$0xff]   ;;  %v10223_v8 = vld [vmem:[%s14663_s1 + $0xaec] ss:$16 sps:$4 sm:$0xff]  }
 0x127   :  { %6795 = vmatpush1.bf16.msra.mxu0 %v10134_v9  ;;  %7643 = vmatpush1.bf16.msra.mxu1 %v10137_v10  ;;  %v10218_v9 = vld [vmem:[%s14663_s1 + $0xae0] ss:$16 sps:$4 sm:$0xff]   ;;  %v10221_v10 = vld [vmem:[%s14663_s1 + $0xae8] ss:$16 sps:$4 sm:$0xff]  }
 0x128   :  { %6796 = vmatprep.subr.bf16.mxu0 %v10142_v11  ;;  %7644 = vmatprep.subr.bf16.mxu1 %v10145_v12  ;;  %v10226_v11 = vld [vmem:[%s14663_s1 + $0xb04] ss:$16 sps:$4 sm:$0xff]   ;;  %v10229_v12 = vld [vmem:[%s14663_s1 + $0xb0c] ss:$16 sps:$4 sm:$0xff]  }
 0x12b   :  { %6797 = vmatpush1.bf16.msra.mxu0 %v10140_v13  ;;  %7645 = vmatpush1.bf16.msra.mxu1 %v10143_v14  ;;  %v10224_v13 = vld [vmem:[%s14663_s1 + $0xb00] ss:$16 sps:$4 sm:$0xff]   ;;  %v10227_v14 = vld [vmem:[%s14663_s1 + $0xb08] ss:$16 sps:$4 sm:$0xff]  }
 0x12c   :  { %6798 = vmatprep.subr.bf16.mxu0 %v10148_v15  ;;  %7646 = vmatprep.subr.bf16.mxu1 %v10151_v16  ;;  %v10232_v15 = vld [vmem:[%s14663_s1 + $0xb24] ss:$16 sps:$4 sm:$0xff]   ;;  %v10235_v16 = vld [vmem:[%s14663_s1 + $0xb2c] ss:$16 sps:$4 sm:$0xff]  }
 0x12f   :  { %6799 = vmatpush1.bf16.msra.mxu0 %v10146_v17  ;;  %7647 = vmatpush1.bf16.msra.mxu1 %v10149_v18  ;;  %v10230_v17 = vld [vmem:[%s14663_s1 + $0xb20] ss:$16 sps:$4 sm:$0xff]   ;;  %v10233_v18 = vld [vmem:[%s14663_s1 + $0xb28] ss:$16 sps:$4 sm:$0xff]  }
 0x130   :  { %6800 = vmatprep.subr.bf16.mxu0 %v10154_v19  ;;  %7648 = vmatprep.subr.bf16.mxu1 %v10157_v20  ;;  %v10238_v19 = vld [vmem:[%s14663_s1 + $0xb44] ss:$16 sps:$4 sm:$0xff]   ;;  %v10241_v20 = vld [vmem:[%s14663_s1 + $0xb4c] ss:$16 sps:$4 sm:$0xff]  }
 0x133   :  { %6801 = vmatpush1.bf16.msra.mxu0 %v10152_v21  ;;  %7649 = vmatpush1.bf16.msra.mxu1 %v10155_v22  ;;  %v10236_v21 = vld [vmem:[%s14663_s1 + $0xb40] ss:$16 sps:$4 sm:$0xff]   ;;  %v10239_v22 = vld [vmem:[%s14663_s1 + $0xb48] ss:$16 sps:$4 sm:$0xff]  }
 0x134   :  { %6802 = vmatprep.subr.bf16.mxu0 %v10160_v23  ;;  %7650 = vmatprep.subr.bf16.mxu1 %v10163_v24  ;;  %v10244_v23 = vld [vmem:[%s14663_s1 + $0xb64] ss:$16 sps:$4 sm:$0xff]   ;;  %v10247_v24 = vld [vmem:[%s14663_s1 + $0xb6c] ss:$16 sps:$4 sm:$0xff]  }
 0x137   :  { %6803 = vmatpush1.bf16.msra.mxu0 %v10158_v26  ;;  %7651 = vmatpush1.bf16.msra.mxu1 %v10161_v25  ;;  %v10242_v26 = vld [vmem:[%s14663_s1 + $0xb60] ss:$16 sps:$4 sm:$0xff]   ;;  %v10245_v25 = vld [vmem:[%s14663_s1 + $0xb68] ss:$16 sps:$4 sm:$0xff]  }
 0x138   :  { %6804 = vmatprep.subr.bf16.mxu0 %v10166_v27  ;;  %7652 = vmatprep.subr.bf16.mxu1 %v10169_v28  ;;  %v10250_v27 = vld [vmem:[%s14663_s1 + $0xb84] ss:$16 sps:$4 sm:$0xff]   ;;  %v10253_v28 = vld [vmem:[%s14663_s1 + $0xb8c] ss:$16 sps:$4 sm:$0xff]  }
 0x13b   :  { %6805 = vmatpush1.bf16.msra.mxu0 %v10164_v29  ;;  %7653 = vmatpush1.bf16.msra.mxu1 %v10167_v30  ;;  %v10248_v29 = vld [vmem:[%s14663_s1 + $0xb80] ss:$16 sps:$4 sm:$0xff]   ;;  %v10251_v30 = vld [vmem:[%s14663_s1 + $0xb88] ss:$16 sps:$4 sm:$0xff]  }
 0x13c   :  { %6806 = vmatprep.subr.bf16.mxu0 %v10172_v31  ;;  %7654 = vmatprep.subr.bf16.mxu1 %v10175_v32  ;;  %v10256_v31 = vld [vmem:[%s14663_s1 + $0xba4] ss:$16 sps:$4 sm:$0xff]   ;;  %v10259_v32 = vld [vmem:[%s14663_s1 + $0xbac] ss:$16 sps:$4 sm:$0xff]  }
 0x13f   :  { %6807 = vmatpush1.bf16.msra.mxu0 %v10170_v34  ;;  %7655 = vmatpush1.bf16.msra.mxu1 %v10173_v36  ;;  %v10254_v34 = vld [vmem:[%s14663_s1 + $0xba0] ss:$16 sps:$4 sm:$0xff]   ;;  %v10257_v36 = vld [vmem:[%s14663_s1 + $0xba8] ss:$16 sps:$4 sm:$0xff]  }
 0x140   :  { %6829 = vmatprep.subr.bf16.mxu0 %v10178_v33  ;;  %7677 = vmatprep.subr.bf16.mxu1 %v10181_v35  ;;  %v10262_v33 = vld [vmem:[%s14663_s1 + $0xbc4] ss:$16 sps:$4 sm:$0xff]   ;;  %v10265_v35 = vld [vmem:[%s14663_s1 + $0xbcc] ss:$16 sps:$4 sm:$0xff]  }
 0x142   :  { %6809 = vmatmul.mubr.bf16.vlgmr.msra.gmra.mrb[0].mxu0 %v8344_v39  ;;  %7657 = vmatmul.mubr.bf16.vlgmr.msra.gmra.mrb[0].mxu1 %v8344_v39  ;;  %v10268_v39 = vld [vmem:[%s14663_s1 + $0xbe4] ss:$16 sps:$4 sm:$0xff]  }
 0x143   :  { %6830 = vmatpush1.bf16.msra.mxu0 %v10176_v40  ;;  %7678 = vmatpush1.bf16.msra.mxu1 %v10179_v42  ;;  %v10271_v40 = vld [vmem:[%s14663_s1 + $0xbec] ss:$16 sps:$4 sm:$0xff]   ;;  %v10266_v42 = vld [vmem:[%s14663_s1 + $0xbe0] ss:$16 sps:$4 sm:$0xff]  }
 0x144   :  { %6831 = vmatprep.subr.bf16.mxu0 %v10184_v44  ;;  %7679 = vmatprep.subr.bf16.mxu1 %v10187_v41  ;;  %v10269_v44 = vld [vmem:[%s14663_s1 + $0xbe8] ss:$16 sps:$4 sm:$0xff]   ;;  %v10274_v41 = vld [vmem:[%s14663_s1 + $0xc04] ss:$16 sps:$4 sm:$0xff]  }
 0x145   :  { %6818 = vmatprep.mubr.bf16.mxu0 %v8377_v46  ;;  %7666 = vmatprep.mubr.bf16.mxu1 %v8377_v46  ;;  %v67_v46 = vld [vmem:[%s14664_s0 + $0x1a8] sm:$0xff] }
 0x147   :  { %6832 = vmatpush1.bf16.msra.mxu0 %v10182_v43  ;;  %7680 = vmatpush1.bf16.msra.mxu1 %v10185_v45  ;;  %v10277_v43 = vld [vmem:[%s14663_s1 + $0xc0c] ss:$16 sps:$4 sm:$0xff]  }
 0x148   :  { %6833 = vmatprep.subr.bf16.mxu0 %v10190_v47  ;;  %7681 = vmatprep.subr.bf16.mxu1 %v10193_v48  ;;  %v51_v45 = vld [vmem:[%s14664_s0 + $0x128] sm:$0xff]  ;;  %v8346_v47 = vcombine.low %v12337_v49, %v12342_v50  ;;  %v10272_v48 = vld [vmem:[%s14663_s1 + $0xc00] ss:$16 sps:$4 sm:$0xff]  }
 0x149   :  { %v10283_v49 = vld [vmem:[%s14663_s1 + $0xc2c] ss:$16 sps:$4 sm:$0xff]   ;;  %v10278_v50 = vld [vmem:[%s14663_s1 + $0xc20] ss:$16 sps:$4 sm:$0xff]  }
 0x14a   :  { %6819 = vmatmul.mubr.bf16.gmra.mrb[4].mxu0 %v8376_v51  ;;  %7667 = vmatmul.mubr.bf16.gmra.mrb[4].mxu1 %v8376_v51  ;;  %v10275_v51 = vld [vmem:[%s14663_s1 + $0xc08] ss:$16 sps:$4 sm:$0xff]  }
 0x14b   :  { %6834 = vmatpush1.bf16.msra.mxu0 %v10188_v52  ;;  %7682 = vmatpush1.bf16.msra.mxu1 %v10191_v53  ;;  %v10280_v52 = vld [vmem:[%s14663_s1 + $0xc24] ss:$16 sps:$4 sm:$0xff]   ;;  %v10281_v53 = vld [vmem:[%s14663_s1 + $0xc28] ss:$16 sps:$4 sm:$0xff]  }
 0x14c   :  { %6835 = vmatprep.subr.bf16.mxu0 %v10196_v54  ;;  %7683 = vmatprep.subr.bf16.mxu1 %v10199_v55  ;;  %v8379_v54 = vcombine.high %v51_v45, %v67_v46  ;;  %v10286_v55 = vld [vmem:[%s14663_s1 + $0xc44] ss:$16 sps:$4 sm:$0xff]  }
 0x14d   :  { %6861 = vmatprep.mubr.bf16.mxu0 %v8347_v56  ;;  %7709 = vmatprep.mubr.bf16.mxu1 %v8347_v56  ;;  %v10289_v56 = vld [vmem:[%s14663_s1 + $0xc4c] ss:$16 sps:$4 sm:$0xff]  }
 0x14f   :  { %6836 = vmatpush1.bf16.msra.mxu0 %v10194_v57  ;;  %7684 = vmatpush1.bf16.msra.mxu1 %v10197_v58  ;;  %v12549_v57 = vld [vmem:[%s14664_s0 + $0x30] sm:$0xff] }
 0x150   :  { %6837 = vmatprep.subr.bf16.mxu0 %v10202_v59  ;;  %7685 = vmatprep.subr.bf16.mxu1 %v10205_v60  ;;  %v12554_v58 = vld [vmem:[%s14664_s0 + $0xb0] sm:$0xff]  ;;  %v8378_v59 = vcombine.low %v51_v45, %v67_v46  ;;  %v10359_v46 = vld [vmem:[%s14663_s1 + $0xdc8] ss:$16 sps:$4 sm:$0xff]  }
 0x151   :  { %v10284_v60 = vld [vmem:[%s14663_s1 + $0xc40] ss:$16 sps:$4 sm:$0xff]  }
 0x152   :  { %v10356_v45 = vld [vmem:[%s14663_s1 + $0xdc0] ss:$16 sps:$4 sm:$0xff]  }
 0x153   :  { %6838 = vmatpush1.bf16.msra.mxu0 %v10200_v61  ;;  %7686 = vmatpush1.bf16.msra.mxu1 %v10203_v62  ;;  %v10287_v61 = vld [vmem:[%s14663_s1 + $0xc48] ss:$16 sps:$4 sm:$0xff]   ;;  %v10292_v62 = vld [vmem:[%s14663_s1 + $0xc64] ss:$16 sps:$4 sm:$0xff]  }
 0x154   :  { %6839 = vmatprep.subr.bf16.mxu0 %v10208_v63  ;;  %7687 = vmatprep.subr.bf16.mxu1 %v10211_v0  ;;  %v10295_v63 = vld [vmem:[%s14663_s1 + $0xc6c] ss:$16 sps:$4 sm:$0xff]   ;;  %v8349_v0 = vcombine.high %v12549_v57, %v12554_v58 }
 0x157   :  { %6840 = vmatpush1.bf16.msra.mxu0 %v10206_v1  ;;  %7688 = vmatpush1.bf16.msra.mxu1 %v10209_v2  ;;  %v10290_v1 = vld [vmem:[%s14663_s1 + $0xc60] ss:$16 sps:$4 sm:$0xff]   ;;  %v10293_v2 = vld [vmem:[%s14663_s1 + $0xc68] ss:$16 sps:$4 sm:$0xff]  }
 0x158   :  { %6841 = vmatprep.subr.bf16.mxu0 %v10214_v3  ;;  %7689 = vmatprep.subr.bf16.mxu1 %v10217_v4  ;;  %v10298_v3 = vld [vmem:[%s14663_s1 + $0xc84] ss:$16 sps:$4 sm:$0xff]   ;;  %v10301_v4 = vld [vmem:[%s14663_s1 + $0xc8c] ss:$16 sps:$4 sm:$0xff]  }
 0x15b   :  { %6842 = vmatpush1.bf16.msra.mxu0 %v10212_v5  ;;  %7690 = vmatpush1.bf16.msra.mxu1 %v10215_v6  ;;  %v10296_v5 = vld [vmem:[%s14663_s1 + $0xc80] ss:$16 sps:$4 sm:$0xff]   ;;  %v10299_v6 = vld [vmem:[%s14663_s1 + $0xc88] ss:$16 sps:$4 sm:$0xff]  }
 0x15c   :  { %6843 = vmatprep.subr.bf16.mxu0 %v10220_v7  ;;  %7691 = vmatprep.subr.bf16.mxu1 %v10223_v8  ;;  %v10304_v7 = vld [vmem:[%s14663_s1 + $0xca4] ss:$16 sps:$4 sm:$0xff]   ;;  %v10307_v8 = vld [vmem:[%s14663_s1 + $0xcac] ss:$16 sps:$4 sm:$0xff]  }
 0x15f   :  { %6844 = vmatpush1.bf16.msra.mxu0 %v10218_v9  ;;  %7692 = vmatpush1.bf16.msra.mxu1 %v10221_v10  ;;  %v10302_v9 = vld [vmem:[%s14663_s1 + $0xca0] ss:$16 sps:$4 sm:$0xff]   ;;  %v10305_v10 = vld [vmem:[%s14663_s1 + $0xca8] ss:$16 sps:$4 sm:$0xff]  }
 0x160   :  { %6845 = vmatprep.subr.bf16.mxu0 %v10226_v11  ;;  %7693 = vmatprep.subr.bf16.mxu1 %v10229_v12  ;;  %v10310_v11 = vld [vmem:[%s14663_s1 + $0xcc4] ss:$16 sps:$4 sm:$0xff]   ;;  %v10313_v12 = vld [vmem:[%s14663_s1 + $0xccc] ss:$16 sps:$4 sm:$0xff]  }
 0x163   :  { %6846 = vmatpush1.bf16.msra.mxu0 %v10224_v13  ;;  %7694 = vmatpush1.bf16.msra.mxu1 %v10227_v14  ;;  %v10308_v13 = vld [vmem:[%s14663_s1 + $0xcc0] ss:$16 sps:$4 sm:$0xff]   ;;  %v10311_v14 = vld [vmem:[%s14663_s1 + $0xcc8] ss:$16 sps:$4 sm:$0xff]  }
 0x164   :  { %6847 = vmatprep.subr.bf16.mxu0 %v10232_v15  ;;  %7695 = vmatprep.subr.bf16.mxu1 %v10235_v16  ;;  %v10316_v15 = vld [vmem:[%s14663_s1 + $0xce4] ss:$16 sps:$4 sm:$0xff]   ;;  %v10319_v16 = vld [vmem:[%s14663_s1 + $0xcec] ss:$16 sps:$4 sm:$0xff]  }
 0x167   :  { %6848 = vmatpush1.bf16.msra.mxu0 %v10230_v17  ;;  %7696 = vmatpush1.bf16.msra.mxu1 %v10233_v18  ;;  %v10314_v17 = vld [vmem:[%s14663_s1 + $0xce0] ss:$16 sps:$4 sm:$0xff]   ;;  %v10317_v18 = vld [vmem:[%s14663_s1 + $0xce8] ss:$16 sps:$4 sm:$0xff]  }
 0x168   :  { %6849 = vmatprep.subr.bf16.mxu0 %v10238_v19  ;;  %7697 = vmatprep.subr.bf16.mxu1 %v10241_v20  ;;  %v10322_v19 = vld [vmem:[%s14663_s1 + $0xd04] ss:$16 sps:$4 sm:$0xff]   ;;  %v10325_v20 = vld [vmem:[%s14663_s1 + $0xd0c] ss:$16 sps:$4 sm:$0xff]  }
 0x16b   :  { %6850 = vmatpush1.bf16.msra.mxu0 %v10236_v21  ;;  %7698 = vmatpush1.bf16.msra.mxu1 %v10239_v22  ;;  %v10320_v21 = vld [vmem:[%s14663_s1 + $0xd00] ss:$16 sps:$4 sm:$0xff]   ;;  %v10323_v22 = vld [vmem:[%s14663_s1 + $0xd08] ss:$16 sps:$4 sm:$0xff]  }
 0x16c   :  { %6851 = vmatprep.subr.bf16.mxu0 %v10244_v23  ;;  %7699 = vmatprep.subr.bf16.mxu1 %v10247_v24  ;;  %v10328_v23 = vld [vmem:[%s14663_s1 + $0xd24] ss:$16 sps:$4 sm:$0xff]   ;;  %v10331_v24 = vld [vmem:[%s14663_s1 + $0xd2c] ss:$16 sps:$4 sm:$0xff]  }
 0x16f   :  { %6852 = vmatpush1.bf16.msra.mxu0 %v10242_v26  ;;  %7700 = vmatpush1.bf16.msra.mxu1 %v10245_v25  ;;  %v10326_v26 = vld [vmem:[%s14663_s1 + $0xd20] ss:$16 sps:$4 sm:$0xff]   ;;  %v10329_v25 = vld [vmem:[%s14663_s1 + $0xd28] ss:$16 sps:$4 sm:$0xff]  }
 0x170   :  { %6853 = vmatprep.subr.bf16.mxu0 %v10250_v27  ;;  %7701 = vmatprep.subr.bf16.mxu1 %v10253_v28  ;;  %v10334_v27 = vld [vmem:[%s14663_s1 + $0xd44] ss:$16 sps:$4 sm:$0xff]   ;;  %v10337_v28 = vld [vmem:[%s14663_s1 + $0xd4c] ss:$16 sps:$4 sm:$0xff]  }
 0x173   :  { %6854 = vmatpush1.bf16.msra.mxu0 %v10248_v29  ;;  %7702 = vmatpush1.bf16.msra.mxu1 %v10251_v30  ;;  %v10332_v29 = vld [vmem:[%s14663_s1 + $0xd40] ss:$16 sps:$4 sm:$0xff]   ;;  %v10335_v30 = vld [vmem:[%s14663_s1 + $0xd48] ss:$16 sps:$4 sm:$0xff]  }
 0x174   :  { %6855 = vmatprep.subr.bf16.mxu0 %v10256_v31  ;;  %7703 = vmatprep.subr.bf16.mxu1 %v10259_v32  ;;  %v10340_v31 = vld [vmem:[%s14663_s1 + $0xd64] ss:$16 sps:$4 sm:$0xff]   ;;  %v10343_v32 = vld [vmem:[%s14663_s1 + $0xd6c] ss:$16 sps:$4 sm:$0xff]  }
 0x177   :  { %6856 = vmatpush1.bf16.msra.mxu0 %v10254_v34  ;;  %7704 = vmatpush1.bf16.msra.mxu1 %v10257_v36  ;;  %v10338_v34 = vld [vmem:[%s14663_s1 + $0xd60] ss:$16 sps:$4 sm:$0xff]   ;;  %v10341_v36 = vld [vmem:[%s14663_s1 + $0xd68] ss:$16 sps:$4 sm:$0xff]  }
 0x178   :  { %6857 = vmatprep.subr.bf16.mxu0 %v10262_v33  ;;  %7705 = vmatprep.subr.bf16.mxu1 %v10265_v35  ;;  %v10346_v33 = vld [vmem:[%s14663_s1 + $0xd84] ss:$16 sps:$4 sm:$0xff]   ;;  %v10349_v35 = vld [vmem:[%s14663_s1 + $0xd8c] ss:$16 sps:$4 sm:$0xff]  }
 0x17b   :  { %6858 = vmatpush1.bf16.msra.mxu0 %v10260_v37  ;;  %7706 = vmatpush1.bf16.msra.mxu1 %v10263_v38  ;;  %v10344_v37 = vld [vmem:[%s14663_s1 + $0xd80] ss:$16 sps:$4 sm:$0xff]   ;;  %v10347_v38 = vld [vmem:[%s14663_s1 + $0xd88] ss:$16 sps:$4 sm:$0xff]  }
 0x17c   :  { %6859 = vmatprep.subr.bf16.mxu0 %v10268_v39  ;;  %7707 = vmatprep.subr.bf16.mxu1 %v10271_v40  ;;  %v10352_v39 = vld [vmem:[%s14663_s1 + $0xda4] ss:$16 sps:$4 sm:$0xff]   ;;  %v10355_v40 = vld [vmem:[%s14663_s1 + $0xdac] ss:$16 sps:$4 sm:$0xff]  }
 0x17f   :  { %6860 = vmatpush1.bf16.msra.mxu0 %v10266_v42  ;;  %7708 = vmatpush1.bf16.msra.mxu1 %v10269_v44  ;;  %v10350_v42 = vld [vmem:[%s14663_s1 + $0xda0] ss:$16 sps:$4 sm:$0xff]   ;;  %v10353_v44 = vld [vmem:[%s14663_s1 + $0xda8] ss:$16 sps:$4 sm:$0xff]  }
 0x180   :  { %6882 = vmatprep.subr.bf16.mxu0 %v10274_v41  ;;  %7730 = vmatprep.subr.bf16.mxu1 %v10277_v43  ;;  %v10358_v41 = vld [vmem:[%s14663_s1 + $0xdc4] ss:$16 sps:$4 sm:$0xff]   ;;  %v10361_v43 = vld [vmem:[%s14663_s1 + $0xdcc] ss:$16 sps:$4 sm:$0xff]  }
 0x182   :  { %6862 = vmatmul.mubr.bf16.vlgmr.msra.gmra.mrb[0].mxu0 %v8346_v47  ;;  %7710 = vmatmul.mubr.bf16.vlgmr.msra.gmra.mrb[0].mxu1 %v8346_v47  ;;  %v10364_v47 = vld [vmem:[%s14663_s1 + $0xde4] ss:$16 sps:$4 sm:$0xff]  }
 0x183   :  { %6883 = vmatpush1.bf16.msra.mxu0 %v10272_v48  ;;  %7731 = vmatpush1.bf16.msra.mxu1 %v10275_v51  ;;  %v10367_v48 = vld [vmem:[%s14663_s1 + $0xdec] ss:$16 sps:$4 sm:$0xff]   ;;  %v10362_v51 = vld [vmem:[%s14663_s1 + $0xde0] ss:$16 sps:$4 sm:$0xff]  }
 0x184   :  { %6884 = vmatprep.subr.bf16.mxu0 %v10280_v52  ;;  %7732 = vmatprep.subr.bf16.mxu1 %v10283_v49  ;;  %v10365_v52 = vld [vmem:[%s14663_s1 + $0xde8] ss:$16 sps:$4 sm:$0xff]   ;;  %v10370_v49 = vld [vmem:[%s14663_s1 + $0xe04] ss:$16 sps:$4 sm:$0xff]  }
 0x185   :  { %6871 = vmatprep.mubr.bf16.mxu0 %v8379_v54  ;;  %7719 = vmatprep.mubr.bf16.mxu1 %v8379_v54  ;;  %v68_v54 = vld [vmem:[%s14664_s0 + $0x1b0] sm:$0xff] }
 0x187   :  { %6885 = vmatpush1.bf16.msra.mxu0 %v10278_v50  ;;  %7733 = vmatpush1.bf16.msra.mxu1 %v10281_v53  ;;  %v10373_v50 = vld [vmem:[%s14663_s1 + $0xe0c] ss:$16 sps:$4 sm:$0xff]   ;;  %v52_v53 = vld [vmem:[%s14664_s0 + $0x130] sm:$0xff] }
 0x188   :  { %6886 = vmatprep.subr.bf16.mxu0 %v10286_v55  ;;  %7734 = vmatprep.subr.bf16.mxu1 %v10289_v56  ;;  %v8348_v55 = vcombine.low %v12549_v57, %v12554_v58  ;;  %v10368_v56 = vld [vmem:[%s14663_s1 + $0xe00] ss:$16 sps:$4 sm:$0xff]   ;;  %v10379_v57 = vld [vmem:[%s14663_s1 + $0xe2c] ss:$16 sps:$4 sm:$0xff]  }
 0x189   :  { %v10374_v58 = vld [vmem:[%s14663_s1 + $0xe20] ss:$16 sps:$4 sm:$0xff]  }
 0x18a   :  { %6872 = vmatmul.mubr.bf16.gmra.mrb[4].mxu0 %v8378_v59  ;;  %7720 = vmatmul.mubr.bf16.gmra.mrb[4].mxu1 %v8378_v59  ;;  %v10371_v59 = vld [vmem:[%s14663_s1 + $0xe08] ss:$16 sps:$4 sm:$0xff]  }
 0x18b   :  { %6887 = vmatpush1.bf16.msra.mxu0 %v10284_v60  ;;  %7735 = vmatpush1.bf16.msra.mxu1 %v10287_v61  ;;  %v10376_v60 = vld [vmem:[%s14663_s1 + $0xe24] ss:$16 sps:$4 sm:$0xff]   ;;  %v10377_v61 = vld [vmem:[%s14663_s1 + $0xe28] ss:$16 sps:$4 sm:$0xff]  }
 0x18c   :  { %6888 = vmatprep.subr.bf16.mxu0 %v10292_v62  ;;  %7736 = vmatprep.subr.bf16.mxu1 %v10295_v63  ;;  %v8381_v62 = vcombine.high %v52_v53, %v68_v54  ;;  %v10382_v63 = vld [vmem:[%s14663_s1 + $0xe44] ss:$16 sps:$4 sm:$0xff]  }
 0x18d   :  { %6914 = vmatprep.mubr.bf16.mxu0 %v8349_v0  ;;  %7762 = vmatprep.mubr.bf16.mxu1 %v8349_v0  ;;  %v10385_v0 = vld [vmem:[%s14663_s1 + $0xe4c] ss:$16 sps:$4 sm:$0xff]  }
 0x18f   :  { %6889 = vmatpush1.bf16.msra.mxu0 %v10290_v1  ;;  %7737 = vmatpush1.bf16.msra.mxu1 %v10293_v2  ;;  %v12761_v1 = vld [vmem:[%s14664_s0 + $0x38] sm:$0xff] }
 0x190   :  { %6890 = vmatprep.subr.bf16.mxu0 %v10298_v3  ;;  %7738 = vmatprep.subr.bf16.mxu1 %v10301_v4  ;;  %v12766_v2 = vld [vmem:[%s14664_s0 + $0xb8] sm:$0xff]  ;;  %v8380_v3 = vcombine.low %v52_v53, %v68_v54  ;;  %v10380_v4 = vld [vmem:[%s14663_s1 + $0xe40] ss:$16 sps:$4 sm:$0xff]  }
 0x191   :  { %v10452_v53 = vld [vmem:[%s14663_s1 + $0xfc0] ss:$16 sps:$4 sm:$0xff]   ;;  %v10455_v54 = vld [vmem:[%s14663_s1 + $0xfc8] ss:$16 sps:$4 sm:$0xff]  }
 0x193   :  { %6891 = vmatpush1.bf16.msra.mxu0 %v10296_v5  ;;  %7739 = vmatpush1.bf16.msra.mxu1 %v10299_v6  ;;  %v10383_v5 = vld [vmem:[%s14663_s1 + $0xe48] ss:$16 sps:$4 sm:$0xff]   ;;  %v10388_v6 = vld [vmem:[%s14663_s1 + $0xe64] ss:$16 sps:$4 sm:$0xff]  }
 0x194   :  { %6892 = vmatprep.subr.bf16.mxu0 %v10304_v7  ;;  %7740 = vmatprep.subr.bf16.mxu1 %v10307_v8  ;;  %v10391_v7 = vld [vmem:[%s14663_s1 + $0xe6c] ss:$16 sps:$4 sm:$0xff]   ;;  %v8351_v8 = vcombine.high %v12761_v1, %v12766_v2 }
 0x197   :  { %6893 = vmatpush1.bf16.msra.mxu0 %v10302_v9  ;;  %7741 = vmatpush1.bf16.msra.mxu1 %v10305_v10  ;;  %v10386_v9 = vld [vmem:[%s14663_s1 + $0xe60] ss:$16 sps:$4 sm:$0xff]   ;;  %v10389_v10 = vld [vmem:[%s14663_s1 + $0xe68] ss:$16 sps:$4 sm:$0xff]  }
 0x198   :  { %6894 = vmatprep.subr.bf16.mxu0 %v10310_v11  ;;  %7742 = vmatprep.subr.bf16.mxu1 %v10313_v12  ;;  %v10394_v11 = vld [vmem:[%s14663_s1 + $0xe84] ss:$16 sps:$4 sm:$0xff]   ;;  %v10397_v12 = vld [vmem:[%s14663_s1 + $0xe8c] ss:$16 sps:$4 sm:$0xff]  }
 0x19b   :  { %6895 = vmatpush1.bf16.msra.mxu0 %v10308_v13  ;;  %7743 = vmatpush1.bf16.msra.mxu1 %v10311_v14  ;;  %v10392_v13 = vld [vmem:[%s14663_s1 + $0xe80] ss:$16 sps:$4 sm:$0xff]   ;;  %v10395_v14 = vld [vmem:[%s14663_s1 + $0xe88] ss:$16 sps:$4 sm:$0xff]  }
 0x19c   :  { %6896 = vmatprep.subr.bf16.mxu0 %v10316_v15  ;;  %7744 = vmatprep.subr.bf16.mxu1 %v10319_v16  ;;  %v10400_v15 = vld [vmem:[%s14663_s1 + $0xea4] ss:$16 sps:$4 sm:$0xff]   ;;  %v10403_v16 = vld [vmem:[%s14663_s1 + $0xeac] ss:$16 sps:$4 sm:$0xff]  }
 0x19f   :  { %6897 = vmatpush1.bf16.msra.mxu0 %v10314_v17  ;;  %7745 = vmatpush1.bf16.msra.mxu1 %v10317_v18  ;;  %v10398_v17 = vld [vmem:[%s14663_s1 + $0xea0] ss:$16 sps:$4 sm:$0xff]   ;;  %v10401_v18 = vld [vmem:[%s14663_s1 + $0xea8] ss:$16 sps:$4 sm:$0xff]  }
 0x1a0   :  { %6898 = vmatprep.subr.bf16.mxu0 %v10322_v19  ;;  %7746 = vmatprep.subr.bf16.mxu1 %v10325_v20  ;;  %v10406_v19 = vld [vmem:[%s14663_s1 + $0xec4] ss:$16 sps:$4 sm:$0xff]   ;;  %v10409_v20 = vld [vmem:[%s14663_s1 + $0xecc] ss:$16 sps:$4 sm:$0xff]  }
 0x1a3   :  { %6899 = vmatpush1.bf16.msra.mxu0 %v10320_v21  ;;  %7747 = vmatpush1.bf16.msra.mxu1 %v10323_v22  ;;  %v10404_v21 = vld [vmem:[%s14663_s1 + $0xec0] ss:$16 sps:$4 sm:$0xff]   ;;  %v10407_v22 = vld [vmem:[%s14663_s1 + $0xec8] ss:$16 sps:$4 sm:$0xff]  }
 0x1a4   :  { %6900 = vmatprep.subr.bf16.mxu0 %v10328_v23  ;;  %7748 = vmatprep.subr.bf16.mxu1 %v10331_v24  ;;  %v10412_v23 = vld [vmem:[%s14663_s1 + $0xee4] ss:$16 sps:$4 sm:$0xff]   ;;  %v10415_v24 = vld [vmem:[%s14663_s1 + $0xeec] ss:$16 sps:$4 sm:$0xff]  }
 0x1a7   :  { %6901 = vmatpush1.bf16.msra.mxu0 %v10326_v26  ;;  %7749 = vmatpush1.bf16.msra.mxu1 %v10329_v25  ;;  %v10410_v26 = vld [vmem:[%s14663_s1 + $0xee0] ss:$16 sps:$4 sm:$0xff]   ;;  %v10413_v25 = vld [vmem:[%s14663_s1 + $0xee8] ss:$16 sps:$4 sm:$0xff]  }
 0x1a8   :  { %6902 = vmatprep.subr.bf16.mxu0 %v10334_v27  ;;  %7750 = vmatprep.subr.bf16.mxu1 %v10337_v28  ;;  %v10418_v27 = vld [vmem:[%s14663_s1 + $0xf04] ss:$16 sps:$4 sm:$0xff]   ;;  %v10421_v28 = vld [vmem:[%s14663_s1 + $0xf0c] ss:$16 sps:$4 sm:$0xff]  }
 0x1ab   :  { %6903 = vmatpush1.bf16.msra.mxu0 %v10332_v29  ;;  %7751 = vmatpush1.bf16.msra.mxu1 %v10335_v30  ;;  %v10416_v29 = vld [vmem:[%s14663_s1 + $0xf00] ss:$16 sps:$4 sm:$0xff]   ;;  %v10419_v30 = vld [vmem:[%s14663_s1 + $0xf08] ss:$16 sps:$4 sm:$0xff]  }
 0x1ac   :  { %6904 = vmatprep.subr.bf16.mxu0 %v10340_v31  ;;  %7752 = vmatprep.subr.bf16.mxu1 %v10343_v32  ;;  %v10424_v31 = vld [vmem:[%s14663_s1 + $0xf24] ss:$16 sps:$4 sm:$0xff]   ;;  %v10427_v32 = vld [vmem:[%s14663_s1 + $0xf2c] ss:$16 sps:$4 sm:$0xff]  }
 0x1af   :  { %6905 = vmatpush1.bf16.msra.mxu0 %v10338_v34  ;;  %7753 = vmatpush1.bf16.msra.mxu1 %v10341_v36  ;;  %v10422_v34 = vld [vmem:[%s14663_s1 + $0xf20] ss:$16 sps:$4 sm:$0xff]   ;;  %v10425_v36 = vld [vmem:[%s14663_s1 + $0xf28] ss:$16 sps:$4 sm:$0xff]  }
 0x1b0   :  { %6906 = vmatprep.subr.bf16.mxu0 %v10346_v33  ;;  %7754 = vmatprep.subr.bf16.mxu1 %v10349_v35  ;;  %v10430_v33 = vld [vmem:[%s14663_s1 + $0xf44] ss:$16 sps:$4 sm:$0xff]   ;;  %v10433_v35 = vld [vmem:[%s14663_s1 + $0xf4c] ss:$16 sps:$4 sm:$0xff]  }
 0x1b3   :  { %6907 = vmatpush1.bf16.msra.mxu0 %v10344_v37  ;;  %7755 = vmatpush1.bf16.msra.mxu1 %v10347_v38  ;;  %v10428_v37 = vld [vmem:[%s14663_s1 + $0xf40] ss:$16 sps:$4 sm:$0xff]   ;;  %v10431_v38 = vld [vmem:[%s14663_s1 + $0xf48] ss:$16 sps:$4 sm:$0xff]  }
 0x1b4   :  { %6908 = vmatprep.subr.bf16.mxu0 %v10352_v39  ;;  %7756 = vmatprep.subr.bf16.mxu1 %v10355_v40  ;;  %v10436_v39 = vld [vmem:[%s14663_s1 + $0xf64] ss:$16 sps:$4 sm:$0xff]   ;;  %v10439_v40 = vld [vmem:[%s14663_s1 + $0xf6c] ss:$16 sps:$4 sm:$0xff]  }
 0x1b7   :  { %6909 = vmatpush1.bf16.msra.mxu0 %v10350_v42  ;;  %7757 = vmatpush1.bf16.msra.mxu1 %v10353_v44  ;;  %v10434_v42 = vld [vmem:[%s14663_s1 + $0xf60] ss:$16 sps:$4 sm:$0xff]   ;;  %v10437_v44 = vld [vmem:[%s14663_s1 + $0xf68] ss:$16 sps:$4 sm:$0xff]  }
 0x1b8   :  { %6910 = vmatprep.subr.bf16.mxu0 %v10358_v41  ;;  %7758 = vmatprep.subr.bf16.mxu1 %v10361_v43  ;;  %v10442_v41 = vld [vmem:[%s14663_s1 + $0xf84] ss:$16 sps:$4 sm:$0xff]   ;;  %v10445_v43 = vld [vmem:[%s14663_s1 + $0xf8c] ss:$16 sps:$4 sm:$0xff]  }
 0x1bb   :  { %6911 = vmatpush1.bf16.msra.mxu0 %v10356_v45  ;;  %7759 = vmatpush1.bf16.msra.mxu1 %v10359_v46  ;;  %v10440_v45 = vld [vmem:[%s14663_s1 + $0xf80] ss:$16 sps:$4 sm:$0xff]   ;;  %v10443_v46 = vld [vmem:[%s14663_s1 + $0xf88] ss:$16 sps:$4 sm:$0xff]  }
 0x1bc   :  { %6912 = vmatprep.subr.bf16.mxu0 %v10364_v47  ;;  %7760 = vmatprep.subr.bf16.mxu1 %v10367_v48  ;;  %v10448_v47 = vld [vmem:[%s14663_s1 + $0xfa4] ss:$16 sps:$4 sm:$0xff]   ;;  %v10451_v48 = vld [vmem:[%s14663_s1 + $0xfac] ss:$16 sps:$4 sm:$0xff]  }
 0x1bf   :  { %6913 = vmatpush1.bf16.msra.mxu0 %v10362_v51  ;;  %7761 = vmatpush1.bf16.msra.mxu1 %v10365_v52  ;;  %v10446_v51 = vld [vmem:[%s14663_s1 + $0xfa0] ss:$16 sps:$4 sm:$0xff]   ;;  %v10449_v52 = vld [vmem:[%s14663_s1 + $0xfa8] ss:$16 sps:$4 sm:$0xff]  }
 0x1c0   :  { %6935 = vmatprep.subr.bf16.mxu0 %v10370_v49  ;;  %7783 = vmatprep.subr.bf16.mxu1 %v10373_v50  ;;  %v10454_v49 = vld [vmem:[%s14663_s1 + $0xfc4] ss:$16 sps:$4 sm:$0xff]   ;;  %v10457_v50 = vld [vmem:[%s14663_s1 + $0xfcc] ss:$16 sps:$4 sm:$0xff]  }
 0x1c2   :  { %6915 = vmatmul.mubr.bf16.vlgmr.msra.gmra.mrb[0].mxu0 %v8348_v55  ;;  %7763 = vmatmul.mubr.bf16.vlgmr.msra.gmra.mrb[0].mxu1 %v8348_v55  ;;  %v10460_v55 = vld [vmem:[%s14663_s1 + $0xfe4] ss:$16 sps:$4 sm:$0xff]  }
 0x1c3   :  { %6936 = vmatpush1.bf16.msra.mxu0 %v10368_v56  ;;  %7784 = vmatpush1.bf16.msra.mxu1 %v10371_v59  ;;  %v10463_v56 = vld [vmem:[%s14663_s1 + $0xfec] ss:$16 sps:$4 sm:$0xff]   ;;  %v10458_v59 = vld [vmem:[%s14663_s1 + $0xfe0] ss:$16 sps:$4 sm:$0xff]  }
 0x1c4   :  { %6937 = vmatprep.subr.bf16.mxu0 %v10376_v60  ;;  %7785 = vmatprep.subr.bf16.mxu1 %v10379_v57  ;;  %v10461_v60 = vld [vmem:[%s14663_s1 + $0xfe8] ss:$16 sps:$4 sm:$0xff]   ;;  %v10466_v57 = vld [vmem:[%s14663_s1 + $0x1004] ss:$16 sps:$4 sm:$0xff]  }
 0x1c5   :  { %6924 = vmatprep.mubr.bf16.mxu0 %v8381_v62  ;;  %7772 = vmatprep.mubr.bf16.mxu1 %v8381_v62  ;;  %v69_v62 = vld [vmem:[%s14664_s0 + $0x1b8] sm:$0xff] }
 0x1c7   :  { %6938 = vmatpush1.bf16.msra.mxu0 %v10374_v58  ;;  %7786 = vmatpush1.bf16.msra.mxu1 %v10377_v61  ;;  %v10469_v58 = vld [vmem:[%s14663_s1 + $0x100c] ss:$16 sps:$4 sm:$0xff]  }
 0x1c8   :  { %6939 = vmatprep.subr.bf16.mxu0 %v10382_v63  ;;  %7787 = vmatprep.subr.bf16.mxu1 %v10385_v0  ;;  %v53_v61 = vld [vmem:[%s14664_s0 + $0x138] sm:$0xff]  ;;  %v8350_v63 = vcombine.low %v12761_v1, %v12766_v2  ;;  %v10464_v0 = vld [vmem:[%s14663_s1 + $0x1000] ss:$16 sps:$4 sm:$0xff]  }
 0x1c9   :  { %v10475_v1 = vld [vmem:[%s14663_s1 + $0x102c] ss:$16 sps:$4 sm:$0xff]   ;;  %v10470_v2 = vld [vmem:[%s14663_s1 + $0x1020] ss:$16 sps:$4 sm:$0xff]  }
 0x1ca   :  { %6925 = vmatmul.mubr.bf16.gmra.mrb[4].mxu0 %v8380_v3  ;;  %7773 = vmatmul.mubr.bf16.gmra.mrb[4].mxu1 %v8380_v3  ;;  %v10467_v3 = vld [vmem:[%s14663_s1 + $0x1008] ss:$16 sps:$4 sm:$0xff]  }
 0x1cb   :  { %6940 = vmatpush1.bf16.msra.mxu0 %v10380_v4  ;;  %7788 = vmatpush1.bf16.msra.mxu1 %v10383_v5  ;;  %v10472_v4 = vld [vmem:[%s14663_s1 + $0x1024] ss:$16 sps:$4 sm:$0xff]   ;;  %v10473_v5 = vld [vmem:[%s14663_s1 + $0x1028] ss:$16 sps:$4 sm:$0xff]  }
 0x1cc   :  { %6941 = vmatprep.subr.bf16.mxu0 %v10388_v6  ;;  %7789 = vmatprep.subr.bf16.mxu1 %v10391_v7  ;;  %v8383_v6 = vcombine.high %v53_v61, %v69_v62  ;;  %v10478_v7 = vld [vmem:[%s14663_s1 + $0x1044] ss:$16 sps:$4 sm:$0xff]  }
 0x1cd   :  { %6967 = vmatprep.mubr.bf16.mxu0 %v8351_v8  ;;  %7815 = vmatprep.mubr.bf16.mxu1 %v8351_v8  ;;  %v10481_v8 = vld [vmem:[%s14663_s1 + $0x104c] ss:$16 sps:$4 sm:$0xff]  }
 0x1cf   :  { %6942 = vmatpush1.bf16.msra.mxu0 %v10386_v9  ;;  %7790 = vmatpush1.bf16.msra.mxu1 %v10389_v10  ;;  %v12973_v9 = vld [vmem:[%s14664_s0 + $0x40] sm:$0xff] }
 0x1d0   :  { %6943 = vmatprep.subr.bf16.mxu0 %v10394_v11  ;;  %7791 = vmatprep.subr.bf16.mxu1 %v10397_v12  ;;  %v12978_v10 = vld [vmem:[%s14664_s0 + $0xc0] sm:$0xff]  ;;  %v8382_v11 = vcombine.low %v53_v61, %v69_v62  ;;  %v10551_v62 = vld [vmem:[%s14663_s1 + $0x11c8] ss:$16 sps:$4 sm:$0xff]  }
 0x1d1   :  { %v10476_v12 = vld [vmem:[%s14663_s1 + $0x1040] ss:$16 sps:$4 sm:$0xff]  }
 0x1d2   :  { %v10548_v61 = vld [vmem:[%s14663_s1 + $0x11c0] ss:$16 sps:$4 sm:$0xff]  }
 0x1d3   :  { %6944 = vmatpush1.bf16.msra.mxu0 %v10392_v13  ;;  %7792 = vmatpush1.bf16.msra.mxu1 %v10395_v14  ;;  %v10479_v13 = vld [vmem:[%s14663_s1 + $0x1048] ss:$16 sps:$4 sm:$0xff]   ;;  %v10484_v14 = vld [vmem:[%s14663_s1 + $0x1064] ss:$16 sps:$4 sm:$0xff]  }
 0x1d4   :  { %6945 = vmatprep.subr.bf16.mxu0 %v10400_v15  ;;  %7793 = vmatprep.subr.bf16.mxu1 %v10403_v16  ;;  %v10487_v15 = vld [vmem:[%s14663_s1 + $0x106c] ss:$16 sps:$4 sm:$0xff]   ;;  %v8353_v16 = vcombine.high %v12973_v9, %v12978_v10 }
 0x1d7   :  { %6946 = vmatpush1.bf16.msra.mxu0 %v10398_v17  ;;  %7794 = vmatpush1.bf16.msra.mxu1 %v10401_v18  ;;  %v10482_v17 = vld [vmem:[%s14663_s1 + $0x1060] ss:$16 sps:$4 sm:$0xff]   ;;  %v10485_v18 = vld [vmem:[%s14663_s1 + $0x1068] ss:$16 sps:$4 sm:$0xff]  }
 0x1d8   :  { %6947 = vmatprep.subr.bf16.mxu0 %v10406_v19  ;;  %7795 = vmatprep.subr.bf16.mxu1 %v10409_v20  ;;  %v10490_v19 = vld [vmem:[%s14663_s1 + $0x1084] ss:$16 sps:$4 sm:$0xff]   ;;  %v10493_v20 = vld [vmem:[%s14663_s1 + $0x108c] ss:$16 sps:$4 sm:$0xff]  }
 0x1db   :  { %6948 = vmatpush1.bf16.msra.mxu0 %v10404_v21  ;;  %7796 = vmatpush1.bf16.msra.mxu1 %v10407_v22  ;;  %v10488_v21 = vld [vmem:[%s14663_s1 + $0x1080] ss:$16 sps:$4 sm:$0xff]   ;;  %v10491_v22 = vld [vmem:[%s14663_s1 + $0x1088] ss:$16 sps:$4 sm:$0xff]  }
 0x1dc   :  { %6949 = vmatprep.subr.bf16.mxu0 %v10412_v23  ;;  %7797 = vmatprep.subr.bf16.mxu1 %v10415_v24  ;;  %v10496_v23 = vld [vmem:[%s14663_s1 + $0x10a4] ss:$16 sps:$4 sm:$0xff]   ;;  %v10499_v24 = vld [vmem:[%s14663_s1 + $0x10ac] ss:$16 sps:$4 sm:$0xff]  }
 0x1df   :  { %6950 = vmatpush1.bf16.msra.mxu0 %v10410_v26  ;;  %7798 = vmatpush1.bf16.msra.mxu1 %v10413_v25  ;;  %v10494_v26 = vld [vmem:[%s14663_s1 + $0x10a0] ss:$16 sps:$4 sm:$0xff]   ;;  %v10497_v25 = vld [vmem:[%s14663_s1 + $0x10a8] ss:$16 sps:$4 sm:$0xff]  }
 0x1e0   :  { %6951 = vmatprep.subr.bf16.mxu0 %v10418_v27  ;;  %7799 = vmatprep.subr.bf16.mxu1 %v10421_v28  ;;  %v10502_v27 = vld [vmem:[%s14663_s1 + $0x10c4] ss:$16 sps:$4 sm:$0xff]   ;;  %v10505_v28 = vld [vmem:[%s14663_s1 + $0x10cc] ss:$16 sps:$4 sm:$0xff]  }
 0x1e3   :  { %6952 = vmatpush1.bf16.msra.mxu0 %v10416_v29  ;;  %7800 = vmatpush1.bf16.msra.mxu1 %v10419_v30  ;;  %v10500_v29 = vld [vmem:[%s14663_s1 + $0x10c0] ss:$16 sps:$4 sm:$0xff]   ;;  %v10503_v30 = vld [vmem:[%s14663_s1 + $0x10c8] ss:$16 sps:$4 sm:$0xff]  }
 0x1e4   :  { %6953 = vmatprep.subr.bf16.mxu0 %v10424_v31  ;;  %7801 = vmatprep.subr.bf16.mxu1 %v10427_v32  ;;  %v10508_v31 = vld [vmem:[%s14663_s1 + $0x10e4] ss:$16 sps:$4 sm:$0xff]   ;;  %v10511_v32 = vld [vmem:[%s14663_s1 + $0x10ec] ss:$16 sps:$4 sm:$0xff]  }
 0x1e7   :  { %6954 = vmatpush1.bf16.msra.mxu0 %v10422_v34  ;;  %7802 = vmatpush1.bf16.msra.mxu1 %v10425_v36  ;;  %v10506_v34 = vld [vmem:[%s14663_s1 + $0x10e0] ss:$16 sps:$4 sm:$0xff]   ;;  %v10509_v36 = vld [vmem:[%s14663_s1 + $0x10e8] ss:$16 sps:$4 sm:$0xff]  }
 0x1e8   :  { %6955 = vmatprep.subr.bf16.mxu0 %v10430_v33  ;;  %7803 = vmatprep.subr.bf16.mxu1 %v10433_v35  ;;  %v10514_v33 = vld [vmem:[%s14663_s1 + $0x1104] ss:$16 sps:$4 sm:$0xff]   ;;  %v10517_v35 = vld [vmem:[%s14663_s1 + $0x110c] ss:$16 sps:$4 sm:$0xff]  }
 0x1eb   :  { %6956 = vmatpush1.bf16.msra.mxu0 %v10428_v37  ;;  %7804 = vmatpush1.bf16.msra.mxu1 %v10431_v38  ;;  %v10512_v37 = vld [vmem:[%s14663_s1 + $0x1100] ss:$16 sps:$4 sm:$0xff]   ;;  %v10515_v38 = vld [vmem:[%s14663_s1 + $0x1108] ss:$16 sps:$4 sm:$0xff]  }
 0x1ec   :  { %6957 = vmatprep.subr.bf16.mxu0 %v10436_v39  ;;  %7805 = vmatprep.subr.bf16.mxu1 %v10439_v40  ;;  %v10520_v39 = vld [vmem:[%s14663_s1 + $0x1124] ss:$16 sps:$4 sm:$0xff]   ;;  %v10523_v40 = vld [vmem:[%s14663_s1 + $0x112c] ss:$16 sps:$4 sm:$0xff]  }
 0x1ef   :  { %6958 = vmatpush1.bf16.msra.mxu0 %v10434_v42  ;;  %7806 = vmatpush1.bf16.msra.mxu1 %v10437_v44  ;;  %v10518_v42 = vld [vmem:[%s14663_s1 + $0x1120] ss:$16 sps:$4 sm:$0xff]   ;;  %v10521_v44 = vld [vmem:[%s14663_s1 + $0x1128] ss:$16 sps:$4 sm:$0xff]  }
 0x1f0   :  { %6959 = vmatprep.subr.bf16.mxu0 %v10442_v41  ;;  %7807 = vmatprep.subr.bf16.mxu1 %v10445_v43  ;;  %v10526_v41 = vld [vmem:[%s14663_s1 + $0x1144] ss:$16 sps:$4 sm:$0xff]   ;;  %v10529_v43 = vld [vmem:[%s14663_s1 + $0x114c] ss:$16 sps:$4 sm:$0xff]  }
 0x1f3   :  { %6960 = vmatpush1.bf16.msra.mxu0 %v10440_v45  ;;  %7808 = vmatpush1.bf16.msra.mxu1 %v10443_v46  ;;  %v10524_v45 = vld [vmem:[%s14663_s1 + $0x1140] ss:$16 sps:$4 sm:$0xff]   ;;  %v10527_v46 = vld [vmem:[%s14663_s1 + $0x1148] ss:$16 sps:$4 sm:$0xff]  }
 0x1f4   :  { %6961 = vmatprep.subr.bf16.mxu0 %v10448_v47  ;;  %7809 = vmatprep.subr.bf16.mxu1 %v10451_v48  ;;  %v10532_v47 = vld [vmem:[%s14663_s1 + $0x1164] ss:$16 sps:$4 sm:$0xff]   ;;  %v10535_v48 = vld [vmem:[%s14663_s1 + $0x116c] ss:$16 sps:$4 sm:$0xff]  }
 0x1f7   :  { %6962 = vmatpush1.bf16.msra.mxu0 %v10446_v51  ;;  %7810 = vmatpush1.bf16.msra.mxu1 %v10449_v52  ;;  %v10530_v51 = vld [vmem:[%s14663_s1 + $0x1160] ss:$16 sps:$4 sm:$0xff]   ;;  %v10533_v52 = vld [vmem:[%s14663_s1 + $0x1168] ss:$16 sps:$4 sm:$0xff]  }
 0x1f8   :  { %6963 = vmatprep.subr.bf16.mxu0 %v10454_v49  ;;  %7811 = vmatprep.subr.bf16.mxu1 %v10457_v50  ;;  %v10538_v49 = vld [vmem:[%s14663_s1 + $0x1184] ss:$16 sps:$4 sm:$0xff]   ;;  %v10541_v50 = vld [vmem:[%s14663_s1 + $0x118c] ss:$16 sps:$4 sm:$0xff]  }
 0x1fb   :  { %6964 = vmatpush1.bf16.msra.mxu0 %v10452_v53  ;;  %7812 = vmatpush1.bf16.msra.mxu1 %v10455_v54  ;;  %v10536_v53 = vld [vmem:[%s14663_s1 + $0x1180] ss:$16 sps:$4 sm:$0xff]   ;;  %v10539_v54 = vld [vmem:[%s14663_s1 + $0x1188] ss:$16 sps:$4 sm:$0xff]  }
 0x1fc   :  { %6965 = vmatprep.subr.bf16.mxu0 %v10460_v55  ;;  %7813 = vmatprep.subr.bf16.mxu1 %v10463_v56  ;;  %v10544_v55 = vld [vmem:[%s14663_s1 + $0x11a4] ss:$16 sps:$4 sm:$0xff]   ;;  %v10547_v56 = vld [vmem:[%s14663_s1 + $0x11ac] ss:$16 sps:$4 sm:$0xff]  }
 0x1ff   :  { %6966 = vmatpush1.bf16.msra.mxu0 %v10458_v59  ;;  %7814 = vmatpush1.bf16.msra.mxu1 %v10461_v60  ;;  %v10542_v59 = vld [vmem:[%s14663_s1 + $0x11a0] ss:$16 sps:$4 sm:$0xff]   ;;  %v10545_v60 = vld [vmem:[%s14663_s1 + $0x11a8] ss:$16 sps:$4 sm:$0xff]  }
 0x200   :  { %6988 = vmatprep.subr.bf16.mxu0 %v10466_v57  ;;  %7836 = vmatprep.subr.bf16.mxu1 %v10469_v58  ;;  %v10550_v57 = vld [vmem:[%s14663_s1 + $0x11c4] ss:$16 sps:$4 sm:$0xff]   ;;  %v10553_v58 = vld [vmem:[%s14663_s1 + $0x11cc] ss:$16 sps:$4 sm:$0xff]  }
 0x202   :  { %6968 = vmatmul.mubr.bf16.vlgmr.msra.gmra.mrb[0].mxu0 %v8350_v63  ;;  %7816 = vmatmul.mubr.bf16.vlgmr.msra.gmra.mrb[0].mxu1 %v8350_v63  ;;  %v10556_v63 = vld [vmem:[%s14663_s1 + $0x11e4] ss:$16 sps:$4 sm:$0xff]  }
 0x203   :  { %6989 = vmatpush1.bf16.msra.mxu0 %v10464_v0  ;;  %7837 = vmatpush1.bf16.msra.mxu1 %v10467_v3  ;;  %v10559_v0 = vld [vmem:[%s14663_s1 + $0x11ec] ss:$16 sps:$4 sm:$0xff]   ;;  %v10554_v3 = vld [vmem:[%s14663_s1 + $0x11e0] ss:$16 sps:$4 sm:$0xff]  }
 0x204   :  { %6990 = vmatprep.subr.bf16.mxu0 %v10472_v4  ;;  %7838 = vmatprep.subr.bf16.mxu1 %v10475_v1  ;;  %v10557_v4 = vld [vmem:[%s14663_s1 + $0x11e8] ss:$16 sps:$4 sm:$0xff]   ;;  %v10562_v1 = vld [vmem:[%s14663_s1 + $0x1204] ss:$16 sps:$4 sm:$0xff]  }
 0x205   :  { %6977 = vmatprep.mubr.bf16.mxu0 %v8383_v6  ;;  %7825 = vmatprep.mubr.bf16.mxu1 %v8383_v6  ;;  %v70_v6 = vld [vmem:[%s14664_s0 + $0x1c0] sm:$0xff] }
 0x207   :  { %6991 = vmatpush1.bf16.msra.mxu0 %v10470_v2  ;;  %7839 = vmatpush1.bf16.msra.mxu1 %v10473_v5  ;;  %v10565_v2 = vld [vmem:[%s14663_s1 + $0x120c] ss:$16 sps:$4 sm:$0xff]   ;;  %v54_v5 = vld [vmem:[%s14664_s0 + $0x140] sm:$0xff] }
 0x208   :  { %6992 = vmatprep.subr.bf16.mxu0 %v10478_v7  ;;  %7840 = vmatprep.subr.bf16.mxu1 %v10481_v8  ;;  %v8352_v7 = vcombine.low %v12973_v9, %v12978_v10  ;;  %v10560_v8 = vld [vmem:[%s14663_s1 + $0x1200] ss:$16 sps:$4 sm:$0xff]   ;;  %v10571_v9 = vld [vmem:[%s14663_s1 + $0x122c] ss:$16 sps:$4 sm:$0xff]  }
 0x209   :  { %v10566_v10 = vld [vmem:[%s14663_s1 + $0x1220] ss:$16 sps:$4 sm:$0xff]  }
 0x20a   :  { %6978 = vmatmul.mubr.bf16.gmra.mrb[4].mxu0 %v8382_v11  ;;  %7826 = vmatmul.mubr.bf16.gmra.mrb[4].mxu1 %v8382_v11  ;;  %v10563_v11 = vld [vmem:[%s14663_s1 + $0x1208] ss:$16 sps:$4 sm:$0xff]  }
 0x20b   :  { %6993 = vmatpush1.bf16.msra.mxu0 %v10476_v12  ;;  %7841 = vmatpush1.bf16.msra.mxu1 %v10479_v13  ;;  %v10568_v12 = vld [vmem:[%s14663_s1 + $0x1224] ss:$16 sps:$4 sm:$0xff]   ;;  %v10569_v13 = vld [vmem:[%s14663_s1 + $0x1228] ss:$16 sps:$4 sm:$0xff]  }
 0x20c   :  { %6994 = vmatprep.subr.bf16.mxu0 %v10484_v14  ;;  %7842 = vmatprep.subr.bf16.mxu1 %v10487_v15  ;;  %v8385_v14 = vcombine.high %v54_v5, %v70_v6  ;;  %v10574_v15 = vld [vmem:[%s14663_s1 + $0x1244] ss:$16 sps:$4 sm:$0xff]  }
 0x20d   :  { %7020 = vmatprep.mubr.bf16.mxu0 %v8353_v16  ;;  %7868 = vmatprep.mubr.bf16.mxu1 %v8353_v16  ;;  %v10577_v16 = vld [vmem:[%s14663_s1 + $0x124c] ss:$16 sps:$4 sm:$0xff]  }
 0x20f   :  { %6995 = vmatpush1.bf16.msra.mxu0 %v10482_v17  ;;  %7843 = vmatpush1.bf16.msra.mxu1 %v10485_v18  ;;  %v13185_v17 = vld [vmem:[%s14664_s0 + $0x48] sm:$0xff] }
 0x210   :  { %6996 = vmatprep.subr.bf16.mxu0 %v10490_v19  ;;  %7844 = vmatprep.subr.bf16.mxu1 %v10493_v20  ;;  %v13190_v18 = vld [vmem:[%s14664_s0 + $0xc8] sm:$0xff]  ;;  %v8384_v19 = vcombine.low %v54_v5, %v70_v6  ;;  %v10572_v20 = vld [vmem:[%s14663_s1 + $0x1240] ss:$16 sps:$4 sm:$0xff]  }
 0x211   :  { %v10644_v5 = vld [vmem:[%s14663_s1 + $0x13c0] ss:$16 sps:$4 sm:$0xff]   ;;  %v10647_v6 = vld [vmem:[%s14663_s1 + $0x13c8] ss:$16 sps:$4 sm:$0xff]  }
 0x213   :  { %6997 = vmatpush1.bf16.msra.mxu0 %v10488_v21  ;;  %7845 = vmatpush1.bf16.msra.mxu1 %v10491_v22  ;;  %v10575_v21 = vld [vmem:[%s14663_s1 + $0x1248] ss:$16 sps:$4 sm:$0xff]   ;;  %v10580_v22 = vld [vmem:[%s14663_s1 + $0x1264] ss:$16 sps:$4 sm:$0xff]  }
 0x214   :  { %6998 = vmatprep.subr.bf16.mxu0 %v10496_v23  ;;  %7846 = vmatprep.subr.bf16.mxu1 %v10499_v24  ;;  %v10583_v23 = vld [vmem:[%s14663_s1 + $0x126c] ss:$16 sps:$4 sm:$0xff]   ;;  %v8355_v24 = vcombine.high %v13185_v17, %v13190_v18 }
 0x217   :  { %6999 = vmatpush1.bf16.msra.mxu0 %v10494_v26  ;;  %7847 = vmatpush1.bf16.msra.mxu1 %v10497_v25  ;;  %v10578_v26 = vld [vmem:[%s14663_s1 + $0x1260] ss:$16 sps:$4 sm:$0xff]   ;;  %v10581_v25 = vld [vmem:[%s14663_s1 + $0x1268] ss:$16 sps:$4 sm:$0xff]  }
 0x218   :  { %7000 = vmatprep.subr.bf16.mxu0 %v10502_v27  ;;  %7848 = vmatprep.subr.bf16.mxu1 %v10505_v28  ;;  %v10586_v27 = vld [vmem:[%s14663_s1 + $0x1284] ss:$16 sps:$4 sm:$0xff]   ;;  %v10589_v28 = vld [vmem:[%s14663_s1 + $0x128c] ss:$16 sps:$4 sm:$0xff]  }
 0x21b   :  { %7001 = vmatpush1.bf16.msra.mxu0 %v10500_v29  ;;  %7849 = vmatpush1.bf16.msra.mxu1 %v10503_v30  ;;  %v10584_v29 = vld [vmem:[%s14663_s1 + $0x1280] ss:$16 sps:$4 sm:$0xff]   ;;  %v10587_v30 = vld [vmem:[%s14663_s1 + $0x1288] ss:$16 sps:$4 sm:$0xff]  }
 0x21c   :  { %7002 = vmatprep.subr.bf16.mxu0 %v10508_v31  ;;  %7850 = vmatprep.subr.bf16.mxu1 %v10511_v32  ;;  %v10592_v31 = vld [vmem:[%s14663_s1 + $0x12a4] ss:$16 sps:$4 sm:$0xff]   ;;  %v10595_v32 = vld [vmem:[%s14663_s1 + $0x12ac] ss:$16 sps:$4 sm:$0xff]  }
 0x21f   :  { %7003 = vmatpush1.bf16.msra.mxu0 %v10506_v34  ;;  %7851 = vmatpush1.bf16.msra.mxu1 %v10509_v36  ;;  %v10590_v34 = vld [vmem:[%s14663_s1 + $0x12a0] ss:$16 sps:$4 sm:$0xff]   ;;  %v10593_v36 = vld [vmem:[%s14663_s1 + $0x12a8] ss:$16 sps:$4 sm:$0xff]  }
 0x220   :  { %7004 = vmatprep.subr.bf16.mxu0 %v10514_v33  ;;  %7852 = vmatprep.subr.bf16.mxu1 %v10517_v35  ;;  %v10598_v33 = vld [vmem:[%s14663_s1 + $0x12c4] ss:$16 sps:$4 sm:$0xff]   ;;  %v10601_v35 = vld [vmem:[%s14663_s1 + $0x12cc] ss:$16 sps:$4 sm:$0xff]  }
 0x223   :  { %7005 = vmatpush1.bf16.msra.mxu0 %v10512_v37  ;;  %7853 = vmatpush1.bf16.msra.mxu1 %v10515_v38  ;;  %v10596_v37 = vld [vmem:[%s14663_s1 + $0x12c0] ss:$16 sps:$4 sm:$0xff]   ;;  %v10599_v38 = vld [vmem:[%s14663_s1 + $0x12c8] ss:$16 sps:$4 sm:$0xff]  }
 0x224   :  { %7006 = vmatprep.subr.bf16.mxu0 %v10520_v39  ;;  %7854 = vmatprep.subr.bf16.mxu1 %v10523_v40  ;;  %v10604_v39 = vld [vmem:[%s14663_s1 + $0x12e4] ss:$16 sps:$4 sm:$0xff]   ;;  %v10607_v40 = vld [vmem:[%s14663_s1 + $0x12ec] ss:$16 sps:$4 sm:$0xff]  }
 0x227   :  { %7007 = vmatpush1.bf16.msra.mxu0 %v10518_v42  ;;  %7855 = vmatpush1.bf16.msra.mxu1 %v10521_v44  ;;  %v10602_v42 = vld [vmem:[%s14663_s1 + $0x12e0] ss:$16 sps:$4 sm:$0xff]   ;;  %v10605_v44 = vld [vmem:[%s14663_s1 + $0x12e8] ss:$16 sps:$4 sm:$0xff]  }
 0x228   :  { %7008 = vmatprep.subr.bf16.mxu0 %v10526_v41  ;;  %7856 = vmatprep.subr.bf16.mxu1 %v10529_v43  ;;  %v10610_v41 = vld [vmem:[%s14663_s1 + $0x1304] ss:$16 sps:$4 sm:$0xff]   ;;  %v10613_v43 = vld [vmem:[%s14663_s1 + $0x130c] ss:$16 sps:$4 sm:$0xff]  }
 0x22b   :  { %7009 = vmatpush1.bf16.msra.mxu0 %v10524_v45  ;;  %7857 = vmatpush1.bf16.msra.mxu1 %v10527_v46  ;;  %v10608_v45 = vld [vmem:[%s14663_s1 + $0x1300] ss:$16 sps:$4 sm:$0xff]   ;;  %v10611_v46 = vld [vmem:[%s14663_s1 + $0x1308] ss:$16 sps:$4 sm:$0xff]  }
 0x22c   :  { %7010 = vmatprep.subr.bf16.mxu0 %v10532_v47  ;;  %7858 = vmatprep.subr.bf16.mxu1 %v10535_v48  ;;  %v10616_v47 = vld [vmem:[%s14663_s1 + $0x1324] ss:$16 sps:$4 sm:$0xff]   ;;  %v10619_v48 = vld [vmem:[%s14663_s1 + $0x132c] ss:$16 sps:$4 sm:$0xff]  }
 0x22f   :  { %7011 = vmatpush1.bf16.msra.mxu0 %v10530_v51  ;;  %7859 = vmatpush1.bf16.msra.mxu1 %v10533_v52  ;;  %v10614_v51 = vld [vmem:[%s14663_s1 + $0x1320] ss:$16 sps:$4 sm:$0xff]   ;;  %v10617_v52 = vld [vmem:[%s14663_s1 + $0x1328] ss:$16 sps:$4 sm:$0xff]  }
 0x230   :  { %7012 = vmatprep.subr.bf16.mxu0 %v10538_v49  ;;  %7860 = vmatprep.subr.bf16.mxu1 %v10541_v50  ;;  %v10622_v49 = vld [vmem:[%s14663_s1 + $0x1344] ss:$16 sps:$4 sm:$0xff]   ;;  %v10625_v50 = vld [vmem:[%s14663_s1 + $0x134c] ss:$16 sps:$4 sm:$0xff]  }
 0x233   :  { %7013 = vmatpush1.bf16.msra.mxu0 %v10536_v53  ;;  %7861 = vmatpush1.bf16.msra.mxu1 %v10539_v54  ;;  %v10620_v53 = vld [vmem:[%s14663_s1 + $0x1340] ss:$16 sps:$4 sm:$0xff]   ;;  %v10623_v54 = vld [vmem:[%s14663_s1 + $0x1348] ss:$16 sps:$4 sm:$0xff]  }
 0x234   :  { %7014 = vmatprep.subr.bf16.mxu0 %v10544_v55  ;;  %7862 = vmatprep.subr.bf16.mxu1 %v10547_v56  ;;  %v10628_v55 = vld [vmem:[%s14663_s1 + $0x1364] ss:$16 sps:$4 sm:$0xff]   ;;  %v10631_v56 = vld [vmem:[%s14663_s1 + $0x136c] ss:$16 sps:$4 sm:$0xff]  }
 0x237   :  { %7015 = vmatpush1.bf16.msra.mxu0 %v10542_v59  ;;  %7863 = vmatpush1.bf16.msra.mxu1 %v10545_v60  ;;  %v10626_v59 = vld [vmem:[%s14663_s1 + $0x1360] ss:$16 sps:$4 sm:$0xff]   ;;  %v10629_v60 = vld [vmem:[%s14663_s1 + $0x1368] ss:$16 sps:$4 sm:$0xff]  }
 0x238   :  { %7016 = vmatprep.subr.bf16.mxu0 %v10550_v57  ;;  %7864 = vmatprep.subr.bf16.mxu1 %v10553_v58  ;;  %v10634_v57 = vld [vmem:[%s14663_s1 + $0x1384] ss:$16 sps:$4 sm:$0xff]   ;;  %v10637_v58 = vld [vmem:[%s14663_s1 + $0x138c] ss:$16 sps:$4 sm:$0xff]  }
 0x23b   :  { %7017 = vmatpush1.bf16.msra.mxu0 %v10548_v61  ;;  %7865 = vmatpush1.bf16.msra.mxu1 %v10551_v62  ;;  %v10632_v61 = vld [vmem:[%s14663_s1 + $0x1380] ss:$16 sps:$4 sm:$0xff]   ;;  %v10635_v62 = vld [vmem:[%s14663_s1 + $0x1388] ss:$16 sps:$4 sm:$0xff]  }
 0x23c   :  { %7018 = vmatprep.subr.bf16.mxu0 %v10556_v63  ;;  %7866 = vmatprep.subr.bf16.mxu1 %v10559_v0  ;;  %v10640_v63 = vld [vmem:[%s14663_s1 + $0x13a4] ss:$16 sps:$4 sm:$0xff]   ;;  %v10643_v0 = vld [vmem:[%s14663_s1 + $0x13ac] ss:$16 sps:$4 sm:$0xff]  }
 0x23f   :  { %7019 = vmatpush1.bf16.msra.mxu0 %v10554_v3  ;;  %7867 = vmatpush1.bf16.msra.mxu1 %v10557_v4  ;;  %v10638_v3 = vld [vmem:[%s14663_s1 + $0x13a0] ss:$16 sps:$4 sm:$0xff]   ;;  %v10641_v4 = vld [vmem:[%s14663_s1 + $0x13a8] ss:$16 sps:$4 sm:$0xff]  }
 0x240   :  { %7041 = vmatprep.subr.bf16.mxu0 %v10562_v1  ;;  %7889 = vmatprep.subr.bf16.mxu1 %v10565_v2  ;;  %v10646_v1 = vld [vmem:[%s14663_s1 + $0x13c4] ss:$16 sps:$4 sm:$0xff]   ;;  %v10649_v2 = vld [vmem:[%s14663_s1 + $0x13cc] ss:$16 sps:$4 sm:$0xff]  }
 0x242   :  { %7021 = vmatmul.mubr.bf16.vlgmr.msra.gmra.mrb[0].mxu0 %v8352_v7  ;;  %7869 = vmatmul.mubr.bf16.vlgmr.msra.gmra.mrb[0].mxu1 %v8352_v7  ;;  %v10652_v7 = vld [vmem:[%s14663_s1 + $0x13e4] ss:$16 sps:$4 sm:$0xff]  }
 0x243   :  { %7042 = vmatpush1.bf16.msra.mxu0 %v10560_v8  ;;  %7890 = vmatpush1.bf16.msra.mxu1 %v10563_v11  ;;  %v10655_v8 = vld [vmem:[%s14663_s1 + $0x13ec] ss:$16 sps:$4 sm:$0xff]   ;;  %v10650_v11 = vld [vmem:[%s14663_s1 + $0x13e0] ss:$16 sps:$4 sm:$0xff]  }
 0x244   :  { %7043 = vmatprep.subr.bf16.mxu0 %v10568_v12  ;;  %7891 = vmatprep.subr.bf16.mxu1 %v10571_v9  ;;  %v10653_v12 = vld [vmem:[%s14663_s1 + $0x13e8] ss:$16 sps:$4 sm:$0xff]   ;;  %v10658_v9 = vld [vmem:[%s14663_s1 + $0x1404] ss:$16 sps:$4 sm:$0xff]  }
 0x245   :  { %7030 = vmatprep.mubr.bf16.mxu0 %v8385_v14  ;;  %7878 = vmatprep.mubr.bf16.mxu1 %v8385_v14  ;;  %v55_v14 = vld [vmem:[%s14664_s0 + $0x148] sm:$0xff] }
 0x247   :  { %7044 = vmatpush1.bf16.msra.mxu0 %v10566_v10  ;;  %7892 = vmatpush1.bf16.msra.mxu1 %v10569_v13  ;;  %v10661_v10 = vld [vmem:[%s14663_s1 + $0x140c] ss:$16 sps:$4 sm:$0xff]   ;;  %v8354_v13 = vcombine.low %v13185_v17, %v13190_v18  ;;  %v10664_v17 = vld [vmem:[%s14663_s1 + $0x1424] ss:$16 sps:$4 sm:$0xff]  }
 0x248   :  { %7045 = vmatprep.subr.bf16.mxu0 %v10574_v15  ;;  %7893 = vmatprep.subr.bf16.mxu1 %v10577_v16  ;;  %v71_v15 = vld [vmem:[%s14664_s0 + $0x1c8] sm:$0xff]  ;;  %v10656_v16 = vld [vmem:[%s14663_s1 + $0x1400] ss:$16 sps:$4 sm:$0xff]  }
 0x249   :  { %v10667_v18 = vld [vmem:[%s14663_s1 + $0x142c] ss:$16 sps:$4 sm:$0xff]  }
 0x24a   :  { %7031 = vmatmul.mubr.bf16.gmra.mrb[4].mxu0 %v8384_v19  ;;  %7879 = vmatmul.mubr.bf16.gmra.mrb[4].mxu1 %v8384_v19  ;;  %v10659_v19 = vld [vmem:[%s14663_s1 + $0x1408] ss:$16 sps:$4 sm:$0xff]  }
 0x24b   :  { %7046 = vmatpush1.bf16.msra.mxu0 %v10572_v20  ;;  %7894 = vmatpush1.bf16.msra.mxu1 %v10575_v21  ;;  %v8387_v20 = vcombine.high %v55_v14, %v71_v15  ;;  %v10662_v21 = vld [vmem:[%s14663_s1 + $0x1420] ss:$16 sps:$4 sm:$0xff]  }
 0x24c   :  { %7047 = vmatprep.subr.bf16.mxu0 %v10580_v22  ;;  %7895 = vmatprep.subr.bf16.mxu1 %v10583_v23  ;;  %v10665_v22 = vld [vmem:[%s14663_s1 + $0x1428] ss:$16 sps:$4 sm:$0xff]   ;;  %v10670_v23 = vld [vmem:[%s14663_s1 + $0x1444] ss:$16 sps:$4 sm:$0xff]  }
 0x24d   :  { %7073 = vmatprep.mubr.bf16.mxu0 %v8355_v24  ;;  %7921 = vmatprep.mubr.bf16.mxu1 %v8355_v24  ;;  %v10673_v24 = vld [vmem:[%s14663_s1 + $0x144c] ss:$16 sps:$4 sm:$0xff]  }
 0x24f   :  { %7048 = vmatpush1.bf16.msra.mxu0 %v10578_v26  ;;  %7896 = vmatpush1.bf16.msra.mxu1 %v10581_v25  ;;  %v8386_v26 = vcombine.low %v55_v14, %v71_v15  ;;  %v13397_v25 = vld [vmem:[%s14664_s0 + $0x50] sm:$0xff]  ;;  %v10743_v14 = vld [vmem:[%s14663_s1 + $0x15c8] ss:$16 sps:$4 sm:$0xff]  }
 0x250   :  { %7049 = vmatprep.subr.bf16.mxu0 %v10586_v27  ;;  %7897 = vmatprep.subr.bf16.mxu1 %v10589_v28  ;;  %v13402_v27 = vld [vmem:[%s14664_s0 + $0xd0] sm:$0xff] }
 0x251   :  { %v10668_v28 = vld [vmem:[%s14663_s1 + $0x1440] ss:$16 sps:$4 sm:$0xff]   ;;  %v10748_v15 = vld [vmem:[%s14663_s1 + $0x15e4] ss:$16 sps:$4 sm:$0xff]  }
 0x253   :  { %7050 = vmatpush1.bf16.msra.mxu0 %v10584_v29  ;;  %7898 = vmatpush1.bf16.msra.mxu1 %v10587_v30  ;;  %v10671_v29 = vld [vmem:[%s14663_s1 + $0x1448] ss:$16 sps:$4 sm:$0xff]   ;;  %v10676_v30 = vld [vmem:[%s14663_s1 + $0x1464] ss:$16 sps:$4 sm:$0xff]  }
 0x254   :  { %7051 = vmatprep.subr.bf16.mxu0 %v10592_v31  ;;  %7899 = vmatprep.subr.bf16.mxu1 %v10595_v32  ;;  %v10679_v31 = vld [vmem:[%s14663_s1 + $0x146c] ss:$16 sps:$4 sm:$0xff]   ;;  %v8357_v32 = vcombine.high %v13397_v25, %v13402_v27 }
 0x257   :  { %7052 = vmatpush1.bf16.msra.mxu0 %v10590_v34  ;;  %7900 = vmatpush1.bf16.msra.mxu1 %v10593_v36  ;;  %v10674_v34 = vld [vmem:[%s14663_s1 + $0x1460] ss:$16 sps:$4 sm:$0xff]   ;;  %v10677_v36 = vld [vmem:[%s14663_s1 + $0x1468] ss:$16 sps:$4 sm:$0xff]  }
 0x258   :  { %7053 = vmatprep.subr.bf16.mxu0 %v10598_v33  ;;  %7901 = vmatprep.subr.bf16.mxu1 %v10601_v35  ;;  %v10682_v33 = vld [vmem:[%s14663_s1 + $0x1484] ss:$16 sps:$4 sm:$0xff]   ;;  %v10685_v35 = vld [vmem:[%s14663_s1 + $0x148c] ss:$16 sps:$4 sm:$0xff]  }
 0x25b   :  { %7054 = vmatpush1.bf16.msra.mxu0 %v10596_v37  ;;  %7902 = vmatpush1.bf16.msra.mxu1 %v10599_v38  ;;  %v10680_v37 = vld [vmem:[%s14663_s1 + $0x1480] ss:$16 sps:$4 sm:$0xff]   ;;  %v10683_v38 = vld [vmem:[%s14663_s1 + $0x1488] ss:$16 sps:$4 sm:$0xff]  }
 0x25c   :  { %7055 = vmatprep.subr.bf16.mxu0 %v10604_v39  ;;  %7903 = vmatprep.subr.bf16.mxu1 %v10607_v40  ;;  %v10688_v39 = vld [vmem:[%s14663_s1 + $0x14a4] ss:$16 sps:$4 sm:$0xff]   ;;  %v10691_v40 = vld [vmem:[%s14663_s1 + $0x14ac] ss:$16 sps:$4 sm:$0xff]  }
 0x25f   :  { %7056 = vmatpush1.bf16.msra.mxu0 %v10602_v42  ;;  %7904 = vmatpush1.bf16.msra.mxu1 %v10605_v44  ;;  %v10686_v42 = vld [vmem:[%s14663_s1 + $0x14a0] ss:$16 sps:$4 sm:$0xff]   ;;  %v10689_v44 = vld [vmem:[%s14663_s1 + $0x14a8] ss:$16 sps:$4 sm:$0xff]  }
 0x260   :  { %7057 = vmatprep.subr.bf16.mxu0 %v10610_v41  ;;  %7905 = vmatprep.subr.bf16.mxu1 %v10613_v43  ;;  %v10694_v41 = vld [vmem:[%s14663_s1 + $0x14c4] ss:$16 sps:$4 sm:$0xff]   ;;  %v10697_v43 = vld [vmem:[%s14663_s1 + $0x14cc] ss:$16 sps:$4 sm:$0xff]  }
 0x263   :  { %7058 = vmatpush1.bf16.msra.mxu0 %v10608_v45  ;;  %7906 = vmatpush1.bf16.msra.mxu1 %v10611_v46  ;;  %v10692_v45 = vld [vmem:[%s14663_s1 + $0x14c0] ss:$16 sps:$4 sm:$0xff]   ;;  %v10695_v46 = vld [vmem:[%s14663_s1 + $0x14c8] ss:$16 sps:$4 sm:$0xff]  }
 0x264   :  { %7059 = vmatprep.subr.bf16.mxu0 %v10616_v47  ;;  %7907 = vmatprep.subr.bf16.mxu1 %v10619_v48  ;;  %v10700_v47 = vld [vmem:[%s14663_s1 + $0x14e4] ss:$16 sps:$4 sm:$0xff]   ;;  %v10703_v48 = vld [vmem:[%s14663_s1 + $0x14ec] ss:$16 sps:$4 sm:$0xff]  }
 0x267   :  { %7060 = vmatpush1.bf16.msra.mxu0 %v10614_v51  ;;  %7908 = vmatpush1.bf16.msra.mxu1 %v10617_v52  ;;  %v10698_v51 = vld [vmem:[%s14663_s1 + $0x14e0] ss:$16 sps:$4 sm:$0xff]   ;;  %v10701_v52 = vld [vmem:[%s14663_s1 + $0x14e8] ss:$16 sps:$4 sm:$0xff]  }
 0x268   :  { %7061 = vmatprep.subr.bf16.mxu0 %v10622_v49  ;;  %7909 = vmatprep.subr.bf16.mxu1 %v10625_v50  ;;  %v10706_v49 = vld [vmem:[%s14663_s1 + $0x1504] ss:$16 sps:$4 sm:$0xff]   ;;  %v10709_v50 = vld [vmem:[%s14663_s1 + $0x150c] ss:$16 sps:$4 sm:$0xff]  }
 0x26b   :  { %7062 = vmatpush1.bf16.msra.mxu0 %v10620_v53  ;;  %7910 = vmatpush1.bf16.msra.mxu1 %v10623_v54  ;;  %v10704_v53 = vld [vmem:[%s14663_s1 + $0x1500] ss:$16 sps:$4 sm:$0xff]   ;;  %v10707_v54 = vld [vmem:[%s14663_s1 + $0x1508] ss:$16 sps:$4 sm:$0xff]  }
 0x26c   :  { %7063 = vmatprep.subr.bf16.mxu0 %v10628_v55  ;;  %7911 = vmatprep.subr.bf16.mxu1 %v10631_v56  ;;  %v10712_v55 = vld [vmem:[%s14663_s1 + $0x1524] ss:$16 sps:$4 sm:$0xff]   ;;  %v10715_v56 = vld [vmem:[%s14663_s1 + $0x152c] ss:$16 sps:$4 sm:$0xff]  }
 0x26f   :  { %7064 = vmatpush1.bf16.msra.mxu0 %v10626_v59  ;;  %7912 = vmatpush1.bf16.msra.mxu1 %v10629_v60  ;;  %v10710_v59 = vld [vmem:[%s14663_s1 + $0x1520] ss:$16 sps:$4 sm:$0xff]   ;;  %v10713_v60 = vld [vmem:[%s14663_s1 + $0x1528] ss:$16 sps:$4 sm:$0xff]  }
 0x270   :  { %7065 = vmatprep.subr.bf16.mxu0 %v10634_v57  ;;  %7913 = vmatprep.subr.bf16.mxu1 %v10637_v58  ;;  %v10718_v57 = vld [vmem:[%s14663_s1 + $0x1544] ss:$16 sps:$4 sm:$0xff]   ;;  %v10721_v58 = vld [vmem:[%s14663_s1 + $0x154c] ss:$16 sps:$4 sm:$0xff]  }
 0x273   :  { %7066 = vmatpush1.bf16.msra.mxu0 %v10632_v61  ;;  %7914 = vmatpush1.bf16.msra.mxu1 %v10635_v62  ;;  %v10716_v61 = vld [vmem:[%s14663_s1 + $0x1540] ss:$16 sps:$4 sm:$0xff]   ;;  %v10719_v62 = vld [vmem:[%s14663_s1 + $0x1548] ss:$16 sps:$4 sm:$0xff]  }
 0x274   :  { %7067 = vmatprep.subr.bf16.mxu0 %v10640_v63  ;;  %7915 = vmatprep.subr.bf16.mxu1 %v10643_v0  ;;  %v10724_v63 = vld [vmem:[%s14663_s1 + $0x1564] ss:$16 sps:$4 sm:$0xff]   ;;  %v10727_v0 = vld [vmem:[%s14663_s1 + $0x156c] ss:$16 sps:$4 sm:$0xff]  }
 0x277   :  { %7068 = vmatpush1.bf16.msra.mxu0 %v10638_v3  ;;  %7916 = vmatpush1.bf16.msra.mxu1 %v10641_v4  ;;  %v10722_v3 = vld [vmem:[%s14663_s1 + $0x1560] ss:$16 sps:$4 sm:$0xff]   ;;  %v10725_v4 = vld [vmem:[%s14663_s1 + $0x1568] ss:$16 sps:$4 sm:$0xff]  }
 0x278   :  { %7069 = vmatprep.subr.bf16.mxu0 %v10646_v1  ;;  %7917 = vmatprep.subr.bf16.mxu1 %v10649_v2  ;;  %v10730_v1 = vld [vmem:[%s14663_s1 + $0x1584] ss:$16 sps:$4 sm:$0xff]   ;;  %v10733_v2 = vld [vmem:[%s14663_s1 + $0x158c] ss:$16 sps:$4 sm:$0xff]  }
 0x27b   :  { %7070 = vmatpush1.bf16.msra.mxu0 %v10644_v5  ;;  %7918 = vmatpush1.bf16.msra.mxu1 %v10647_v6  ;;  %v10728_v5 = vld [vmem:[%s14663_s1 + $0x1580] ss:$16 sps:$4 sm:$0xff]   ;;  %v10731_v6 = vld [vmem:[%s14663_s1 + $0x1588] ss:$16 sps:$4 sm:$0xff]  }
 0x27c   :  { %7071 = vmatprep.subr.bf16.mxu0 %v10652_v7  ;;  %7919 = vmatprep.subr.bf16.mxu1 %v10655_v8  ;;  %v10736_v7 = vld [vmem:[%s14663_s1 + $0x15a4] ss:$16 sps:$4 sm:$0xff]   ;;  %v10739_v8 = vld [vmem:[%s14663_s1 + $0x15ac] ss:$16 sps:$4 sm:$0xff]  }
 0x27f   :  { %7072 = vmatpush1.bf16.msra.mxu0 %v10650_v11  ;;  %7920 = vmatpush1.bf16.msra.mxu1 %v10653_v12  ;;  %v10734_v11 = vld [vmem:[%s14663_s1 + $0x15a0] ss:$16 sps:$4 sm:$0xff]   ;;  %v10737_v12 = vld [vmem:[%s14663_s1 + $0x15a8] ss:$16 sps:$4 sm:$0xff]  }
 0x280   :  { %7094 = vmatprep.subr.bf16.mxu0 %v10658_v9  ;;  %7942 = vmatprep.subr.bf16.mxu1 %v10661_v10  ;;  %v10742_v9 = vld [vmem:[%s14663_s1 + $0x15c4] ss:$16 sps:$4 sm:$0xff]   ;;  %v10745_v10 = vld [vmem:[%s14663_s1 + $0x15cc] ss:$16 sps:$4 sm:$0xff]  }
 0x282   :  { %7074 = vmatmul.mubr.bf16.vlgmr.msra.gmra.mrb[0].mxu0 %v8354_v13  ;;  %7922 = vmatmul.mubr.bf16.vlgmr.msra.gmra.mrb[0].mxu1 %v8354_v13  ;;  %v10740_v13 = vld [vmem:[%s14663_s1 + $0x15c0] ss:$16 sps:$4 sm:$0xff]  }
 0x283   :  { %7095 = vmatpush1.bf16.msra.mxu0 %v10656_v16  ;;  %7943 = vmatpush1.bf16.msra.mxu1 %v10659_v19  ;;  %v10751_v16 = vld [vmem:[%s14663_s1 + $0x15ec] ss:$16 sps:$4 sm:$0xff]   ;;  %v10746_v19 = vld [vmem:[%s14663_s1 + $0x15e0] ss:$16 sps:$4 sm:$0xff]  }
 0x284   :  { %7096 = vmatprep.subr.bf16.mxu0 %v10664_v17  ;;  %7944 = vmatprep.subr.bf16.mxu1 %v10667_v18  ;;  %v10749_v17 = vld [vmem:[%s14663_s1 + $0x15e8] ss:$16 sps:$4 sm:$0xff]   ;;  %v10754_v18 = vld [vmem:[%s14663_s1 + $0x1604] ss:$16 sps:$4 sm:$0xff]  }
 0x285   :  { %7083 = vmatprep.mubr.bf16.mxu0 %v8387_v20  ;;  %7931 = vmatprep.mubr.bf16.mxu1 %v8387_v20  ;;  %v10757_v20 = vld [vmem:[%s14663_s1 + $0x160c] ss:$16 sps:$4 sm:$0xff]  }
 0x287   :  { %7097 = vmatpush1.bf16.msra.mxu0 %v10662_v21  ;;  %7945 = vmatpush1.bf16.msra.mxu1 %v10665_v22  ;;  %v8356_v21 = vcombine.low %v13397_v25, %v13402_v27  ;;  %v56_v22 = vld [vmem:[%s14664_s0 + $0x150] sm:$0xff]  ;;  %v10763_v27 = vld [vmem:[%s14663_s1 + $0x162c] ss:$16 sps:$4 sm:$0xff]  }
 0x288   :  { %7098 = vmatprep.subr.bf16.mxu0 %v10670_v23  ;;  %7946 = vmatprep.subr.bf16.mxu1 %v10673_v24  ;;  %v72_v23 = vld [vmem:[%s14664_s0 + $0x1d0] sm:$0xff] }
 0x289   :  { %v10752_v24 = vld [vmem:[%s14663_s1 + $0x1600] ss:$16 sps:$4 sm:$0xff]   ;;  %v10760_v25 = vld [vmem:[%s14663_s1 + $0x1624] ss:$16 sps:$4 sm:$0xff]  }
 0x28a   :  { %7084 = vmatmul.mubr.bf16.gmra.mrb[4].mxu0 %v8386_v26  ;;  %7932 = vmatmul.mubr.bf16.gmra.mrb[4].mxu1 %v8386_v26  ;;  %v10755_v26 = vld [vmem:[%s14663_s1 + $0x1608] ss:$16 sps:$4 sm:$0xff]  }
 0x28b   :  { %7099 = vmatpush1.bf16.msra.mxu0 %v10668_v28  ;;  %7947 = vmatpush1.bf16.msra.mxu1 %v10671_v29  ;;  %v8389_v28 = vcombine.high %v56_v22, %v72_v23  ;;  %v10758_v29 = vld [vmem:[%s14663_s1 + $0x1620] ss:$16 sps:$4 sm:$0xff]  }
 0x28c   :  { %7100 = vmatprep.subr.bf16.mxu0 %v10676_v30  ;;  %7948 = vmatprep.subr.bf16.mxu1 %v10679_v31  ;;  %v10761_v30 = vld [vmem:[%s14663_s1 + $0x1628] ss:$16 sps:$4 sm:$0xff]   ;;  %v10766_v31 = vld [vmem:[%s14663_s1 + $0x1644] ss:$16 sps:$4 sm:$0xff]  }
 0x28d   :  { %7126 = vmatprep.mubr.bf16.mxu0 %v8357_v32  ;;  %7974 = vmatprep.mubr.bf16.mxu1 %v8357_v32  ;;  %v10769_v32 = vld [vmem:[%s14663_s1 + $0x164c] ss:$16 sps:$4 sm:$0xff]  }
 0x28f   :  { %7101 = vmatpush1.bf16.msra.mxu0 %v10674_v34  ;;  %7949 = vmatpush1.bf16.msra.mxu1 %v10677_v36  ;;  %v8388_v34 = vcombine.low %v56_v22, %v72_v23  ;;  %v13609_v36 = vld [vmem:[%s14664_s0 + $0x58] sm:$0xff]  ;;  %v10844_v23 = vld [vmem:[%s14663_s1 + $0x17e4] ss:$16 sps:$4 sm:$0xff]  }
 0x290   :  { %7102 = vmatprep.subr.bf16.mxu0 %v10682_v33  ;;  %7950 = vmatprep.subr.bf16.mxu1 %v10685_v35  ;;  %v13614_v33 = vld [vmem:[%s14664_s0 + $0xd8] sm:$0xff]  ;;  %v10764_v35 = vld [vmem:[%s14663_s1 + $0x1640] ss:$16 sps:$4 sm:$0xff]  }
 0x291   :  { %v10839_v22 = vld [vmem:[%s14663_s1 + $0x17c8] ss:$16 sps:$4 sm:$0xff]  }
 0x293   :  { %7103 = vmatpush1.bf16.msra.mxu0 %v10680_v37  ;;  %7951 = vmatpush1.bf16.msra.mxu1 %v10683_v38  ;;  %v10767_v37 = vld [vmem:[%s14663_s1 + $0x1648] ss:$16 sps:$4 sm:$0xff]   ;;  %v10772_v38 = vld [vmem:[%s14663_s1 + $0x1664] ss:$16 sps:$4 sm:$0xff]  }
 0x294   :  { %7104 = vmatprep.subr.bf16.mxu0 %v10688_v39  ;;  %7952 = vmatprep.subr.bf16.mxu1 %v10691_v40  ;;  %v10775_v39 = vld [vmem:[%s14663_s1 + $0x166c] ss:$16 sps:$4 sm:$0xff]   ;;  %v8359_v40 = vcombine.high %v13609_v36, %v13614_v33 }
 0x297   :  { %7105 = vmatpush1.bf16.msra.mxu0 %v10686_v42  ;;  %7953 = vmatpush1.bf16.msra.mxu1 %v10689_v44  ;;  %v10770_v42 = vld [vmem:[%s14663_s1 + $0x1660] ss:$16 sps:$4 sm:$0xff]   ;;  %v10773_v44 = vld [vmem:[%s14663_s1 + $0x1668] ss:$16 sps:$4 sm:$0xff]  }
 0x298   :  { %7106 = vmatprep.subr.bf16.mxu0 %v10694_v41  ;;  %7954 = vmatprep.subr.bf16.mxu1 %v10697_v43  ;;  %v10778_v41 = vld [vmem:[%s14663_s1 + $0x1684] ss:$16 sps:$4 sm:$0xff]   ;;  %v10781_v43 = vld [vmem:[%s14663_s1 + $0x168c] ss:$16 sps:$4 sm:$0xff]  }
 0x29b   :  { %7107 = vmatpush1.bf16.msra.mxu0 %v10692_v45  ;;  %7955 = vmatpush1.bf16.msra.mxu1 %v10695_v46  ;;  %v10776_v45 = vld [vmem:[%s14663_s1 + $0x1680] ss:$16 sps:$4 sm:$0xff]   ;;  %v10779_v46 = vld [vmem:[%s14663_s1 + $0x1688] ss:$16 sps:$4 sm:$0xff]  }
 0x29c   :  { %7108 = vmatprep.subr.bf16.mxu0 %v10700_v47  ;;  %7956 = vmatprep.subr.bf16.mxu1 %v10703_v48  ;;  %v10784_v47 = vld [vmem:[%s14663_s1 + $0x16a4] ss:$16 sps:$4 sm:$0xff]   ;;  %v10787_v48 = vld [vmem:[%s14663_s1 + $0x16ac] ss:$16 sps:$4 sm:$0xff]  }
 0x29f   :  { %7109 = vmatpush1.bf16.msra.mxu0 %v10698_v51  ;;  %7957 = vmatpush1.bf16.msra.mxu1 %v10701_v52  ;;  %v10782_v51 = vld [vmem:[%s14663_s1 + $0x16a0] ss:$16 sps:$4 sm:$0xff]   ;;  %v10785_v52 = vld [vmem:[%s14663_s1 + $0x16a8] ss:$16 sps:$4 sm:$0xff]  }
 0x2a0   :  { %7110 = vmatprep.subr.bf16.mxu0 %v10706_v49  ;;  %7958 = vmatprep.subr.bf16.mxu1 %v10709_v50  ;;  %v10790_v49 = vld [vmem:[%s14663_s1 + $0x16c4] ss:$16 sps:$4 sm:$0xff]   ;;  %v10793_v50 = vld [vmem:[%s14663_s1 + $0x16cc] ss:$16 sps:$4 sm:$0xff]  }
 0x2a3   :  { %7111 = vmatpush1.bf16.msra.mxu0 %v10704_v53  ;;  %7959 = vmatpush1.bf16.msra.mxu1 %v10707_v54  ;;  %v10788_v53 = vld [vmem:[%s14663_s1 + $0x16c0] ss:$16 sps:$4 sm:$0xff]   ;;  %v10791_v54 = vld [vmem:[%s14663_s1 + $0x16c8] ss:$16 sps:$4 sm:$0xff]  }
 0x2a4   :  { %7112 = vmatprep.subr.bf16.mxu0 %v10712_v55  ;;  %7960 = vmatprep.subr.bf16.mxu1 %v10715_v56  ;;  %v10796_v55 = vld [vmem:[%s14663_s1 + $0x16e4] ss:$16 sps:$4 sm:$0xff]   ;;  %v10799_v56 = vld [vmem:[%s14663_s1 + $0x16ec] ss:$16 sps:$4 sm:$0xff]  }
 0x2a7   :  { %7113 = vmatpush1.bf16.msra.mxu0 %v10710_v59  ;;  %7961 = vmatpush1.bf16.msra.mxu1 %v10713_v60  ;;  %v10794_v59 = vld [vmem:[%s14663_s1 + $0x16e0] ss:$16 sps:$4 sm:$0xff]   ;;  %v10797_v60 = vld [vmem:[%s14663_s1 + $0x16e8] ss:$16 sps:$4 sm:$0xff]  }
 0x2a8   :  { %7114 = vmatprep.subr.bf16.mxu0 %v10718_v57  ;;  %7962 = vmatprep.subr.bf16.mxu1 %v10721_v58  ;;  %v10802_v57 = vld [vmem:[%s14663_s1 + $0x1704] ss:$16 sps:$4 sm:$0xff]   ;;  %v10805_v58 = vld [vmem:[%s14663_s1 + $0x170c] ss:$16 sps:$4 sm:$0xff]  }
 0x2ab   :  { %7115 = vmatpush1.bf16.msra.mxu0 %v10716_v61  ;;  %7963 = vmatpush1.bf16.msra.mxu1 %v10719_v62  ;;  %v10800_v61 = vld [vmem:[%s14663_s1 + $0x1700] ss:$16 sps:$4 sm:$0xff]   ;;  %v10803_v62 = vld [vmem:[%s14663_s1 + $0x1708] ss:$16 sps:$4 sm:$0xff]  }
 0x2ac   :  { %7116 = vmatprep.subr.bf16.mxu0 %v10724_v63  ;;  %7964 = vmatprep.subr.bf16.mxu1 %v10727_v0  ;;  %v10808_v63 = vld [vmem:[%s14663_s1 + $0x1724] ss:$16 sps:$4 sm:$0xff]   ;;  %v10811_v0 = vld [vmem:[%s14663_s1 + $0x172c] ss:$16 sps:$4 sm:$0xff]  }
 0x2af   :  { %7117 = vmatpush1.bf16.msra.mxu0 %v10722_v3  ;;  %7965 = vmatpush1.bf16.msra.mxu1 %v10725_v4  ;;  %v10806_v3 = vld [vmem:[%s14663_s1 + $0x1720] ss:$16 sps:$4 sm:$0xff]   ;;  %v10809_v4 = vld [vmem:[%s14663_s1 + $0x1728] ss:$16 sps:$4 sm:$0xff]  }
 0x2b0   :  { %7118 = vmatprep.subr.bf16.mxu0 %v10730_v1  ;;  %7966 = vmatprep.subr.bf16.mxu1 %v10733_v2  ;;  %v10814_v1 = vld [vmem:[%s14663_s1 + $0x1744] ss:$16 sps:$4 sm:$0xff]   ;;  %v10817_v2 = vld [vmem:[%s14663_s1 + $0x174c] ss:$16 sps:$4 sm:$0xff]  }
 0x2b3   :  { %7119 = vmatpush1.bf16.msra.mxu0 %v10728_v5  ;;  %7967 = vmatpush1.bf16.msra.mxu1 %v10731_v6  ;;  %v10812_v5 = vld [vmem:[%s14663_s1 + $0x1740] ss:$16 sps:$4 sm:$0xff]   ;;  %v10815_v6 = vld [vmem:[%s14663_s1 + $0x1748] ss:$16 sps:$4 sm:$0xff]  }
 0x2b4   :  { %7120 = vmatprep.subr.bf16.mxu0 %v10736_v7  ;;  %7968 = vmatprep.subr.bf16.mxu1 %v10739_v8  ;;  %v10820_v7 = vld [vmem:[%s14663_s1 + $0x1764] ss:$16 sps:$4 sm:$0xff]   ;;  %v10823_v8 = vld [vmem:[%s14663_s1 + $0x176c] ss:$16 sps:$4 sm:$0xff]  }
 0x2b7   :  { %7121 = vmatpush1.bf16.msra.mxu0 %v10734_v11  ;;  %7969 = vmatpush1.bf16.msra.mxu1 %v10737_v12  ;;  %v10818_v11 = vld [vmem:[%s14663_s1 + $0x1760] ss:$16 sps:$4 sm:$0xff]   ;;  %v10821_v12 = vld [vmem:[%s14663_s1 + $0x1768] ss:$16 sps:$4 sm:$0xff]  }
 0x2b8   :  { %7122 = vmatprep.subr.bf16.mxu0 %v10742_v9  ;;  %7970 = vmatprep.subr.bf16.mxu1 %v10745_v10  ;;  %v10826_v9 = vld [vmem:[%s14663_s1 + $0x1784] ss:$16 sps:$4 sm:$0xff]   ;;  %v10829_v10 = vld [vmem:[%s14663_s1 + $0x178c] ss:$16 sps:$4 sm:$0xff]  }
 0x2bb   :  { %7123 = vmatpush1.bf16.msra.mxu0 %v10740_v13  ;;  %7971 = vmatpush1.bf16.msra.mxu1 %v10743_v14  ;;  %v10824_v13 = vld [vmem:[%s14663_s1 + $0x1780] ss:$16 sps:$4 sm:$0xff]   ;;  %v10827_v14 = vld [vmem:[%s14663_s1 + $0x1788] ss:$16 sps:$4 sm:$0xff]  }
 0x2bc   :  { %7124 = vmatprep.subr.bf16.mxu0 %v10748_v15  ;;  %7972 = vmatprep.subr.bf16.mxu1 %v10751_v16  ;;  %v10832_v15 = vld [vmem:[%s14663_s1 + $0x17a4] ss:$16 sps:$4 sm:$0xff]   ;;  %v10835_v16 = vld [vmem:[%s14663_s1 + $0x17ac] ss:$16 sps:$4 sm:$0xff]  }
 0x2bf   :  { %7125 = vmatpush1.bf16.msra.mxu0 %v10746_v19  ;;  %7973 = vmatpush1.bf16.msra.mxu1 %v10749_v17  ;;  %v10830_v19 = vld [vmem:[%s14663_s1 + $0x17a0] ss:$16 sps:$4 sm:$0xff]   ;;  %v10833_v17 = vld [vmem:[%s14663_s1 + $0x17a8] ss:$16 sps:$4 sm:$0xff]  }
 0x2c0   :  { %7147 = vmatprep.subr.bf16.mxu0 %v10754_v18  ;;  %7995 = vmatprep.subr.bf16.mxu1 %v10757_v20  ;;  %v10838_v18 = vld [vmem:[%s14663_s1 + $0x17c4] ss:$16 sps:$4 sm:$0xff]   ;;  %v10841_v20 = vld [vmem:[%s14663_s1 + $0x17cc] ss:$16 sps:$4 sm:$0xff]  }
 0x2c2   :  { %7127 = vmatmul.mubr.bf16.vlgmr.msra.gmra.mrb[0].mxu0 %v8356_v21  ;;  %7975 = vmatmul.mubr.bf16.vlgmr.msra.gmra.mrb[0].mxu1 %v8356_v21  ;;  %v10836_v21 = vld [vmem:[%s14663_s1 + $0x17c0] ss:$16 sps:$4 sm:$0xff]  }
 0x2c3   :  { %7148 = vmatpush1.bf16.msra.mxu0 %v10752_v24  ;;  %7996 = vmatpush1.bf16.msra.mxu1 %v10755_v26  ;;  %v10847_v24 = vld [vmem:[%s14663_s1 + $0x17ec] ss:$16 sps:$4 sm:$0xff]   ;;  %v10842_v26 = vld [vmem:[%s14663_s1 + $0x17e0] ss:$16 sps:$4 sm:$0xff]  }
 0x2c4   :  { %7149 = vmatprep.subr.bf16.mxu0 %v10760_v25  ;;  %7997 = vmatprep.subr.bf16.mxu1 %v10763_v27  ;;  %v10845_v25 = vld [vmem:[%s14663_s1 + $0x17e8] ss:$16 sps:$4 sm:$0xff]   ;;  %v10850_v27 = vld [vmem:[%s14663_s1 + $0x1804] ss:$16 sps:$4 sm:$0xff]  }
 0x2c5   :  { %7136 = vmatprep.mubr.bf16.mxu0 %v8389_v28  ;;  %7984 = vmatprep.mubr.bf16.mxu1 %v8389_v28  ;;  %v10853_v28 = vld [vmem:[%s14663_s1 + $0x180c] ss:$16 sps:$4 sm:$0xff]  }
 0x2c7   :  { %7150 = vmatpush1.bf16.msra.mxu0 %v10758_v29  ;;  %7998 = vmatpush1.bf16.msra.mxu1 %v10761_v30  ;;  %v8358_v29 = vcombine.low %v13609_v36, %v13614_v33  ;;  %v57_v30 = vld [vmem:[%s14664_s0 + $0x158] sm:$0xff]  ;;  %v10856_v36 = vld [vmem:[%s14663_s1 + $0x1824] ss:$16 sps:$4 sm:$0xff]  }
 0x2c8   :  { %7151 = vmatprep.subr.bf16.mxu0 %v10766_v31  ;;  %7999 = vmatprep.subr.bf16.mxu1 %v10769_v32  ;;  %v73_v31 = vld [vmem:[%s14664_s0 + $0x1d8] sm:$0xff]  ;;  %v10848_v32 = vld [vmem:[%s14663_s1 + $0x1800] ss:$16 sps:$4 sm:$0xff]  }
 0x2c9   :  { %v10859_v33 = vld [vmem:[%s14663_s1 + $0x182c] ss:$16 sps:$4 sm:$0xff]  }
 0x2ca   :  { %7137 = vmatmul.mubr.bf16.gmra.mrb[4].mxu0 %v8388_v34  ;;  %7985 = vmatmul.mubr.bf16.gmra.mrb[4].mxu1 %v8388_v34  ;;  %v10851_v34 = vld [vmem:[%s14663_s1 + $0x1808] ss:$16 sps:$4 sm:$0xff]  }
 0x2cb   :  { %7152 = vmatpush1.bf16.msra.mxu0 %v10764_v35  ;;  %8000 = vmatpush1.bf16.msra.mxu1 %v10767_v37  ;;  %v8391_v35 = vcombine.high %v57_v30, %v73_v31  ;;  %v10854_v37 = vld [vmem:[%s14663_s1 + $0x1820] ss:$16 sps:$4 sm:$0xff]  }
 0x2cc   :  { %7153 = vmatprep.subr.bf16.mxu0 %v10772_v38  ;;  %8001 = vmatprep.subr.bf16.mxu1 %v10775_v39  ;;  %v10857_v38 = vld [vmem:[%s14663_s1 + $0x1828] ss:$16 sps:$4 sm:$0xff]   ;;  %v10862_v39 = vld [vmem:[%s14663_s1 + $0x1844] ss:$16 sps:$4 sm:$0xff]  }
 0x2cd   :  { %7179 = vmatprep.mubr.bf16.mxu0 %v8359_v40  ;;  %8027 = vmatprep.mubr.bf16.mxu1 %v8359_v40  ;;  %v10865_v40 = vld [vmem:[%s14663_s1 + $0x184c] ss:$16 sps:$4 sm:$0xff]  }
 0x2cf   :  { %7154 = vmatpush1.bf16.msra.mxu0 %v10770_v42  ;;  %8002 = vmatpush1.bf16.msra.mxu1 %v10773_v44  ;;  %v8390_v42 = vcombine.low %v57_v30, %v73_v31  ;;  %v13821_v44 = vld [vmem:[%s14664_s0 + $0x60] sm:$0xff]  ;;  %v10935_v30 = vld [vmem:[%s14663_s1 + $0x19c8] ss:$16 sps:$4 sm:$0xff]  }
 0x2d0   :  { %7155 = vmatprep.subr.bf16.mxu0 %v10778_v41  ;;  %8003 = vmatprep.subr.bf16.mxu1 %v10781_v43  ;;  %v13826_v41 = vld [vmem:[%s14664_s0 + $0xe0] sm:$0xff] }
 0x2d1   :  { %v10860_v43 = vld [vmem:[%s14663_s1 + $0x1840] ss:$16 sps:$4 sm:$0xff]   ;;  %v10940_v31 = vld [vmem:[%s14663_s1 + $0x19e4] ss:$16 sps:$4 sm:$0xff]  }
 0x2d3   :  { %7156 = vmatpush1.bf16.msra.mxu0 %v10776_v45  ;;  %8004 = vmatpush1.bf16.msra.mxu1 %v10779_v46  ;;  %v10863_v45 = vld [vmem:[%s14663_s1 + $0x1848] ss:$16 sps:$4 sm:$0xff]   ;;  %v10868_v46 = vld [vmem:[%s14663_s1 + $0x1864] ss:$16 sps:$4 sm:$0xff]  }
 0x2d4   :  { %7157 = vmatprep.subr.bf16.mxu0 %v10784_v47  ;;  %8005 = vmatprep.subr.bf16.mxu1 %v10787_v48  ;;  %v10871_v47 = vld [vmem:[%s14663_s1 + $0x186c] ss:$16 sps:$4 sm:$0xff]   ;;  %v8361_v48 = vcombine.high %v13821_v44, %v13826_v41 }
 0x2d7   :  { %7158 = vmatpush1.bf16.msra.mxu0 %v10782_v51  ;;  %8006 = vmatpush1.bf16.msra.mxu1 %v10785_v52  ;;  %v10866_v51 = vld [vmem:[%s14663_s1 + $0x1860] ss:$16 sps:$4 sm:$0xff]   ;;  %v10869_v52 = vld [vmem:[%s14663_s1 + $0x1868] ss:$16 sps:$4 sm:$0xff]  }
 0x2d8   :  { %7159 = vmatprep.subr.bf16.mxu0 %v10790_v49  ;;  %8007 = vmatprep.subr.bf16.mxu1 %v10793_v50  ;;  %v10874_v49 = vld [vmem:[%s14663_s1 + $0x1884] ss:$16 sps:$4 sm:$0xff]   ;;  %v10877_v50 = vld [vmem:[%s14663_s1 + $0x188c] ss:$16 sps:$4 sm:$0xff]  }
 0x2db   :  { %7160 = vmatpush1.bf16.msra.mxu0 %v10788_v53  ;;  %8008 = vmatpush1.bf16.msra.mxu1 %v10791_v54  ;;  %v10872_v53 = vld [vmem:[%s14663_s1 + $0x1880] ss:$16 sps:$4 sm:$0xff]   ;;  %v10875_v54 = vld [vmem:[%s14663_s1 + $0x1888] ss:$16 sps:$4 sm:$0xff]  }
 0x2dc   :  { %7161 = vmatprep.subr.bf16.mxu0 %v10796_v55  ;;  %8009 = vmatprep.subr.bf16.mxu1 %v10799_v56  ;;  %v10880_v55 = vld [vmem:[%s14663_s1 + $0x18a4] ss:$16 sps:$4 sm:$0xff]   ;;  %v10883_v56 = vld [vmem:[%s14663_s1 + $0x18ac] ss:$16 sps:$4 sm:$0xff]  }
 0x2df   :  { %7162 = vmatpush1.bf16.msra.mxu0 %v10794_v59  ;;  %8010 = vmatpush1.bf16.msra.mxu1 %v10797_v60  ;;  %v10878_v59 = vld [vmem:[%s14663_s1 + $0x18a0] ss:$16 sps:$4 sm:$0xff]   ;;  %v10881_v60 = vld [vmem:[%s14663_s1 + $0x18a8] ss:$16 sps:$4 sm:$0xff]  }
 0x2e0   :  { %7163 = vmatprep.subr.bf16.mxu0 %v10802_v57  ;;  %8011 = vmatprep.subr.bf16.mxu1 %v10805_v58  ;;  %v10886_v57 = vld [vmem:[%s14663_s1 + $0x18c4] ss:$16 sps:$4 sm:$0xff]   ;;  %v10889_v58 = vld [vmem:[%s14663_s1 + $0x18cc] ss:$16 sps:$4 sm:$0xff]  }
 0x2e3   :  { %7164 = vmatpush1.bf16.msra.mxu0 %v10800_v61  ;;  %8012 = vmatpush1.bf16.msra.mxu1 %v10803_v62  ;;  %v10884_v61 = vld [vmem:[%s14663_s1 + $0x18c0] ss:$16 sps:$4 sm:$0xff]   ;;  %v10887_v62 = vld [vmem:[%s14663_s1 + $0x18c8] ss:$16 sps:$4 sm:$0xff]  }
 0x2e4   :  { %7165 = vmatprep.subr.bf16.mxu0 %v10808_v63  ;;  %8013 = vmatprep.subr.bf16.mxu1 %v10811_v0  ;;  %v10892_v63 = vld [vmem:[%s14663_s1 + $0x18e4] ss:$16 sps:$4 sm:$0xff]   ;;  %v10895_v0 = vld [vmem:[%s14663_s1 + $0x18ec] ss:$16 sps:$4 sm:$0xff]  }
 0x2e7   :  { %7166 = vmatpush1.bf16.msra.mxu0 %v10806_v3  ;;  %8014 = vmatpush1.bf16.msra.mxu1 %v10809_v4  ;;  %v10890_v3 = vld [vmem:[%s14663_s1 + $0x18e0] ss:$16 sps:$4 sm:$0xff]   ;;  %v10893_v4 = vld [vmem:[%s14663_s1 + $0x18e8] ss:$16 sps:$4 sm:$0xff]  }
 0x2e8   :  { %7167 = vmatprep.subr.bf16.mxu0 %v10814_v1  ;;  %8015 = vmatprep.subr.bf16.mxu1 %v10817_v2  ;;  %v10898_v1 = vld [vmem:[%s14663_s1 + $0x1904] ss:$16 sps:$4 sm:$0xff]   ;;  %v10901_v2 = vld [vmem:[%s14663_s1 + $0x190c] ss:$16 sps:$4 sm:$0xff]  }
 0x2eb   :  { %7168 = vmatpush1.bf16.msra.mxu0 %v10812_v5  ;;  %8016 = vmatpush1.bf16.msra.mxu1 %v10815_v6  ;;  %v10896_v5 = vld [vmem:[%s14663_s1 + $0x1900] ss:$16 sps:$4 sm:$0xff]   ;;  %v10899_v6 = vld [vmem:[%s14663_s1 + $0x1908] ss:$16 sps:$4 sm:$0xff]  }
 0x2ec   :  { %7169 = vmatprep.subr.bf16.mxu0 %v10820_v7  ;;  %8017 = vmatprep.subr.bf16.mxu1 %v10823_v8  ;;  %v10904_v7 = vld [vmem:[%s14663_s1 + $0x1924] ss:$16 sps:$4 sm:$0xff]   ;;  %v10907_v8 = vld [vmem:[%s14663_s1 + $0x192c] ss:$16 sps:$4 sm:$0xff]  }
 0x2ef   :  { %7170 = vmatpush1.bf16.msra.mxu0 %v10818_v11  ;;  %8018 = vmatpush1.bf16.msra.mxu1 %v10821_v12  ;;  %v10902_v11 = vld [vmem:[%s14663_s1 + $0x1920] ss:$16 sps:$4 sm:$0xff]   ;;  %v10905_v12 = vld [vmem:[%s14663_s1 + $0x1928] ss:$16 sps:$4 sm:$0xff]  }
 0x2f0   :  { %7171 = vmatprep.subr.bf16.mxu0 %v10826_v9  ;;  %8019 = vmatprep.subr.bf16.mxu1 %v10829_v10  ;;  %v10910_v9 = vld [vmem:[%s14663_s1 + $0x1944] ss:$16 sps:$4 sm:$0xff]   ;;  %v10913_v10 = vld [vmem:[%s14663_s1 + $0x194c] ss:$16 sps:$4 sm:$0xff]  }
 0x2f3   :  { %7172 = vmatpush1.bf16.msra.mxu0 %v10824_v13  ;;  %8020 = vmatpush1.bf16.msra.mxu1 %v10827_v14  ;;  %v10908_v13 = vld [vmem:[%s14663_s1 + $0x1940] ss:$16 sps:$4 sm:$0xff]   ;;  %v10911_v14 = vld [vmem:[%s14663_s1 + $0x1948] ss:$16 sps:$4 sm:$0xff]  }
 0x2f4   :  { %7173 = vmatprep.subr.bf16.mxu0 %v10832_v15  ;;  %8021 = vmatprep.subr.bf16.mxu1 %v10835_v16  ;;  %v10916_v15 = vld [vmem:[%s14663_s1 + $0x1964] ss:$16 sps:$4 sm:$0xff]   ;;  %v10919_v16 = vld [vmem:[%s14663_s1 + $0x196c] ss:$16 sps:$4 sm:$0xff]  }
 0x2f7   :  { %7174 = vmatpush1.bf16.msra.mxu0 %v10830_v19  ;;  %8022 = vmatpush1.bf16.msra.mxu1 %v10833_v17  ;;  %v10914_v19 = vld [vmem:[%s14663_s1 + $0x1960] ss:$16 sps:$4 sm:$0xff]   ;;  %v10917_v17 = vld [vmem:[%s14663_s1 + $0x1968] ss:$16 sps:$4 sm:$0xff]  }
 0x2f8   :  { %7175 = vmatprep.subr.bf16.mxu0 %v10838_v18  ;;  %8023 = vmatprep.subr.bf16.mxu1 %v10841_v20  ;;  %v10922_v18 = vld [vmem:[%s14663_s1 + $0x1984] ss:$16 sps:$4 sm:$0xff]   ;;  %v10925_v20 = vld [vmem:[%s14663_s1 + $0x198c] ss:$16 sps:$4 sm:$0xff]  }
 0x2fb   :  { %7176 = vmatpush1.bf16.msra.mxu0 %v10836_v21  ;;  %8024 = vmatpush1.bf16.msra.mxu1 %v10839_v22  ;;  %v10920_v21 = vld [vmem:[%s14663_s1 + $0x1980] ss:$16 sps:$4 sm:$0xff]   ;;  %v10923_v22 = vld [vmem:[%s14663_s1 + $0x1988] ss:$16 sps:$4 sm:$0xff]  }
 0x2fc   :  { %7177 = vmatprep.subr.bf16.mxu0 %v10844_v23  ;;  %8025 = vmatprep.subr.bf16.mxu1 %v10847_v24  ;;  %v10928_v23 = vld [vmem:[%s14663_s1 + $0x19a4] ss:$16 sps:$4 sm:$0xff]   ;;  %v10931_v24 = vld [vmem:[%s14663_s1 + $0x19ac] ss:$16 sps:$4 sm:$0xff]  }
 0x2ff   :  { %7178 = vmatpush1.bf16.msra.mxu0 %v10842_v26  ;;  %8026 = vmatpush1.bf16.msra.mxu1 %v10845_v25  ;;  %v10926_v26 = vld [vmem:[%s14663_s1 + $0x19a0] ss:$16 sps:$4 sm:$0xff]   ;;  %v10929_v25 = vld [vmem:[%s14663_s1 + $0x19a8] ss:$16 sps:$4 sm:$0xff]  }
 0x300   :  { %7200 = vmatprep.subr.bf16.mxu0 %v10850_v27  ;;  %8048 = vmatprep.subr.bf16.mxu1 %v10853_v28  ;;  %v10934_v27 = vld [vmem:[%s14663_s1 + $0x19c4] ss:$16 sps:$4 sm:$0xff]   ;;  %v10937_v28 = vld [vmem:[%s14663_s1 + $0x19cc] ss:$16 sps:$4 sm:$0xff]  }
 0x302   :  { %7180 = vmatmul.mubr.bf16.vlgmr.msra.gmra.mrb[0].mxu0 %v8358_v29  ;;  %8028 = vmatmul.mubr.bf16.vlgmr.msra.gmra.mrb[0].mxu1 %v8358_v29  ;;  %v10932_v29 = vld [vmem:[%s14663_s1 + $0x19c0] ss:$16 sps:$4 sm:$0xff]  }
 0x303   :  { %7201 = vmatpush1.bf16.msra.mxu0 %v10848_v32  ;;  %8049 = vmatpush1.bf16.msra.mxu1 %v10851_v34  ;;  %v10943_v32 = vld [vmem:[%s14663_s1 + $0x19ec] ss:$16 sps:$4 sm:$0xff]   ;;  %v10938_v34 = vld [vmem:[%s14663_s1 + $0x19e0] ss:$16 sps:$4 sm:$0xff]  }
 0x304   :  { %7202 = vmatprep.subr.bf16.mxu0 %v10856_v36  ;;  %8050 = vmatprep.subr.bf16.mxu1 %v10859_v33  ;;  %v10941_v36 = vld [vmem:[%s14663_s1 + $0x19e8] ss:$16 sps:$4 sm:$0xff]   ;;  %v10946_v33 = vld [vmem:[%s14663_s1 + $0x1a04] ss:$16 sps:$4 sm:$0xff]  }
 0x305   :  { %7189 = vmatprep.mubr.bf16.mxu0 %v8391_v35  ;;  %8037 = vmatprep.mubr.bf16.mxu1 %v8391_v35  ;;  %v10949_v35 = vld [vmem:[%s14663_s1 + $0x1a0c] ss:$16 sps:$4 sm:$0xff]  }
 0x307   :  { %7203 = vmatpush1.bf16.msra.mxu0 %v10854_v37  ;;  %8051 = vmatpush1.bf16.msra.mxu1 %v10857_v38  ;;  %v8360_v37 = vcombine.low %v13821_v44, %v13826_v41  ;;  %v58_v38 = vld [vmem:[%s14664_s0 + $0x160] sm:$0xff]  ;;  %v10955_v41 = vld [vmem:[%s14663_s1 + $0x1a2c] ss:$16 sps:$4 sm:$0xff]  }
 0x308   :  { %7204 = vmatprep.subr.bf16.mxu0 %v10862_v39  ;;  %8052 = vmatprep.subr.bf16.mxu1 %v10865_v40  ;;  %v74_v39 = vld [vmem:[%s14664_s0 + $0x1e0] sm:$0xff] }
 0x309   :  { %v10944_v40 = vld [vmem:[%s14663_s1 + $0x1a00] ss:$16 sps:$4 sm:$0xff]   ;;  %v10952_v44 = vld [vmem:[%s14663_s1 + $0x1a24] ss:$16 sps:$4 sm:$0xff]  }
 0x30a   :  { %7190 = vmatmul.mubr.bf16.gmra.mrb[4].mxu0 %v8390_v42  ;;  %8038 = vmatmul.mubr.bf16.gmra.mrb[4].mxu1 %v8390_v42  ;;  %v10947_v42 = vld [vmem:[%s14663_s1 + $0x1a08] ss:$16 sps:$4 sm:$0xff]  }
 0x30b   :  { %7205 = vmatpush1.bf16.msra.mxu0 %v10860_v43  ;;  %8053 = vmatpush1.bf16.msra.mxu1 %v10863_v45  ;;  %v8393_v43 = vcombine.high %v58_v38, %v74_v39  ;;  %v10950_v45 = vld [vmem:[%s14663_s1 + $0x1a20] ss:$16 sps:$4 sm:$0xff]  }
 0x30c   :  { %7206 = vmatprep.subr.bf16.mxu0 %v10868_v46  ;;  %8054 = vmatprep.subr.bf16.mxu1 %v10871_v47  ;;  %v10953_v46 = vld [vmem:[%s14663_s1 + $0x1a28] ss:$16 sps:$4 sm:$0xff]   ;;  %v10958_v47 = vld [vmem:[%s14663_s1 + $0x1a44] ss:$16 sps:$4 sm:$0xff]  }
 0x30d   :  { %7232 = vmatprep.mubr.bf16.mxu0 %v8361_v48  ;;  %8080 = vmatprep.mubr.bf16.mxu1 %v8361_v48  ;;  %v10961_v48 = vld [vmem:[%s14663_s1 + $0x1a4c] ss:$16 sps:$4 sm:$0xff]  }
 0x30f   :  { %7207 = vmatpush1.bf16.msra.mxu0 %v10866_v51  ;;  %8055 = vmatpush1.bf16.msra.mxu1 %v10869_v52  ;;  %v8392_v51 = vcombine.low %v58_v38, %v74_v39  ;;  %v14033_v52 = vld [vmem:[%s14664_s0 + $0x68] sm:$0xff]  ;;  %v11036_v39 = vld [vmem:[%s14663_s1 + $0x1be4] ss:$16 sps:$4 sm:$0xff]  }
 0x310   :  { %7208 = vmatprep.subr.bf16.mxu0 %v10874_v49  ;;  %8056 = vmatprep.subr.bf16.mxu1 %v10877_v50  ;;  %v14038_v49 = vld [vmem:[%s14664_s0 + $0xe8] sm:$0xff]  ;;  %v10956_v50 = vld [vmem:[%s14663_s1 + $0x1a40] ss:$16 sps:$4 sm:$0xff]  }
 0x311   :  { %v11031_v38 = vld [vmem:[%s14663_s1 + $0x1bc8] ss:$16 sps:$4 sm:$0xff]  }
 0x313   :  { %7209 = vmatpush1.bf16.msra.mxu0 %v10872_v53  ;;  %8057 = vmatpush1.bf16.msra.mxu1 %v10875_v54  ;;  %v10959_v53 = vld [vmem:[%s14663_s1 + $0x1a48] ss:$16 sps:$4 sm:$0xff]   ;;  %v10964_v54 = vld [vmem:[%s14663_s1 + $0x1a64] ss:$16 sps:$4 sm:$0xff]  }
 0x314   :  { %7210 = vmatprep.subr.bf16.mxu0 %v10880_v55  ;;  %8058 = vmatprep.subr.bf16.mxu1 %v10883_v56  ;;  %v10967_v55 = vld [vmem:[%s14663_s1 + $0x1a6c] ss:$16 sps:$4 sm:$0xff]   ;;  %v8363_v56 = vcombine.high %v14033_v52, %v14038_v49 }
 0x317   :  { %7211 = vmatpush1.bf16.msra.mxu0 %v10878_v59  ;;  %8059 = vmatpush1.bf16.msra.mxu1 %v10881_v60  ;;  %v10962_v59 = vld [vmem:[%s14663_s1 + $0x1a60] ss:$16 sps:$4 sm:$0xff]   ;;  %v10965_v60 = vld [vmem:[%s14663_s1 + $0x1a68] ss:$16 sps:$4 sm:$0xff]  }
 0x318   :  { %7212 = vmatprep.subr.bf16.mxu0 %v10886_v57  ;;  %8060 = vmatprep.subr.bf16.mxu1 %v10889_v58  ;;  %v10970_v57 = vld [vmem:[%s14663_s1 + $0x1a84] ss:$16 sps:$4 sm:$0xff]   ;;  %v10973_v58 = vld [vmem:[%s14663_s1 + $0x1a8c] ss:$16 sps:$4 sm:$0xff]  }
 0x31b   :  { %7213 = vmatpush1.bf16.msra.mxu0 %v10884_v61  ;;  %8061 = vmatpush1.bf16.msra.mxu1 %v10887_v62  ;;  %v10968_v61 = vld [vmem:[%s14663_s1 + $0x1a80] ss:$16 sps:$4 sm:$0xff]   ;;  %v10971_v62 = vld [vmem:[%s14663_s1 + $0x1a88] ss:$16 sps:$4 sm:$0xff]  }
 0x31c   :  { %7214 = vmatprep.subr.bf16.mxu0 %v10892_v63  ;;  %8062 = vmatprep.subr.bf16.mxu1 %v10895_v0  ;;  %v10976_v63 = vld [vmem:[%s14663_s1 + $0x1aa4] ss:$16 sps:$4 sm:$0xff]   ;;  %v10979_v0 = vld [vmem:[%s14663_s1 + $0x1aac] ss:$16 sps:$4 sm:$0xff]  }
 0x31f   :  { %7215 = vmatpush1.bf16.msra.mxu0 %v10890_v3  ;;  %8063 = vmatpush1.bf16.msra.mxu1 %v10893_v4  ;;  %v10974_v3 = vld [vmem:[%s14663_s1 + $0x1aa0] ss:$16 sps:$4 sm:$0xff]   ;;  %v10977_v4 = vld [vmem:[%s14663_s1 + $0x1aa8] ss:$16 sps:$4 sm:$0xff]  }
 0x320   :  { %7216 = vmatprep.subr.bf16.mxu0 %v10898_v1  ;;  %8064 = vmatprep.subr.bf16.mxu1 %v10901_v2  ;;  %v10982_v1 = vld [vmem:[%s14663_s1 + $0x1ac4] ss:$16 sps:$4 sm:$0xff]   ;;  %v10985_v2 = vld [vmem:[%s14663_s1 + $0x1acc] ss:$16 sps:$4 sm:$0xff]  }
 0x323   :  { %7217 = vmatpush1.bf16.msra.mxu0 %v10896_v5  ;;  %8065 = vmatpush1.bf16.msra.mxu1 %v10899_v6  ;;  %v10980_v5 = vld [vmem:[%s14663_s1 + $0x1ac0] ss:$16 sps:$4 sm:$0xff]   ;;  %v10983_v6 = vld [vmem:[%s14663_s1 + $0x1ac8] ss:$16 sps:$4 sm:$0xff]  }
 0x324   :  { %7218 = vmatprep.subr.bf16.mxu0 %v10904_v7  ;;  %8066 = vmatprep.subr.bf16.mxu1 %v10907_v8  ;;  %v10988_v7 = vld [vmem:[%s14663_s1 + $0x1ae4] ss:$16 sps:$4 sm:$0xff]   ;;  %v10991_v8 = vld [vmem:[%s14663_s1 + $0x1aec] ss:$16 sps:$4 sm:$0xff]  }
 0x327   :  { %7219 = vmatpush1.bf16.msra.mxu0 %v10902_v11  ;;  %8067 = vmatpush1.bf16.msra.mxu1 %v10905_v12  ;;  %v10986_v11 = vld [vmem:[%s14663_s1 + $0x1ae0] ss:$16 sps:$4 sm:$0xff]   ;;  %v10989_v12 = vld [vmem:[%s14663_s1 + $0x1ae8] ss:$16 sps:$4 sm:$0xff]  }
 0x328   :  { %7220 = vmatprep.subr.bf16.mxu0 %v10910_v9  ;;  %8068 = vmatprep.subr.bf16.mxu1 %v10913_v10  ;;  %v10994_v9 = vld [vmem:[%s14663_s1 + $0x1b04] ss:$16 sps:$4 sm:$0xff]   ;;  %v10997_v10 = vld [vmem:[%s14663_s1 + $0x1b0c] ss:$16 sps:$4 sm:$0xff]  }
 0x32b   :  { %7221 = vmatpush1.bf16.msra.mxu0 %v10908_v13  ;;  %8069 = vmatpush1.bf16.msra.mxu1 %v10911_v14  ;;  %v10992_v13 = vld [vmem:[%s14663_s1 + $0x1b00] ss:$16 sps:$4 sm:$0xff]   ;;  %v10995_v14 = vld [vmem:[%s14663_s1 + $0x1b08] ss:$16 sps:$4 sm:$0xff]  }
 0x32c   :  { %7222 = vmatprep.subr.bf16.mxu0 %v10916_v15  ;;  %8070 = vmatprep.subr.bf16.mxu1 %v10919_v16  ;;  %v11000_v15 = vld [vmem:[%s14663_s1 + $0x1b24] ss:$16 sps:$4 sm:$0xff]   ;;  %v11003_v16 = vld [vmem:[%s14663_s1 + $0x1b2c] ss:$16 sps:$4 sm:$0xff]  }
 0x32f   :  { %7223 = vmatpush1.bf16.msra.mxu0 %v10914_v19  ;;  %8071 = vmatpush1.bf16.msra.mxu1 %v10917_v17  ;;  %v10998_v19 = vld [vmem:[%s14663_s1 + $0x1b20] ss:$16 sps:$4 sm:$0xff]   ;;  %v11001_v17 = vld [vmem:[%s14663_s1 + $0x1b28] ss:$16 sps:$4 sm:$0xff]  }
 0x330   :  { %7224 = vmatprep.subr.bf16.mxu0 %v10922_v18  ;;  %8072 = vmatprep.subr.bf16.mxu1 %v10925_v20  ;;  %v11006_v18 = vld [vmem:[%s14663_s1 + $0x1b44] ss:$16 sps:$4 sm:$0xff]   ;;  %v11009_v20 = vld [vmem:[%s14663_s1 + $0x1b4c] ss:$16 sps:$4 sm:$0xff]  }
 0x333   :  { %7225 = vmatpush1.bf16.msra.mxu0 %v10920_v21  ;;  %8073 = vmatpush1.bf16.msra.mxu1 %v10923_v22  ;;  %v11004_v21 = vld [vmem:[%s14663_s1 + $0x1b40] ss:$16 sps:$4 sm:$0xff]   ;;  %v11007_v22 = vld [vmem:[%s14663_s1 + $0x1b48] ss:$16 sps:$4 sm:$0xff]  }
 0x334   :  { %7226 = vmatprep.subr.bf16.mxu0 %v10928_v23  ;;  %8074 = vmatprep.subr.bf16.mxu1 %v10931_v24  ;;  %v11012_v23 = vld [vmem:[%s14663_s1 + $0x1b64] ss:$16 sps:$4 sm:$0xff]   ;;  %v11015_v24 = vld [vmem:[%s14663_s1 + $0x1b6c] ss:$16 sps:$4 sm:$0xff]  }
 0x337   :  { %7227 = vmatpush1.bf16.msra.mxu0 %v10926_v26  ;;  %8075 = vmatpush1.bf16.msra.mxu1 %v10929_v25  ;;  %v11010_v26 = vld [vmem:[%s14663_s1 + $0x1b60] ss:$16 sps:$4 sm:$0xff]   ;;  %v11013_v25 = vld [vmem:[%s14663_s1 + $0x1b68] ss:$16 sps:$4 sm:$0xff]  }
 0x338   :  { %7228 = vmatprep.subr.bf16.mxu0 %v10934_v27  ;;  %8076 = vmatprep.subr.bf16.mxu1 %v10937_v28  ;;  %v11018_v27 = vld [vmem:[%s14663_s1 + $0x1b84] ss:$16 sps:$4 sm:$0xff]   ;;  %v11021_v28 = vld [vmem:[%s14663_s1 + $0x1b8c] ss:$16 sps:$4 sm:$0xff]  }
 0x33b   :  { %7229 = vmatpush1.bf16.msra.mxu0 %v10932_v29  ;;  %8077 = vmatpush1.bf16.msra.mxu1 %v10935_v30  ;;  %v11016_v29 = vld [vmem:[%s14663_s1 + $0x1b80] ss:$16 sps:$4 sm:$0xff]   ;;  %v11019_v30 = vld [vmem:[%s14663_s1 + $0x1b88] ss:$16 sps:$4 sm:$0xff]  }
 0x33c   :  { %7230 = vmatprep.subr.bf16.mxu0 %v10940_v31  ;;  %8078 = vmatprep.subr.bf16.mxu1 %v10943_v32  ;;  %v11024_v31 = vld [vmem:[%s14663_s1 + $0x1ba4] ss:$16 sps:$4 sm:$0xff]   ;;  %v11027_v32 = vld [vmem:[%s14663_s1 + $0x1bac] ss:$16 sps:$4 sm:$0xff]  }
 0x33f   :  { %7231 = vmatpush1.bf16.msra.mxu0 %v10938_v34  ;;  %8079 = vmatpush1.bf16.msra.mxu1 %v10941_v36  ;;  %v11022_v34 = vld [vmem:[%s14663_s1 + $0x1ba0] ss:$16 sps:$4 sm:$0xff]   ;;  %v11025_v36 = vld [vmem:[%s14663_s1 + $0x1ba8] ss:$16 sps:$4 sm:$0xff]  }
 0x340   :  { %7253 = vmatprep.subr.bf16.mxu0 %v10946_v33  ;;  %8101 = vmatprep.subr.bf16.mxu1 %v10949_v35  ;;  %v11030_v33 = vld [vmem:[%s14663_s1 + $0x1bc4] ss:$16 sps:$4 sm:$0xff]   ;;  %v11033_v35 = vld [vmem:[%s14663_s1 + $0x1bcc] ss:$16 sps:$4 sm:$0xff]  }
 0x342   :  { %7233 = vmatmul.mubr.bf16.vlgmr.msra.gmra.mrb[0].mxu0 %v8360_v37  ;;  %8081 = vmatmul.mubr.bf16.vlgmr.msra.gmra.mrb[0].mxu1 %v8360_v37  ;;  %v11028_v37 = vld [vmem:[%s14663_s1 + $0x1bc0] ss:$16 sps:$4 sm:$0xff]  }
 0x343   :  { %7254 = vmatpush1.bf16.msra.mxu0 %v10944_v40  ;;  %8102 = vmatpush1.bf16.msra.mxu1 %v10947_v42  ;;  %v11039_v40 = vld [vmem:[%s14663_s1 + $0x1bec] ss:$16 sps:$4 sm:$0xff]   ;;  %v11034_v42 = vld [vmem:[%s14663_s1 + $0x1be0] ss:$16 sps:$4 sm:$0xff]  }
 0x344   :  { %7255 = vmatprep.subr.bf16.mxu0 %v10952_v44  ;;  %8103 = vmatprep.subr.bf16.mxu1 %v10955_v41  ;;  %v11037_v44 = vld [vmem:[%s14663_s1 + $0x1be8] ss:$16 sps:$4 sm:$0xff]   ;;  %v11042_v41 = vld [vmem:[%s14663_s1 + $0x1c04] ss:$16 sps:$4 sm:$0xff]  }
 0x345   :  { %7242 = vmatprep.mubr.bf16.mxu0 %v8393_v43  ;;  %8090 = vmatprep.mubr.bf16.mxu1 %v8393_v43  ;;  %v11045_v43 = vld [vmem:[%s14663_s1 + $0x1c0c] ss:$16 sps:$4 sm:$0xff]  }
 0x347   :  { %7256 = vmatpush1.bf16.msra.mxu0 %v10950_v45  ;;  %8104 = vmatpush1.bf16.msra.mxu1 %v10953_v46  ;;  %v8362_v45 = vcombine.low %v14033_v52, %v14038_v49  ;;  %v59_v46 = vld [vmem:[%s14664_s0 + $0x168] sm:$0xff]  ;;  %v11048_v52 = vld [vmem:[%s14663_s1 + $0x1c24] ss:$16 sps:$4 sm:$0xff]  }
 0x348   :  { %7257 = vmatprep.subr.bf16.mxu0 %v10958_v47  ;;  %8105 = vmatprep.subr.bf16.mxu1 %v10961_v48  ;;  %v75_v47 = vld [vmem:[%s14664_s0 + $0x1e8] sm:$0xff]  ;;  %v11040_v48 = vld [vmem:[%s14663_s1 + $0x1c00] ss:$16 sps:$4 sm:$0xff]  }
 0x349   :  { %v11051_v49 = vld [vmem:[%s14663_s1 + $0x1c2c] ss:$16 sps:$4 sm:$0xff]  }
 0x34a   :  { %7243 = vmatmul.mubr.bf16.gmra.mrb[4].mxu0 %v8392_v51  ;;  %8091 = vmatmul.mubr.bf16.gmra.mrb[4].mxu1 %v8392_v51  ;;  %v11043_v51 = vld [vmem:[%s14663_s1 + $0x1c08] ss:$16 sps:$4 sm:$0xff]  }
 0x34b   :  { %7258 = vmatpush1.bf16.msra.mxu0 %v10956_v50  ;;  %8106 = vmatpush1.bf16.msra.mxu1 %v10959_v53  ;;  %v8395_v50 = vcombine.high %v59_v46, %v75_v47  ;;  %v11046_v53 = vld [vmem:[%s14663_s1 + $0x1c20] ss:$16 sps:$4 sm:$0xff]  }
 0x34c   :  { %7259 = vmatprep.subr.bf16.mxu0 %v10964_v54  ;;  %8107 = vmatprep.subr.bf16.mxu1 %v10967_v55  ;;  %v11049_v54 = vld [vmem:[%s14663_s1 + $0x1c28] ss:$16 sps:$4 sm:$0xff]   ;;  %v11054_v55 = vld [vmem:[%s14663_s1 + $0x1c44] ss:$16 sps:$4 sm:$0xff]  }
 0x34d   :  { %7285 = vmatprep.mubr.bf16.mxu0 %v8363_v56  ;;  %8133 = vmatprep.mubr.bf16.mxu1 %v8363_v56  ;;  %v11057_v56 = vld [vmem:[%s14663_s1 + $0x1c4c] ss:$16 sps:$4 sm:$0xff]  }
 0x34f   :  { %7260 = vmatpush1.bf16.msra.mxu0 %v10962_v59  ;;  %8108 = vmatpush1.bf16.msra.mxu1 %v10965_v60  ;;  %v8394_v59 = vcombine.low %v59_v46, %v75_v47  ;;  %v14245_v60 = vld [vmem:[%s14664_s0 + $0x70] sm:$0xff]  ;;  %v11127_v46 = vld [vmem:[%s14663_s1 + $0x1dc8] ss:$16 sps:$4 sm:$0xff]  }
 0x350   :  { %7261 = vmatprep.subr.bf16.mxu0 %v10970_v57  ;;  %8109 = vmatprep.subr.bf16.mxu1 %v10973_v58  ;;  %v14250_v57 = vld [vmem:[%s14664_s0 + $0xf0] sm:$0xff] }
 0x351   :  { %v11052_v58 = vld [vmem:[%s14663_s1 + $0x1c40] ss:$16 sps:$4 sm:$0xff]   ;;  %v11132_v47 = vld [vmem:[%s14663_s1 + $0x1de4] ss:$16 sps:$4 sm:$0xff]  }
 0x353   :  { %7262 = vmatpush1.bf16.msra.mxu0 %v10968_v61  ;;  %8110 = vmatpush1.bf16.msra.mxu1 %v10971_v62  ;;  %v11055_v61 = vld [vmem:[%s14663_s1 + $0x1c48] ss:$16 sps:$4 sm:$0xff]   ;;  %v11060_v62 = vld [vmem:[%s14663_s1 + $0x1c64] ss:$16 sps:$4 sm:$0xff]  }
 0x354   :  { %7263 = vmatprep.subr.bf16.mxu0 %v10976_v63  ;;  %8111 = vmatprep.subr.bf16.mxu1 %v10979_v0  ;;  %v11063_v63 = vld [vmem:[%s14663_s1 + $0x1c6c] ss:$16 sps:$4 sm:$0xff]   ;;  %v8365_v0 = vcombine.high %v14245_v60, %v14250_v57 }
 0x357   :  { %7264 = vmatpush1.bf16.msra.mxu0 %v10974_v3  ;;  %8112 = vmatpush1.bf16.msra.mxu1 %v10977_v4  ;;  %v11058_v3 = vld [vmem:[%s14663_s1 + $0x1c60] ss:$16 sps:$4 sm:$0xff]   ;;  %v11061_v4 = vld [vmem:[%s14663_s1 + $0x1c68] ss:$16 sps:$4 sm:$0xff]  }
 0x358   :  { %7265 = vmatprep.subr.bf16.mxu0 %v10982_v1  ;;  %8113 = vmatprep.subr.bf16.mxu1 %v10985_v2  ;;  %v11066_v1 = vld [vmem:[%s14663_s1 + $0x1c84] ss:$16 sps:$4 sm:$0xff]   ;;  %v11069_v2 = vld [vmem:[%s14663_s1 + $0x1c8c] ss:$16 sps:$4 sm:$0xff]  }
 0x35b   :  { %7266 = vmatpush1.bf16.msra.mxu0 %v10980_v5  ;;  %8114 = vmatpush1.bf16.msra.mxu1 %v10983_v6  ;;  %v11064_v5 = vld [vmem:[%s14663_s1 + $0x1c80] ss:$16 sps:$4 sm:$0xff]   ;;  %v11067_v6 = vld [vmem:[%s14663_s1 + $0x1c88] ss:$16 sps:$4 sm:$0xff]  }
 0x35c   :  { %7267 = vmatprep.subr.bf16.mxu0 %v10988_v7  ;;  %8115 = vmatprep.subr.bf16.mxu1 %v10991_v8  ;;  %v11072_v7 = vld [vmem:[%s14663_s1 + $0x1ca4] ss:$16 sps:$4 sm:$0xff]   ;;  %v11075_v8 = vld [vmem:[%s14663_s1 + $0x1cac] ss:$16 sps:$4 sm:$0xff]  }
 0x35f   :  { %7268 = vmatpush1.bf16.msra.mxu0 %v10986_v11  ;;  %8116 = vmatpush1.bf16.msra.mxu1 %v10989_v12  ;;  %v11070_v11 = vld [vmem:[%s14663_s1 + $0x1ca0] ss:$16 sps:$4 sm:$0xff]   ;;  %v11073_v12 = vld [vmem:[%s14663_s1 + $0x1ca8] ss:$16 sps:$4 sm:$0xff]  }
 0x360   :  { %7269 = vmatprep.subr.bf16.mxu0 %v10994_v9  ;;  %8117 = vmatprep.subr.bf16.mxu1 %v10997_v10  ;;  %v11078_v9 = vld [vmem:[%s14663_s1 + $0x1cc4] ss:$16 sps:$4 sm:$0xff]   ;;  %v11081_v10 = vld [vmem:[%s14663_s1 + $0x1ccc] ss:$16 sps:$4 sm:$0xff]  }
 0x363   :  { %7270 = vmatpush1.bf16.msra.mxu0 %v10992_v13  ;;  %8118 = vmatpush1.bf16.msra.mxu1 %v10995_v14  ;;  %v11076_v13 = vld [vmem:[%s14663_s1 + $0x1cc0] ss:$16 sps:$4 sm:$0xff]   ;;  %v11079_v14 = vld [vmem:[%s14663_s1 + $0x1cc8] ss:$16 sps:$4 sm:$0xff]  }
 0x364   :  { %7271 = vmatprep.subr.bf16.mxu0 %v11000_v15  ;;  %8119 = vmatprep.subr.bf16.mxu1 %v11003_v16  ;;  %v11084_v15 = vld [vmem:[%s14663_s1 + $0x1ce4] ss:$16 sps:$4 sm:$0xff]   ;;  %v11087_v16 = vld [vmem:[%s14663_s1 + $0x1cec] ss:$16 sps:$4 sm:$0xff]  }
 0x367   :  { %7272 = vmatpush1.bf16.msra.mxu0 %v10998_v19  ;;  %8120 = vmatpush1.bf16.msra.mxu1 %v11001_v17  ;;  %v11082_v19 = vld [vmem:[%s14663_s1 + $0x1ce0] ss:$16 sps:$4 sm:$0xff]   ;;  %v11085_v17 = vld [vmem:[%s14663_s1 + $0x1ce8] ss:$16 sps:$4 sm:$0xff]  }
 0x368   :  { %7273 = vmatprep.subr.bf16.mxu0 %v11006_v18  ;;  %8121 = vmatprep.subr.bf16.mxu1 %v11009_v20  ;;  %v11090_v18 = vld [vmem:[%s14663_s1 + $0x1d04] ss:$16 sps:$4 sm:$0xff]   ;;  %v11093_v20 = vld [vmem:[%s14663_s1 + $0x1d0c] ss:$16 sps:$4 sm:$0xff]  }
 0x36b   :  { %7274 = vmatpush1.bf16.msra.mxu0 %v11004_v21  ;;  %8122 = vmatpush1.bf16.msra.mxu1 %v11007_v22  ;;  %v11088_v21 = vld [vmem:[%s14663_s1 + $0x1d00] ss:$16 sps:$4 sm:$0xff]   ;;  %v11091_v22 = vld [vmem:[%s14663_s1 + $0x1d08] ss:$16 sps:$4 sm:$0xff]  }
 0x36c   :  { %7275 = vmatprep.subr.bf16.mxu0 %v11012_v23  ;;  %8123 = vmatprep.subr.bf16.mxu1 %v11015_v24  ;;  %v11096_v23 = vld [vmem:[%s14663_s1 + $0x1d24] ss:$16 sps:$4 sm:$0xff]   ;;  %v11099_v24 = vld [vmem:[%s14663_s1 + $0x1d2c] ss:$16 sps:$4 sm:$0xff]  }
 0x36f   :  { %7276 = vmatpush1.bf16.msra.mxu0 %v11010_v26  ;;  %8124 = vmatpush1.bf16.msra.mxu1 %v11013_v25  ;;  %v11094_v26 = vld [vmem:[%s14663_s1 + $0x1d20] ss:$16 sps:$4 sm:$0xff]   ;;  %v11097_v25 = vld [vmem:[%s14663_s1 + $0x1d28] ss:$16 sps:$4 sm:$0xff]  }
 0x370   :  { %7277 = vmatprep.subr.bf16.mxu0 %v11018_v27  ;;  %8125 = vmatprep.subr.bf16.mxu1 %v11021_v28  ;;  %v11102_v27 = vld [vmem:[%s14663_s1 + $0x1d44] ss:$16 sps:$4 sm:$0xff]   ;;  %v11105_v28 = vld [vmem:[%s14663_s1 + $0x1d4c] ss:$16 sps:$4 sm:$0xff]  }
 0x373   :  { %7278 = vmatpush1.bf16.msra.mxu0 %v11016_v29  ;;  %8126 = vmatpush1.bf16.msra.mxu1 %v11019_v30  ;;  %v11100_v29 = vld [vmem:[%s14663_s1 + $0x1d40] ss:$16 sps:$4 sm:$0xff]   ;;  %v11103_v30 = vld [vmem:[%s14663_s1 + $0x1d48] ss:$16 sps:$4 sm:$0xff]  }
 0x374   :  { %7279 = vmatprep.subr.bf16.mxu0 %v11024_v31  ;;  %8127 = vmatprep.subr.bf16.mxu1 %v11027_v32  ;;  %v11108_v31 = vld [vmem:[%s14663_s1 + $0x1d64] ss:$16 sps:$4 sm:$0xff]   ;;  %v11111_v32 = vld [vmem:[%s14663_s1 + $0x1d6c] ss:$16 sps:$4 sm:$0xff]  }
 0x377   :  { %7280 = vmatpush1.bf16.msra.mxu0 %v11022_v34  ;;  %8128 = vmatpush1.bf16.msra.mxu1 %v11025_v36  ;;  %v11106_v34 = vld [vmem:[%s14663_s1 + $0x1d60] ss:$16 sps:$4 sm:$0xff]   ;;  %v11109_v36 = vld [vmem:[%s14663_s1 + $0x1d68] ss:$16 sps:$4 sm:$0xff]  }
 0x378   :  { %7281 = vmatprep.subr.bf16.mxu0 %v11030_v33  ;;  %8129 = vmatprep.subr.bf16.mxu1 %v11033_v35  ;;  %v11114_v33 = vld [vmem:[%s14663_s1 + $0x1d84] ss:$16 sps:$4 sm:$0xff]   ;;  %v11117_v35 = vld [vmem:[%s14663_s1 + $0x1d8c] ss:$16 sps:$4 sm:$0xff]  }
 0x37b   :  { %7282 = vmatpush1.bf16.msra.mxu0 %v11028_v37  ;;  %8130 = vmatpush1.bf16.msra.mxu1 %v11031_v38  ;;  %v11112_v37 = vld [vmem:[%s14663_s1 + $0x1d80] ss:$16 sps:$4 sm:$0xff]   ;;  %v11115_v38 = vld [vmem:[%s14663_s1 + $0x1d88] ss:$16 sps:$4 sm:$0xff]  }
 0x37c   :  { %7283 = vmatprep.subr.bf16.mxu0 %v11036_v39  ;;  %8131 = vmatprep.subr.bf16.mxu1 %v11039_v40  ;;  %v11120_v39 = vld [vmem:[%s14663_s1 + $0x1da4] ss:$16 sps:$4 sm:$0xff]   ;;  %v11123_v40 = vld [vmem:[%s14663_s1 + $0x1dac] ss:$16 sps:$4 sm:$0xff]  }
 0x37f   :  { %7284 = vmatpush1.bf16.msra.mxu0 %v11034_v42  ;;  %8132 = vmatpush1.bf16.msra.mxu1 %v11037_v44  ;;  %v11118_v42 = vld [vmem:[%s14663_s1 + $0x1da0] ss:$16 sps:$4 sm:$0xff]   ;;  %v11121_v44 = vld [vmem:[%s14663_s1 + $0x1da8] ss:$16 sps:$4 sm:$0xff]  }
 0x380   :  { %7306 = vmatprep.subr.bf16.mxu0 %v11042_v41  ;;  %8154 = vmatprep.subr.bf16.mxu1 %v11045_v43  ;;  %v11126_v41 = vld [vmem:[%s14663_s1 + $0x1dc4] ss:$16 sps:$4 sm:$0xff]   ;;  %v11129_v43 = vld [vmem:[%s14663_s1 + $0x1dcc] ss:$16 sps:$4 sm:$0xff]  }
 0x382   :  { %7286 = vmatmul.mubr.bf16.vlgmr.msra.gmra.mrb[0].mxu0 %v8362_v45  ;;  %8134 = vmatmul.mubr.bf16.vlgmr.msra.gmra.mrb[0].mxu1 %v8362_v45  ;;  %v11124_v45 = vld [vmem:[%s14663_s1 + $0x1dc0] ss:$16 sps:$4 sm:$0xff]  }
 0x383   :  { %7307 = vmatpush1.bf16.msra.mxu0 %v11040_v48  ;;  %8155 = vmatpush1.bf16.msra.mxu1 %v11043_v51  ;;  %v11135_v48 = vld [vmem:[%s14663_s1 + $0x1dec] ss:$16 sps:$4 sm:$0xff]   ;;  %v11130_v51 = vld [vmem:[%s14663_s1 + $0x1de0] ss:$16 sps:$4 sm:$0xff]  }
 0x384   :  { %7308 = vmatprep.subr.bf16.mxu0 %v11048_v52  ;;  %8156 = vmatprep.subr.bf16.mxu1 %v11051_v49  ;;  %v11133_v52 = vld [vmem:[%s14663_s1 + $0x1de8] ss:$16 sps:$4 sm:$0xff]   ;;  %v11138_v49 = vld [vmem:[%s14663_s1 + $0x1e04] ss:$16 sps:$4 sm:$0xff]  }
 0x385   :  { %7295 = vmatprep.mubr.bf16.mxu0 %v8395_v50  ;;  %8143 = vmatprep.mubr.bf16.mxu1 %v8395_v50  ;;  %v11141_v50 = vld [vmem:[%s14663_s1 + $0x1e0c] ss:$16 sps:$4 sm:$0xff]  }
 0x387   :  { %7309 = vmatpush1.bf16.msra.mxu0 %v11046_v53  ;;  %8157 = vmatpush1.bf16.msra.mxu1 %v11049_v54  ;;  %v8364_v53 = vcombine.low %v14245_v60, %v14250_v57  ;;  %v60_v54 = vld [vmem:[%s14664_s0 + $0x170] sm:$0xff]  ;;  %v11147_v57 = vld [vmem:[%s14663_s1 + $0x1e2c] ss:$16 sps:$4 sm:$0xff]  }
 0x388   :  { %7310 = vmatprep.subr.bf16.mxu0 %v11054_v55  ;;  %8158 = vmatprep.subr.bf16.mxu1 %v11057_v56  ;;  %v76_v55 = vld [vmem:[%s14664_s0 + $0x1f0] sm:$0xff] }
 0x389   :  { %v11136_v56 = vld [vmem:[%s14663_s1 + $0x1e00] ss:$16 sps:$4 sm:$0xff]   ;;  %v11144_v60 = vld [vmem:[%s14663_s1 + $0x1e24] ss:$16 sps:$4 sm:$0xff]  }
 0x38a   :  { %7296 = vmatmul.mubr.bf16.gmra.mrb[4].mxu0 %v8394_v59  ;;  %8144 = vmatmul.mubr.bf16.gmra.mrb[4].mxu1 %v8394_v59  ;;  %v11139_v59 = vld [vmem:[%s14663_s1 + $0x1e08] ss:$16 sps:$4 sm:$0xff]  }
 0x38b   :  { %7311 = vmatpush1.bf16.msra.mxu0 %v11052_v58  ;;  %8159 = vmatpush1.bf16.msra.mxu1 %v11055_v61  ;;  %v8397_v58 = vcombine.high %v60_v54, %v76_v55  ;;  %v11142_v61 = vld [vmem:[%s14663_s1 + $0x1e20] ss:$16 sps:$4 sm:$0xff]  }
 0x38c   :  { %7312 = vmatprep.subr.bf16.mxu0 %v11060_v62  ;;  %8160 = vmatprep.subr.bf16.mxu1 %v11063_v63  ;;  %v11145_v62 = vld [vmem:[%s14663_s1 + $0x1e28] ss:$16 sps:$4 sm:$0xff]   ;;  %v11150_v63 = vld [vmem:[%s14663_s1 + $0x1e44] ss:$16 sps:$4 sm:$0xff]  }
 0x38d   :  { %7338 = vmatprep.mubr.bf16.mxu0 %v8365_v0  ;;  %8186 = vmatprep.mubr.bf16.mxu1 %v8365_v0  ;;  %v11153_v0 = vld [vmem:[%s14663_s1 + $0x1e4c] ss:$16 sps:$4 sm:$0xff]  }
 0x38f   :  { %7313 = vmatpush1.bf16.msra.mxu0 %v11058_v3  ;;  %8161 = vmatpush1.bf16.msra.mxu1 %v11061_v4  ;;  %v8396_v3 = vcombine.low %v60_v54, %v76_v55  ;;  %v14457_v4 = vld [vmem:[%s14664_s0 + $0x78] sm:$0xff]  ;;  %v11228_v55 = vld [vmem:[%s14663_s1 + $0x1fe4] ss:$16 sps:$4 sm:$0xff]  }
 0x390   :  { %7314 = vmatprep.subr.bf16.mxu0 %v11066_v1  ;;  %8162 = vmatprep.subr.bf16.mxu1 %v11069_v2  ;;  %v14462_v1 = vld [vmem:[%s14664_s0 + $0xf8] sm:$0xff]  ;;  %v11148_v2 = vld [vmem:[%s14663_s1 + $0x1e40] ss:$16 sps:$4 sm:$0xff]  }
 0x391   :  { %v11223_v54 = vld [vmem:[%s14663_s1 + $0x1fc8] ss:$16 sps:$4 sm:$0xff]  }
 0x393   :  { %7315 = vmatpush1.bf16.msra.mxu0 %v11064_v5  ;;  %8163 = vmatpush1.bf16.msra.mxu1 %v11067_v6  ;;  %v11151_v5 = vld [vmem:[%s14663_s1 + $0x1e48] ss:$16 sps:$4 sm:$0xff]   ;;  %v11156_v6 = vld [vmem:[%s14663_s1 + $0x1e64] ss:$16 sps:$4 sm:$0xff]  }
 0x394   :  { %7316 = vmatprep.subr.bf16.mxu0 %v11072_v7  ;;  %8164 = vmatprep.subr.bf16.mxu1 %v11075_v8  ;;  %v11159_v7 = vld [vmem:[%s14663_s1 + $0x1e6c] ss:$16 sps:$4 sm:$0xff]   ;;  %v8367_v8 = vcombine.high %v14457_v4, %v14462_v1 }
 0x397   :  { %7317 = vmatpush1.bf16.msra.mxu0 %v11070_v11  ;;  %8165 = vmatpush1.bf16.msra.mxu1 %v11073_v12  ;;  %v11154_v11 = vld [vmem:[%s14663_s1 + $0x1e60] ss:$16 sps:$4 sm:$0xff]   ;;  %v11157_v12 = vld [vmem:[%s14663_s1 + $0x1e68] ss:$16 sps:$4 sm:$0xff]  }
 0x398   :  { %7318 = vmatprep.subr.bf16.mxu0 %v11078_v9  ;;  %8166 = vmatprep.subr.bf16.mxu1 %v11081_v10  ;;  %v11162_v9 = vld [vmem:[%s14663_s1 + $0x1e84] ss:$16 sps:$4 sm:$0xff]   ;;  %v11165_v10 = vld [vmem:[%s14663_s1 + $0x1e8c] ss:$16 sps:$4 sm:$0xff]  }
 0x39b   :  { %7319 = vmatpush1.bf16.msra.mxu0 %v11076_v13  ;;  %8167 = vmatpush1.bf16.msra.mxu1 %v11079_v14  ;;  %v11160_v13 = vld [vmem:[%s14663_s1 + $0x1e80] ss:$16 sps:$4 sm:$0xff]   ;;  %v11163_v14 = vld [vmem:[%s14663_s1 + $0x1e88] ss:$16 sps:$4 sm:$0xff]  }
 0x39c   :  { %7320 = vmatprep.subr.bf16.mxu0 %v11084_v15  ;;  %8168 = vmatprep.subr.bf16.mxu1 %v11087_v16  ;;  %v11168_v15 = vld [vmem:[%s14663_s1 + $0x1ea4] ss:$16 sps:$4 sm:$0xff]   ;;  %v11171_v16 = vld [vmem:[%s14663_s1 + $0x1eac] ss:$16 sps:$4 sm:$0xff]  }
 0x39f   :  { %7321 = vmatpush1.bf16.msra.mxu0 %v11082_v19  ;;  %8169 = vmatpush1.bf16.msra.mxu1 %v11085_v17  ;;  %v11166_v19 = vld [vmem:[%s14663_s1 + $0x1ea0] ss:$16 sps:$4 sm:$0xff]   ;;  %v11169_v17 = vld [vmem:[%s14663_s1 + $0x1ea8] ss:$16 sps:$4 sm:$0xff]  }
 0x3a0   :  { %7322 = vmatprep.subr.bf16.mxu0 %v11090_v18  ;;  %8170 = vmatprep.subr.bf16.mxu1 %v11093_v20  ;;  %v11174_v18 = vld [vmem:[%s14663_s1 + $0x1ec4] ss:$16 sps:$4 sm:$0xff]   ;;  %v11177_v20 = vld [vmem:[%s14663_s1 + $0x1ecc] ss:$16 sps:$4 sm:$0xff]  }
 0x3a3   :  { %7323 = vmatpush1.bf16.msra.mxu0 %v11088_v21  ;;  %8171 = vmatpush1.bf16.msra.mxu1 %v11091_v22  ;;  %v11172_v21 = vld [vmem:[%s14663_s1 + $0x1ec0] ss:$16 sps:$4 sm:$0xff]   ;;  %v11175_v22 = vld [vmem:[%s14663_s1 + $0x1ec8] ss:$16 sps:$4 sm:$0xff]  }
 0x3a4   :  { %7324 = vmatprep.subr.bf16.mxu0 %v11096_v23  ;;  %8172 = vmatprep.subr.bf16.mxu1 %v11099_v24  ;;  %v11180_v23 = vld [vmem:[%s14663_s1 + $0x1ee4] ss:$16 sps:$4 sm:$0xff]   ;;  %v11183_v24 = vld [vmem:[%s14663_s1 + $0x1eec] ss:$16 sps:$4 sm:$0xff]  }
 0x3a7   :  { %7325 = vmatpush1.bf16.msra.mxu0 %v11094_v26  ;;  %8173 = vmatpush1.bf16.msra.mxu1 %v11097_v25  ;;  %v11178_v26 = vld [vmem:[%s14663_s1 + $0x1ee0] ss:$16 sps:$4 sm:$0xff]   ;;  %v11181_v25 = vld [vmem:[%s14663_s1 + $0x1ee8] ss:$16 sps:$4 sm:$0xff]  }
 0x3a8   :  { %7326 = vmatprep.subr.bf16.mxu0 %v11102_v27  ;;  %8174 = vmatprep.subr.bf16.mxu1 %v11105_v28  ;;  %v11186_v27 = vld [vmem:[%s14663_s1 + $0x1f04] ss:$16 sps:$4 sm:$0xff]   ;;  %v11189_v28 = vld [vmem:[%s14663_s1 + $0x1f0c] ss:$16 sps:$4 sm:$0xff]  }
 0x3ab   :  { %7327 = vmatpush1.bf16.msra.mxu0 %v11100_v29  ;;  %8175 = vmatpush1.bf16.msra.mxu1 %v11103_v30  ;;  %v11184_v29 = vld [vmem:[%s14663_s1 + $0x1f00] ss:$16 sps:$4 sm:$0xff]   ;;  %v11187_v30 = vld [vmem:[%s14663_s1 + $0x1f08] ss:$16 sps:$4 sm:$0xff]  }
 0x3ac   :  { %7328 = vmatprep.subr.bf16.mxu0 %v11108_v31  ;;  %8176 = vmatprep.subr.bf16.mxu1 %v11111_v32  ;;  %v11192_v31 = vld [vmem:[%s14663_s1 + $0x1f24] ss:$16 sps:$4 sm:$0xff]   ;;  %v11195_v32 = vld [vmem:[%s14663_s1 + $0x1f2c] ss:$16 sps:$4 sm:$0xff]  }
 0x3af   :  { %7329 = vmatpush1.bf16.msra.mxu0 %v11106_v34  ;;  %8177 = vmatpush1.bf16.msra.mxu1 %v11109_v36  ;;  %v11190_v34 = vld [vmem:[%s14663_s1 + $0x1f20] ss:$16 sps:$4 sm:$0xff]   ;;  %v11193_v36 = vld [vmem:[%s14663_s1 + $0x1f28] ss:$16 sps:$4 sm:$0xff]  }
 0x3b0   :  { %7330 = vmatprep.subr.bf16.mxu0 %v11114_v33  ;;  %8178 = vmatprep.subr.bf16.mxu1 %v11117_v35  ;;  %v11198_v33 = vld [vmem:[%s14663_s1 + $0x1f44] ss:$16 sps:$4 sm:$0xff]   ;;  %v11201_v35 = vld [vmem:[%s14663_s1 + $0x1f4c] ss:$16 sps:$4 sm:$0xff]  }
 0x3b3   :  { %7331 = vmatpush1.bf16.msra.mxu0 %v11112_v37  ;;  %8179 = vmatpush1.bf16.msra.mxu1 %v11115_v38  ;;  %v11196_v37 = vld [vmem:[%s14663_s1 + $0x1f40] ss:$16 sps:$4 sm:$0xff]   ;;  %v11199_v38 = vld [vmem:[%s14663_s1 + $0x1f48] ss:$16 sps:$4 sm:$0xff]  }
 0x3b4   :  { %7332 = vmatprep.subr.bf16.mxu0 %v11120_v39  ;;  %8180 = vmatprep.subr.bf16.mxu1 %v11123_v40  ;;  %v11204_v39 = vld [vmem:[%s14663_s1 + $0x1f64] ss:$16 sps:$4 sm:$0xff]   ;;  %v11207_v40 = vld [vmem:[%s14663_s1 + $0x1f6c] ss:$16 sps:$4 sm:$0xff]  }
 0x3b7   :  { %7333 = vmatpush1.bf16.msra.mxu0 %v11118_v42  ;;  %8181 = vmatpush1.bf16.msra.mxu1 %v11121_v44  ;;  %v11202_v42 = vld [vmem:[%s14663_s1 + $0x1f60] ss:$16 sps:$4 sm:$0xff]   ;;  %v11205_v44 = vld [vmem:[%s14663_s1 + $0x1f68] ss:$16 sps:$4 sm:$0xff]  }
 0x3b8   :  { %7334 = vmatprep.subr.bf16.mxu0 %v11126_v41  ;;  %8182 = vmatprep.subr.bf16.mxu1 %v11129_v43  ;;  %v11210_v41 = vld [vmem:[%s14663_s1 + $0x1f84] ss:$16 sps:$4 sm:$0xff]   ;;  %v11213_v43 = vld [vmem:[%s14663_s1 + $0x1f8c] ss:$16 sps:$4 sm:$0xff]  }
 0x3bb   :  { %7335 = vmatpush1.bf16.msra.mxu0 %v11124_v45  ;;  %8183 = vmatpush1.bf16.msra.mxu1 %v11127_v46  ;;  %v11208_v45 = vld [vmem:[%s14663_s1 + $0x1f80] ss:$16 sps:$4 sm:$0xff]   ;;  %v11211_v46 = vld [vmem:[%s14663_s1 + $0x1f88] ss:$16 sps:$4 sm:$0xff]  }
 0x3bc   :  { %7336 = vmatprep.subr.bf16.mxu0 %v11132_v47  ;;  %8184 = vmatprep.subr.bf16.mxu1 %v11135_v48  ;;  %v11216_v47 = vld [vmem:[%s14663_s1 + $0x1fa4] ss:$16 sps:$4 sm:$0xff]   ;;  %v11219_v48 = vld [vmem:[%s14663_s1 + $0x1fac] ss:$16 sps:$4 sm:$0xff]  }
 0x3bf   :  { %7337 = vmatpush1.bf16.msra.mxu0 %v11130_v51  ;;  %8185 = vmatpush1.bf16.msra.mxu1 %v11133_v52  ;;  %v11214_v51 = vld [vmem:[%s14663_s1 + $0x1fa0] ss:$16 sps:$4 sm:$0xff]   ;;  %v11217_v52 = vld [vmem:[%s14663_s1 + $0x1fa8] ss:$16 sps:$4 sm:$0xff]  }
 0x3c0   :  { %7359 = vmatprep.subr.bf16.mxu0 %v11138_v49  ;;  %8207 = vmatprep.subr.bf16.mxu1 %v11141_v50  ;;  %v11222_v49 = vld [vmem:[%s14663_s1 + $0x1fc4] ss:$16 sps:$4 sm:$0xff]   ;;  %v11225_v50 = vld [vmem:[%s14663_s1 + $0x1fcc] ss:$16 sps:$4 sm:$0xff]  }
 0x3c2   :  { %7339 = vmatmul.mubr.bf16.vlgmr.msra.gmra.mrb[0].mxu0 %v8364_v53  ;;  %8187 = vmatmul.mubr.bf16.vlgmr.msra.gmra.mrb[0].mxu1 %v8364_v53  ;;  %v11220_v53 = vld [vmem:[%s14663_s1 + $0x1fc0] ss:$16 sps:$4 sm:$0xff]  }
 0x3c3   :  { %7360 = vmatpush1.bf16.msra.mxu0 %v11136_v56  ;;  %8208 = vmatpush1.bf16.msra.mxu1 %v11139_v59  ;;  %v11231_v56 = vld [vmem:[%s14663_s1 + $0x1fec] ss:$16 sps:$4 sm:$0xff]   ;;  %v11226_v59 = vld [vmem:[%s14663_s1 + $0x1fe0] ss:$16 sps:$4 sm:$0xff]  }
 0x3c4   :  { %7361 = vmatprep.subr.bf16.mxu0 %v11144_v60  ;;  %8209 = vmatprep.subr.bf16.mxu1 %v11147_v57  ;;  %v11229_v60 = vld [vmem:[%s14663_s1 + $0x1fe8] ss:$16 sps:$4 sm:$0xff]  }
 0x3c5   :  { %7348 = vmatprep.mubr.bf16.mxu0 %v8397_v58  ;;  %8196 = vmatprep.mubr.bf16.mxu1 %v8397_v58  ;;  %v61_v57 = vld [vmem:[%s14664_s0 + $0x178] sm:$0xff] }
 0x3c6   :  { %v77_v58 = vld [vmem:[%s14664_s0 + $0x1f8] sm:$0xff] }
 0x3c7   :  { %7362 = vmatpush1.bf16.msra.mxu0 %v11142_v61  ;;  %8210 = vmatpush1.bf16.msra.mxu1 %v11145_v62  ;;  %v8366_v61 = vcombine.low %v14457_v4, %v14462_v1  ;;  %v8399_v62 = vcombine.high %v61_v57, %v77_v58 }
 0x3c8   :  { %7363 = vmatprep.subr.bf16.mxu0 %v11150_v63  ;;  %8211 = vmatprep.subr.bf16.mxu1 %v11153_v0  ;;  %v8398_v63 = vcombine.low %v61_v57, %v77_v58  ;;  %v1104_v0 = vlaneseq }
 0x3ca   :  { %7349 = vmatmul.mubr.bf16.gmra.mrb[4].mxu0 %v8396_v3  ;;  %8197 = vmatmul.mubr.bf16.gmra.mrb[4].mxu1 %v8396_v3  ;;  %v1105_v3 = vshrl.u32 %v1104_v0, 7 }
 0x3cb   :  { %7364 = vmatpush1.bf16.msra.mxu0 %v11148_v2  ;;  %8212 = vmatpush1.bf16.msra.mxu1 %v11151_v5 }
 0x3cc   :  { %7365 = vmatprep.subr.bf16.mxu0 %v11156_v6  ;;  %8213 = vmatprep.subr.bf16.mxu1 %v11159_v7  ;;  %v1106_v2 = vsub.s32 0, %v1105_v3  ;;  %v1114_v5 = vsub.s32 2, %v1105_v3  ;;  %v1102_v6 = vld [vmem:[%s14665_s2] sm:$0xf]  ;;  %v1110_v7 = vsub.s32 1, %v1105_v3  ;;  %v1118_v4 = vsub.s32 3, %v1105_v3 }
 0x3cd   :  { %7391 = vmatprep.mubr.bf16.mxu0 %v8367_v8  ;;  %8239 = vmatprep.mubr.bf16.mxu1 %v8367_v8 }
 0x3ce   :  { %v1107_v1 = vrot.slane %v1102_v6, %v1106_v2  ;;  %v1115_v8 = vrot.slane %v1102_v6, %v1114_v5 }
 0x3cf   :  { %7366 = vmatpush1.bf16.msra.mxu0 %v11154_v11  ;;  %8214 = vmatpush1.bf16.msra.mxu1 %v11157_v12  ;;  %v1111_v11 = vrot.slane %v1102_v6, %v1110_v7  ;;  %v1119_v12 = vrot.slane %v1102_v6, %v1118_v4 }
 0x3d0   :  { %7367 = vmatprep.subr.bf16.mxu0 %v11162_v9  ;;  %8215 = vmatprep.subr.bf16.mxu1 %v11165_v10 }
 0x3d3   :  { %7368 = vmatpush1.bf16.msra.mxu0 %v11160_v13  ;;  %8216 = vmatpush1.bf16.msra.mxu1 %v11163_v14 }
 0x3d4   :  { %7369 = vmatprep.subr.bf16.mxu0 %v11168_v15  ;;  %8217 = vmatprep.subr.bf16.mxu1 %v11171_v16 }
 0x3d7   :  { %7370 = vmatpush1.bf16.msra.mxu0 %v11166_v19  ;;  %8218 = vmatpush1.bf16.msra.mxu1 %v11169_v17 }
 0x3d8   :  { %7371 = vmatprep.subr.bf16.mxu0 %v11174_v18  ;;  %8219 = vmatprep.subr.bf16.mxu1 %v11177_v20 }
 0x3db   :  { %7372 = vmatpush1.bf16.msra.mxu0 %v11172_v21  ;;  %8220 = vmatpush1.bf16.msra.mxu1 %v11175_v22 }
 0x3dc   :  { %7373 = vmatprep.subr.bf16.mxu0 %v11180_v23  ;;  %8221 = vmatprep.subr.bf16.mxu1 %v11183_v24 }
 0x3df   :  { %7374 = vmatpush1.bf16.msra.mxu0 %v11178_v26  ;;  %8222 = vmatpush1.bf16.msra.mxu1 %v11181_v25 }
 0x3e0   :  { %7375 = vmatprep.subr.bf16.mxu0 %v11186_v27  ;;  %8223 = vmatprep.subr.bf16.mxu1 %v11189_v28 }
 0x3e3   :  { %7376 = vmatpush1.bf16.msra.mxu0 %v11184_v29  ;;  %8224 = vmatpush1.bf16.msra.mxu1 %v11187_v30 }
 0x3e4   :  { %7377 = vmatprep.subr.bf16.mxu0 %v11192_v31  ;;  %8225 = vmatprep.subr.bf16.mxu1 %v11195_v32 }
 0x3e7   :  { %7378 = vmatpush1.bf16.msra.mxu0 %v11190_v34  ;;  %8226 = vmatpush1.bf16.msra.mxu1 %v11193_v36 }
 0x3e8   :  { %7379 = vmatprep.subr.bf16.mxu0 %v11198_v33  ;;  %8227 = vmatprep.subr.bf16.mxu1 %v11201_v35 }
 0x3eb   :  { %7380 = vmatpush1.bf16.msra.mxu0 %v11196_v37  ;;  %8228 = vmatpush1.bf16.msra.mxu1 %v11199_v38 }
 0x3ec   :  { %7381 = vmatprep.subr.bf16.mxu0 %v11204_v39  ;;  %8229 = vmatprep.subr.bf16.mxu1 %v11207_v40 }
 0x3ef   :  { %7382 = vmatpush1.bf16.msra.mxu0 %v11202_v42  ;;  %8230 = vmatpush1.bf16.msra.mxu1 %v11205_v44 }
 0x3f0   :  { %7383 = vmatprep.subr.bf16.mxu0 %v11210_v41  ;;  %8231 = vmatprep.subr.bf16.mxu1 %v11213_v43 }
 0x3f3   :  { %7384 = vmatpush1.bf16.msra.mxu0 %v11208_v45  ;;  %8232 = vmatpush1.bf16.msra.mxu1 %v11211_v46 }
 0x3f4   :  { %7385 = vmatprep.subr.bf16.mxu0 %v11216_v47  ;;  %8233 = vmatprep.subr.bf16.mxu1 %v11219_v48 }
 0x3f7   :  { %7386 = vmatpush1.bf16.msra.mxu0 %v11214_v51  ;;  %8234 = vmatpush1.bf16.msra.mxu1 %v11217_v52 }
 0x3f8   :  { %7387 = vmatprep.subr.bf16.mxu0 %v11222_v49  ;;  %8235 = vmatprep.subr.bf16.mxu1 %v11225_v50 }
 0x3fb   :  { %7388 = vmatpush1.bf16.msra.mxu0 %v11220_v53  ;;  %8236 = vmatpush1.bf16.msra.mxu1 %v11223_v54 }
 0x3fc   :  { %7389 = vmatprep.subr.bf16.mxu0 %v11228_v55  ;;  %8237 = vmatprep.subr.bf16.mxu1 %v11231_v56 }
 0x3ff   :  { %7390 = vmatpush1.bf16.msra.mxu0 %v11226_v59  ;;  %8238 = vmatpush1.bf16.msra.mxu1 %v11229_v60 }
 0x402   :  { %7392 = vmatmul.mubr.bf16.vlgmr.msra.gmra.mrb[0].mxu0 %v8366_v61  ;;  %8240 = vmatmul.mubr.bf16.vlgmr.msra.gmra.mrb[0].mxu1 %v8366_v61 }
 0x403   :  { %7401 = vmatprep.mubr.bf16.mxu0 %v8399_v62  ;;  %8249 = vmatprep.mubr.bf16.mxu1 %v8399_v62 }
 0x40a   :  { %7402 = vmatmul.mubr.bf16.gmra.mrb[4].mxu0 %v8398_v63  ;;  %8250 = vmatmul.mubr.bf16.gmra.mrb[4].mxu1 %v8398_v63 }
 0x4d5   :  { %v7393_v9 = vpop.f32.mrb[0].mxu0  ;;  %v8241_v10 = vpop.f32.mrb[0].mxu1 }
 0x4d6   :  { %v9440_v13 = vadd.f32 %v7393_v9, %v1107_v1  ;;  %v9448_v14 = vadd.f32 %v8241_v10, %v1115_v8  ;;  %v7395_v15 = vpop.f32.mrb[1].mxu0  ;;  %v8243_v16 = vpop.f32.mrb[1].mxu1 }
 0x4d7   :  { %v9441_v19 = vadd.f32 %v7395_v15, %v1111_v11  ;;  %v9449_v17 = vadd.f32 %v8243_v16, %v1119_v12  ;;  %v7397_v18 = vpop.f32.mrb[2].mxu0  ;;  %v8245_v20 = vpop.f32.mrb[2].mxu1 }
 0x4d8   :  { %v8260_v21 = vmax.f32 %v9440_v13, 0.0  ;;  %v8262_v22 = vmax.f32 %v9448_v14, 0.0  ;;  %v9442_v23 = vadd.f32 %v7397_v18, %v1107_v1  ;;  %v9450_v24 = vadd.f32 %v8245_v20, %v1115_v8  ;;  %v7399_v26 = vpop.f32.mrb[3].mxu0  ;;  %v8247_v25 = vpop.f32.mrb[3].mxu1 }
 0x4d9   :  { %v8261_v27 = vmax.f32 %v9441_v19, 0.0  ;;  %v8263_v28 = vmax.f32 %v9449_v17, 0.0  ;;  %v9443_v29 = vadd.f32 %v7399_v26, %v1111_v11  ;;  %v9451_v30 = vadd.f32 %v8247_v25, %v1119_v12 }
 0x4da   :  { %v8264_v31 = vmax.f32 %v9442_v23, 0.0  ;;  %v8266_v32 = vmax.f32 %v9450_v24, 0.0 }
 0x4db   :  { %v9432_v34 = vpack.c.bf16 %v8261_v27, %v8260_v21  ;;  %v9433_v36 = vpack.c.bf16 %v8263_v28, %v8262_v22  ;;  %v8265_v33 = vmax.f32 %v9443_v29, 0.0  ;;  %v8267_v35 = vmax.f32 %v9451_v30, 0.0 }
 0x4dd   :  { %8324 = vst [vmem:[%s14666_s3] sm:$0xff] %v9432_v34  ;;  %8325 = vst [vmem:[%s14666_s3 + $0x8] sm:$0xff] %v9433_v36  ;;  %v9434_v37 = vpack.c.bf16 %v8265_v33, %v8264_v31  ;;  %v9435_v38 = vpack.c.bf16 %v8267_v35, %v8266_v32  ;;  %v7403_v39 = vpop.f32.mrb[4].mxu0  ;;  %v8251_v40 = vpop.f32.mrb[4].mxu1 }
 0x4de   :  { %v9444_v42 = vadd.f32 %v7403_v39, %v1107_v1  ;;  %v9452_v44 = vadd.f32 %v8251_v40, %v1115_v8  ;;  %v7405_v41 = vpop.f32.mrb[5].mxu0  ;;  %v8253_v43 = vpop.f32.mrb[5].mxu1 }
 0x4df   :  { %8326 = vst [vmem:[%s14666_s3 + $0x10] sm:$0xff] %v9434_v37  ;;  %8327 = vst [vmem:[%s14666_s3 + $0x18] sm:$0xff] %v9435_v38  ;;  %v9445_v45 = vadd.f32 %v7405_v41, %v1111_v11  ;;  %v9453_v46 = vadd.f32 %v8253_v43, %v1119_v12  ;;  %v7407_v47 = vpop.f32.mrb[6].mxu0  ;;  %v8255_v48 = vpop.f32.mrb[6].mxu1 }
 0x4e0   :  { %v8268_v51 = vmax.f32 %v9444_v42, 0.0  ;;  %v8270_v52 = vmax.f32 %v9452_v44, 0.0  ;;  %v9446_v49 = vadd.f32 %v7407_v47, %v1107_v1  ;;  %v9454_v50 = vadd.f32 %v8255_v48, %v1115_v8  ;;  %v7409_v53 = vpop.f32.mrb[7].mxu0  ;;  %v8257_v54 = vpop.f32.mrb[7].mxu1 }
 0x4e1   :  { %v8269_v55 = vmax.f32 %v9445_v45, 0.0  ;;  %v8271_v56 = vmax.f32 %v9453_v46, 0.0  ;;  %v9447_v59 = vadd.f32 %v7409_v53, %v1111_v11  ;;  %v9455_v60 = vadd.f32 %v8257_v54, %v1119_v12 }
 0x4e2   :  { %v8272_v57 = vmax.f32 %v9446_v49, 0.0  ;;  %v8274_v58 = vmax.f32 %v9454_v50, 0.0 }
 0x4e3   :  { %v9436_v61 = vpack.c.bf16 %v8269_v55, %v8268_v51  ;;  %v9437_v62 = vpack.c.bf16 %v8271_v56, %v8270_v52  ;;  %v8273_v63 = vmax.f32 %v9447_v59, 0.0  ;;  %v8275_v0 = vmax.f32 %v9455_v60, 0.0 }
 0x4e5   :  { %8328 = vst [vmem:[%s14666_s3 + $0x20] sm:$0xff] %v9436_v61  ;;  %8329 = vst [vmem:[%s14666_s3 + $0x28] sm:$0xff] %v9437_v62  ;;  %v9438_v3 = vpack.c.bf16 %v8273_v63, %v8272_v57  ;;  %v9439_v2 = vpack.c.bf16 %v8275_v0, %v8274_v58 }
 0x4e7   :  { %8330 = vst [vmem:[%s14666_s3 + $0x30] sm:$0xff] %v9438_v3  ;;  %8331 = vst [vmem:[%s14666_s3 + $0x38] sm:$0xff] %v9439_v2 }

// kernel: encoder_lsun_forward.9
= control target key start
LH: loop header
LB: loop body
LE: loop exit
PB: predicated region body
PF: predicated region fallthrough
CT: control target
= control target key end

     0   :  { %v1060_v28 = vlaneseq  ;;  %v7653_v36 = vmov 1966171168   ;;  %s9364_s0 = inlined_call_operand.vmem [shape: bf16[2,8192], index: 0, kind: input, shape index: {}]   ;;  %s9365_s1 = inlined_call_operand.vmem [shape: bf16[8192,128], index: 1, kind: input, shape index: {}]   ;;  %s9366_s2 = inlined_call_operand.vmem [shape: f32[2,128], index: 2, kind: input, shape index: {}]   ;;  %s9367_s3 = inlined_call_operand.hbm [shape: f32[2,128], index: 3, kind: output, shape index: {}]  }
   0x1   :  { %v7107_v0 = vld [vmem:[%s9365_s1 + $0x40] sm:$0xff]   ;;  %v7111_v4 = vld [vmem:[%s9365_s1 + $0x48] sm:$0xff]   ;;  %v7115_v8 = vld [vmem:[%s9365_s1 + $0x50] sm:$0xff]   ;;  %v1058_v37 = vunpack.c.l.s4 %v7653_v36 }
   0x2   :  { %v7108_v1 = vld [vmem:[%s9365_s1 + $0xc0] sm:$0xff]   ;;  %6400 = vmatprep.subr.bf16.mxu0 %v7107_v0  ;;  %v7112_v5 = vld [vmem:[%s9365_s1 + $0xc8] sm:$0xff]   ;;  %v7116_v9 = vld [vmem:[%s9365_s1 + $0xd0] sm:$0xff]   ;;  %v1061_v33 = vshrl.u32 %v1060_v28, 7 }
   0x3   :  { %v7109_v2 = vld [vmem:[%s9365_s1] sm:$0xff]   ;;  %6422 = vmatprep.subr.bf16.mxu1 %v7108_v1  ;;  %v7113_v6 = vld [vmem:[%s9365_s1 + $0x8] sm:$0xff]   ;;  %v7117_v10 = vld [vmem:[%s9365_s1 + $0x10] sm:$0xff]   ;;  %v1059_v40 = vunpack.c.0.s8 %v1058_v37 }
   0x4   :  { %v7110_v3 = vld [vmem:[%s9365_s1 + $0x80] sm:$0xff]   ;;  %6401 = vmatpush3.bf16.msra.mxu0 %v7109_v2  ;;  %v7114_v7 = vld [vmem:[%s9365_s1 + $0x88] sm:$0xff]   ;;  %v7118_v11 = vld [vmem:[%s9365_s1 + $0x90] sm:$0xff]  }
   0x5   :  { %6423 = vmatpush3.bf16.msra.mxu1 %v7110_v3  ;;  %6402 = vmatprep.subr.bf16.mxu0 %v7111_v4  ;;  %v7119_v12 = vld [vmem:[%s9365_s1 + $0x58] sm:$0xff]   ;;  %v7123_v16 = vld [vmem:[%s9365_s1 + $0x60] sm:$0xff]   ;;  %v7127_v20 = vld [vmem:[%s9365_s1 + $0x68] sm:$0xff]   ;;  %v7780_v41 = vsub.s32 %v1059_v40, %v1061_v33 }
   0x6   :  { %6424 = vmatprep.subr.bf16.mxu1 %v7112_v5  ;;  %v7120_v13 = vld [vmem:[%s9365_s1 + $0xd8] sm:$0xff]   ;;  %v7124_v17 = vld [vmem:[%s9365_s1 + $0xe0] sm:$0xff]   ;;  %v7128_v21 = vld [vmem:[%s9365_s1 + $0xe8] sm:$0xff]  }
   0x7   :  { %v7121_v14 = vld [vmem:[%s9365_s1 + $0x18] sm:$0xff]   ;;  %v7125_v18 = vld [vmem:[%s9365_s1 + $0x20] sm:$0xff]   ;;  %v7129_v22 = vld [vmem:[%s9365_s1 + $0x28] sm:$0xff]  }
   0x8   :  { %6403 = vmatpush3.bf16.msra.mxu0 %v7113_v6  ;;  %v7122_v15 = vld [vmem:[%s9365_s1 + $0x98] sm:$0xff]   ;;  %v7126_v19 = vld [vmem:[%s9365_s1 + $0xa0] sm:$0xff]   ;;  %v7130_v23 = vld [vmem:[%s9365_s1 + $0xa8] sm:$0xff]  }
   0x9   :  { %6425 = vmatpush3.bf16.msra.mxu1 %v7114_v7  ;;  %6404 = vmatprep.subr.bf16.mxu0 %v7115_v8  ;;  %v7131_v24 = vld [vmem:[%s9365_s1 + $0x70] sm:$0xff]   ;;  %v7135_v29 = vld [vmem:[%s9365_s1 + $0x78] sm:$0xff]   ;;  %v16_v34 = vld [vmem:[%s9364_s0] sm:$0xff] }
   0xa   :  { %6426 = vmatprep.subr.bf16.mxu1 %v7116_v9  ;;  %v7132_v25 = vld [vmem:[%s9365_s1 + $0xf0] sm:$0xff]   ;;  %v7136_v30 = vld [vmem:[%s9365_s1 + $0xf8] sm:$0xff]   ;;  %v7140_v35 = vld [vmem:[%s9365_s1 + $0x140] sm:$0xff]   ;;  %v1056_v39 = vcombine.high %v16_v34, %v16_v34  ;;  %v1063_v42 = vrot.slane %v16_v34, %v7780_v41 }
   0xb   :  { %v7133_v26 = vld [vmem:[%s9365_s1 + $0x30] sm:$0xff]   ;;  %v7137_v31 = vld [vmem:[%s9365_s1 + $0x38] sm:$0xff]   ;;  %v7141_v38 = vld [vmem:[%s9365_s1 + $0x1c0] sm:$0xff]  }
   0xc   :  { %6405 = vmatpush3.bf16.msra.mxu0 %v7117_v10  ;;  %v7134_v27 = vld [vmem:[%s9365_s1 + $0xb0] sm:$0xff]   ;;  %v7138_v32 = vld [vmem:[%s9365_s1 + $0xb8] sm:$0xff]   ;;  %v7784_v43 = vrot.slane %v1056_v39, %v7780_v41  ;;  %v1071_v44 = vcombine.high %v1063_v42, %v1063_v42  ;;  %v1079_v45 = vrot.slane %v1063_v42, %v7780_v41  ;;  %v7142_v47 = vld [vmem:[%s9365_s1 + $0x100] sm:$0xff]  }
   0xd   :  { %6427 = vmatpush3.bf16.msra.mxu1 %v7118_v11  ;;  %6406 = vmatprep.subr.bf16.mxu0 %v7119_v12  ;;  %v7143_v49 = vld [vmem:[%s9365_s1 + $0x180] sm:$0xff]   ;;  %v7144_v52 = vld [vmem:[%s9365_s1 + $0x148] sm:$0xff]   ;;  %v7148_v58 = vld [vmem:[%s9365_s1 + $0x150] sm:$0xff]  }
   0xe   :  { %6428 = vmatprep.subr.bf16.mxu1 %v7120_v13  ;;  %v1072_v46 = vcombine.high %v7784_v43, %v7784_v43  ;;  %v1093_v48 = vrot.slane %v1071_v44, %v7780_v41  ;;  %v1101_v51 = vcombine.high %v1079_v45, %v1079_v45  ;;  %v7145_v54 = vld [vmem:[%s9365_s1 + $0x1c8] sm:$0xff]   ;;  %v7149_v59 = vld [vmem:[%s9365_s1 + $0x1d0] sm:$0xff]   ;;  %v7152_v62 = vld [vmem:[%s9365_s1 + $0x158] sm:$0xff]  }
   0xf   :  { %v7146_v55 = vld [vmem:[%s9365_s1 + $0x108] sm:$0xff]   ;;  %v7150_v60 = vld [vmem:[%s9365_s1 + $0x110] sm:$0xff]   ;;  %v7153_v63 = vld [vmem:[%s9365_s1 + $0x1d8] sm:$0xff]  }
  0x10   :  { %6407 = vmatpush3.bf16.msra.mxu0 %v7121_v14  ;;  %v1100_v50 = vrot.slane %v1072_v46, %v7780_v41  ;;  %4616 = vmatprep.mubr.bf16.mxu0 %v1093_v48  ;;  %v1103_v53 = vcombine.high %v1093_v48, %v1093_v48  ;;  %v7147_v57 = vld [vmem:[%s9365_s1 + $0x188] sm:$0xff]   ;;  %v7151_v61 = vld [vmem:[%s9365_s1 + $0x190] sm:$0xff]   ;;  %v7154_v0 = vld [vmem:[%s9365_s1 + $0x118] sm:$0xff]  }
  0x11   :  { %6429 = vmatpush3.bf16.msra.mxu1 %v7122_v15  ;;  %6408 = vmatprep.subr.bf16.mxu0 %v7123_v16  ;;  %v7155_v1 = vld [vmem:[%s9365_s1 + $0x198] sm:$0xff]   ;;  %v7156_v2 = vld [vmem:[%s9365_s1 + $0x160] sm:$0xff]   ;;  %v7160_v6 = vld [vmem:[%s9365_s1 + $0x168] sm:$0xff]  }
  0x12   :  { %6430 = vmatprep.subr.bf16.mxu1 %v7124_v17  ;;  %v1104_v56 = vcombine.high %v1100_v50, %v1100_v50  ;;  %4656 = vmatprep.mubr.bf16.mxu1 %v1103_v53  ;;  %v7157_v3 = vld [vmem:[%s9365_s1 + $0x1e0] sm:$0xff]   ;;  %v7161_v7 = vld [vmem:[%s9365_s1 + $0x1e8] sm:$0xff]   ;;  %v7164_v10 = vld [vmem:[%s9365_s1 + $0x170] sm:$0xff]  }
  0x13   :  { %v7158_v4 = vld [vmem:[%s9365_s1 + $0x120] sm:$0xff]   ;;  %v7162_v8 = vld [vmem:[%s9365_s1 + $0x128] sm:$0xff]   ;;  %v7165_v11 = vld [vmem:[%s9365_s1 + $0x1f0] sm:$0xff]  }
  0x14   :  { %6409 = vmatpush3.bf16.msra.mxu0 %v7125_v18  ;;  %v7159_v5 = vld [vmem:[%s9365_s1 + $0x1a0] sm:$0xff]   ;;  %v7163_v9 = vld [vmem:[%s9365_s1 + $0x1a8] sm:$0xff]   ;;  %v7166_v12 = vld [vmem:[%s9365_s1 + $0x130] sm:$0xff]   ;;  %v1086_v18 = vrot.slane %v7784_v43, %v7780_v41 }
  0x15   :  { %6431 = vmatpush3.bf16.msra.mxu1 %v7126_v19  ;;  %6410 = vmatprep.subr.bf16.mxu0 %v7127_v20  ;;  %v7167_v13 = vld [vmem:[%s9365_s1 + $0x1b0] sm:$0xff]   ;;  %v7168_v14 = vld [vmem:[%s9365_s1 + $0x178] sm:$0xff]   ;;  %v7172_v19 = vld [vmem:[%s9365_s1 + $0x240] sm:$0xff]  }
  0x16   :  { %6432 = vmatprep.subr.bf16.mxu1 %v7128_v21  ;;  %v7169_v15 = vld [vmem:[%s9365_s1 + $0x1f8] sm:$0xff]   ;;  %v7173_v20 = vld [vmem:[%s9365_s1 + $0x2c0] sm:$0xff]   ;;  %v7180_v28 = vld [vmem:[%s9365_s1 + $0x250] sm:$0xff]  }
  0x17   :  { %v7170_v16 = vld [vmem:[%s9365_s1 + $0x138] sm:$0xff]   ;;  %v7174_v21 = vld [vmem:[%s9365_s1 + $0x200] sm:$0xff]   ;;  %v7192_v40 = vld [vmem:[%s9365_s1 + $0x268] sm:$0xff]  }
  0x18   :  { %6411 = vmatpush3.bf16.msra.mxu0 %v7129_v22  ;;  %v7171_v17 = vld [vmem:[%s9365_s1 + $0x1b8] sm:$0xff]   ;;  %v7175_v22 = vld [vmem:[%s9365_s1 + $0x280] sm:$0xff]   ;;  %v7193_v42 = vld [vmem:[%s9365_s1 + $0x2e8] sm:$0xff]  }
  0x19   :  { %6433 = vmatpush3.bf16.msra.mxu1 %v7130_v23  ;;  %6412 = vmatprep.subr.bf16.mxu0 %v7131_v24  ;;  %v1102_v23 = vcombine.high %v1086_v18, %v1086_v18  ;;  %v7176_v24 = vld [vmem:[%s9365_s1 + $0x248] sm:$0xff]   ;;  %v7185_v33 = vld [vmem:[%s9365_s1 + $0x2d8] sm:$0xff]   ;;  %v7188_v36 = vld [vmem:[%s9365_s1 + $0x260] sm:$0xff]  }
  0x1a   :  { %6434 = vmatprep.subr.bf16.mxu1 %v7132_v25  ;;  %v7177_v25 = vld [vmem:[%s9365_s1 + $0x2c8] sm:$0xff]   ;;  %v7186_v34 = vld [vmem:[%s9365_s1 + $0x218] sm:$0xff]   ;;  %v7189_v37 = vld [vmem:[%s9365_s1 + $0x2e0] sm:$0xff]  }
  0x1b   :  { %v7191_v39 = vld [vmem:[%s9365_s1 + $0x2a0] sm:$0xff]   ;;  %v7194_v43 = vld [vmem:[%s9365_s1 + $0x228] sm:$0xff]  }
  0x1c   :  { %6413 = vmatpush3.bf16.msra.mxu0 %v7133_v26  ;;  %v7178_v26 = vld [vmem:[%s9365_s1 + $0x208] sm:$0xff]  }
  0x1d   :  { %6435 = vmatpush3.bf16.msra.mxu1 %v7134_v27  ;;  %6414 = vmatprep.subr.bf16.mxu0 %v7135_v29  ;;  %v7179_v27 = vld [vmem:[%s9365_s1 + $0x288] sm:$0xff]   ;;  %v7181_v29 = vld [vmem:[%s9365_s1 + $0x2d0] sm:$0xff]  }
  0x1e   :  { %6436 = vmatprep.subr.bf16.mxu1 %v7136_v30  ;;  %v7182_v30 = vld [vmem:[%s9365_s1 + $0x210] sm:$0xff]   ;;  %v7195_v44 = vld [vmem:[%s9365_s1 + $0x2a8] sm:$0xff]  }
  0x1f   :  { %v17_v46 = vld [vmem:[%s9364_s0 + $0x8] sm:$0xff] }
  0x20   :  { %6415 = vmatpush3.bf16.msra.mxu0 %v7137_v31  ;;  %v7183_v31 = vld [vmem:[%s9365_s1 + $0x290] sm:$0xff]   ;;  %v1112_v48 = vrot.slane %v17_v46, %v7780_v41 }
  0x21   :  { %6437 = vmatpush3.bf16.msra.mxu1 %v7138_v32  ;;  %6444 = vmatprep.subr.bf16.mxu0 %v7140_v35  ;;  %v7184_v32 = vld [vmem:[%s9365_s1 + $0x258] sm:$0xff]  }
  0x22   :  { %6466 = vmatprep.subr.bf16.mxu1 %v7141_v38  ;;  %v7187_v35 = vld [vmem:[%s9365_s1 + $0x298] sm:$0xff]   ;;  %v7190_v38 = vld [vmem:[%s9365_s1 + $0x220] sm:$0xff]  }
  0x23   :  { %4617 = vmatmul.mubr.bf16.vlgmr.msra.gmra.mrb[0].mxu0 %v1079_v45  ;;  %v7196_v45 = vld [vmem:[%s9365_s1 + $0x270] sm:$0xff]  }
  0x24   :  { %6445 = vmatpush3.bf16.msra.mxu0 %v7142_v47  ;;  %4657 = vmatmul.mubr.bf16.vlgmr.msra.gmra.mrb[0].mxu1 %v1101_v51  ;;  %v7197_v47 = vld [vmem:[%s9365_s1 + $0x2f0] sm:$0xff]  }
  0x25   :  { %6446 = vmatprep.subr.bf16.mxu0 %v7144_v52  ;;  %6467 = vmatpush3.bf16.msra.mxu1 %v7143_v49  ;;  %v1105_v49 = vcombine.high %v17_v46, %v17_v46  ;;  %v7199_v51 = vld [vmem:[%s9365_s1 + $0x2b0] sm:$0xff]   ;;  %v1120_v52 = vcombine.high %v1112_v48, %v1112_v48 }
  0x26   :  { %4696 = vmatprep.mubr.bf16.mxu0 %v1100_v50  ;;  %6468 = vmatprep.subr.bf16.mxu1 %v7145_v54  ;;  %v7198_v50 = vld [vmem:[%s9365_s1 + $0x230] sm:$0xff]   ;;  %v7200_v54 = vld [vmem:[%s9365_s1 + $0x278] sm:$0xff]  }
  0x27   :  { %4736 = vmatprep.mubr.bf16.mxu1 %v1104_v56  ;;  %v7972_v53 = vrot.slane %v1105_v49, %v7780_v41  ;;  %v1142_v56 = vrot.slane %v1120_v52, %v7780_v41  ;;  %v7247_v46 = vld [vmem:[%s9365_s1 + $0x410] sm:$0xff]   ;;  %v7250_v49 = vld [vmem:[%s9365_s1 + $0x4d8] sm:$0xff]   ;;  %v7253_v52 = vld [vmem:[%s9365_s1 + $0x460] sm:$0xff]  }
  0x28   :  { %6447 = vmatpush3.bf16.msra.mxu0 %v7146_v55  ;;  %v7201_v55 = vld [vmem:[%s9365_s1 + $0x2f8] sm:$0xff]  }
  0x29   :  { %6448 = vmatprep.subr.bf16.mxu0 %v7148_v58  ;;  %6469 = vmatpush3.bf16.msra.mxu1 %v7147_v57  ;;  %v1121_v57 = vcombine.high %v7972_v53, %v7972_v53  ;;  %v7202_v58 = vld [vmem:[%s9365_s1 + $0x238] sm:$0xff]  }
  0x2a   :  { %6470 = vmatprep.subr.bf16.mxu1 %v7149_v59  ;;  %v7203_v59 = vld [vmem:[%s9365_s1 + $0x2b8] sm:$0xff]  }
  0x2c   :  { %6449 = vmatpush3.bf16.msra.mxu0 %v7150_v60  ;;  %v1152_v60 = vcombine.high %v1142_v56, %v1142_v56 }
  0x2d   :  { %6450 = vmatprep.subr.bf16.mxu0 %v7152_v62  ;;  %6471 = vmatpush3.bf16.msra.mxu1 %v7151_v61  ;;  %v1128_v61 = vrot.slane %v1112_v48, %v7780_v41  ;;  %v7204_v62 = vld [vmem:[%s9365_s1 + $0x340] sm:$0xff]   ;;  %v7249_v48 = vld [vmem:[%s9365_s1 + $0x458] sm:$0xff]  }
  0x2e   :  { %6472 = vmatprep.subr.bf16.mxu1 %v7153_v63  ;;  %v7205_v63 = vld [vmem:[%s9365_s1 + $0x3c0] sm:$0xff]  }
  0x30   :  { %6451 = vmatpush3.bf16.msra.mxu0 %v7154_v0  ;;  %v1149_v0 = vrot.slane %v1121_v57, %v7780_v41  ;;  %v7258_v57 = vld [vmem:[%s9365_s1 + $0x4e8] sm:$0xff]  }
  0x31   :  { %6452 = vmatprep.subr.bf16.mxu0 %v7156_v2  ;;  %6473 = vmatpush3.bf16.msra.mxu1 %v7155_v1  ;;  %v7206_v1 = vld [vmem:[%s9365_s1 + $0x300] sm:$0xff]  }
  0x32   :  { %6474 = vmatprep.subr.bf16.mxu1 %v7157_v3  ;;  %v7207_v2 = vld [vmem:[%s9365_s1 + $0x380] sm:$0xff]   ;;  %v1150_v3 = vcombine.high %v1128_v61, %v1128_v61 }
  0x34   :  { %6453 = vmatpush3.bf16.msra.mxu0 %v7158_v4  ;;  %v7208_v4 = vld [vmem:[%s9365_s1 + $0x348] sm:$0xff]  }
  0x35   :  { %6454 = vmatprep.subr.bf16.mxu0 %v7160_v6  ;;  %6475 = vmatpush3.bf16.msra.mxu1 %v7159_v5  ;;  %v7209_v5 = vld [vmem:[%s9365_s1 + $0x3c8] sm:$0xff]   ;;  %v1153_v6 = vcombine.high %v1149_v0, %v1149_v0 }
  0x36   :  { %6476 = vmatprep.subr.bf16.mxu1 %v7161_v7  ;;  %v7210_v7 = vld [vmem:[%s9365_s1 + $0x308] sm:$0xff]  }
  0x38   :  { %6455 = vmatpush3.bf16.msra.mxu0 %v7162_v8  ;;  %v7211_v8 = vld [vmem:[%s9365_s1 + $0x388] sm:$0xff]  }
  0x39   :  { %6456 = vmatprep.subr.bf16.mxu0 %v7164_v10  ;;  %6477 = vmatpush3.bf16.msra.mxu1 %v7163_v9  ;;  %v7212_v9 = vld [vmem:[%s9365_s1 + $0x350] sm:$0xff]  }
  0x3a   :  { %6478 = vmatprep.subr.bf16.mxu1 %v7165_v11  ;;  %v7213_v10 = vld [vmem:[%s9365_s1 + $0x3d0] sm:$0xff]  }
  0x3b   :  { %v7214_v11 = vld [vmem:[%s9365_s1 + $0x310] sm:$0xff]  }
  0x3c   :  { %6457 = vmatpush3.bf16.msra.mxu0 %v7166_v12  ;;  %v7215_v12 = vld [vmem:[%s9365_s1 + $0x390] sm:$0xff]  }
  0x3d   :  { %6458 = vmatprep.subr.bf16.mxu0 %v7168_v14  ;;  %6479 = vmatpush3.bf16.msra.mxu1 %v7167_v13  ;;  %v7216_v13 = vld [vmem:[%s9365_s1 + $0x358] sm:$0xff]  }
  0x3e   :  { %6480 = vmatprep.subr.bf16.mxu1 %v7169_v15  ;;  %v7217_v14 = vld [vmem:[%s9365_s1 + $0x3d8] sm:$0xff]  }
  0x3f   :  { %v7218_v15 = vld [vmem:[%s9365_s1 + $0x318] sm:$0xff]  }
  0x40   :  { %6459 = vmatpush3.bf16.msra.mxu0 %v7170_v16  ;;  %v7219_v16 = vld [vmem:[%s9365_s1 + $0x398] sm:$0xff]  }
  0x41   :  { %6488 = vmatprep.subr.bf16.mxu0 %v7172_v19  ;;  %6481 = vmatpush3.bf16.msra.mxu1 %v7171_v17  ;;  %v7220_v17 = vld [vmem:[%s9365_s1 + $0x360] sm:$0xff]  }
  0x42   :  { %6510 = vmatprep.subr.bf16.mxu1 %v7173_v20  ;;  %v7222_v19 = vld [vmem:[%s9365_s1 + $0x320] sm:$0xff]  }
  0x43   :  { %4697 = vmatmul.mubr.bf16.vlgmr.msra.gmra.mrb[4].mxu0 %v1086_v18  ;;  %v7221_v18 = vld [vmem:[%s9365_s1 + $0x3e0] sm:$0xff]  }
  0x44   :  { %6489 = vmatpush3.bf16.msra.mxu0 %v7174_v21  ;;  %4737 = vmatmul.mubr.bf16.vlgmr.msra.gmra.mrb[4].mxu1 %v1102_v23  ;;  %v7223_v20 = vld [vmem:[%s9365_s1 + $0x3a0] sm:$0xff]   ;;  %v7224_v21 = vld [vmem:[%s9365_s1 + $0x368] sm:$0xff]  }
  0x45   :  { %6490 = vmatprep.subr.bf16.mxu0 %v7176_v24  ;;  %6511 = vmatpush3.bf16.msra.mxu1 %v7175_v22  ;;  %v7225_v22 = vld [vmem:[%s9365_s1 + $0x3e8] sm:$0xff]  }
  0x46   :  { %6512 = vmatprep.subr.bf16.mxu1 %v7177_v25  ;;  %4776 = vmatprep.mubr.bf16.mxu0 %v1142_v56  ;;  %v7226_v23 = vld [vmem:[%s9365_s1 + $0x328] sm:$0xff]   ;;  %v7228_v25 = vld [vmem:[%s9365_s1 + $0x370] sm:$0xff]  }
  0x47   :  { %4816 = vmatprep.mubr.bf16.mxu1 %v1152_v60  ;;  %v7227_v24 = vld [vmem:[%s9365_s1 + $0x3a8] sm:$0xff]   ;;  %v7261_v60 = vld [vmem:[%s9365_s1 + $0x470] sm:$0xff]  }
  0x48   :  { %6491 = vmatpush3.bf16.msra.mxu0 %v7178_v26  ;;  %v7229_v26 = vld [vmem:[%s9365_s1 + $0x3f0] sm:$0xff]   ;;  %v7257_v56 = vld [vmem:[%s9365_s1 + $0x468] sm:$0xff]  }
  0x49   :  { %6492 = vmatprep.subr.bf16.mxu0 %v7180_v28  ;;  %6513 = vmatpush3.bf16.msra.mxu1 %v7179_v27  ;;  %v7230_v27 = vld [vmem:[%s9365_s1 + $0x330] sm:$0xff]  }
  0x4a   :  { %6514 = vmatprep.subr.bf16.mxu1 %v7181_v29  ;;  %v7231_v28 = vld [vmem:[%s9365_s1 + $0x3b0] sm:$0xff]   ;;  %v7232_v29 = vld [vmem:[%s9365_s1 + $0x378] sm:$0xff]  }
  0x4c   :  { %6493 = vmatpush3.bf16.msra.mxu0 %v7182_v30  ;;  %v7233_v30 = vld [vmem:[%s9365_s1 + $0x3f8] sm:$0xff]  }
  0x4d   :  { %6494 = vmatprep.subr.bf16.mxu0 %v7184_v32  ;;  %6515 = vmatpush3.bf16.msra.mxu1 %v7183_v31  ;;  %v7234_v31 = vld [vmem:[%s9365_s1 + $0x338] sm:$0xff]  }
  0x4e   :  { %6516 = vmatprep.subr.bf16.mxu1 %v7185_v33  ;;  %v7235_v32 = vld [vmem:[%s9365_s1 + $0x3b8] sm:$0xff]   ;;  %v1135_v33 = vrot.slane %v7972_v53, %v7780_v41  ;;  %v7254_v53 = vld [vmem:[%s9365_s1 + $0x4e0] sm:$0xff]  }
  0x50   :  { %6495 = vmatpush3.bf16.msra.mxu0 %v7186_v34  ;;  %v7237_v34 = vld [vmem:[%s9365_s1 + $0x440] sm:$0xff]  }
  0x51   :  { %6496 = vmatprep.subr.bf16.mxu0 %v7188_v36  ;;  %6517 = vmatpush3.bf16.msra.mxu1 %v7187_v35  ;;  %v7238_v35 = vld [vmem:[%s9365_s1 + $0x4c0] sm:$0xff]  }
  0x52   :  { %6518 = vmatprep.subr.bf16.mxu1 %v7189_v37  ;;  %v7239_v36 = vld [vmem:[%s9365_s1 + $0x400] sm:$0xff]  }
  0x53   :  { %v7240_v37 = vld [vmem:[%s9365_s1 + $0x480] sm:$0xff]  }
  0x54   :  { %6497 = vmatpush3.bf16.msra.mxu0 %v7190_v38  ;;  %v1151_v38 = vcombine.high %v1135_v33, %v1135_v33 }
  0x55   :  { %6498 = vmatprep.subr.bf16.mxu0 %v7192_v40  ;;  %6519 = vmatpush3.bf16.msra.mxu1 %v7191_v39  ;;  %v7241_v39 = vld [vmem:[%s9365_s1 + $0x448] sm:$0xff]  }
  0x56   :  { %6520 = vmatprep.subr.bf16.mxu1 %v7193_v42  ;;  %v7242_v40 = vld [vmem:[%s9365_s1 + $0x4c8] sm:$0xff]  }
  0x57   :  { %v7243_v42 = vld [vmem:[%s9365_s1 + $0x408] sm:$0xff]  }
  0x58   :  { %6499 = vmatpush3.bf16.msra.mxu0 %v7194_v43  ;;  %v7244_v43 = vld [vmem:[%s9365_s1 + $0x488] sm:$0xff]  }
  0x59   :  { %6500 = vmatprep.subr.bf16.mxu0 %v7196_v45  ;;  %6521 = vmatpush3.bf16.msra.mxu1 %v7195_v44  ;;  %v7245_v44 = vld [vmem:[%s9365_s1 + $0x450] sm:$0xff]  }
  0x5a   :  { %6522 = vmatprep.subr.bf16.mxu1 %v7197_v47  ;;  %v7246_v45 = vld [vmem:[%s9365_s1 + $0x4d0] sm:$0xff]  }
  0x5b   :  { %v7248_v47 = vld [vmem:[%s9365_s1 + $0x490] sm:$0xff]  }
  0x5c   :  { %6501 = vmatpush3.bf16.msra.mxu0 %v7198_v50  ;;  %v7251_v50 = vld [vmem:[%s9365_s1 + $0x418] sm:$0xff]  }
  0x5d   :  { %6502 = vmatprep.subr.bf16.mxu0 %v7200_v54  ;;  %6523 = vmatpush3.bf16.msra.mxu1 %v7199_v51  ;;  %v7252_v51 = vld [vmem:[%s9365_s1 + $0x498] sm:$0xff]   ;;  %v7255_v54 = vld [vmem:[%s9365_s1 + $0x420] sm:$0xff]  }
  0x5e   :  { %6524 = vmatprep.subr.bf16.mxu1 %v7201_v55  ;;  %v7256_v55 = vld [vmem:[%s9365_s1 + $0x4a0] sm:$0xff]  }
  0x60   :  { %6503 = vmatpush3.bf16.msra.mxu0 %v7202_v58  ;;  %v7259_v58 = vld [vmem:[%s9365_s1 + $0x428] sm:$0xff]  }
  0x61   :  { %6532 = vmatprep.subr.bf16.mxu0 %v7204_v62  ;;  %6525 = vmatpush3.bf16.msra.mxu1 %v7203_v59  ;;  %v7260_v59 = vld [vmem:[%s9365_s1 + $0x4a8] sm:$0xff]   ;;  %v7262_v62 = vld [vmem:[%s9365_s1 + $0x4f0] sm:$0xff]  }
  0x62   :  { %6554 = vmatprep.subr.bf16.mxu1 %v7205_v63 }
  0x63   :  { %4777 = vmatmul.mubr.bf16.vlgmr.msra.gmra.mrb[8].mxu0 %v1128_v61  ;;  %v18_v61 = vld [vmem:[%s9364_s0 + $0x10] sm:$0xff] }
  0x64   :  { %6533 = vmatpush3.bf16.msra.mxu0 %v7206_v1  ;;  %4856 = vmatprep.mubr.bf16.mxu0 %v1149_v0  ;;  %v1161_v63 = vrot.slane %v18_v61, %v7780_v41  ;;  %v1154_v0 = vcombine.high %v18_v61, %v18_v61  ;;  %v7263_v1 = vld [vmem:[%s9365_s1 + $0x430] sm:$0xff]  }
  0x65   :  { %4817 = vmatmul.mubr.bf16.vlgmr.msra.gmra.mrb[8].mxu1 %v1150_v3  ;;  %6534 = vmatprep.subr.bf16.mxu0 %v7208_v4  ;;  %v7312_v61 = vld [vmem:[%s9365_s1 + $0x610] sm:$0xff]  }
  0x66   :  { %6555 = vmatpush3.bf16.msra.mxu1 %v7207_v2  ;;  %4896 = vmatprep.mubr.bf16.mxu1 %v1153_v6  ;;  %v7264_v2 = vld [vmem:[%s9365_s1 + $0x4b0] sm:$0xff]   ;;  %v1169_v3 = vcombine.high %v1161_v63, %v1161_v63  ;;  %v8178_v4 = vrot.slane %v1154_v0, %v7780_v41  ;;  %v7266_v6 = vld [vmem:[%s9365_s1 + $0x4f8] sm:$0xff]  }
  0x67   :  { %6556 = vmatprep.subr.bf16.mxu1 %v7209_v5  ;;  %v7265_v5 = vld [vmem:[%s9365_s1 + $0x478] sm:$0xff]  }
  0x68   :  { %6535 = vmatpush3.bf16.msra.mxu0 %v7210_v7  ;;  %v1191_v7 = vrot.slane %v1169_v3, %v7780_v41  ;;  %v7315_v0 = vld [vmem:[%s9365_s1 + $0x6d8] sm:$0xff]   ;;  %v7318_v3 = vld [vmem:[%s9365_s1 + $0x660] sm:$0xff]  }
  0x69   :  { %6536 = vmatprep.subr.bf16.mxu0 %v7212_v9  ;;  %v7267_v9 = vld [vmem:[%s9365_s1 + $0x438] sm:$0xff]  }
  0x6a   :  { %6557 = vmatpush3.bf16.msra.mxu1 %v7211_v8  ;;  %v1170_v8 = vcombine.high %v8178_v4, %v8178_v4 }
  0x6b   :  { %6558 = vmatprep.subr.bf16.mxu1 %v7213_v10  ;;  %v7268_v10 = vld [vmem:[%s9365_s1 + $0x4b8] sm:$0xff]  }
  0x6c   :  { %6537 = vmatpush3.bf16.msra.mxu0 %v7214_v11  ;;  %v1201_v11 = vcombine.high %v1191_v7, %v1191_v7 }
  0x6d   :  { %6538 = vmatprep.subr.bf16.mxu0 %v7216_v13  ;;  %v7269_v13 = vld [vmem:[%s9365_s1 + $0x540] sm:$0xff]  }
  0x6e   :  { %6559 = vmatpush3.bf16.msra.mxu1 %v7215_v12  ;;  %v1177_v12 = vrot.slane %v1161_v63, %v7780_v41  ;;  %v7314_v63 = vld [vmem:[%s9365_s1 + $0x658] sm:$0xff]  }
  0x6f   :  { %6560 = vmatprep.subr.bf16.mxu1 %v7217_v14  ;;  %v7270_v14 = vld [vmem:[%s9365_s1 + $0x5c0] sm:$0xff]  }
  0x70   :  { %6539 = vmatpush3.bf16.msra.mxu0 %v7218_v15  ;;  %v1198_v15 = vrot.slane %v1170_v8, %v7780_v41  ;;  %v7323_v8 = vld [vmem:[%s9365_s1 + $0x6e8] sm:$0xff]  }
  0x71   :  { %6540 = vmatprep.subr.bf16.mxu0 %v7220_v17  ;;  %v7272_v17 = vld [vmem:[%s9365_s1 + $0x580] sm:$0xff]  }
  0x72   :  { %6561 = vmatpush3.bf16.msra.mxu1 %v7219_v16  ;;  %v7271_v16 = vld [vmem:[%s9365_s1 + $0x500] sm:$0xff]  }
  0x73   :  { %6562 = vmatprep.subr.bf16.mxu1 %v7221_v18  ;;  %v1199_v18 = vcombine.high %v1177_v12, %v1177_v12 }
  0x74   :  { %6541 = vmatpush3.bf16.msra.mxu0 %v7222_v19  ;;  %v7273_v19 = vld [vmem:[%s9365_s1 + $0x548] sm:$0xff]  }
  0x75   :  { %6542 = vmatprep.subr.bf16.mxu0 %v7224_v21  ;;  %v1202_v21 = vcombine.high %v1198_v15, %v1198_v15 }
  0x76   :  { %6563 = vmatpush3.bf16.msra.mxu1 %v7223_v20  ;;  %v7274_v20 = vld [vmem:[%s9365_s1 + $0x5c8] sm:$0xff]  }
  0x77   :  { %6564 = vmatprep.subr.bf16.mxu1 %v7225_v22  ;;  %v7275_v22 = vld [vmem:[%s9365_s1 + $0x508] sm:$0xff]  }
  0x78   :  { %6543 = vmatpush3.bf16.msra.mxu0 %v7226_v23  ;;  %v7276_v23 = vld [vmem:[%s9365_s1 + $0x588] sm:$0xff]  }
  0x79   :  { %6544 = vmatprep.subr.bf16.mxu0 %v7228_v25  ;;  %v7278_v25 = vld [vmem:[%s9365_s1 + $0x5d0] sm:$0xff]  }
  0x7a   :  { %6565 = vmatpush3.bf16.msra.mxu1 %v7227_v24  ;;  %v7277_v24 = vld [vmem:[%s9365_s1 + $0x550] sm:$0xff]  }
  0x7b   :  { %6566 = vmatprep.subr.bf16.mxu1 %v7229_v26  ;;  %v7279_v26 = vld [vmem:[%s9365_s1 + $0x510] sm:$0xff]  }
  0x7c   :  { %6545 = vmatpush3.bf16.msra.mxu0 %v7230_v27  ;;  %v7280_v27 = vld [vmem:[%s9365_s1 + $0x590] sm:$0xff]  }
  0x7d   :  { %6546 = vmatprep.subr.bf16.mxu0 %v7232_v29  ;;  %v7282_v29 = vld [vmem:[%s9365_s1 + $0x5d8] sm:$0xff]  }
  0x7e   :  { %6567 = vmatpush3.bf16.msra.mxu1 %v7231_v28  ;;  %v7281_v28 = vld [vmem:[%s9365_s1 + $0x558] sm:$0xff]  }
  0x7f   :  { %6568 = vmatprep.subr.bf16.mxu1 %v7233_v30  ;;  %v7283_v30 = vld [vmem:[%s9365_s1 + $0x518] sm:$0xff]  }
  0x80   :  { %6547 = vmatpush3.bf16.msra.mxu0 %v7234_v31  ;;  %v7284_v31 = vld [vmem:[%s9365_s1 + $0x598] sm:$0xff]  }
  0x81   :  { %6576 = vmatprep.subr.bf16.mxu0 %v7237_v34  ;;  %v7287_v34 = vld [vmem:[%s9365_s1 + $0x520] sm:$0xff]  }
  0x82   :  { %6569 = vmatpush3.bf16.msra.mxu1 %v7235_v32  ;;  %v7285_v32 = vld [vmem:[%s9365_s1 + $0x560] sm:$0xff]  }
  0x83   :  { %4857 = vmatmul.mubr.bf16.vlgmr.msra.gmra.mrb[12].mxu0 %v1135_v33  ;;  %6598 = vmatprep.subr.bf16.mxu1 %v7238_v35  ;;  %v7286_v33 = vld [vmem:[%s9365_s1 + $0x5e0] sm:$0xff]  }
  0x84   :  { %6577 = vmatpush3.bf16.msra.mxu0 %v7239_v36  ;;  %4936 = vmatprep.mubr.bf16.mxu0 %v1191_v7  ;;  %v7288_v35 = vld [vmem:[%s9365_s1 + $0x5a0] sm:$0xff]   ;;  %v7289_v36 = vld [vmem:[%s9365_s1 + $0x568] sm:$0xff]  }
  0x85   :  { %4897 = vmatmul.mubr.bf16.vlgmr.msra.gmra.mrb[12].mxu1 %v1151_v38  ;;  %6578 = vmatprep.subr.bf16.mxu0 %v7241_v39  ;;  %v7291_v38 = vld [vmem:[%s9365_s1 + $0x528] sm:$0xff]  }
  0x86   :  { %6599 = vmatpush3.bf16.msra.mxu1 %v7240_v37  ;;  %4976 = vmatprep.mubr.bf16.mxu1 %v1201_v11  ;;  %v7290_v37 = vld [vmem:[%s9365_s1 + $0x5e8] sm:$0xff]   ;;  %v7326_v11 = vld [vmem:[%s9365_s1 + $0x670] sm:$0xff]  }
  0x87   :  { %6600 = vmatprep.subr.bf16.mxu1 %v7242_v40  ;;  %v7292_v39 = vld [vmem:[%s9365_s1 + $0x5a8] sm:$0xff]   ;;  %v7293_v40 = vld [vmem:[%s9365_s1 + $0x570] sm:$0xff]  }
  0x88   :  { %6579 = vmatpush3.bf16.msra.mxu0 %v7243_v42  ;;  %v7294_v42 = vld [vmem:[%s9365_s1 + $0x5f0] sm:$0xff]   ;;  %v7322_v7 = vld [vmem:[%s9365_s1 + $0x668] sm:$0xff]  }
  0x89   :  { %6580 = vmatprep.subr.bf16.mxu0 %v7245_v44  ;;  %v7296_v44 = vld [vmem:[%s9365_s1 + $0x5b0] sm:$0xff]  }
  0x8a   :  { %6601 = vmatpush3.bf16.msra.mxu1 %v7244_v43  ;;  %v7295_v43 = vld [vmem:[%s9365_s1 + $0x530] sm:$0xff]  }
  0x8b   :  { %6602 = vmatprep.subr.bf16.mxu1 %v7246_v45  ;;  %v7297_v45 = vld [vmem:[%s9365_s1 + $0x578] sm:$0xff]  }
  0x8c   :  { %6581 = vmatpush3.bf16.msra.mxu0 %v7247_v46  ;;  %v7298_v46 = vld [vmem:[%s9365_s1 + $0x5f8] sm:$0xff]  }
  0x8d   :  { %6582 = vmatprep.subr.bf16.mxu0 %v7249_v48  ;;  %v7300_v48 = vld [vmem:[%s9365_s1 + $0x5b8] sm:$0xff]  }
  0x8e   :  { %6603 = vmatpush3.bf16.msra.mxu1 %v7248_v47  ;;  %v7299_v47 = vld [vmem:[%s9365_s1 + $0x538] sm:$0xff]  }
  0x8f   :  { %6604 = vmatprep.subr.bf16.mxu1 %v7250_v49  ;;  %v1184_v49 = vrot.slane %v8178_v4, %v7780_v41  ;;  %v7319_v4 = vld [vmem:[%s9365_s1 + $0x6e0] sm:$0xff]  }
  0x90   :  { %6583 = vmatpush3.bf16.msra.mxu0 %v7251_v50  ;;  %v7302_v50 = vld [vmem:[%s9365_s1 + $0x640] sm:$0xff]  }
  0x91   :  { %6584 = vmatprep.subr.bf16.mxu0 %v7253_v52  ;;  %v7304_v52 = vld [vmem:[%s9365_s1 + $0x600] sm:$0xff]  }
  0x92   :  { %6605 = vmatpush3.bf16.msra.mxu1 %v7252_v51  ;;  %v7303_v51 = vld [vmem:[%s9365_s1 + $0x6c0] sm:$0xff]  }
  0x93   :  { %6606 = vmatprep.subr.bf16.mxu1 %v7254_v53  ;;  %v7305_v53 = vld [vmem:[%s9365_s1 + $0x680] sm:$0xff]  }
  0x94   :  { %6585 = vmatpush3.bf16.msra.mxu0 %v7255_v54  ;;  %v1200_v54 = vcombine.high %v1184_v49, %v1184_v49 }
  0x95   :  { %6586 = vmatprep.subr.bf16.mxu0 %v7257_v56  ;;  %v7307_v56 = vld [vmem:[%s9365_s1 + $0x6c8] sm:$0xff]  }
  0x96   :  { %6607 = vmatpush3.bf16.msra.mxu1 %v7256_v55  ;;  %v7306_v55 = vld [vmem:[%s9365_s1 + $0x648] sm:$0xff]  }
  0x97   :  { %6608 = vmatprep.subr.bf16.mxu1 %v7258_v57  ;;  %v7308_v57 = vld [vmem:[%s9365_s1 + $0x608] sm:$0xff]  }
  0x98   :  { %6587 = vmatpush3.bf16.msra.mxu0 %v7259_v58  ;;  %v7309_v58 = vld [vmem:[%s9365_s1 + $0x688] sm:$0xff]  }
  0x99   :  { %6588 = vmatprep.subr.bf16.mxu0 %v7261_v60  ;;  %v7311_v60 = vld [vmem:[%s9365_s1 + $0x6d0] sm:$0xff]  }
  0x9a   :  { %6609 = vmatpush3.bf16.msra.mxu1 %v7260_v59  ;;  %v7310_v59 = vld [vmem:[%s9365_s1 + $0x650] sm:$0xff]  }
  0x9b   :  { %6610 = vmatprep.subr.bf16.mxu1 %v7262_v62  ;;  %v7313_v62 = vld [vmem:[%s9365_s1 + $0x690] sm:$0xff]  }
  0x9c   :  { %6589 = vmatpush3.bf16.msra.mxu0 %v7263_v1  ;;  %v7316_v1 = vld [vmem:[%s9365_s1 + $0x618] sm:$0xff]  }
  0x9d   :  { %6590 = vmatprep.subr.bf16.mxu0 %v7265_v5  ;;  %v7320_v5 = vld [vmem:[%s9365_s1 + $0x620] sm:$0xff]  }
  0x9e   :  { %6611 = vmatpush3.bf16.msra.mxu1 %v7264_v2  ;;  %v7317_v2 = vld [vmem:[%s9365_s1 + $0x698] sm:$0xff]  }
  0x9f   :  { %6612 = vmatprep.subr.bf16.mxu1 %v7266_v6  ;;  %v7321_v6 = vld [vmem:[%s9365_s1 + $0x6a0] sm:$0xff]  }
  0xa0   :  { %6591 = vmatpush3.bf16.msra.mxu0 %v7267_v9  ;;  %v7324_v9 = vld [vmem:[%s9365_s1 + $0x628] sm:$0xff]  }
  0xa1   :  { %6620 = vmatprep.subr.bf16.mxu0 %v7269_v13  ;;  %v19_v13 = vld [vmem:[%s9364_s0 + $0x18] sm:$0xff] }
  0xa2   :  { %6613 = vmatpush3.bf16.msra.mxu1 %v7268_v10  ;;  %v7325_v10 = vld [vmem:[%s9365_s1 + $0x6a8] sm:$0xff]  }
  0xa3   :  { %4937 = vmatmul.mubr.bf16.vlgmr.msra.gmra.mrb[16].mxu0 %v1177_v12  ;;  %6642 = vmatprep.subr.bf16.mxu1 %v7270_v14  ;;  %v7327_v12 = vld [vmem:[%s9365_s1 + $0x6f0] sm:$0xff]  }
  0xa4   :  { %6621 = vmatpush3.bf16.msra.mxu0 %v7271_v16  ;;  %5016 = vmatprep.mubr.bf16.mxu0 %v1198_v15  ;;  %v7328_v14 = vld [vmem:[%s9365_s1 + $0x630] sm:$0xff]   ;;  %v1210_v15 = vrot.slane %v19_v13, %v7780_v41  ;;  %v1203_v16 = vcombine.high %v19_v13, %v19_v13  ;;  %v7368_v13 = vld [vmem:[%s9365_s1 + $0x8c0] sm:$0xff]  }
  0xa5   :  { %4977 = vmatmul.mubr.bf16.vlgmr.msra.gmra.mrb[16].mxu1 %v1199_v18  ;;  %6622 = vmatprep.subr.bf16.mxu0 %v7273_v19  ;;  %v7330_v18 = vld [vmem:[%s9365_s1 + $0x678] sm:$0xff]  }
  0xa6   :  { %6643 = vmatpush3.bf16.msra.mxu1 %v7272_v17  ;;  %5056 = vmatprep.mubr.bf16.mxu1 %v1202_v21  ;;  %v7329_v17 = vld [vmem:[%s9365_s1 + $0x6b0] sm:$0xff]   ;;  %v1218_v19 = vcombine.high %v1210_v15, %v1210_v15  ;;  %v7331_v21 = vld [vmem:[%s9365_s1 + $0x6f8] sm:$0xff]  }
  0xa7   :  { %6644 = vmatprep.subr.bf16.mxu1 %v7274_v20  ;;  %v8387_v20 = vrot.slane %v1203_v16, %v7780_v41 }
  0xa8   :  { %6623 = vmatpush3.bf16.msra.mxu0 %v7275_v22  ;;  %v7332_v22 = vld [vmem:[%s9365_s1 + $0x638] sm:$0xff]  }
  0xa9   :  { %6624 = vmatprep.subr.bf16.mxu0 %v7277_v24  ;;  %v1219_v24 = vcombine.high %v8387_v20, %v8387_v20 }
  0xaa   :  { %6645 = vmatpush3.bf16.msra.mxu1 %v7276_v23  ;;  %v1240_v23 = vrot.slane %v1218_v19, %v7780_v41  ;;  %v7373_v19 = vld [vmem:[%s9365_s1 + $0x808] sm:$0xff]  }
  0xab   :  { %6646 = vmatprep.subr.bf16.mxu1 %v7278_v25  ;;  %v7333_v25 = vld [vmem:[%s9365_s1 + $0x6b8] sm:$0xff]  }
  0xac   :  { %6625 = vmatpush3.bf16.msra.mxu0 %v7279_v26  ;;  %v1250_v26 = vcombine.high %v1240_v23, %v1240_v23 }
  0xad   :  { %6626 = vmatprep.subr.bf16.mxu0 %v7281_v28  ;;  %v7334_v28 = vld [vmem:[%s9365_s1 + $0x740] sm:$0xff]  }
  0xae   :  { %6647 = vmatpush3.bf16.msra.mxu1 %v7280_v27  ;;  %v1226_v27 = vrot.slane %v1210_v15, %v7780_v41  ;;  %v7370_v15 = vld [vmem:[%s9365_s1 + $0x880] sm:$0xff]  }
  0xaf   :  { %6648 = vmatprep.subr.bf16.mxu1 %v7282_v29  ;;  %v7335_v29 = vld [vmem:[%s9365_s1 + $0x7c0] sm:$0xff]  }
  0xb0   :  { %6627 = vmatpush3.bf16.msra.mxu0 %v7283_v30  ;;  %v1247_v30 = vrot.slane %v1219_v24, %v7780_v41  ;;  %v7378_v24 = vld [vmem:[%s9365_s1 + $0x890] sm:$0xff]  }
  0xb1   :  { %6628 = vmatprep.subr.bf16.mxu0 %v7285_v32  ;;  %v7337_v32 = vld [vmem:[%s9365_s1 + $0x780] sm:$0xff]  }
  0xb2   :  { %6649 = vmatpush3.bf16.msra.mxu1 %v7284_v31  ;;  %v7336_v31 = vld [vmem:[%s9365_s1 + $0x700] sm:$0xff]  }
  0xb3   :  { %6650 = vmatprep.subr.bf16.mxu1 %v7286_v33  ;;  %v1248_v33 = vcombine.high %v1226_v27, %v1226_v27 }
  0xb4   :  { %6629 = vmatpush3.bf16.msra.mxu0 %v7287_v34  ;;  %v7338_v34 = vld [vmem:[%s9365_s1 + $0x748] sm:$0xff]  }
  0xb5   :  { %6630 = vmatprep.subr.bf16.mxu0 %v7289_v36  ;;  %v1251_v36 = vcombine.high %v1247_v30, %v1247_v30 }
  0xb6   :  { %6651 = vmatpush3.bf16.msra.mxu1 %v7288_v35  ;;  %v7339_v35 = vld [vmem:[%s9365_s1 + $0x7c8] sm:$0xff]  }
  0xb7   :  { %6652 = vmatprep.subr.bf16.mxu1 %v7290_v37  ;;  %v7340_v37 = vld [vmem:[%s9365_s1 + $0x708] sm:$0xff]  }
  0xb8   :  { %6631 = vmatpush3.bf16.msra.mxu0 %v7291_v38  ;;  %v7341_v38 = vld [vmem:[%s9365_s1 + $0x788] sm:$0xff]  }
  0xb9   :  { %6632 = vmatprep.subr.bf16.mxu0 %v7293_v40  ;;  %v7343_v40 = vld [vmem:[%s9365_s1 + $0x7d0] sm:$0xff]  }
  0xba   :  { %6653 = vmatpush3.bf16.msra.mxu1 %v7292_v39  ;;  %v7342_v39 = vld [vmem:[%s9365_s1 + $0x750] sm:$0xff]  }
  0xbb   :  { %6654 = vmatprep.subr.bf16.mxu1 %v7294_v42  ;;  %v7344_v42 = vld [vmem:[%s9365_s1 + $0x710] sm:$0xff]  }
  0xbc   :  { %6633 = vmatpush3.bf16.msra.mxu0 %v7295_v43  ;;  %v7345_v43 = vld [vmem:[%s9365_s1 + $0x790] sm:$0xff]  }
  0xbd   :  { %6634 = vmatprep.subr.bf16.mxu0 %v7297_v45  ;;  %v7347_v45 = vld [vmem:[%s9365_s1 + $0x7d8] sm:$0xff]  }
  0xbe   :  { %6655 = vmatpush3.bf16.msra.mxu1 %v7296_v44  ;;  %v7346_v44 = vld [vmem:[%s9365_s1 + $0x758] sm:$0xff]  }
  0xbf   :  { %6656 = vmatprep.subr.bf16.mxu1 %v7298_v46  ;;  %v7348_v46 = vld [vmem:[%s9365_s1 + $0x718] sm:$0xff]  }
  0xc0   :  { %6635 = vmatpush3.bf16.msra.mxu0 %v7299_v47  ;;  %v7349_v47 = vld [vmem:[%s9365_s1 + $0x798] sm:$0xff]  }
  0xc1   :  { %6664 = vmatprep.subr.bf16.mxu0 %v7302_v50  ;;  %v7352_v50 = vld [vmem:[%s9365_s1 + $0x720] sm:$0xff]  }
  0xc2   :  { %6657 = vmatpush3.bf16.msra.mxu1 %v7300_v48  ;;  %v7350_v48 = vld [vmem:[%s9365_s1 + $0x760] sm:$0xff]  }
  0xc3   :  { %5017 = vmatmul.mubr.bf16.vlgmr.msra.gmra.mrb[20].mxu0 %v1184_v49  ;;  %6686 = vmatprep.subr.bf16.mxu1 %v7303_v51  ;;  %v7351_v49 = vld [vmem:[%s9365_s1 + $0x7e0] sm:$0xff]  }
  0xc4   :  { %6665 = vmatpush3.bf16.msra.mxu0 %v7304_v52  ;;  %5096 = vmatprep.mubr.bf16.mxu0 %v1240_v23  ;;  %v7353_v51 = vld [vmem:[%s9365_s1 + $0x7a0] sm:$0xff]   ;;  %v7354_v52 = vld [vmem:[%s9365_s1 + $0x768] sm:$0xff]   ;;  %v7377_v23 = vld [vmem:[%s9365_s1 + $0x810] sm:$0xff]  }
  0xc5   :  { %5057 = vmatmul.mubr.bf16.vlgmr.msra.gmra.mrb[20].mxu1 %v1200_v54  ;;  %6666 = vmatprep.subr.bf16.mxu0 %v7306_v55  ;;  %v7356_v54 = vld [vmem:[%s9365_s1 + $0x728] sm:$0xff]  }
  0xc6   :  { %6687 = vmatpush3.bf16.msra.mxu1 %v7305_v53  ;;  %5136 = vmatprep.mubr.bf16.mxu1 %v1250_v26  ;;  %v7355_v53 = vld [vmem:[%s9365_s1 + $0x7e8] sm:$0xff]   ;;  %v7380_v26 = vld [vmem:[%s9365_s1 + $0x8d8] sm:$0xff]  }
  0xc7   :  { %6688 = vmatprep.subr.bf16.mxu1 %v7307_v56  ;;  %v7357_v55 = vld [vmem:[%s9365_s1 + $0x7a8] sm:$0xff]   ;;  %v7358_v56 = vld [vmem:[%s9365_s1 + $0x770] sm:$0xff]  }
  0xc8   :  { %6667 = vmatpush3.bf16.msra.mxu0 %v7308_v57 }
  0xc9   :  { %6668 = vmatprep.subr.bf16.mxu0 %v7310_v59 }
  0xca   :  { %6689 = vmatpush3.bf16.msra.mxu1 %v7309_v58  ;;  %v7359_v58 = vld [vmem:[%s9365_s1 + $0x7f0] sm:$0xff]  }
  0xcb   :  { %6690 = vmatprep.subr.bf16.mxu1 %v7311_v60  ;;  %v7360_v60 = vld [vmem:[%s9365_s1 + $0x730] sm:$0xff]  }
  0xcc   :  { %6669 = vmatpush3.bf16.msra.mxu0 %v7312_v61 }
  0xcd   :  { %6670 = vmatprep.subr.bf16.mxu0 %v7314_v63 }
  0xce   :  { %6691 = vmatpush3.bf16.msra.mxu1 %v7313_v62 }
  0xcf   :  { %6692 = vmatprep.subr.bf16.mxu1 %v7315_v0  ;;  %v7361_v0 = vld [vmem:[%s9365_s1 + $0x7b0] sm:$0xff]  }
  0xd0   :  { %6671 = vmatpush3.bf16.msra.mxu0 %v7316_v1  ;;  %v7362_v1 = vld [vmem:[%s9365_s1 + $0x778] sm:$0xff]  }
  0xd1   :  { %6672 = vmatprep.subr.bf16.mxu0 %v7318_v3 }
  0xd2   :  { %6693 = vmatpush3.bf16.msra.mxu1 %v7317_v2 }
  0xd3   :  { %6694 = vmatprep.subr.bf16.mxu1 %v7319_v4 }
  0xd4   :  { %6673 = vmatpush3.bf16.msra.mxu0 %v7320_v5 }
  0xd5   :  { %6674 = vmatprep.subr.bf16.mxu0 %v7322_v7 }
  0xd6   :  { %6695 = vmatpush3.bf16.msra.mxu1 %v7321_v6  ;;  %v7363_v6 = vld [vmem:[%s9365_s1 + $0x7f8] sm:$0xff]  }
  0xd7   :  { %6696 = vmatprep.subr.bf16.mxu1 %v7323_v8  ;;  %v7364_v8 = vld [vmem:[%s9365_s1 + $0x738] sm:$0xff]  }
  0xd8   :  { %6675 = vmatpush3.bf16.msra.mxu0 %v7324_v9 }
  0xd9   :  { %6676 = vmatprep.subr.bf16.mxu0 %v7326_v11  ;;  %v1233_v11 = vrot.slane %v8387_v20, %v7780_v41  ;;  %v7374_v20 = vld [vmem:[%s9365_s1 + $0x888] sm:$0xff]  }
  0xda   :  { %6697 = vmatpush3.bf16.msra.mxu1 %v7325_v10  ;;  %v7365_v10 = vld [vmem:[%s9365_s1 + $0x7b8] sm:$0xff]  }
  0xdb   :  { %6698 = vmatprep.subr.bf16.mxu1 %v7327_v12  ;;  %v7367_v12 = vld [vmem:[%s9365_s1 + $0x840] sm:$0xff]   ;;  %v1249_v16 = vcombine.high %v1233_v11, %v1233_v11 }
  0xdc   :  { %6677 = vmatpush3.bf16.msra.mxu0 %v7328_v14  ;;  %v7369_v14 = vld [vmem:[%s9365_s1 + $0x800] sm:$0xff]  }
  0xdd   :  { %6678 = vmatprep.subr.bf16.mxu0 %v7330_v18  ;;  %v7372_v18 = vld [vmem:[%s9365_s1 + $0x8c8] sm:$0xff]  }
  0xde   :  { %6699 = vmatpush3.bf16.msra.mxu1 %v7329_v17  ;;  %v7371_v17 = vld [vmem:[%s9365_s1 + $0x848] sm:$0xff]  }
  0xdf   :  { %6700 = vmatprep.subr.bf16.mxu1 %v7331_v21  ;;  %v7375_v21 = vld [vmem:[%s9365_s1 + $0x850] sm:$0xff]  }
  0xe0   :  { %6679 = vmatpush3.bf16.msra.mxu0 %v7332_v22  ;;  %v7376_v22 = vld [vmem:[%s9365_s1 + $0x8d0] sm:$0xff]  }
  0xe1   :  { %6708 = vmatprep.subr.bf16.mxu0 %v7334_v28  ;;  %v7382_v28 = vld [vmem:[%s9365_s1 + $0x898] sm:$0xff]  }
  0xe2   :  { %6701 = vmatpush3.bf16.msra.mxu1 %v7333_v25  ;;  %v7379_v25 = vld [vmem:[%s9365_s1 + $0x858] sm:$0xff]  }
  0xe3   :  { %5097 = vmatmul.mubr.bf16.vlgmr.msra.gmra.mrb[24].mxu0 %v1226_v27  ;;  %6730 = vmatprep.subr.bf16.mxu1 %v7335_v29  ;;  %v7381_v27 = vld [vmem:[%s9365_s1 + $0x818] sm:$0xff]   ;;  %v7383_v29 = vld [vmem:[%s9365_s1 + $0x860] sm:$0xff]  }
  0xe4   :  { %6709 = vmatpush3.bf16.msra.mxu0 %v7336_v31  ;;  %5176 = vmatprep.mubr.bf16.mxu0 %v1247_v30  ;;  %v7384_v30 = vld [vmem:[%s9365_s1 + $0x8e0] sm:$0xff]  }
  0xe5   :  { %5137 = vmatmul.mubr.bf16.vlgmr.msra.gmra.mrb[24].mxu1 %v1248_v33  ;;  %6710 = vmatprep.subr.bf16.mxu0 %v7338_v34  ;;  %v7385_v31 = vld [vmem:[%s9365_s1 + $0x820] sm:$0xff]   ;;  %v7387_v33 = vld [vmem:[%s9365_s1 + $0x868] sm:$0xff]  }
  0xe6   :  { %6731 = vmatpush3.bf16.msra.mxu1 %v7337_v32  ;;  %5216 = vmatprep.mubr.bf16.mxu1 %v1251_v36  ;;  %v7386_v32 = vld [vmem:[%s9365_s1 + $0x8a0] sm:$0xff]   ;;  %v7388_v34 = vld [vmem:[%s9365_s1 + $0x8e8] sm:$0xff]  }
  0xe7   :  { %6732 = vmatprep.subr.bf16.mxu1 %v7339_v35  ;;  %v7389_v35 = vld [vmem:[%s9365_s1 + $0x828] sm:$0xff]  }
  0xe8   :  { %6711 = vmatpush3.bf16.msra.mxu0 %v7340_v37  ;;  %v7390_v36 = vld [vmem:[%s9365_s1 + $0x8a8] sm:$0xff]   ;;  %v7391_v37 = vld [vmem:[%s9365_s1 + $0x870] sm:$0xff]  }
  0xe9   :  { %6712 = vmatprep.subr.bf16.mxu0 %v7342_v39  ;;  %v7392_v39 = vld [vmem:[%s9365_s1 + $0x8f0] sm:$0xff]  }
  0xea   :  { %6733 = vmatpush3.bf16.msra.mxu1 %v7341_v38 }
  0xeb   :  { %6734 = vmatprep.subr.bf16.mxu1 %v7343_v40  ;;  %v20_v40 = vld [vmem:[%s9364_s0 + $0x20] sm:$0xff] }
  0xec   :  { %6713 = vmatpush3.bf16.msra.mxu0 %v7344_v42 }
  0xed   :  { %6714 = vmatprep.subr.bf16.mxu0 %v7346_v44  ;;  %v1259_v44 = vrot.slane %v20_v40, %v7780_v41 }
  0xee   :  { %6735 = vmatpush3.bf16.msra.mxu1 %v7345_v43  ;;  %v7393_v43 = vld [vmem:[%s9365_s1 + $0x830] sm:$0xff]  }
  0xef   :  { %6736 = vmatprep.subr.bf16.mxu1 %v7347_v45  ;;  %v1252_v45 = vcombine.high %v20_v40, %v20_v40 }
  0xf0   :  { %6715 = vmatpush3.bf16.msra.mxu0 %v7348_v46 }
  0xf1   :  { %6716 = vmatprep.subr.bf16.mxu0 %v7350_v48 }
  0xf2   :  { %6737 = vmatpush3.bf16.msra.mxu1 %v7349_v47 }
  0xf3   :  { %6738 = vmatprep.subr.bf16.mxu1 %v7351_v49 }
  0xf4   :  { %6717 = vmatpush3.bf16.msra.mxu0 %v7352_v50 }
  0xf5   :  { %6718 = vmatprep.subr.bf16.mxu0 %v7354_v52  ;;  %v7395_v52 = vld [vmem:[%s9365_s1 + $0x878] sm:$0xff]  }
  0xf6   :  { %6739 = vmatpush3.bf16.msra.mxu1 %v7353_v51  ;;  %v6416_v57 = vpop.f32.mrb[0].mxu0  ;;  %v7394_v51 = vld [vmem:[%s9365_s1 + $0x8b0] sm:$0xff]  }
  0xf7   :  { %v6417_v59 = vpop.f32.mrb[1].mxu0  ;;  %6740 = vmatprep.subr.bf16.mxu1 %v7355_v53  ;;  %v6438_v61 = vpop.f32.mrb[0].mxu1  ;;  %v1267_v53 = vcombine.high %v1259_v44, %v1259_v44 }
  0xf8   :  { %v6418_v62 = vadd.f32 %v6417_v59, %v6416_v57  ;;  %v6419_v63 = vpop.f32.mrb[2].mxu0  ;;  %6719 = vmatpush3.bf16.msra.mxu0 %v7356_v54  ;;  %v6439_v2 = vpop.f32.mrb[1].mxu1  ;;  %v8595_v54 = vrot.slane %v1252_v45, %v7780_v41 }
  0xf9   :  { %v6420_v3 = vpop.f32.mrb[3].mxu0  ;;  %6720 = vmatprep.subr.bf16.mxu0 %v7358_v56  ;;  %v6440_v4 = vadd.f32 %v6439_v2, %v6438_v61  ;;  %v6441_v5 = vpop.f32.mrb[2].mxu1  ;;  %v1289_v61 = vrot.slane %v1267_v53, %v7780_v41  ;;  %v1275_v2 = vrot.slane %v1259_v44, %v7780_v41  ;;  %v7433_v53 = vld [vmem:[%s9365_s1 + $0xac0] sm:$0xff]  }
  0xfa   :  { %6741 = vmatpush3.bf16.msra.mxu1 %v7357_v55  ;;  %v6442_v7 = vpop.f32.mrb[3].mxu1  ;;  %v7399_v3 = vld [vmem:[%s9365_s1 + $0x940] sm:$0xff]  }
  0xfb   :  { %6742 = vmatprep.subr.bf16.mxu1 %v7359_v58  ;;  %v8496_v9 = vadd.f32 %v6440_v4, %v6418_v62  ;;  %v7396_v58 = vld [vmem:[%s9365_s1 + $0x8f8] sm:$0xff]   ;;  %v1268_v62 = vcombine.high %v8595_v54, %v8595_v54  ;;  %v7400_v4 = vld [vmem:[%s9365_s1 + $0x9c0] sm:$0xff]  }
  0xfc   :  { %6721 = vmatpush3.bf16.msra.mxu0 %v7360_v60  ;;  %v7397_v60 = vld [vmem:[%s9365_s1 + $0x838] sm:$0xff]   ;;  %v7402_v7 = vld [vmem:[%s9365_s1 + $0x980] sm:$0xff]  }
  0xfd   :  { %6722 = vmatprep.subr.bf16.mxu0 %v7362_v1  ;;  %v1299_v1 = vcombine.high %v1289_v61, %v1289_v61  ;;  %v1296_v5 = vrot.slane %v1268_v62, %v7780_v41  ;;  %v7441_v62 = vld [vmem:[%s9365_s1 + $0xad0] sm:$0xff]  }
  0xfe   :  { %6743 = vmatpush3.bf16.msra.mxu1 %v7361_v0  ;;  %v7398_v0 = vld [vmem:[%s9365_s1 + $0x8b8] sm:$0xff]  }
  0xff   :  { %6744 = vmatprep.subr.bf16.mxu1 %v7363_v6  ;;  %v7401_v6 = vld [vmem:[%s9365_s1 + $0x900] sm:$0xff]  }
 0x100   :  { %6723 = vmatpush3.bf16.msra.mxu0 %v7364_v8  ;;  %v1297_v8 = vcombine.high %v1275_v2, %v1275_v2 }
 0x101   :  { %6752 = vmatprep.subr.bf16.mxu0 %v7367_v12  ;;  %v7405_v12 = vld [vmem:[%s9365_s1 + $0x908] sm:$0xff]  }
 0x102   :  { %6745 = vmatpush3.bf16.msra.mxu1 %v7365_v10  ;;  %v7404_v10 = vld [vmem:[%s9365_s1 + $0x9c8] sm:$0xff]  }
 0x103   :  { %5177 = vmatmul.mubr.bf16.vlgmr.msra.gmra.mrb[28].mxu0 %v1233_v11  ;;  %6774 = vmatprep.subr.bf16.mxu1 %v7368_v13  ;;  %v1300_v11 = vcombine.high %v1296_v5, %v1296_v5  ;;  %v7406_v13 = vld [vmem:[%s9365_s1 + $0x988] sm:$0xff]  }
 0x104   :  { %6753 = vmatpush3.bf16.msra.mxu0 %v7369_v14  ;;  %5256 = vmatprep.mubr.bf16.mxu0 %v1289_v61  ;;  %v7407_v14 = vld [vmem:[%s9365_s1 + $0x950] sm:$0xff]  }
 0x105   :  { %5217 = vmatmul.mubr.bf16.vlgmr.msra.gmra.mrb[28].mxu1 %v1249_v16  ;;  %6754 = vmatprep.subr.bf16.mxu0 %v7371_v17  ;;  %v7409_v16 = vld [vmem:[%s9365_s1 + $0x910] sm:$0xff]  }
 0x106   :  { %6775 = vmatpush3.bf16.msra.mxu1 %v7370_v15  ;;  %5296 = vmatprep.mubr.bf16.mxu1 %v1299_v1  ;;  %v7408_v15 = vld [vmem:[%s9365_s1 + $0x9d0] sm:$0xff]   ;;  %v7444_v1 = vld [vmem:[%s9365_s1 + $0xa58] sm:$0xff]  }
 0x107   :  { %6776 = vmatprep.subr.bf16.mxu1 %v7372_v18  ;;  %v7410_v17 = vld [vmem:[%s9365_s1 + $0x990] sm:$0xff]   ;;  %v7411_v18 = vld [vmem:[%s9365_s1 + $0x958] sm:$0xff]  }
 0x108   :  { %6755 = vmatpush3.bf16.msra.mxu0 %v7373_v19  ;;  %v7412_v19 = vld [vmem:[%s9365_s1 + $0x9d8] sm:$0xff]   ;;  %v7440_v61 = vld [vmem:[%s9365_s1 + $0xa50] sm:$0xff]  }
 0x109   :  { %6756 = vmatprep.subr.bf16.mxu0 %v7375_v21  ;;  %v7414_v21 = vld [vmem:[%s9365_s1 + $0x998] sm:$0xff]  }
 0x10a   :  { %6777 = vmatpush3.bf16.msra.mxu1 %v7374_v20  ;;  %v7413_v20 = vld [vmem:[%s9365_s1 + $0x918] sm:$0xff]  }
 0x10b   :  { %6778 = vmatprep.subr.bf16.mxu1 %v7376_v22  ;;  %v7415_v22 = vld [vmem:[%s9365_s1 + $0x960] sm:$0xff]  }
 0x10c   :  { %6757 = vmatpush3.bf16.msra.mxu0 %v7377_v23  ;;  %v7416_v23 = vld [vmem:[%s9365_s1 + $0x9e0] sm:$0xff]  }
 0x10d   :  { %6758 = vmatprep.subr.bf16.mxu0 %v7379_v25  ;;  %v7418_v25 = vld [vmem:[%s9365_s1 + $0x9a0] sm:$0xff]  }
 0x10e   :  { %6779 = vmatpush3.bf16.msra.mxu1 %v7378_v24  ;;  %v7417_v24 = vld [vmem:[%s9365_s1 + $0x920] sm:$0xff]  }
 0x10f   :  { %6780 = vmatprep.subr.bf16.mxu1 %v7380_v26  ;;  %v7419_v26 = vld [vmem:[%s9365_s1 + $0x968] sm:$0xff]  }
 0x110   :  { %6759 = vmatpush3.bf16.msra.mxu0 %v7381_v27  ;;  %v7420_v27 = vld [vmem:[%s9365_s1 + $0x9e8] sm:$0xff]  }
 0x111   :  { %6760 = vmatprep.subr.bf16.mxu0 %v7383_v29  ;;  %v7422_v29 = vld [vmem:[%s9365_s1 + $0x9a8] sm:$0xff]  }
 0x112   :  { %6781 = vmatpush3.bf16.msra.mxu1 %v7382_v28  ;;  %v7421_v28 = vld [vmem:[%s9365_s1 + $0x928] sm:$0xff]  }
 0x113   :  { %6782 = vmatprep.subr.bf16.mxu1 %v7384_v30  ;;  %v7423_v30 = vld [vmem:[%s9365_s1 + $0x970] sm:$0xff]  }
 0x114   :  { %6761 = vmatpush3.bf16.msra.mxu0 %v7385_v31 }
 0x115   :  { %6762 = vmatprep.subr.bf16.mxu0 %v7387_v33 }
 0x116   :  { %6783 = vmatpush3.bf16.msra.mxu1 %v7386_v32  ;;  %v6460_v38 = vpop.f32.mrb[4].mxu0  ;;  %v7424_v32 = vld [vmem:[%s9365_s1 + $0x9f0] sm:$0xff]  }
 0x117   :  { %v6461_v42 = vpop.f32.mrb[5].mxu0  ;;  %6784 = vmatprep.subr.bf16.mxu1 %v7388_v34  ;;  %v6482_v46 = vpop.f32.mrb[4].mxu1  ;;  %v7425_v34 = vld [vmem:[%s9365_s1 + $0x930] sm:$0xff]  }
 0x118   :  { %v6462_v47 = vadd.f32 %v6461_v42, %v6460_v38  ;;  %v6463_v48 = vpop.f32.mrb[6].mxu0  ;;  %6763 = vmatpush3.bf16.msra.mxu0 %v7389_v35  ;;  %v6483_v49 = vpop.f32.mrb[5].mxu1  ;;  %v7426_v38 = vld [vmem:[%s9365_s1 + $0x9b0] sm:$0xff]  }
 0x119   :  { %v6464_v50 = vpop.f32.mrb[7].mxu0  ;;  %6764 = vmatprep.subr.bf16.mxu0 %v7391_v37  ;;  %v6484_v56 = vadd.f32 %v6483_v49, %v6482_v46  ;;  %v6485_v57 = vpop.f32.mrb[6].mxu1  ;;  %v7428_v46 = vld [vmem:[%s9365_s1 + $0x9f8] sm:$0xff]  }
 0x11a   :  { %v4699_v55 = vadd.f32 %v6462_v47, %v8496_v9  ;;  %6785 = vmatpush3.bf16.msra.mxu1 %v7390_v36  ;;  %v6486_v59 = vpop.f32.mrb[7].mxu1  ;;  %v7403_v9 = vld [vmem:[%s9365_s1 + $0x948] sm:$0xff]   ;;  %v7429_v48 = vld [vmem:[%s9365_s1 + $0x938] sm:$0xff]  }
 0x11b   :  { %6786 = vmatprep.subr.bf16.mxu1 %v7392_v39  ;;  %v7427_v39 = vld [vmem:[%s9365_s1 + $0x978] sm:$0xff]   ;;  %v7436_v57 = vld [vmem:[%s9365_s1 + $0xa48] sm:$0xff]  }
 0x11c   :  { %v8607_v63 = vadd.f32 %v6484_v56, %v4699_v55  ;;  %6765 = vmatpush3.bf16.msra.mxu0 %v7393_v43  ;;  %v7430_v50 = vld [vmem:[%s9365_s1 + $0x9b8] sm:$0xff]   ;;  %v7434_v55 = vld [vmem:[%s9365_s1 + $0xa00] sm:$0xff]   ;;  %v7438_v59 = vld [vmem:[%s9365_s1 + $0xa08] sm:$0xff]  }
 0x11d   :  { %6766 = vmatprep.subr.bf16.mxu0 %v7395_v52  ;;  %v7432_v52 = vld [vmem:[%s9365_s1 + $0xa40] sm:$0xff]  }
 0x11e   :  { %6787 = vmatpush3.bf16.msra.mxu1 %v7394_v51  ;;  %v1282_v51 = vrot.slane %v8595_v54, %v7780_v41  ;;  %v7435_v56 = vld [vmem:[%s9365_s1 + $0xa80] sm:$0xff]  }
 0x11f   :  { %6788 = vmatprep.subr.bf16.mxu1 %v7396_v58  ;;  %v7437_v58 = vld [vmem:[%s9365_s1 + $0xac8] sm:$0xff]  }
 0x120   :  { %6767 = vmatpush3.bf16.msra.mxu0 %v7397_v60  ;;  %v1298_v54 = vcombine.high %v1282_v51, %v1282_v51  ;;  %v7439_v60 = vld [vmem:[%s9365_s1 + $0xa88] sm:$0xff]  }
 0x121   :  { %6796 = vmatprep.subr.bf16.mxu0 %v7399_v3  ;;  %v7446_v3 = vld [vmem:[%s9365_s1 + $0xa18] sm:$0xff]  }
 0x122   :  { %6789 = vmatpush3.bf16.msra.mxu1 %v7398_v0  ;;  %v7443_v0 = vld [vmem:[%s9365_s1 + $0xa90] sm:$0xff]  }
 0x123   :  { %5257 = vmatmul.mubr.bf16.vlgmr.msra.gmra.mrb[32].mxu0 %v1275_v2  ;;  %6818 = vmatprep.subr.bf16.mxu1 %v7400_v4  ;;  %v7445_v2 = vld [vmem:[%s9365_s1 + $0xad8] sm:$0xff]  }
 0x124   :  { %6797 = vmatpush3.bf16.msra.mxu0 %v7401_v6  ;;  %5336 = vmatprep.mubr.bf16.mxu0 %v1296_v5  ;;  %v7447_v4 = vld [vmem:[%s9365_s1 + $0xa98] sm:$0xff]   ;;  %v7448_v5 = vld [vmem:[%s9365_s1 + $0xa60] sm:$0xff]  }
 0x125   :  { %5297 = vmatmul.mubr.bf16.vlgmr.msra.gmra.mrb[32].mxu1 %v1297_v8  ;;  %6798 = vmatprep.subr.bf16.mxu0 %v7403_v9  ;;  %v7449_v6 = vld [vmem:[%s9365_s1 + $0xae0] sm:$0xff]   ;;  %v7452_v9 = vld [vmem:[%s9365_s1 + $0xa68] sm:$0xff]  }
 0x126   :  { %6819 = vmatpush3.bf16.msra.mxu1 %v7402_v7  ;;  %5376 = vmatprep.mubr.bf16.mxu1 %v1300_v11  ;;  %v7450_v7 = vld [vmem:[%s9365_s1 + $0xa20] sm:$0xff]   ;;  %v7454_v11 = vld [vmem:[%s9365_s1 + $0xa28] sm:$0xff]  }
 0x127   :  { %6820 = vmatprep.subr.bf16.mxu1 %v7404_v10  ;;  %v7451_v8 = vld [vmem:[%s9365_s1 + $0xaa0] sm:$0xff]   ;;  %v7453_v10 = vld [vmem:[%s9365_s1 + $0xae8] sm:$0xff]  }
 0x128   :  { %6799 = vmatpush3.bf16.msra.mxu0 %v7405_v12  ;;  %v7455_v12 = vld [vmem:[%s9365_s1 + $0xaa8] sm:$0xff]  }
 0x129   :  { %6800 = vmatprep.subr.bf16.mxu0 %v7407_v14 }
 0x12a   :  { %6821 = vmatpush3.bf16.msra.mxu1 %v7406_v13  ;;  %v7456_v13 = vld [vmem:[%s9365_s1 + $0xa70] sm:$0xff]  }
 0x12b   :  { %6822 = vmatprep.subr.bf16.mxu1 %v7408_v15  ;;  %v7457_v15 = vld [vmem:[%s9365_s1 + $0xaf0] sm:$0xff]  }
 0x12c   :  { %6801 = vmatpush3.bf16.msra.mxu0 %v7409_v16 }
 0x12d   :  { %6802 = vmatprep.subr.bf16.mxu0 %v7411_v18  ;;  %v21_v18 = vld [vmem:[%s9364_s0 + $0x28] sm:$0xff] }
 0x12e   :  { %6823 = vmatpush3.bf16.msra.mxu1 %v7410_v17  ;;  %v7458_v17 = vld [vmem:[%s9365_s1 + $0xa30] sm:$0xff]  }
 0x12f   :  { %6824 = vmatprep.subr.bf16.mxu1 %v7412_v19 }
 0x130   :  { %6803 = vmatpush3.bf16.msra.mxu0 %v7413_v20 }
 0x131   :  { %6804 = vmatprep.subr.bf16.mxu0 %v7415_v22  ;;  %v1308_v22 = vrot.slane %v21_v18, %v7780_v41 }
 0x132   :  { %6825 = vmatpush3.bf16.msra.mxu1 %v7414_v21 }
 0x133   :  { %6826 = vmatprep.subr.bf16.mxu1 %v7416_v23  ;;  %v1301_v23 = vcombine.high %v21_v18, %v21_v18 }
 0x134   :  { %6805 = vmatpush3.bf16.msra.mxu0 %v7417_v24 }
 0x135   :  { %6806 = vmatprep.subr.bf16.mxu0 %v7419_v26  ;;  %v7459_v26 = vld [vmem:[%s9365_s1 + $0xab0] sm:$0xff]  }
 0x136   :  { %6827 = vmatpush3.bf16.msra.mxu1 %v7418_v25  ;;  %v6504_v31 = vpop.f32.mrb[8].mxu0 }
 0x137   :  { %v6505_v33 = vpop.f32.mrb[9].mxu0  ;;  %6828 = vmatprep.subr.bf16.mxu1 %v7420_v27  ;;  %v7460_v27 = vld [vmem:[%s9365_s1 + $0xa78] sm:$0xff]  }
 0x138   :  { %v6526_v35 = vpop.f32.mrb[8].mxu1  ;;  %v6506_v36 = vadd.f32 %v6505_v33, %v6504_v31  ;;  %v6507_v37 = vpop.f32.mrb[10].mxu0  ;;  %6807 = vmatpush3.bf16.msra.mxu0 %v7421_v28  ;;  %v7461_v31 = vld [vmem:[%s9365_s1 + $0xaf8] sm:$0xff]  }
 0x139   :  { %v6527_v40 = vpop.f32.mrb[9].mxu1  ;;  %v6508_v42 = vpop.f32.mrb[11].mxu0  ;;  %6808 = vmatprep.subr.bf16.mxu0 %v7423_v30  ;;  %v7463_v37 = vld [vmem:[%s9365_s1 + $0xab8] sm:$0xff]  }
 0x13a   :  { %v4779_v43 = vadd.f32 %v6506_v36, %v8607_v63  ;;  %v6528_v44 = vadd.f32 %v6527_v40, %v6526_v35  ;;  %v6529_v45 = vpop.f32.mrb[10].mxu1  ;;  %6829 = vmatpush3.bf16.msra.mxu1 %v7422_v29  ;;  %v7442_v63 = vld [vmem:[%s9365_s1 + $0xa10] sm:$0xff]   ;;  %v8814_v35 = vrot.slane %v1301_v23, %v7780_v41  ;;  %v7464_v40 = vld [vmem:[%s9365_s1 + $0xb40] sm:$0xff]   ;;  %v7494_v23 = vld [vmem:[%s9365_s1 + $0xb38] sm:$0xff]  }
 0x13b   :  { %v6530_v47 = vpop.f32.mrb[11].mxu1  ;;  %6830 = vmatprep.subr.bf16.mxu1 %v7424_v32  ;;  %v1316_v32 = vcombine.high %v1308_v22, %v1308_v22  ;;  %v7466_v45 = vld [vmem:[%s9365_s1 + $0xb00] sm:$0xff]  }
 0x13c   :  { %v8708_v49 = vadd.f32 %v6528_v44, %v4779_v43  ;;  %6809 = vmatpush3.bf16.msra.mxu0 %v7425_v34  ;;  %v7462_v34 = vld [vmem:[%s9365_s1 + $0xa38] sm:$0xff]   ;;  %v1317_v42 = vcombine.high %v8814_v35, %v8814_v35  ;;  %v7465_v44 = vld [vmem:[%s9365_s1 + $0xbc0] sm:$0xff]  }
 0x13d   :  { %6810 = vmatprep.subr.bf16.mxu0 %v7427_v39  ;;  %v1324_v39 = vrot.slane %v1308_v22, %v7780_v41  ;;  %v7467_v47 = vld [vmem:[%s9365_s1 + $0xb80] sm:$0xff]  }
 0x13e   :  { %6831 = vmatpush3.bf16.msra.mxu1 %v7426_v38  ;;  %v1338_v38 = vrot.slane %v1316_v32, %v7780_v41  ;;  %v7501_v32 = vld [vmem:[%s9365_s1 + $0xc48] sm:$0xff]  }
 0x13f   :  { %6832 = vmatprep.subr.bf16.mxu1 %v7428_v46  ;;  %v1345_v46 = vrot.slane %v1317_v42, %v7780_v41  ;;  %v7510_v42 = vld [vmem:[%s9365_s1 + $0xcd8] sm:$0xff]  }
 0x140   :  { %6811 = vmatpush3.bf16.msra.mxu0 %v7429_v48  ;;  %v1348_v43 = vcombine.high %v1338_v38, %v1338_v38  ;;  %v1346_v48 = vcombine.high %v1324_v39, %v1324_v39 }
 0x141   :  { %6840 = vmatprep.subr.bf16.mxu0 %v7432_v52  ;;  %v7470_v52 = vld [vmem:[%s9365_s1 + $0xb08] sm:$0xff]  }
 0x142   :  { %6833 = vmatpush3.bf16.msra.mxu1 %v7430_v50  ;;  %v7469_v50 = vld [vmem:[%s9365_s1 + $0xbc8] sm:$0xff]  }
 0x143   :  { %5337 = vmatmul.mubr.bf16.vlgmr.msra.gmra.mrb[36].mxu0 %v1282_v51  ;;  %6862 = vmatprep.subr.bf16.mxu1 %v7433_v53  ;;  %v1349_v51 = vcombine.high %v1345_v46, %v1345_v46  ;;  %v7471_v53 = vld [vmem:[%s9365_s1 + $0xb88] sm:$0xff]  }
 0x144   :  { %6841 = vmatpush3.bf16.msra.mxu0 %v7434_v55  ;;  %5416 = vmatprep.mubr.bf16.mxu0 %v1338_v38  ;;  %v7472_v55 = vld [vmem:[%s9365_s1 + $0xb50] sm:$0xff]  }
 0x145   :  { %5377 = vmatmul.mubr.bf16.vlgmr.msra.gmra.mrb[36].mxu1 %v1298_v54  ;;  %6842 = vmatprep.subr.bf16.mxu0 %v7436_v57  ;;  %v7474_v54 = vld [vmem:[%s9365_s1 + $0xb10] sm:$0xff]  }
 0x146   :  { %6863 = vmatpush3.bf16.msra.mxu1 %v7435_v56  ;;  %5456 = vmatprep.mubr.bf16.mxu1 %v1348_v43  ;;  %v7473_v56 = vld [vmem:[%s9365_s1 + $0xbd0] sm:$0xff]   ;;  %v7511_v43 = vld [vmem:[%s9365_s1 + $0xc18] sm:$0xff]  }
 0x147   :  { %6864 = vmatprep.subr.bf16.mxu1 %v7437_v58  ;;  %v7475_v57 = vld [vmem:[%s9365_s1 + $0xb90] sm:$0xff]   ;;  %v7476_v58 = vld [vmem:[%s9365_s1 + $0xb58] sm:$0xff]  }
 0x148   :  { %6843 = vmatpush3.bf16.msra.mxu0 %v7438_v59  ;;  %v7477_v59 = vld [vmem:[%s9365_s1 + $0xbd8] sm:$0xff]   ;;  %v7507_v38 = vld [vmem:[%s9365_s1 + $0xc10] sm:$0xff]  }
 0x149   :  { %6844 = vmatprep.subr.bf16.mxu0 %v7440_v61  ;;  %v7479_v61 = vld [vmem:[%s9365_s1 + $0xb98] sm:$0xff]  }
 0x14a   :  { %6865 = vmatpush3.bf16.msra.mxu1 %v7439_v60  ;;  %v7478_v60 = vld [vmem:[%s9365_s1 + $0xb18] sm:$0xff]  }
 0x14b   :  { %6866 = vmatprep.subr.bf16.mxu1 %v7441_v62  ;;  %v7480_v62 = vld [vmem:[%s9365_s1 + $0xb60] sm:$0xff]  }
 0x14c   :  { %6845 = vmatpush3.bf16.msra.mxu0 %v7442_v63  ;;  %v7481_v63 = vld [vmem:[%s9365_s1 + $0xbe0] sm:$0xff]  }
 0x14d   :  { %6846 = vmatprep.subr.bf16.mxu0 %v7444_v1  ;;  %v7483_v1 = vld [vmem:[%s9365_s1 + $0xba0] sm:$0xff]  }
 0x14e   :  { %6867 = vmatpush3.bf16.msra.mxu1 %v7443_v0  ;;  %v7482_v0 = vld [vmem:[%s9365_s1 + $0xb20] sm:$0xff]  }
 0x14f   :  { %6868 = vmatprep.subr.bf16.mxu1 %v7445_v2  ;;  %v7484_v2 = vld [vmem:[%s9365_s1 + $0xb68] sm:$0xff]  }
 0x150   :  { %6847 = vmatpush3.bf16.msra.mxu0 %v7446_v3  ;;  %v7485_v3 = vld [vmem:[%s9365_s1 + $0xbe8] sm:$0xff]  }
 0x151   :  { %6848 = vmatprep.subr.bf16.mxu0 %v7448_v5  ;;  %v7487_v5 = vld [vmem:[%s9365_s1 + $0xba8] sm:$0xff]  }
 0x152   :  { %6869 = vmatpush3.bf16.msra.mxu1 %v7447_v4  ;;  %v7486_v4 = vld [vmem:[%s9365_s1 + $0xb28] sm:$0xff]  }
 0x153   :  { %6870 = vmatprep.subr.bf16.mxu1 %v7449_v6  ;;  %v7488_v6 = vld [vmem:[%s9365_s1 + $0xb70] sm:$0xff]  }
 0x154   :  { %6849 = vmatpush3.bf16.msra.mxu0 %v7450_v7 }
 0x155   :  { %6850 = vmatprep.subr.bf16.mxu0 %v7452_v9 }
 0x156   :  { %6871 = vmatpush3.bf16.msra.mxu1 %v7451_v8  ;;  %v6548_v14 = vpop.f32.mrb[12].mxu0  ;;  %v7489_v8 = vld [vmem:[%s9365_s1 + $0xbf0] sm:$0xff]  }
 0x157   :  { %v6549_v16 = vpop.f32.mrb[13].mxu0  ;;  %6872 = vmatprep.subr.bf16.mxu1 %v7453_v10  ;;  %v7490_v10 = vld [vmem:[%s9365_s1 + $0xb30] sm:$0xff]  }
 0x158   :  { %v6570_v19 = vpop.f32.mrb[12].mxu1  ;;  %v6550_v20 = vadd.f32 %v6549_v16, %v6548_v14  ;;  %v6551_v21 = vpop.f32.mrb[14].mxu0  ;;  %6851 = vmatpush3.bf16.msra.mxu0 %v7454_v11  ;;  %v7491_v14 = vld [vmem:[%s9365_s1 + $0xbb0] sm:$0xff]  }
 0x159   :  { %v6571_v24 = vpop.f32.mrb[13].mxu1  ;;  %v6552_v25 = vpop.f32.mrb[15].mxu0  ;;  %6852 = vmatprep.subr.bf16.mxu0 %v7456_v13  ;;  %v7493_v21 = vld [vmem:[%s9365_s1 + $0xbf8] sm:$0xff]  }
 0x15a   :  { %v4859_v28 = vadd.f32 %v6550_v20, %v8708_v49  ;;  %v6572_v29 = vadd.f32 %v6571_v24, %v6570_v19  ;;  %v6573_v30 = vpop.f32.mrb[14].mxu1  ;;  %6873 = vmatpush3.bf16.msra.mxu1 %v7455_v12  ;;  %v7468_v49 = vld [vmem:[%s9365_s1 + $0xb48] sm:$0xff]   ;;  %v7495_v25 = vld [vmem:[%s9365_s1 + $0xbb8] sm:$0xff]  }
 0x15b   :  { %v6574_v33 = vpop.f32.mrb[15].mxu1  ;;  %6874 = vmatprep.subr.bf16.mxu1 %v7457_v15  ;;  %v7492_v15 = vld [vmem:[%s9365_s1 + $0xb78] sm:$0xff]   ;;  %v7500_v30 = vld [vmem:[%s9365_s1 + $0xc80] sm:$0xff]  }
 0x15c   :  { %v8816_v36 = vadd.f32 %v6572_v29, %v4859_v28  ;;  %6853 = vmatpush3.bf16.msra.mxu0 %v7458_v17  ;;  %v7498_v28 = vld [vmem:[%s9365_s1 + $0xcc0] sm:$0xff]   ;;  %v7502_v33 = vld [vmem:[%s9365_s1 + $0xcc8] sm:$0xff]  }
 0x15d   :  { %6854 = vmatprep.subr.bf16.mxu0 %v7460_v27  ;;  %v7497_v27 = vld [vmem:[%s9365_s1 + $0xc40] sm:$0xff]  }
 0x15e   :  { %6875 = vmatpush3.bf16.msra.mxu1 %v7459_v26  ;;  %v1331_v26 = vrot.slane %v8814_v35, %v7780_v41  ;;  %v7499_v29 = vld [vmem:[%s9365_s1 + $0xc00] sm:$0xff]   ;;  %v7504_v35 = vld [vmem:[%s9365_s1 + $0xc88] sm:$0xff]  }
 0x15f   :  { %6876 = vmatprep.subr.bf16.mxu1 %v7461_v31 }
 0x160   :  { %6855 = vmatpush3.bf16.msra.mxu0 %v7462_v34  ;;  %v1347_v31 = vcombine.high %v1331_v26, %v1331_v26  ;;  %v7503_v34 = vld [vmem:[%s9365_s1 + $0xc08] sm:$0xff]  }
 0x161   :  { %6884 = vmatprep.subr.bf16.mxu0 %v7464_v40  ;;  %v7509_v40 = vld [vmem:[%s9365_s1 + $0xc58] sm:$0xff]  }
 0x162   :  { %6877 = vmatpush3.bf16.msra.mxu1 %v7463_v37  ;;  %v7506_v37 = vld [vmem:[%s9365_s1 + $0xcd0] sm:$0xff]  }
 0x163   :  { %5417 = vmatmul.mubr.bf16.vlgmr.msra.gmra.mrb[40].mxu0 %v1324_v39  ;;  %6906 = vmatprep.subr.bf16.mxu1 %v7465_v44  ;;  %v7508_v39 = vld [vmem:[%s9365_s1 + $0xc90] sm:$0xff]   ;;  %v7512_v44 = vld [vmem:[%s9365_s1 + $0xc98] sm:$0xff]  }
 0x164   :  { %6885 = vmatpush3.bf16.msra.mxu0 %v7466_v45  ;;  %5496 = vmatprep.mubr.bf16.mxu0 %v1345_v46  ;;  %v7513_v45 = vld [vmem:[%s9365_s1 + $0xc60] sm:$0xff]  }
 0x165   :  { %5457 = vmatmul.mubr.bf16.vlgmr.msra.gmra.mrb[40].mxu1 %v1346_v48  ;;  %6886 = vmatprep.subr.bf16.mxu0 %v7468_v49  ;;  %v7514_v46 = vld [vmem:[%s9365_s1 + $0xce0] sm:$0xff]   ;;  %v7517_v49 = vld [vmem:[%s9365_s1 + $0xc68] sm:$0xff]  }
 0x166   :  { %6907 = vmatpush3.bf16.msra.mxu1 %v7467_v47  ;;  %5536 = vmatprep.mubr.bf16.mxu1 %v1349_v51  ;;  %v7515_v47 = vld [vmem:[%s9365_s1 + $0xc20] sm:$0xff]   ;;  %v7519_v51 = vld [vmem:[%s9365_s1 + $0xc28] sm:$0xff]  }
 0x167   :  { %6908 = vmatprep.subr.bf16.mxu1 %v7469_v50  ;;  %v7516_v48 = vld [vmem:[%s9365_s1 + $0xca0] sm:$0xff]   ;;  %v7518_v50 = vld [vmem:[%s9365_s1 + $0xce8] sm:$0xff]  }
 0x168   :  { %6887 = vmatpush3.bf16.msra.mxu0 %v7470_v52  ;;  %v7520_v52 = vld [vmem:[%s9365_s1 + $0xca8] sm:$0xff]  }
 0x169   :  { %6888 = vmatprep.subr.bf16.mxu0 %v7472_v55 }
 0x16a   :  { %6909 = vmatpush3.bf16.msra.mxu1 %v7471_v53  ;;  %v7521_v53 = vld [vmem:[%s9365_s1 + $0xc70] sm:$0xff]  }
 0x16b   :  { %6910 = vmatprep.subr.bf16.mxu1 %v7473_v56  ;;  %v7522_v56 = vld [vmem:[%s9365_s1 + $0xcf0] sm:$0xff]  }
 0x16c   :  { %6889 = vmatpush3.bf16.msra.mxu0 %v7474_v54 }
 0x16d   :  { %6890 = vmatprep.subr.bf16.mxu0 %v7476_v58 }
 0x16e   :  { %6911 = vmatpush3.bf16.msra.mxu1 %v7475_v57  ;;  %v7523_v57 = vld [vmem:[%s9365_s1 + $0xc30] sm:$0xff]  }
 0x16f   :  { %6912 = vmatprep.subr.bf16.mxu1 %v7477_v59 }
 0x170   :  { %6891 = vmatpush3.bf16.msra.mxu0 %v7478_v60 }
 0x171   :  { %6892 = vmatprep.subr.bf16.mxu0 %v7480_v62  ;;  %v7525_v62 = vld [vmem:[%s9365_s1 + $0xc78] sm:$0xff]  }
 0x172   :  { %6913 = vmatpush3.bf16.msra.mxu1 %v7479_v61  ;;  %v7524_v61 = vld [vmem:[%s9365_s1 + $0xcb0] sm:$0xff]  }
 0x173   :  { %6914 = vmatprep.subr.bf16.mxu1 %v7481_v63  ;;  %v22_v63 = vld [vmem:[%s9364_s0 + $0x30] sm:$0xff] }
 0x174   :  { %6893 = vmatpush3.bf16.msra.mxu0 %v7482_v0 }
 0x175   :  { %6894 = vmatprep.subr.bf16.mxu0 %v7484_v2  ;;  %v1357_v2 = vrot.slane %v22_v63, %v7780_v41 }
 0x176   :  { %6915 = vmatpush3.bf16.msra.mxu1 %v7483_v1  ;;  %v6592_v7 = vpop.f32.mrb[16].mxu0 }
 0x177   :  { %v6593_v9 = vpop.f32.mrb[17].mxu0  ;;  %6916 = vmatprep.subr.bf16.mxu1 %v7485_v3  ;;  %v1350_v3 = vcombine.high %v22_v63, %v22_v63  ;;  %v7559_v63 = vld [vmem:[%s9365_s1 + $0xd38] sm:$0xff]  }
 0x178   :  { %v6614_v11 = vpop.f32.mrb[16].mxu1  ;;  %v6594_v12 = vadd.f32 %v6593_v9, %v6592_v7  ;;  %v6595_v13 = vpop.f32.mrb[18].mxu0  ;;  %6895 = vmatpush3.bf16.msra.mxu0 %v7486_v4  ;;  %v7526_v7 = vld [vmem:[%s9365_s1 + $0xcf8] sm:$0xff]  }
 0x179   :  { %v6615_v16 = vpop.f32.mrb[17].mxu1  ;;  %v6596_v17 = vpop.f32.mrb[19].mxu0  ;;  %6896 = vmatprep.subr.bf16.mxu0 %v7488_v6  ;;  %v7527_v9 = vld [vmem:[%s9365_s1 + $0xc38] sm:$0xff]  }
 0x17a   :  { %v4939_v18 = vadd.f32 %v6594_v12, %v8816_v36  ;;  %v6616_v19 = vadd.f32 %v6615_v16, %v6614_v11  ;;  %v6617_v20 = vpop.f32.mrb[18].mxu1  ;;  %6917 = vmatpush3.bf16.msra.mxu1 %v7487_v5  ;;  %v7505_v36 = vld [vmem:[%s9365_s1 + $0xc50] sm:$0xff]   ;;  %v9026_v11 = vrot.slane %v1350_v3, %v7780_v41  ;;  %v7528_v13 = vld [vmem:[%s9365_s1 + $0xcb8] sm:$0xff]   ;;  %v7529_v16 = vld [vmem:[%s9365_s1 + $0xd40] sm:$0xff]  }
 0x17b   :  { %v6618_v22 = vpop.f32.mrb[19].mxu1  ;;  %6918 = vmatprep.subr.bf16.mxu1 %v7489_v8  ;;  %v7531_v20 = vld [vmem:[%s9365_s1 + $0xd00] sm:$0xff]  }
 0x17c   :  { %v8920_v24 = vadd.f32 %v6616_v19, %v4939_v18  ;;  %6897 = vmatpush3.bf16.msra.mxu0 %v7490_v10  ;;  %v1365_v10 = vcombine.high %v1357_v2, %v1357_v2  ;;  %v1366_v17 = vcombine.high %v9026_v11, %v9026_v11  ;;  %v7530_v18 = vld [vmem:[%s9365_s1 + $0xdc0] sm:$0xff]  }
 0x17d   :  { %6898 = vmatprep.subr.bf16.mxu0 %v7492_v15  ;;  %v1373_v15 = vrot.slane %v1357_v2, %v7780_v41  ;;  %v7532_v22 = vld [vmem:[%s9365_s1 + $0xd80] sm:$0xff]   ;;  %v1380_v2 = vrot.slane %v9026_v11, %v7780_v41  ;;  %v7569_v11 = vld [vmem:[%s9365_s1 + $0xe88] sm:$0xff]  }
 0x17e   :  { %6919 = vmatpush3.bf16.msra.mxu1 %v7491_v14  ;;  %v1387_v14 = vrot.slane %v1365_v10, %v7780_v41  ;;  %v7562_v3 = vld [vmem:[%s9365_s1 + $0xe40] sm:$0xff]   ;;  %v7568_v10 = vld [vmem:[%s9365_s1 + $0xe08] sm:$0xff]  }
 0x17f   :  { %6920 = vmatprep.subr.bf16.mxu1 %v7493_v21  ;;  %v1394_v21 = vrot.slane %v1366_v17, %v7780_v41  ;;  %v7575_v17 = vld [vmem:[%s9365_s1 + $0xed8] sm:$0xff]  }
 0x180   :  { %6899 = vmatpush3.bf16.msra.mxu0 %v7494_v23  ;;  %v1397_v19 = vcombine.high %v1387_v14, %v1387_v14  ;;  %v1395_v23 = vcombine.high %v1373_v15, %v1373_v15 }
 0x181   :  { %6928 = vmatprep.subr.bf16.mxu0 %v7497_v27  ;;  %v7535_v27 = vld [vmem:[%s9365_s1 + $0xd08] sm:$0xff]  }
 0x182   :  { %6921 = vmatpush3.bf16.msra.mxu1 %v7495_v25  ;;  %v7534_v25 = vld [vmem:[%s9365_s1 + $0xdc8] sm:$0xff]  }
 0x183   :  { %5497 = vmatmul.mubr.bf16.vlgmr.msra.gmra.mrb[44].mxu0 %v1331_v26  ;;  %6950 = vmatprep.subr.bf16.mxu1 %v7498_v28  ;;  %v1398_v26 = vcombine.high %v1394_v21, %v1394_v21  ;;  %v7536_v28 = vld [vmem:[%s9365_s1 + $0xd88] sm:$0xff]  }
 0x184   :  { %6929 = vmatpush3.bf16.msra.mxu0 %v7499_v29  ;;  %5576 = vmatprep.mubr.bf16.mxu0 %v1387_v14  ;;  %v7537_v29 = vld [vmem:[%s9365_s1 + $0xd50] sm:$0xff]  }
 0x185   :  { %5537 = vmatmul.mubr.bf16.vlgmr.msra.gmra.mrb[44].mxu1 %v1347_v31  ;;  %6930 = vmatprep.subr.bf16.mxu0 %v7501_v32  ;;  %v7539_v31 = vld [vmem:[%s9365_s1 + $0xd10] sm:$0xff]  }
 0x186   :  { %6951 = vmatpush3.bf16.msra.mxu1 %v7500_v30  ;;  %5616 = vmatprep.mubr.bf16.mxu1 %v1397_v19  ;;  %v7538_v30 = vld [vmem:[%s9365_s1 + $0xdd0] sm:$0xff]   ;;  %v7577_v19 = vld [vmem:[%s9365_s1 + $0xe98] sm:$0xff]  }
 0x187   :  { %6952 = vmatprep.subr.bf16.mxu1 %v7502_v33  ;;  %v7540_v32 = vld [vmem:[%s9365_s1 + $0xd90] sm:$0xff]   ;;  %v7541_v33 = vld [vmem:[%s9365_s1 + $0xd58] sm:$0xff]  }
 0x188   :  { %6931 = vmatpush3.bf16.msra.mxu0 %v7503_v34  ;;  %v7542_v34 = vld [vmem:[%s9365_s1 + $0xdd8] sm:$0xff]   ;;  %v7572_v14 = vld [vmem:[%s9365_s1 + $0xe10] sm:$0xff]  }
 0x189   :  { %6932 = vmatprep.subr.bf16.mxu0 %v7505_v36  ;;  %v7544_v36 = vld [vmem:[%s9365_s1 + $0xd98] sm:$0xff]  }
 0x18a   :  { %6953 = vmatpush3.bf16.msra.mxu1 %v7504_v35  ;;  %v7543_v35 = vld [vmem:[%s9365_s1 + $0xd18] sm:$0xff]  }
 0x18b   :  { %6954 = vmatprep.subr.bf16.mxu1 %v7506_v37  ;;  %v7545_v37 = vld [vmem:[%s9365_s1 + $0xd60] sm:$0xff]  }
 0x18c   :  { %6933 = vmatpush3.bf16.msra.mxu0 %v7507_v38  ;;  %v7546_v38 = vld [vmem:[%s9365_s1 + $0xde0] sm:$0xff]  }
 0x18d   :  { %6934 = vmatprep.subr.bf16.mxu0 %v7509_v40  ;;  %v7548_v40 = vld [vmem:[%s9365_s1 + $0xda0] sm:$0xff]  }
 0x18e   :  { %6955 = vmatpush3.bf16.msra.mxu1 %v7508_v39  ;;  %v7547_v39 = vld [vmem:[%s9365_s1 + $0xd20] sm:$0xff]  }
 0x18f   :  { %6956 = vmatprep.subr.bf16.mxu1 %v7510_v42  ;;  %v7549_v42 = vld [vmem:[%s9365_s1 + $0xd68] sm:$0xff]  }
 0x190   :  { %6935 = vmatpush3.bf16.msra.mxu0 %v7511_v43  ;;  %v7550_v43 = vld [vmem:[%s9365_s1 + $0xde8] sm:$0xff]  }
 0x191   :  { %6936 = vmatprep.subr.bf16.mxu0 %v7513_v45  ;;  %v7552_v45 = vld [vmem:[%s9365_s1 + $0xda8] sm:$0xff]  }
 0x192   :  { %6957 = vmatpush3.bf16.msra.mxu1 %v7512_v44  ;;  %v7551_v44 = vld [vmem:[%s9365_s1 + $0xd28] sm:$0xff]  }
 0x193   :  { %6958 = vmatprep.subr.bf16.mxu1 %v7514_v46  ;;  %v7553_v46 = vld [vmem:[%s9365_s1 + $0xd70] sm:$0xff]  }
 0x194   :  { %6937 = vmatpush3.bf16.msra.mxu0 %v7515_v47 }
 0x195   :  { %6938 = vmatprep.subr.bf16.mxu0 %v7517_v49 }
 0x196   :  { %6959 = vmatpush3.bf16.msra.mxu1 %v7516_v48  ;;  %v6636_v55 = vpop.f32.mrb[20].mxu0  ;;  %v7554_v48 = vld [vmem:[%s9365_s1 + $0xdf0] sm:$0xff]  }
 0x197   :  { %v6637_v54 = vpop.f32.mrb[21].mxu0  ;;  %6960 = vmatprep.subr.bf16.mxu1 %v7518_v50  ;;  %v7555_v50 = vld [vmem:[%s9365_s1 + $0xd30] sm:$0xff]  }
 0x198   :  { %v6658_v58 = vpop.f32.mrb[20].mxu1  ;;  %v6638_v59 = vadd.f32 %v6637_v54, %v6636_v55  ;;  %v6639_v60 = vpop.f32.mrb[22].mxu0  ;;  %6939 = vmatpush3.bf16.msra.mxu0 %v7519_v51  ;;  %v7556_v55 = vld [vmem:[%s9365_s1 + $0xdb0] sm:$0xff]  }
 0x199   :  { %v6659_v0 = vpop.f32.mrb[21].mxu1  ;;  %v6640_v1 = vpop.f32.mrb[23].mxu0  ;;  %6940 = vmatprep.subr.bf16.mxu0 %v7521_v53 }
 0x19a   :  { %v5019_v4 = vadd.f32 %v6638_v59, %v8920_v24  ;;  %v6660_v5 = vadd.f32 %v6659_v0, %v6658_v58  ;;  %v6661_v6 = vpop.f32.mrb[22].mxu1  ;;  %6961 = vmatpush3.bf16.msra.mxu1 %v7520_v52  ;;  %v7533_v24 = vld [vmem:[%s9365_s1 + $0xd48] sm:$0xff]   ;;  %v7560_v1 = vld [vmem:[%s9365_s1 + $0xdb8] sm:$0xff]  }
 0x19b   :  { %v6662_v8 = vpop.f32.mrb[23].mxu1  ;;  %6962 = vmatprep.subr.bf16.mxu1 %v7522_v56  ;;  %v7557_v56 = vld [vmem:[%s9365_s1 + $0xd78] sm:$0xff]   ;;  %v7565_v6 = vld [vmem:[%s9365_s1 + $0xe80] sm:$0xff]  }
 0x19c   :  { %v9028_v12 = vadd.f32 %v6660_v5, %v5019_v4  ;;  %6941 = vmatpush3.bf16.msra.mxu0 %v7523_v57  ;;  %v7563_v4 = vld [vmem:[%s9365_s1 + $0xec0] sm:$0xff]   ;;  %v7566_v8 = vld [vmem:[%s9365_s1 + $0xe48] sm:$0xff]  }
 0x19d   :  { %6942 = vmatprep.subr.bf16.mxu0 %v7525_v62  ;;  %v7564_v5 = vld [vmem:[%s9365_s1 + $0xe00] sm:$0xff]  }
 0x19e   :  { %6963 = vmatpush3.bf16.msra.mxu1 %v7524_v61  ;;  %v7558_v61 = vld [vmem:[%s9365_s1 + $0xdf8] sm:$0xff]  }
 0x19f   :  { %6964 = vmatprep.subr.bf16.mxu1 %v7526_v7  ;;  %v1396_v7 = vcombine.high %v1380_v2, %v1380_v2 }
 0x1a0   :  { %6943 = vmatpush3.bf16.msra.mxu0 %v7527_v9  ;;  %v7567_v9 = vld [vmem:[%s9365_s1 + $0xec8] sm:$0xff]  }
 0x1a1   :  { %6972 = vmatprep.subr.bf16.mxu0 %v7529_v16  ;;  %v7574_v16 = vld [vmem:[%s9365_s1 + $0xe58] sm:$0xff]  }
 0x1a2   :  { %6965 = vmatpush3.bf16.msra.mxu1 %v7528_v13  ;;  %v7571_v13 = vld [vmem:[%s9365_s1 + $0xed0] sm:$0xff]  }
 0x1a3   :  { %5577 = vmatmul.mubr.bf16.vlgmr.msra.gmra.mrb[48].mxu0 %v1373_v15  ;;  %6994 = vmatprep.subr.bf16.mxu1 %v7530_v18  ;;  %v7573_v15 = vld [vmem:[%s9365_s1 + $0xe90] sm:$0xff]   ;;  %v7576_v18 = vld [vmem:[%s9365_s1 + $0xe18] sm:$0xff]  }
 0x1a4   :  { %6973 = vmatpush3.bf16.msra.mxu0 %v7531_v20  ;;  %5656 = vmatprep.mubr.bf16.mxu0 %v1394_v21  ;;  %v7578_v20 = vld [vmem:[%s9365_s1 + $0xe60] sm:$0xff]  }
 0x1a5   :  { %5617 = vmatmul.mubr.bf16.vlgmr.msra.gmra.mrb[48].mxu1 %v1395_v23  ;;  %6974 = vmatprep.subr.bf16.mxu0 %v7533_v24  ;;  %v7579_v21 = vld [vmem:[%s9365_s1 + $0xee0] sm:$0xff]   ;;  %v7582_v24 = vld [vmem:[%s9365_s1 + $0xe68] sm:$0xff]  }
 0x1a6   :  { %6995 = vmatpush3.bf16.msra.mxu1 %v7532_v22  ;;  %5696 = vmatprep.mubr.bf16.mxu1 %v1398_v26  ;;  %v7580_v22 = vld [vmem:[%s9365_s1 + $0xe20] sm:$0xff]   ;;  %v7584_v26 = vld [vmem:[%s9365_s1 + $0xe28] sm:$0xff]  }
 0x1a7   :  { %6996 = vmatprep.subr.bf16.mxu1 %v7534_v25  ;;  %v7581_v23 = vld [vmem:[%s9365_s1 + $0xea0] sm:$0xff]   ;;  %v7583_v25 = vld [vmem:[%s9365_s1 + $0xee8] sm:$0xff]  }
 0x1a8   :  { %6975 = vmatpush3.bf16.msra.mxu0 %v7535_v27  ;;  %v7585_v27 = vld [vmem:[%s9365_s1 + $0xea8] sm:$0xff]  }
 0x1a9   :  { %6976 = vmatprep.subr.bf16.mxu0 %v7537_v29 }
 0x1aa   :  { %6997 = vmatpush3.bf16.msra.mxu1 %v7536_v28  ;;  %v7586_v28 = vld [vmem:[%s9365_s1 + $0xe70] sm:$0xff]  }
 0x1ab   :  { %6998 = vmatprep.subr.bf16.mxu1 %v7538_v30  ;;  %v7587_v30 = vld [vmem:[%s9365_s1 + $0xef0] sm:$0xff]  }
 0x1ac   :  { %6977 = vmatpush3.bf16.msra.mxu0 %v7539_v31 }
 0x1ad   :  { %6978 = vmatprep.subr.bf16.mxu0 %v7541_v33 }
 0x1ae   :  { %6999 = vmatpush3.bf16.msra.mxu1 %v7540_v32  ;;  %v7588_v32 = vld [vmem:[%s9365_s1 + $0xe30] sm:$0xff]  }
 0x1af   :  { %7000 = vmatprep.subr.bf16.mxu1 %v7542_v34 }
 0x1b0   :  { %6979 = vmatpush3.bf16.msra.mxu0 %v7543_v35 }
 0x1b1   :  { %6980 = vmatprep.subr.bf16.mxu0 %v7545_v37  ;;  %v7590_v37 = vld [vmem:[%s9365_s1 + $0xe78] sm:$0xff]  }
 0x1b2   :  { %7001 = vmatpush3.bf16.msra.mxu1 %v7544_v36  ;;  %v7589_v36 = vld [vmem:[%s9365_s1 + $0xeb0] sm:$0xff]  }
 0x1b3   :  { %7002 = vmatprep.subr.bf16.mxu1 %v7546_v38 }
 0x1b4   :  { %6981 = vmatpush3.bf16.msra.mxu0 %v7547_v39 }
 0x1b5   :  { %6982 = vmatprep.subr.bf16.mxu0 %v7549_v42 }
 0x1b6   :  { %7003 = vmatpush3.bf16.msra.mxu1 %v7548_v40  ;;  %v6680_v47 = vpop.f32.mrb[24].mxu0 }
 0x1b7   :  { %v6681_v49 = vpop.f32.mrb[25].mxu0  ;;  %7004 = vmatprep.subr.bf16.mxu1 %v7550_v43 }
 0x1b8   :  { %v6702_v51 = vpop.f32.mrb[24].mxu1  ;;  %v6682_v52 = vadd.f32 %v6681_v49, %v6680_v47  ;;  %v6683_v53 = vpop.f32.mrb[26].mxu0  ;;  %6983 = vmatpush3.bf16.msra.mxu0 %v7551_v44  ;;  %v23_v44 = vld [vmem:[%s9364_s0 + $0x38] sm:$0xff] }
 0x1b9   :  { %v6703_v54 = vpop.f32.mrb[25].mxu1  ;;  %v6684_v57 = vpop.f32.mrb[27].mxu0  ;;  %6984 = vmatprep.subr.bf16.mxu0 %v7553_v46  ;;  %v7591_v46 = vld [vmem:[%s9365_s1 + $0xef8] sm:$0xff]   ;;  %v1406_v47 = vrot.slane %v23_v44, %v7780_v41  ;;  %v7594_v53 = vld [vmem:[%s9365_s1 + $0xf40] sm:$0xff]  }
 0x1ba   :  { %v5099_v58 = vadd.f32 %v6682_v52, %v9028_v12  ;;  %v6704_v59 = vadd.f32 %v6703_v54, %v6702_v51  ;;  %v6705_v60 = vpop.f32.mrb[26].mxu1  ;;  %7005 = vmatpush3.bf16.msra.mxu1 %v7552_v45  ;;  %v7570_v12 = vld [vmem:[%s9365_s1 + $0xe50] sm:$0xff]   ;;  %v7595_v57 = vld [vmem:[%s9365_s1 + $0xfc0] sm:$0xff]  }
 0x1bb   :  { %v6706_v62 = vpop.f32.mrb[27].mxu1  ;;  %7006 = vmatprep.subr.bf16.mxu1 %v7554_v48  ;;  %v1399_v48 = vcombine.high %v23_v44, %v23_v44  ;;  %v1414_v51 = vcombine.high %v1406_v47, %v1406_v47  ;;  %v1422_v52 = vrot.slane %v1406_v47, %v7780_v41 }
 0x1bc   :  { %v9132_v0 = vadd.f32 %v6704_v59, %v5099_v58  ;;  %6985 = vmatpush3.bf16.msra.mxu0 %v7555_v50  ;;  %v7592_v50 = vld [vmem:[%s9365_s1 + $0xe38] sm:$0xff]   ;;  %v7596_v59 = vld [vmem:[%s9365_s1 + $0xf00] sm:$0xff]   ;;  %v7598_v62 = vld [vmem:[%s9365_s1 + $0xf48] sm:$0xff]  }
 0x1bd   :  { %6986 = vmatprep.subr.bf16.mxu0 %v7557_v56  ;;  %v7593_v56 = vld [vmem:[%s9365_s1 + $0xeb8] sm:$0xff]   ;;  %v1436_v54 = vrot.slane %v1414_v51, %v7780_v41 }
 0x1be   :  { %7007 = vmatpush3.bf16.msra.mxu1 %v7556_v55  ;;  %v9244_v55 = vrot.slane %v1399_v48, %v7780_v41 }
 0x1bf   :  { %7008 = vmatprep.subr.bf16.mxu1 %v7558_v61  ;;  %v1446_v60 = vcombine.high %v1436_v54, %v1436_v54  ;;  %v1444_v61 = vcombine.high %v1422_v52, %v1422_v52 }
 0x1c0   :  { %6987 = vmatpush3.bf16.msra.mxu0 %v7559_v63  ;;  %v1415_v58 = vcombine.high %v9244_v55, %v9244_v55 }
 0x1c1   :  { %7016 = vmatprep.subr.bf16.mxu0 %v7562_v3  ;;  %v7600_v3 = vld [vmem:[%s9365_s1 + $0xf08] sm:$0xff]  }
 0x1c2   :  { %7009 = vmatpush3.bf16.msra.mxu1 %v7560_v1  ;;  %v1443_v63 = vrot.slane %v1415_v58, %v7780_v41  ;;  %v7599_v1 = vld [vmem:[%s9365_s1 + $0xfc8] sm:$0xff]  }
 0x1c3   :  { %5657 = vmatmul.mubr.bf16.vlgmr.msra.gmra.mrb[52].mxu0 %v1380_v2  ;;  %7038 = vmatprep.subr.bf16.mxu1 %v7563_v4  ;;  %v7602_v4 = vld [vmem:[%s9365_s1 + $0xf50] sm:$0xff]  }
 0x1c4   :  { %7017 = vmatpush3.bf16.msra.mxu0 %v7564_v5  ;;  %5736 = vmatprep.mubr.bf16.mxu0 %v1436_v54  ;;  %v1447_v2 = vcombine.high %v1443_v63, %v1443_v63  ;;  %v7601_v5 = vld [vmem:[%s9365_s1 + $0xf88] sm:$0xff]  }
 0x1c5   :  { %5697 = vmatmul.mubr.bf16.vlgmr.msra.gmra.mrb[52].mxu1 %v1396_v7  ;;  %7018 = vmatprep.subr.bf16.mxu0 %v7566_v8  ;;  %v7604_v7 = vld [vmem:[%s9365_s1 + $0xf10] sm:$0xff]   ;;  %v7606_v8 = vld [vmem:[%s9365_s1 + $0xf58] sm:$0xff]  }
 0x1c6   :  { %7039 = vmatpush3.bf16.msra.mxu1 %v7565_v6  ;;  %5776 = vmatprep.mubr.bf16.mxu1 %v1446_v60  ;;  %v7603_v6 = vld [vmem:[%s9365_s1 + $0xfd0] sm:$0xff]  }
 0x1c7   :  { %7040 = vmatprep.subr.bf16.mxu1 %v7567_v9  ;;  %v7605_v9 = vld [vmem:[%s9365_s1 + $0xf90] sm:$0xff]  }
 0x1c8   :  { %7019 = vmatpush3.bf16.msra.mxu0 %v7568_v10  ;;  %v7607_v10 = vld [vmem:[%s9365_s1 + $0xfd8] sm:$0xff]  }
 0x1c9   :  { %7020 = vmatprep.subr.bf16.mxu0 %v7570_v12  ;;  %v7610_v12 = vld [vmem:[%s9365_s1 + $0xf60] sm:$0xff]  }
 0x1ca   :  { %7041 = vmatpush3.bf16.msra.mxu1 %v7569_v11  ;;  %v7608_v11 = vld [vmem:[%s9365_s1 + $0xf18] sm:$0xff]  }
 0x1cb   :  { %7042 = vmatprep.subr.bf16.mxu1 %v7571_v13  ;;  %v7609_v13 = vld [vmem:[%s9365_s1 + $0xf98] sm:$0xff]  }
 0x1cc   :  { %7021 = vmatpush3.bf16.msra.mxu0 %v7572_v14  ;;  %v7611_v14 = vld [vmem:[%s9365_s1 + $0xfe0] sm:$0xff]  }
 0x1cd   :  { %7022 = vmatprep.subr.bf16.mxu0 %v7574_v16  ;;  %v7614_v16 = vld [vmem:[%s9365_s1 + $0xf68] sm:$0xff]  }
 0x1ce   :  { %7043 = vmatpush3.bf16.msra.mxu1 %v7573_v15  ;;  %v7612_v15 = vld [vmem:[%s9365_s1 + $0xf20] sm:$0xff]  }
 0x1cf   :  { %7044 = vmatprep.subr.bf16.mxu1 %v7575_v17  ;;  %v7613_v17 = vld [vmem:[%s9365_s1 + $0xfa0] sm:$0xff]  }
 0x1d0   :  { %7023 = vmatpush3.bf16.msra.mxu0 %v7576_v18  ;;  %v7615_v18 = vld [vmem:[%s9365_s1 + $0xfe8] sm:$0xff]  }
 0x1d1   :  { %7024 = vmatprep.subr.bf16.mxu0 %v7578_v20  ;;  %v7618_v20 = vld [vmem:[%s9365_s1 + $0xf70] sm:$0xff]  }
 0x1d2   :  { %7045 = vmatpush3.bf16.msra.mxu1 %v7577_v19  ;;  %v7616_v19 = vld [vmem:[%s9365_s1 + $0xf28] sm:$0xff]  }
 0x1d3   :  { %7046 = vmatprep.subr.bf16.mxu1 %v7579_v21 }
 0x1d4   :  { %7025 = vmatpush3.bf16.msra.mxu0 %v7580_v22  ;;  %v7617_v22 = vld [vmem:[%s9365_s1 + $0xfa8] sm:$0xff]  }
 0x1d5   :  { %7026 = vmatprep.subr.bf16.mxu0 %v7582_v24  ;;  %v7619_v24 = vld [vmem:[%s9365_s1 + $0xff0] sm:$0xff]  }
 0x1d6   :  { %7047 = vmatpush3.bf16.msra.mxu1 %v7581_v23  ;;  %v6724_v29 = vpop.f32.mrb[28].mxu0 }
 0x1d7   :  { %v6725_v31 = vpop.f32.mrb[29].mxu0  ;;  %7048 = vmatprep.subr.bf16.mxu1 %v7583_v25 }
 0x1d8   :  { %v6746_v33 = vpop.f32.mrb[28].mxu1  ;;  %v6726_v34 = vadd.f32 %v6725_v31, %v6724_v29  ;;  %v6727_v35 = vpop.f32.mrb[30].mxu0  ;;  %7027 = vmatpush3.bf16.msra.mxu0 %v7584_v26  ;;  %v7622_v29 = vld [vmem:[%s9365_s1 + $0xf78] sm:$0xff]  }
 0x1d9   :  { %v6747_v38 = vpop.f32.mrb[29].mxu1  ;;  %v6728_v39 = vpop.f32.mrb[31].mxu0  ;;  %7028 = vmatprep.subr.bf16.mxu0 %v7586_v28  ;;  %v7620_v28 = vld [vmem:[%s9365_s1 + $0xf30] sm:$0xff]  }
 0x1da   :  { %v5179_v40 = vadd.f32 %v6726_v34, %v9132_v0  ;;  %v6748_v42 = vadd.f32 %v6747_v38, %v6746_v33  ;;  %v6749_v43 = vpop.f32.mrb[30].mxu1  ;;  %7049 = vmatpush3.bf16.msra.mxu1 %v7585_v27  ;;  %v7597_v0 = vld [vmem:[%s9365_s1 + $0xf80] sm:$0xff]   ;;  %v7621_v35 = vld [vmem:[%s9365_s1 + $0xfb0] sm:$0xff]  }
 0x1db   :  { %v6750_v45 = vpop.f32.mrb[31].mxu1  ;;  %7050 = vmatprep.subr.bf16.mxu1 %v7587_v30 }
 0x1dc   :  { %v9234_v49 = vadd.f32 %v6748_v42, %v5179_v40  ;;  %7029 = vmatpush3.bf16.msra.mxu0 %v7588_v32 }
 0x1dd   :  { %7030 = vmatprep.subr.bf16.mxu0 %v7590_v37 }
 0x1de   :  { %7051 = vmatpush3.bf16.msra.mxu1 %v7589_v36 }
 0x1df   :  { %7052 = vmatprep.subr.bf16.mxu1 %v7591_v46 }
 0x1e0   :  { %7031 = vmatpush3.bf16.msra.mxu0 %v7592_v50 }
 0x1e1   :  { %7060 = vmatprep.subr.bf16.mxu0 %v7594_v53 }
 0x1e2   :  { %7053 = vmatpush3.bf16.msra.mxu1 %v7593_v56 }
 0x1e3   :  { %5737 = vmatmul.mubr.bf16.vlgmr.msra.gmra.mrb[56].mxu0 %v1422_v52  ;;  %7082 = vmatprep.subr.bf16.mxu1 %v7595_v57 }
 0x1e4   :  { %7061 = vmatpush3.bf16.msra.mxu0 %v7596_v59  ;;  %5816 = vmatprep.mubr.bf16.mxu0 %v1443_v63 }
 0x1e5   :  { %5777 = vmatmul.mubr.bf16.vlgmr.msra.gmra.mrb[56].mxu1 %v1444_v61  ;;  %7062 = vmatprep.subr.bf16.mxu0 %v7598_v62 }
 0x1e6   :  { %7083 = vmatpush3.bf16.msra.mxu1 %v7597_v0  ;;  %5856 = vmatprep.mubr.bf16.mxu1 %v1447_v2 }
 0x1e7   :  { %7084 = vmatprep.subr.bf16.mxu1 %v7599_v1 }
 0x1e8   :  { %7063 = vmatpush3.bf16.msra.mxu0 %v7600_v3 }
 0x1e9   :  { %7064 = vmatprep.subr.bf16.mxu0 %v7602_v4 }
 0x1ea   :  { %7085 = vmatpush3.bf16.msra.mxu1 %v7601_v5 }
 0x1eb   :  { %7086 = vmatprep.subr.bf16.mxu1 %v7603_v6 }
 0x1ec   :  { %7065 = vmatpush3.bf16.msra.mxu0 %v7604_v7 }
 0x1ed   :  { %7066 = vmatprep.subr.bf16.mxu0 %v7606_v8 }
 0x1ee   :  { %7087 = vmatpush3.bf16.msra.mxu1 %v7605_v9 }
 0x1ef   :  { %7088 = vmatprep.subr.bf16.mxu1 %v7607_v10 }
 0x1f0   :  { %7067 = vmatpush3.bf16.msra.mxu0 %v7608_v11 }
 0x1f1   :  { %7068 = vmatprep.subr.bf16.mxu0 %v7610_v12 }
 0x1f2   :  { %7089 = vmatpush3.bf16.msra.mxu1 %v7609_v13 }
 0x1f3   :  { %7090 = vmatprep.subr.bf16.mxu1 %v7611_v14 }
 0x1f4   :  { %7069 = vmatpush3.bf16.msra.mxu0 %v7612_v15 }
 0x1f5   :  { %7070 = vmatprep.subr.bf16.mxu0 %v7614_v16 }
 0x1f6   :  { %7091 = vmatpush3.bf16.msra.mxu1 %v7613_v17  ;;  %v6768_v21 = vpop.f32.mrb[32].mxu0 }
 0x1f7   :  { %v6769_v23 = vpop.f32.mrb[33].mxu0  ;;  %7092 = vmatprep.subr.bf16.mxu1 %v7615_v18 }
 0x1f8   :  { %v6790_v25 = vpop.f32.mrb[32].mxu1  ;;  %v6770_v26 = vadd.f32 %v6769_v23, %v6768_v21  ;;  %v6771_v27 = vpop.f32.mrb[34].mxu0  ;;  %7071 = vmatpush3.bf16.msra.mxu0 %v7616_v19 }
 0x1f9   :  { %v6791_v30 = vpop.f32.mrb[33].mxu1  ;;  %v6772_v31 = vpop.f32.mrb[35].mxu0  ;;  %7072 = vmatprep.subr.bf16.mxu0 %v7618_v20 }
 0x1fa   :  { %v5259_v32 = vadd.f32 %v6770_v26, %v9234_v49  ;;  %v6792_v33 = vadd.f32 %v6791_v30, %v6790_v25  ;;  %v6793_v34 = vpop.f32.mrb[34].mxu1  ;;  %7093 = vmatpush3.bf16.msra.mxu1 %v7617_v22 }
 0x1fb   :  { %8 = vsyncpa [#allocation3], 0  ;;  %v6794_v36 = vpop.f32.mrb[35].mxu1  ;;  %7094 = vmatprep.subr.bf16.mxu1 %v7619_v24  ;;  %v7623_v37 = vld [vmem:[%s9365_s1 + $0xff8] sm:$0xff]   ;;  %v1429_v40 = vrot.slane %v9244_v55, %v7780_v41  ;;  %s7654_s24 = smov [#allocation2]  }
 0x1fc   :  { %v5299_v38 = vadd.f32 %v6792_v33, %v5259_v32  ;;  %7073 = vmatpush3.bf16.msra.mxu0 %v7620_v28  ;;  %v7624_v39 = vld [vmem:[%s9365_s1 + $0xf38] sm:$0xff]   ;;  %s5879_s25 = sshll.u32 %s7654_s24, 4  ;;  %s5880_s25 = int_to_ptr.vmem [resolvable:$true] %s5879_s25 }
 0x1fd   :  { %7074 = vmatprep.subr.bf16.mxu0 %v7622_v29  ;;  %v7625_v42 = vld [vmem:[%s9365_s1 + $0xfb8] sm:$0xff]   ;;  %v1445_v43 = vcombine.high %v1429_v40, %v1429_v40  ;;  %s7629_s26 = scalar_lea.vmem %s5880_s25, 32  ;;  %p7634_p1 = scmp.lt.s32.totalorder %s5880_s25, %s5880_s25 }
 0x1fe   :  { %7095 = vmatpush3.bf16.msra.mxu1 %v7621_v35  ;;  %p7630_p0 = scmp.ne.s32.totalorder %s5880_s25, %s7629_s26  ;;  %p7635_p2 = scmp.lt.s32.totalorder %s7629_s26, %s7629_s26 }
 0x1ff   :  { %7096 = vmatprep.subr.bf16.mxu1 %v7623_v37 }
 0x200   :  { %7075 = vmatpush3.bf16.msra.mxu0 %v7624_v39  ;;  %p7636_p3 = por %p7635_p2, %p7634_p1 }
 0x202   :  { %7097 = vmatpush3.bf16.msra.mxu1 %v7625_v42  ;;  %p7637_p4 = pnand %p7636_p3, %p7630_p0 }
 0x203   :  { %5817 = vmatmul.mubr.bf16.vlgmr.msra.gmra.mrb[60].mxu0 %v1429_v40 }
 0x205   :  { %5857 = vmatmul.mubr.bf16.vlgmr.msra.gmra.mrb[60].mxu1 %v1445_v43 }
 0x216   :  { %v6812_v44 = vpop.f32.mrb[36].mxu0 }
 0x217   :  { %v6813_v45 = vpop.f32.mrb[37].mxu0 }
 0x218   :  { %v6834_v46 = vpop.f32.mrb[36].mxu1  ;;  %v6814_v47 = vadd.f32 %v6813_v45, %v6812_v44  ;;  %v6815_v48 = vpop.f32.mrb[38].mxu0 }
 0x219   :  { %v6835_v49 = vpop.f32.mrb[37].mxu1  ;;  %v6816_v50 = vpop.f32.mrb[39].mxu0 }
 0x21a   :  { %v5339_v51 = vadd.f32 %v6814_v47, %v5299_v38  ;;  %v6836_v41 = vadd.f32 %v6835_v49, %v6834_v46  ;;  %v6837_v52 = vpop.f32.mrb[38].mxu1 }
 0x21b   :  { %v6838_v53 = vpop.f32.mrb[39].mxu1 }
 0x21c   :  { %v5379_v55 = vadd.f32 %v6836_v41, %v5339_v51 }
 0x236   :  { %v6856_v56 = vpop.f32.mrb[40].mxu0 }
 0x237   :  { %v6857_v54 = vpop.f32.mrb[41].mxu0 }
 0x238   :  { %v6878_v57 = vpop.f32.mrb[40].mxu1  ;;  %v6858_v58 = vadd.f32 %v6857_v54, %v6856_v56  ;;  %v6859_v59 = vpop.f32.mrb[42].mxu0 }
 0x239   :  { %v6879_v60 = vpop.f32.mrb[41].mxu1  ;;  %v6860_v61 = vpop.f32.mrb[43].mxu0 }
 0x23a   :  { %v5419_v62 = vadd.f32 %v6858_v58, %v5379_v55  ;;  %v6880_v63 = vadd.f32 %v6879_v60, %v6878_v57  ;;  %v6881_v0 = vpop.f32.mrb[42].mxu1 }
 0x23b   :  { %v6882_v1 = vpop.f32.mrb[43].mxu1 }
 0x23c   :  { %v5459_v2 = vadd.f32 %v6880_v63, %v5419_v62  ;;  %v5865_v63 = vld [vmem:[%s9366_s2] sm:$0x3] }
 0x256   :  { %v6900_v3 = vpop.f32.mrb[44].mxu0 }
 0x257   :  { %v6901_v4 = vpop.f32.mrb[45].mxu0 }
 0x258   :  { %v6922_v5 = vpop.f32.mrb[44].mxu1  ;;  %v6902_v6 = vadd.f32 %v6901_v4, %v6900_v3  ;;  %v6903_v7 = vpop.f32.mrb[46].mxu0 }
 0x259   :  { %v6923_v8 = vpop.f32.mrb[45].mxu1  ;;  %v6904_v9 = vpop.f32.mrb[47].mxu0 }
 0x25a   :  { %v5499_v10 = vadd.f32 %v6902_v6, %v5459_v2  ;;  %v6924_v11 = vadd.f32 %v6923_v8, %v6922_v5  ;;  %v6925_v12 = vpop.f32.mrb[46].mxu1 }
 0x25b   :  { %v6926_v13 = vpop.f32.mrb[47].mxu1 }
 0x25c   :  { %v5539_v14 = vadd.f32 %v6924_v11, %v5499_v10 }
 0x276   :  { %v6944_v15 = vpop.f32.mrb[48].mxu0 }
 0x277   :  { %v6945_v16 = vpop.f32.mrb[49].mxu0 }
 0x278   :  { %v6966_v17 = vpop.f32.mrb[48].mxu1  ;;  %v6946_v18 = vadd.f32 %v6945_v16, %v6944_v15  ;;  %v6947_v19 = vpop.f32.mrb[50].mxu0 }
 0x279   :  { %v6967_v20 = vpop.f32.mrb[49].mxu1  ;;  %v6948_v21 = vpop.f32.mrb[51].mxu0 }
 0x27a   :  { %v5579_v22 = vadd.f32 %v6946_v18, %v5539_v14  ;;  %v6968_v23 = vadd.f32 %v6967_v20, %v6966_v17  ;;  %v6969_v24 = vpop.f32.mrb[50].mxu1 }
 0x27b   :  { %v6970_v25 = vpop.f32.mrb[51].mxu1 }
 0x27c   :  { %v5619_v26 = vadd.f32 %v6968_v23, %v5579_v22 }
 0x296   :  { %v6988_v27 = vpop.f32.mrb[52].mxu0 }
 0x297   :  { %v6989_v28 = vpop.f32.mrb[53].mxu0 }
 0x298   :  { %v7010_v29 = vpop.f32.mrb[52].mxu1  ;;  %v6990_v30 = vadd.f32 %v6989_v28, %v6988_v27  ;;  %v6991_v31 = vpop.f32.mrb[54].mxu0 }
 0x299   :  { %v7011_v32 = vpop.f32.mrb[53].mxu1  ;;  %v6992_v33 = vpop.f32.mrb[55].mxu0 }
 0x29a   :  { %v5659_v34 = vadd.f32 %v6990_v30, %v5619_v26  ;;  %v7012_v35 = vadd.f32 %v7011_v32, %v7010_v29  ;;  %v7013_v36 = vpop.f32.mrb[54].mxu1 }
 0x29b   :  { %v7014_v37 = vpop.f32.mrb[55].mxu1 }
 0x29c   :  { %v5699_v38 = vadd.f32 %v7012_v35, %v5659_v34 }
 0x2b6   :  { %v7032_v39 = vpop.f32.mrb[56].mxu0 }
 0x2b7   :  { %v7033_v40 = vpop.f32.mrb[57].mxu0 }
 0x2b8   :  { %v7054_v42 = vpop.f32.mrb[56].mxu1  ;;  %v7034_v43 = vadd.f32 %v7033_v40, %v7032_v39  ;;  %v7035_v44 = vpop.f32.mrb[58].mxu0 }
 0x2b9   :  { %v7055_v45 = vpop.f32.mrb[57].mxu1  ;;  %v7036_v46 = vpop.f32.mrb[59].mxu0 }
 0x2ba   :  { %v5739_v47 = vadd.f32 %v7034_v43, %v5699_v38  ;;  %v7056_v48 = vadd.f32 %v7055_v45, %v7054_v42  ;;  %v7057_v49 = vpop.f32.mrb[58].mxu1 }
 0x2bb   :  { %v7058_v50 = vpop.f32.mrb[59].mxu1 }
 0x2bc   :  { %v5779_v51 = vadd.f32 %v7056_v48, %v5739_v47 }
 0x2d6   :  { %v7076_v41 = vpop.f32.mrb[60].mxu0 }
 0x2d7   :  { %v7077_v52 = vpop.f32.mrb[61].mxu0 }
 0x2d8   :  { %v7098_v53 = vpop.f32.mrb[60].mxu1  ;;  %v7078_v55 = vadd.f32 %v7077_v52, %v7076_v41  ;;  %v7079_v56 = vpop.f32.mrb[62].mxu0 }
 0x2d9   :  { %v7099_v54 = vpop.f32.mrb[61].mxu1  ;;  %v7080_v57 = vpop.f32.mrb[63].mxu0 }
 0x2da   :  { %v5819_v58 = vadd.f32 %v7078_v55, %v5779_v51  ;;  %v7100_v59 = vadd.f32 %v7099_v54, %v7098_v53  ;;  %v7101_v60 = vpop.f32.mrb[62].mxu1 }
 0x2db   :  { %v7102_v61 = vpop.f32.mrb[63].mxu1 }
 0x2dc   :  { %v5859_v62 = vadd.f32 %v7100_v59, %v5819_v58 }
 0x2de   :  { %7627 = vtanh.f32 %v5859_v62 }
 0x2e8   :  { %v7628_v0 = vpop.eup %7627 }
 0x2e9   :  { %v5866_v1 = vadd.f32 %v7628_v0, %v5865_v63 }
 0x2eb   :  { %v6399_v2 = vadd.f32 2.0, %v5866_v1 }
 0x2ed   :  { %v7104_v3 = vround.rtne.f32 %v6399_v2 }
 0x2ef   :  { %v5869_v4 = vmax.f32 %v7104_v3, 0.0 }
 0x2f1   :  { %v5870_v5 = vmin.f32 %v5869_v4, 4.0 }
 0x2f3   :  { %v5871_v6 = vadd.f32 -2.0, %v5870_v5 }
 0x2f5   :  { %5872 = vst [vmem:[#allocation2] sm:$0x3] %v5871_v6 }
 0x2f6   :  { %7640 = shalt.err (!%p7637_p4)
}
 0x2f7   :  { %s7641_s28 = scalar_lea.hbm %s9367_s3, 32 }
 0x2f8   :  { %p7642_p5 = scmp.ne.s32.totalorder %s9367_s3, %s7641_s28  ;;  %p7645_p6 = scmp.lt.u32.totalorder %s7641_s28, %s9367_s3 }
 0x2fa   :  { %p7647_p7 = pnand %p7645_p6, %p7642_p5 }
 0x2fc   :  { %7650 = shalt.err (!%p7647_p7)
}
 0x2fd   :  { %5882 = dma.vmem_to_hbm [thread:$0]  %s5880_s25, 32, %s9367_s3, [#allocation3]  }
 0x2fe   :  { %7651 = dma.done.wait [#allocation3], 32  }
 0x2ff   :  { %7652 = vsyncadd [#allocation3], 4294967264 }
 0x300   :  { %5886 = vsyncpa [#allocation3], 1 }

</bundles_post_ra>
